<compile_context>
chip_gen: v5e
topology: v5e:2x2
jax: 0.10.0
libtpu: 0.0.40
codegen_flags: <defaults>
</compile_context>

<pallas_src>
import jax
import jax.numpy as jnp
import numpy as np
from jax import lax
from jax.experimental import pallas as pl
from jax.experimental.pallas import tpu as pltpu

B = 2                      # batch
C_OUT = 32                 # conv output channels
H_IN = W_IN = 28
H_POOL = W_POOL = 13
POOL_HW = H_POOL * W_POOL  # 169 pooled positions per channel
FLAT = C_OUT * POOL_HW     # 5408
HID = 128

NG = 4                     # channel groups per sublane row (spread over lane chunks)
NR = C_OUT // NG           # 8 sublane rows -> channel c = 4*r + g
PADP = 192                 # 169 padded to 192 so each lane chunk is vreg aligned (192 -> no,
                           # but NG*192 = 768 = 6x128 = 3x256: aligned fc1 chunks / MXU K tile)
WIDE = NG * PADP           # 768 lanes
KPAD = NR * WIDE           # 6144 padded fc1 contraction size
N_PH = 4                   # 2x2 max-pool phases
N_TAP = 9                  # 3x3 conv taps


# ------------------------------------------------------------------
# Fused kernel, grid=(NR,):
#   r == 0      : conv3x3 + bias + ReLU + maxpool2x2 for both batch rows -> pooled_scr
#   every r     : hid_acc += (B, WIDE) x (WIDE, HID) bf16 MXU dot with w1 block r
#   r == NR - 1 : ReLU(hid_acc + b1), fc2 as a VPU lane reduction, write (B, 1) output
# ------------------------------------------------------------------
def fused_kernel(patches_ref, wconv_ref, biasw_ref, w1_ref, b1_ref, w2_ref, b2_ref,
                 out_ref, pooled_scr, hid_acc):
    # patches_ref: (B*36, 768) f32  row (b*4+ph)*9+k = tap k of pool-phase ph of batch b;
    #                               169 pooled positions zero-padded to 192 and replicated
    #                               across the 4 channel-group lane chunks.
    # wconv_ref:   (72, 768)  f32  row k*8+r = conv tap k for channels 4r..4r+3 (constant
    #                               across each 192-lane chunk).
    # biasw_ref:   (8, 768)   f32  conv bias in the same widened layout.
    # w1_ref:      (768, 128) bf16 fc1 weight block for chunk r (streamed per grid step).
    # b1_ref:(1,128) w2_ref:(1,128) b2_ref:(1,1) f32 ; out_ref:(B,1) f32
    # pooled_scr:  (B*NR, 768) f32 scratch ; hid_acc: (B, 128) f32 scratch
    r = pl.program_id(0)

    @pl.when(r == 0)
    def _conv_pool():
        hid_acc[...] = jnp.zeros_like(hid_acc)
        bias = biasw_ref[...]                                      # (NR, WIDE)
        for b in range(B):
            pooled = None
            for ph in range(N_PH):
                acc = jnp.zeros((NR, WIDE), jnp.float32)
                for k in range(N_TAP):
                    idx = (b * N_PH + ph) * N_TAP + k
                    wtap = wconv_ref[k * NR:(k + 1) * NR, :]       # (NR, WIDE)
                    ptap = patches_ref[idx:idx + 1, :]             # (1, WIDE), sublane bcast
                    acc = acc + wtap * ptap
                pooled = acc if pooled is None else jnp.maximum(pooled, acc)
            # per-channel bias + monotone ReLU commute with the 2x2 phase max
            pooled = jnp.maximum(pooled + bias, 0.0)               # (NR, WIDE)
            # padded lanes p>=169 hold relu(bias); the matching w1 rows are zero.
            pooled_scr[pl.ds(b * NR, NR), :] = pooled              # aligned (8, 768) store

    # ---- fc1 chunk r: one batched MXU dot per grid step, f32 accumulation in VMEM ----
    lhs = jnp.concatenate(
        [pooled_scr[pl.ds(b * NR + r, 1), :] for b in range(B)], axis=0)   # (B, WIDE)
    hid_acc[...] += jnp.dot(lhs.astype(jnp.bfloat16), w1_ref[...],
                            preferred_element_type=jnp.float32)

    @pl.when(r == NR - 1)
    def _finalize():
        hidden = jnp.maximum(hid_acc[...] + b1_ref[...], 0.0)              # (B, HID)
        # fc2 (128 -> 1) as a VPU lane reduction (avoids an N=1 MXU matmul)
        out_ref[...] = (jnp.sum(hidden * w2_ref[...], axis=-1, keepdims=True)
                        + b2_ref[...])


# ------------------------------------------------------------------
# One-time parameter preprocessing (outside jit): layout + bf16 cast
# ------------------------------------------------------------------
def prepare_params(conv_w, conv_b, fc1_w, fc1_b, fc2_w, fc2_b):
    # conv weights -> (72, 768): row k*8+r, lane g*192+p holds conv_w[4r+g, 0, k//3, k%3]
    w9 = conv_w.reshape(C_OUT, N_TAP)                                  # [c, k]
    wgrp = jnp.transpose(w9.reshape(NR, NG, N_TAP), (2, 0, 1))         # [k, r, g]
    wconv = jnp.repeat(wgrp, PADP, axis=2).reshape(N_TAP * NR, WIDE)   # (72, 768)
    biasw = jnp.repeat(conv_b.reshape(NR, NG), PADP, axis=1)           # (8, 768)

    # fc1 weight: transpose once, pad positions 169->192, flatten to (6144, 128) so that
    # row c*192 + p = r*768 + g*192 + p (c = 4r + g) matches pooled_scr's lane layout.
    w1t = fc1_w.T.reshape(C_OUT, POOL_HW, HID)                         # [c, p, h]
    w1pad = jnp.pad(w1t, ((0, 0), (0, PADP - POOL_HW), (0, 0)))        # (32, 192, 128)
    w1p = w1pad.reshape(KPAD, HID).astype(jnp.bfloat16)                # (6144, 128) bf16

    b1 = fc1_b.reshape(1, HID)
    w2 = fc2_w.reshape(1, HID)
    b2 = fc2_b.reshape(1, 1)
    return wconv, biasw, w1p, b1, w2, b2


# ------------------------------------------------------------------
# Per-call wrapper: tiny im2col-style phase/tap extraction + one pallas_call
# ------------------------------------------------------------------
def _build_patches(x):
    x2 = x[:, 0]                                           # (B, 28, 28)
    slices = []
    for pi in range(2):
        for pj in range(2):
            for di in range(3):
                for dj in range(3):
                    r0, c0 = pi + di, pj + dj
                    s = x2[:, r0:r0 + 2 * H_POOL:2, c0:c0 + 2 * W_POOL:2]  # (B, 13, 13)
                    slices.append(s.reshape(B, POOL_HW))
    p = jnp.stack(slices, axis=1)                          # (B, 36, 169), index ph*9 + k
    p = jnp.pad(p, ((0, 0), (0, 0), (0, PADP - POOL_HW)))  # (B, 36, 192)
    p = jnp.tile(p, (1, 1, NG))                            # (B, 36, 768)
    return p.reshape(B * N_PH * N_TAP, WIDE)               # (72, 768)


@jax.jit
def modified_nn_forward(x, wconv, biasw, w1p, b1, w2, b2):
    patches = _build_patches(x)
    grid_spec = pltpu.PrefetchScalarGridSpec(
        num_scalar_prefetch=0,
        grid=(NR,),
        in_specs=[
            pl.BlockSpec((B * N_PH * N_TAP, WIDE), lambda r: (0, 0)),   # patches (resident)
            pl.BlockSpec((N_TAP * NR, WIDE), lambda r: (0, 0)),         # conv weights
            pl.BlockSpec((NR, WIDE), lambda r: (0, 0)),                 # conv bias
            pl.BlockSpec((WIDE, HID), lambda r: (r, 0)),                # fc1 weight, streamed
            pl.BlockSpec((1, HID), lambda r: (0, 0)),                   # fc1 bias
            pl.BlockSpec((1, HID), lambda r: (0, 0)),                   # fc2 weight
            pl.BlockSpec((1, 1), lambda r: (0, 0)),                     # fc2 bias
        ],
        out_specs=pl.BlockSpec((B, 1), lambda r: (0, 0)),
        scratch_shapes=[
            pltpu.VMEM((B * NR, WIDE), jnp.float32),   # pooled activations, grouped layout
            pltpu.VMEM((B, HID), jnp.float32),         # fc1 accumulator
        ],
    )
    return pl.pallas_call(
        fused_kernel,
        out_shape=jax.ShapeDtypeStruct((B, 1), jnp.float32),
        grid_spec=grid_spec,
        compiler_params=pltpu.CompilerParams(dimension_semantics=("arbitrary",)),
    )(patches, wconv, biasw, w1p, b1, w2, b2)


# ------------------------------------------------------------------
# Pure-JAX reference matching the PyTorch forward (f32, highest precision)
# ------------------------------------------------------------------
def reference_forward(x, conv_w, conv_b, fc1_w, fc1_b, fc2_w, fc2_b):
    xi = x[:, 0]                                           # (B, 28, 28)
    conv = jnp.zeros((B, C_OUT, 26, 26), jnp.float32)
    for di in range(3):
        for dj in range(3):
            patch = xi[:, di:di + 26, dj:dj + 26]          # (B, 26, 26)
            wtap = conv_w[:, 0, di, dj].reshape(1, C_OUT, 1, 1)
            conv = conv + patch[:, None, :, :] * wtap
    conv = conv + conv_b.reshape(1, C_OUT, 1, 1)
    relu = jnp.maximum(conv, 0.0)
    pooled = relu.reshape(B, C_OUT, 13, 2, 13, 2).max(axis=(3, 5))
    flat = pooled.reshape(B, FLAT)
    h = jnp.maximum(
        jnp.dot(flat, fc1_w.T, precision=lax.Precision.HIGHEST) + fc1_b, 0.0)
    return jnp.dot(h, fc2_w.T, precision=lax.Precision.HIGHEST) + fc2_b


if __name__ == "__main__":
    key = jax.random.PRNGKey(0)
    ks = jax.random.split(key, 7)

    # input: MNIST-like (B, 1, 28, 28) NCHW (28x28 is forced by fc1's 32*13*13 = 5408)
    x = jax.random.normal(ks[0], (B, 1, H_IN, W_IN), jnp.float32)

    # deterministic synthetic parameters (PyTorch shapes)
    conv_w = jax.random.normal(ks[1], (C_OUT, 1, 3, 3), jnp.float32) * 0.1
    conv_b = jax.random.normal(ks[2], (C_OUT,), jnp.float32) * 0.1
    fc1_w = jax.random.normal(ks[3], (HID, FLAT), jnp.float32) * 0.02
    fc1_b = jax.random.normal(ks[4], (HID,), jnp.float32) * 0.02
    fc2_w = jax.random.normal(ks[5], (1, HID), jnp.float32) * 0.05
    fc2_b = jax.random.normal(ks[6], (1,), jnp.float32) * 0.05

    # one-time weight prep (outside the jitted per-call path)
    wconv, biasw, w1p, b1, w2, b2 = prepare_params(
        conv_w, conv_b, fc1_w, fc1_b, fc2_w, fc2_b)

    out = modified_nn_forward(x, wconv, biasw, w1p, b1, w2, b2)
    out = jax.block_until_ready(out)

    ref = reference_forward(x, conv_w, conv_b, fc1_w, fc1_b, fc2_w, fc2_b)
    assert out.shape == (B, 1)
    # fc1 weights/activations stream through the MXU in bf16 (f32 accumulation);
    # tolerance reflects bf16 quantization vs. the f32 HIGHEST-precision reference.
    np.testing.assert_allclose(np.asarray(out), np.asarray(ref), rtol=1e-3, atol=2e-3)

    print("KERNEL_OK")
</pallas_src>

<mosaic_0001>
module attributes {stable_mosaic.version = 11 : i64} {
  func.func @fused_kernel(%arg0: i32, %arg1: memref<72x768xf32, #tpu.memory_space<vmem>>, %arg2: memref<72x768xf32, #tpu.memory_space<vmem>>, %arg3: memref<8x768xf32, #tpu.memory_space<vmem>>, %arg4: memref<768x128xbf16, #tpu.memory_space<vmem>>, %arg5: memref<1x128xf32, #tpu.memory_space<vmem>>, %arg6: memref<1x128xf32, #tpu.memory_space<vmem>>, %arg7: memref<1x1xf32, #tpu.memory_space<vmem>>, %arg8: memref<2x1xf32, #tpu.memory_space<vmem>>, %arg9: memref<16x768xf32, #tpu.memory_space<vmem>>, %arg10: memref<2x128xf32, #tpu.memory_space<vmem>>) attributes {dimension_semantics = [#tpu.dimension_semantics<arbitrary>], iteration_bounds = array<i64: 8>, scalar_prefetch = 0 : i64, scratch_operands = 2 : i64, tpu.core_type = #tpu.core_type<tc>, window_params = [{pipeline_mode = #tpu.pipeline_mode<synchronous>, transform_indices = @transform_0, window_bounds = array<i64: 72, 768>}, {pipeline_mode = #tpu.pipeline_mode<synchronous>, transform_indices = @transform_1, window_bounds = array<i64: 72, 768>}, {pipeline_mode = #tpu.pipeline_mode<synchronous>, transform_indices = @transform_2, window_bounds = array<i64: 8, 768>}, {transform_indices = @transform_3, window_bounds = array<i64: 768, 128>}, {pipeline_mode = #tpu.pipeline_mode<synchronous>, transform_indices = @transform_4, window_bounds = array<i64: 1, 128>}, {pipeline_mode = #tpu.pipeline_mode<synchronous>, transform_indices = @transform_5, window_bounds = array<i64: 1, 128>}, {pipeline_mode = #tpu.pipeline_mode<synchronous>, transform_indices = @transform_6, window_bounds = array<i64: 1, 1>}, {pipeline_mode = #tpu.pipeline_mode<synchronous>, transform_indices = @transform_7, window_bounds = array<i64: 2, 1>}]} {
    %c0_i32 = arith.constant 0 : i32
    %0 = arith.cmpi eq, %arg0, %c0_i32 : i32
    %1 = arith.extui %0 : i1 to i32
    %c0_i32_0 = arith.constant 0 : i32
    %2 = arith.cmpi ne, %1, %c0_i32_0 : i32
    scf.if %2 {
      %cst_10 = arith.constant 0.000000e+00 : f32
      %19 = vector.broadcast %cst_10 : f32 to vector<2x128xf32>
      %c0_11 = arith.constant 0 : index
      %c0_12 = arith.constant 0 : index
      %20 = vector.load %arg10[%c0_11, %c0_12] : memref<2x128xf32, #tpu.memory_space<vmem>>, vector<2x128xf32>
      tpu.vector_store %arg10[%c0_11, %c0_12], %19 {strides = array<i32>} : memref<2x128xf32, #tpu.memory_space<vmem>>, vector<2x128xf32>,
      %c0_13 = arith.constant 0 : index
      %c0_14 = arith.constant 0 : index
      %21 = vector.load %arg3[%c0_13, %c0_14] : memref<8x768xf32, #tpu.memory_space<vmem>>, vector<8x768xf32>
      %cst_15 = arith.constant 0.000000e+00 : f32
      %22 = vector.broadcast %cst_15 : f32 to vector<8x768xf32>
      %c0_16 = arith.constant 0 : index
      %c0_17 = arith.constant 0 : index
      %23 = vector.load %arg2[%c0_16, %c0_17] : memref<72x768xf32, #tpu.memory_space<vmem>>, vector<8x768xf32>
      %c0_18 = arith.constant 0 : index
      %c0_19 = arith.constant 0 : index
      %24 = vector.load %arg1[%c0_18, %c0_19] : memref<72x768xf32, #tpu.memory_space<vmem>>, vector<1x768xf32>
      %25 = vector.broadcast %24 : vector<1x768xf32> to vector<8x768xf32>
      %26 = arith.mulf %23, %25 : vector<8x768xf32>
      %27 = arith.addf %22, %26 : vector<8x768xf32>
      %c8 = arith.constant 8 : index
      %c0_20 = arith.constant 0 : index
      %28 = vector.load %arg2[%c8, %c0_20] : memref<72x768xf32, #tpu.memory_space<vmem>>, vector<8x768xf32>
      %c1 = arith.constant 1 : index
      %c0_21 = arith.constant 0 : index
      %29 = vector.load %arg1[%c1, %c0_21] : memref<72x768xf32, #tpu.memory_space<vmem>>, vector<1x768xf32>
      %30 = vector.broadcast %29 : vector<1x768xf32> to vector<8x768xf32>
      %31 = arith.mulf %28, %30 : vector<8x768xf32>
      %32 = arith.addf %27, %31 : vector<8x768xf32>
      %c16 = arith.constant 16 : index
      %c0_22 = arith.constant 0 : index
      %33 = vector.load %arg2[%c16, %c0_22] : memref<72x768xf32, #tpu.memory_space<vmem>>, vector<8x768xf32>
      %c2 = arith.constant 2 : index
      %c0_23 = arith.constant 0 : index
      %34 = vector.load %arg1[%c2, %c0_23] : memref<72x768xf32, #tpu.memory_space<vmem>>, vector<1x768xf32>
      %35 = vector.broadcast %34 : vector<1x768xf32> to vector<8x768xf32>
      %36 = arith.mulf %33, %35 : vector<8x768xf32>
      %37 = arith.addf %32, %36 : vector<8x768xf32>
      %c24 = arith.constant 24 : index
      %c0_24 = arith.constant 0 : index
      %38 = vector.load %arg2[%c24, %c0_24] : memref<72x768xf32, #tpu.memory_space<vmem>>, vector<8x768xf32>
      %c3 = arith.constant 3 : index
      %c0_25 = arith.constant 0 : index
      %39 = vector.load %arg1[%c3, %c0_25] : memref<72x768xf32, #tpu.memory_space<vmem>>, vector<1x768xf32>
      %40 = vector.broadcast %39 : vector<1x768xf32> to vector<8x768xf32>
      %41 = arith.mulf %38, %40 : vector<8x768xf32>
      %42 = arith.addf %37, %41 : vector<8x768xf32>
      %c32 = arith.constant 32 : index
      %c0_26 = arith.constant 0 : index
      %43 = vector.load %arg2[%c32, %c0_26] : memref<72x768xf32, #tpu.memory_space<vmem>>, vector<8x768xf32>
      %c4 = arith.constant 4 : index
      %c0_27 = arith.constant 0 : index
      %44 = vector.load %arg1[%c4, %c0_27] : memref<72x768xf32, #tpu.memory_space<vmem>>, vector<1x768xf32>
      %45 = vector.broadcast %44 : vector<1x768xf32> to vector<8x768xf32>
      %46 = arith.mulf %43, %45 : vector<8x768xf32>
      %47 = arith.addf %42, %46 : vector<8x768xf32>
      %c40 = arith.constant 40 : index
      %c0_28 = arith.constant 0 : index
      %48 = vector.load %arg2[%c40, %c0_28] : memref<72x768xf32, #tpu.memory_space<vmem>>, vector<8x768xf32>
      %c5 = arith.constant 5 : index
      %c0_29 = arith.constant 0 : index
      %49 = vector.load %arg1[%c5, %c0_29] : memref<72x768xf32, #tpu.memory_space<vmem>>, vector<1x768xf32>
      %50 = vector.broadcast %49 : vector<1x768xf32> to vector<8x768xf32>
      %51 = arith.mulf %48, %50 : vector<8x768xf32>
      %52 = arith.addf %47, %51 : vector<8x768xf32>
      %c48 = arith.constant 48 : index
      %c0_30 = arith.constant 0 : index
      %53 = vector.load %arg2[%c48, %c0_30] : memref<72x768xf32, #tpu.memory_space<vmem>>, vector<8x768xf32>
      %c6 = arith.constant 6 : index
      %c0_31 = arith.constant 0 : index
      %54 = vector.load %arg1[%c6, %c0_31] : memref<72x768xf32, #tpu.memory_space<vmem>>, vector<1x768xf32>
      %55 = vector.broadcast %54 : vector<1x768xf32> to vector<8x768xf32>
      %56 = arith.mulf %53, %55 : vector<8x768xf32>
      %57 = arith.addf %52, %56 : vector<8x768xf32>
      %c56 = arith.constant 56 : index
      %c0_32 = arith.constant 0 : index
      %58 = vector.load %arg2[%c56, %c0_32] : memref<72x768xf32, #tpu.memory_space<vmem>>, vector<8x768xf32>
      %c7 = arith.constant 7 : index
      %c0_33 = arith.constant 0 : index
      %59 = vector.load %arg1[%c7, %c0_33] : memref<72x768xf32, #tpu.memory_space<vmem>>, vector<1x768xf32>
      %60 = vector.broadcast %59 : vector<1x768xf32> to vector<8x768xf32>
      %61 = arith.mulf %58, %60 : vector<8x768xf32>
      %62 = arith.addf %57, %61 : vector<8x768xf32>
      %c64 = arith.constant 64 : index
      %c0_34 = arith.constant 0 : index
      %63 = vector.load %arg2[%c64, %c0_34] : memref<72x768xf32, #tpu.memory_space<vmem>>, vector<8x768xf32>
      %c8_35 = arith.constant 8 : index
      %c0_36 = arith.constant 0 : index
      %64 = vector.load %arg1[%c8_35, %c0_36] : memref<72x768xf32, #tpu.memory_space<vmem>>, vector<1x768xf32>
      %65 = vector.broadcast %64 : vector<1x768xf32> to vector<8x768xf32>
      %66 = arith.mulf %63, %65 : vector<8x768xf32>
      %67 = arith.addf %62, %66 : vector<8x768xf32>
      %cst_37 = arith.constant 0.000000e+00 : f32
      %68 = vector.broadcast %cst_37 : f32 to vector<8x768xf32>
      %c0_38 = arith.constant 0 : index
      %c0_39 = arith.constant 0 : index
      %69 = vector.load %arg2[%c0_38, %c0_39] : memref<72x768xf32, #tpu.memory_space<vmem>>, vector<8x768xf32>
      %c9 = arith.constant 9 : index
      %c0_40 = arith.constant 0 : index
      %70 = vector.load %arg1[%c9, %c0_40] : memref<72x768xf32, #tpu.memory_space<vmem>>, vector<1x768xf32>
      %71 = vector.broadcast %70 : vector<1x768xf32> to vector<8x768xf32>
      %72 = arith.mulf %69, %71 : vector<8x768xf32>
      %73 = arith.addf %68, %72 : vector<8x768xf32>
      %c8_41 = arith.constant 8 : index
      %c0_42 = arith.constant 0 : index
      %74 = vector.load %arg2[%c8_41, %c0_42] : memref<72x768xf32, #tpu.memory_space<vmem>>, vector<8x768xf32>
      %c10 = arith.constant 10 : index
      %c0_43 = arith.constant 0 : index
      %75 = vector.load %arg1[%c10, %c0_43] : memref<72x768xf32, #tpu.memory_space<vmem>>, vector<1x768xf32>
      %76 = vector.broadcast %75 : vector<1x768xf32> to vector<8x768xf32>
      %77 = arith.mulf %74, %76 : vector<8x768xf32>
      %78 = arith.addf %73, %77 : vector<8x768xf32>
      %c16_44 = arith.constant 16 : index
      %c0_45 = arith.constant 0 : index
      %79 = vector.load %arg2[%c16_44, %c0_45] : memref<72x768xf32, #tpu.memory_space<vmem>>, vector<8x768xf32>
      %c11 = arith.constant 11 : index
      %c0_46 = arith.constant 0 : index
      %80 = vector.load %arg1[%c11, %c0_46] : memref<72x768xf32, #tpu.memory_space<vmem>>, vector<1x768xf32>
      %81 = vector.broadcast %80 : vector<1x768xf32> to vector<8x768xf32>
      %82 = arith.mulf %79, %81 : vector<8x768xf32>
      %83 = arith.addf %78, %82 : vector<8x768xf32>
      %c24_47 = arith.constant 24 : index
      %c0_48 = arith.constant 0 : index
      %84 = vector.load %arg2[%c24_47, %c0_48] : memref<72x768xf32, #tpu.memory_space<vmem>>, vector<8x768xf32>
      %c12 = arith.constant 12 : index
      %c0_49 = arith.constant 0 : index
      %85 = vector.load %arg1[%c12, %c0_49] : memref<72x768xf32, #tpu.memory_space<vmem>>, vector<1x768xf32>
      %86 = vector.broadcast %85 : vector<1x768xf32> to vector<8x768xf32>
      %87 = arith.mulf %84, %86 : vector<8x768xf32>
      %88 = arith.addf %83, %87 : vector<8x768xf32>
      %c32_50 = arith.constant 32 : index
      %c0_51 = arith.constant 0 : index
      %89 = vector.load %arg2[%c32_50, %c0_51] : memref<72x768xf32, #tpu.memory_space<vmem>>, vector<8x768xf32>
      %c13 = arith.constant 13 : index
      %c0_52 = arith.constant 0 : index
      %90 = vector.load %arg1[%c13, %c0_52] : memref<72x768xf32, #tpu.memory_space<vmem>>, vector<1x768xf32>
      %91 = vector.broadcast %90 : vector<1x768xf32> to vector<8x768xf32>
      %92 = arith.mulf %89, %91 : vector<8x768xf32>
      %93 = arith.addf %88, %92 : vector<8x768xf32>
      %c40_53 = arith.constant 40 : index
      %c0_54 = arith.constant 0 : index
      %94 = vector.load %arg2[%c40_53, %c0_54] : memref<72x768xf32, #tpu.memory_space<vmem>>, vector<8x768xf32>
      %c14 = arith.constant 14 : index
      %c0_55 = arith.constant 0 : index
      %95 = vector.load %arg1[%c14, %c0_55] : memref<72x768xf32, #tpu.memory_space<vmem>>, vector<1x768xf32>
      %96 = vector.broadcast %95 : vector<1x768xf32> to vector<8x768xf32>
      %97 = arith.mulf %94, %96 : vector<8x768xf32>
      %98 = arith.addf %93, %97 : vector<8x768xf32>
      %c48_56 = arith.constant 48 : index
      %c0_57 = arith.constant 0 : index
      %99 = vector.load %arg2[%c48_56, %c0_57] : memref<72x768xf32, #tpu.memory_space<vmem>>, vector<8x768xf32>
      %c15 = arith.constant 15 : index
      %c0_58 = arith.constant 0 : index
      %100 = vector.load %arg1[%c15, %c0_58] : memref<72x768xf32, #tpu.memory_space<vmem>>, vector<1x768xf32>
      %101 = vector.broadcast %100 : vector<1x768xf32> to vector<8x768xf32>
      %102 = arith.mulf %99, %101 : vector<8x768xf32>
      %103 = arith.addf %98, %102 : vector<8x768xf32>
      %c56_59 = arith.constant 56 : index
      %c0_60 = arith.constant 0 : index
      %104 = vector.load %arg2[%c56_59, %c0_60] : memref<72x768xf32, #tpu.memory_space<vmem>>, vector<8x768xf32>
      %c16_61 = arith.constant 16 : index
      %c0_62 = arith.constant 0 : index
      %105 = vector.load %arg1[%c16_61, %c0_62] : memref<72x768xf32, #tpu.memory_space<vmem>>, vector<1x768xf32>
      %106 = vector.broadcast %105 : vector<1x768xf32> to vector<8x768xf32>
      %107 = arith.mulf %104, %106 : vector<8x768xf32>
      %108 = arith.addf %103, %107 : vector<8x768xf32>
      %c64_63 = arith.constant 64 : index
      %c0_64 = arith.constant 0 : index
      %109 = vector.load %arg2[%c64_63, %c0_64] : memref<72x768xf32, #tpu.memory_space<vmem>>, vector<8x768xf32>
      %c17 = arith.constant 17 : index
      %c0_65 = arith.constant 0 : index
      %110 = vector.load %arg1[%c17, %c0_65] : memref<72x768xf32, #tpu.memory_space<vmem>>, vector<1x768xf32>
      %111 = vector.broadcast %110 : vector<1x768xf32> to vector<8x768xf32>
      %112 = arith.mulf %109, %111 : vector<8x768xf32>
      %113 = arith.addf %108, %112 : vector<8x768xf32>
      %114 = arith.maximumf %67, %113 : vector<8x768xf32>
      %cst_66 = arith.constant 0.000000e+00 : f32
      %115 = vector.broadcast %cst_66 : f32 to vector<8x768xf32>
      %c0_67 = arith.constant 0 : index
      %c0_68 = arith.constant 0 : index
      %116 = vector.load %arg2[%c0_67, %c0_68] : memref<72x768xf32, #tpu.memory_space<vmem>>, vector<8x768xf32>
      %c18 = arith.constant 18 : index
      %c0_69 = arith.constant 0 : index
      %117 = vector.load %arg1[%c18, %c0_69] : memref<72x768xf32, #tpu.memory_space<vmem>>, vector<1x768xf32>
      %118 = vector.broadcast %117 : vector<1x768xf32> to vector<8x768xf32>
      %119 = arith.mulf %116, %118 : vector<8x768xf32>
      %120 = arith.addf %115, %119 : vector<8x768xf32>
      %c8_70 = arith.constant 8 : index
      %c0_71 = arith.constant 0 : index
      %121 = vector.load %arg2[%c8_70, %c0_71] : memref<72x768xf32, #tpu.memory_space<vmem>>, vector<8x768xf32>
      %c19 = arith.constant 19 : index
      %c0_72 = arith.constant 0 : index
      %122 = vector.load %arg1[%c19, %c0_72] : memref<72x768xf32, #tpu.memory_space<vmem>>, vector<1x768xf32>
      %123 = vector.broadcast %122 : vector<1x768xf32> to vector<8x768xf32>
      %124 = arith.mulf %121, %123 : vector<8x768xf32>
      %125 = arith.addf %120, %124 : vector<8x768xf32>
      %c16_73 = arith.constant 16 : index
      %c0_74 = arith.constant 0 : index
      %126 = vector.load %arg2[%c16_73, %c0_74] : memref<72x768xf32, #tpu.memory_space<vmem>>, vector<8x768xf32>
      %c20 = arith.constant 20 : index
      %c0_75 = arith.constant 0 : index
      %127 = vector.load %arg1[%c20, %c0_75] : memref<72x768xf32, #tpu.memory_space<vmem>>, vector<1x768xf32>
      %128 = vector.broadcast %127 : vector<1x768xf32> to vector<8x768xf32>
      %129 = arith.mulf %126, %128 : vector<8x768xf32>
      %130 = arith.addf %125, %129 : vector<8x768xf32>
      %c24_76 = arith.constant 24 : index
      %c0_77 = arith.constant 0 : index
      %131 = vector.load %arg2[%c24_76, %c0_77] : memref<72x768xf32, #tpu.memory_space<vmem>>, vector<8x768xf32>
      %c21 = arith.constant 21 : index
      %c0_78 = arith.constant 0 : index
      %132 = vector.load %arg1[%c21, %c0_78] : memref<72x768xf32, #tpu.memory_space<vmem>>, vector<1x768xf32>
      %133 = vector.broadcast %132 : vector<1x768xf32> to vector<8x768xf32>
      %134 = arith.mulf %131, %133 : vector<8x768xf32>
      %135 = arith.addf %130, %134 : vector<8x768xf32>
      %c32_79 = arith.constant 32 : index
      %c0_80 = arith.constant 0 : index
      %136 = vector.load %arg2[%c32_79, %c0_80] : memref<72x768xf32, #tpu.memory_space<vmem>>, vector<8x768xf32>
      %c22 = arith.constant 22 : index
      %c0_81 = arith.constant 0 : index
      %137 = vector.load %arg1[%c22, %c0_81] : memref<72x768xf32, #tpu.memory_space<vmem>>, vector<1x768xf32>
      %138 = vector.broadcast %137 : vector<1x768xf32> to vector<8x768xf32>
      %139 = arith.mulf %136, %138 : vector<8x768xf32>
      %140 = arith.addf %135, %139 : vector<8x768xf32>
      %c40_82 = arith.constant 40 : index
      %c0_83 = arith.constant 0 : index
      %141 = vector.load %arg2[%c40_82, %c0_83] : memref<72x768xf32, #tpu.memory_space<vmem>>, vector<8x768xf32>
      %c23 = arith.constant 23 : index
      %c0_84 = arith.constant 0 : index
      %142 = vector.load %arg1[%c23, %c0_84] : memref<72x768xf32, #tpu.memory_space<vmem>>, vector<1x768xf32>
      %143 = vector.broadcast %142 : vector<1x768xf32> to vector<8x768xf32>
      %144 = arith.mulf %141, %143 : vector<8x768xf32>
      %145 = arith.addf %140, %144 : vector<8x768xf32>
      %c48_85 = arith.constant 48 : index
      %c0_86 = arith.constant 0 : index
      %146 = vector.load %arg2[%c48_85, %c0_86] : memref<72x768xf32, #tpu.memory_space<vmem>>, vector<8x768xf32>
      %c24_87 = arith.constant 24 : index
      %c0_88 = arith.constant 0 : index
      %147 = vector.load %arg1[%c24_87, %c0_88] : memref<72x768xf32, #tpu.memory_space<vmem>>, vector<1x768xf32>
      %148 = vector.broadcast %147 : vector<1x768xf32> to vector<8x768xf32>
      %149 = arith.mulf %146, %148 : vector<8x768xf32>
      %150 = arith.addf %145, %149 : vector<8x768xf32>
      %c56_89 = arith.constant 56 : index
      %c0_90 = arith.constant 0 : index
      %151 = vector.load %arg2[%c56_89, %c0_90] : memref<72x768xf32, #tpu.memory_space<vmem>>, vector<8x768xf32>
      %c25 = arith.constant 25 : index
      %c0_91 = arith.constant 0 : index
      %152 = vector.load %arg1[%c25, %c0_91] : memref<72x768xf32, #tpu.memory_space<vmem>>, vector<1x768xf32>
      %153 = vector.broadcast %152 : vector<1x768xf32> to vector<8x768xf32>
      %154 = arith.mulf %151, %153 : vector<8x768xf32>
      %155 = arith.addf %150, %154 : vector<8x768xf32>
      %c64_92 = arith.constant 64 : index
      %c0_93 = arith.constant 0 : index
      %156 = vector.load %arg2[%c64_92, %c0_93] : memref<72x768xf32, #tpu.memory_space<vmem>>, vector<8x768xf32>
      %c26 = arith.constant 26 : index
      %c0_94 = arith.constant 0 : index
      %157 = vector.load %arg1[%c26, %c0_94] : memref<72x768xf32, #tpu.memory_space<vmem>>, vector<1x768xf32>
      %158 = vector.broadcast %157 : vector<1x768xf32> to vector<8x768xf32>
      %159 = arith.mulf %156, %158 : vector<8x768xf32>
      %160 = arith.addf %155, %159 : vector<8x768xf32>
      %161 = arith.maximumf %114, %160 : vector<8x768xf32>
      %cst_95 = arith.constant 0.000000e+00 : f32
      %162 = vector.broadcast %cst_95 : f32 to vector<8x768xf32>
      %c0_96 = arith.constant 0 : index
      %c0_97 = arith.constant 0 : index
      %163 = vector.load %arg2[%c0_96, %c0_97] : memref<72x768xf32, #tpu.memory_space<vmem>>, vector<8x768xf32>
      %c27 = arith.constant 27 : index
      %c0_98 = arith.constant 0 : index
      %164 = vector.load %arg1[%c27, %c0_98] : memref<72x768xf32, #tpu.memory_space<vmem>>, vector<1x768xf32>
      %165 = vector.broadcast %164 : vector<1x768xf32> to vector<8x768xf32>
      %166 = arith.mulf %163, %165 : vector<8x768xf32>
      %167 = arith.addf %162, %166 : vector<8x768xf32>
      %c8_99 = arith.constant 8 : index
      %c0_100 = arith.constant 0 : index
      %168 = vector.load %arg2[%c8_99, %c0_100] : memref<72x768xf32, #tpu.memory_space<vmem>>, vector<8x768xf32>
      %c28 = arith.constant 28 : index
      %c0_101 = arith.constant 0 : index
      %169 = vector.load %arg1[%c28, %c0_101] : memref<72x768xf32, #tpu.memory_space<vmem>>, vector<1x768xf32>
      %170 = vector.broadcast %169 : vector<1x768xf32> to vector<8x768xf32>
      %171 = arith.mulf %168, %170 : vector<8x768xf32>
      %172 = arith.addf %167, %171 : vector<8x768xf32>
      %c16_102 = arith.constant 16 : index
      %c0_103 = arith.constant 0 : index
      %173 = vector.load %arg2[%c16_102, %c0_103] : memref<72x768xf32, #tpu.memory_space<vmem>>, vector<8x768xf32>
      %c29 = arith.constant 29 : index
      %c0_104 = arith.constant 0 : index
      %174 = vector.load %arg1[%c29, %c0_104] : memref<72x768xf32, #tpu.memory_space<vmem>>, vector<1x768xf32>
      %175 = vector.broadcast %174 : vector<1x768xf32> to vector<8x768xf32>
      %176 = arith.mulf %173, %175 : vector<8x768xf32>
      %177 = arith.addf %172, %176 : vector<8x768xf32>
      %c24_105 = arith.constant 24 : index
      %c0_106 = arith.constant 0 : index
      %178 = vector.load %arg2[%c24_105, %c0_106] : memref<72x768xf32, #tpu.memory_space<vmem>>, vector<8x768xf32>
      %c30 = arith.constant 30 : index
      %c0_107 = arith.constant 0 : index
      %179 = vector.load %arg1[%c30, %c0_107] : memref<72x768xf32, #tpu.memory_space<vmem>>, vector<1x768xf32>
      %180 = vector.broadcast %179 : vector<1x768xf32> to vector<8x768xf32>
      %181 = arith.mulf %178, %180 : vector<8x768xf32>
      %182 = arith.addf %177, %181 : vector<8x768xf32>
      %c32_108 = arith.constant 32 : index
      %c0_109 = arith.constant 0 : index
      %183 = vector.load %arg2[%c32_108, %c0_109] : memref<72x768xf32, #tpu.memory_space<vmem>>, vector<8x768xf32>
      %c31 = arith.constant 31 : index
      %c0_110 = arith.constant 0 : index
      %184 = vector.load %arg1[%c31, %c0_110] : memref<72x768xf32, #tpu.memory_space<vmem>>, vector<1x768xf32>
      %185 = vector.broadcast %184 : vector<1x768xf32> to vector<8x768xf32>
      %186 = arith.mulf %183, %185 : vector<8x768xf32>
      %187 = arith.addf %182, %186 : vector<8x768xf32>
      %c40_111 = arith.constant 40 : index
      %c0_112 = arith.constant 0 : index
      %188 = vector.load %arg2[%c40_111, %c0_112] : memref<72x768xf32, #tpu.memory_space<vmem>>, vector<8x768xf32>
      %c32_113 = arith.constant 32 : index
      %c0_114 = arith.constant 0 : index
      %189 = vector.load %arg1[%c32_113, %c0_114] : memref<72x768xf32, #tpu.memory_space<vmem>>, vector<1x768xf32>
      %190 = vector.broadcast %189 : vector<1x768xf32> to vector<8x768xf32>
      %191 = arith.mulf %188, %190 : vector<8x768xf32>
      %192 = arith.addf %187, %191 : vector<8x768xf32>
      %c48_115 = arith.constant 48 : index
      %c0_116 = arith.constant 0 : index
      %193 = vector.load %arg2[%c48_115, %c0_116] : memref<72x768xf32, #tpu.memory_space<vmem>>, vector<8x768xf32>
      %c33 = arith.constant 33 : index
      %c0_117 = arith.constant 0 : index
      %194 = vector.load %arg1[%c33, %c0_117] : memref<72x768xf32, #tpu.memory_space<vmem>>, vector<1x768xf32>
      %195 = vector.broadcast %194 : vector<1x768xf32> to vector<8x768xf32>
      %196 = arith.mulf %193, %195 : vector<8x768xf32>
      %197 = arith.addf %192, %196 : vector<8x768xf32>
      %c56_118 = arith.constant 56 : index
      %c0_119 = arith.constant 0 : index
      %198 = vector.load %arg2[%c56_118, %c0_119] : memref<72x768xf32, #tpu.memory_space<vmem>>, vector<8x768xf32>
      %c34 = arith.constant 34 : index
      %c0_120 = arith.constant 0 : index
      %199 = vector.load %arg1[%c34, %c0_120] : memref<72x768xf32, #tpu.memory_space<vmem>>, vector<1x768xf32>
      %200 = vector.broadcast %199 : vector<1x768xf32> to vector<8x768xf32>
      %201 = arith.mulf %198, %200 : vector<8x768xf32>
      %202 = arith.addf %197, %201 : vector<8x768xf32>
      %c64_121 = arith.constant 64 : index
      %c0_122 = arith.constant 0 : index
      %203 = vector.load %arg2[%c64_121, %c0_122] : memref<72x768xf32, #tpu.memory_space<vmem>>, vector<8x768xf32>
      %c35 = arith.constant 35 : index
      %c0_123 = arith.constant 0 : index
      %204 = vector.load %arg1[%c35, %c0_123] : memref<72x768xf32, #tpu.memory_space<vmem>>, vector<1x768xf32>
      %205 = vector.broadcast %204 : vector<1x768xf32> to vector<8x768xf32>
      %206 = arith.mulf %203, %205 : vector<8x768xf32>
      %207 = arith.addf %202, %206 : vector<8x768xf32>
      %208 = arith.maximumf %161, %207 : vector<8x768xf32>
      %209 = arith.addf %208, %21 : vector<8x768xf32>
      %cst_124 = arith.constant 0.000000e+00 : f32
      %210 = vector.broadcast %cst_124 : f32 to vector<8x768xf32>
      %211 = arith.maximumf %209, %210 : vector<8x768xf32>
      %c0_125 = arith.constant 0 : index
      %c0_126 = arith.constant 0 : index
      %212 = vector.load %arg9[%c0_125, %c0_126] : memref<16x768xf32, #tpu.memory_space<vmem>>, vector<8x768xf32>
      tpu.vector_store %arg9[%c0_125, %c0_126], %211 {strides = array<i32>} : memref<16x768xf32, #tpu.memory_space<vmem>>, vector<8x768xf32>,
      %cst_127 = arith.constant 0.000000e+00 : f32
      %213 = vector.broadcast %cst_127 : f32 to vector<8x768xf32>
      %c0_128 = arith.constant 0 : index
      %c0_129 = arith.constant 0 : index
      %214 = vector.load %arg2[%c0_128, %c0_129] : memref<72x768xf32, #tpu.memory_space<vmem>>, vector<8x768xf32>
      %c36 = arith.constant 36 : index
      %c0_130 = arith.constant 0 : index
      %215 = vector.load %arg1[%c36, %c0_130] : memref<72x768xf32, #tpu.memory_space<vmem>>, vector<1x768xf32>
      %216 = vector.broadcast %215 : vector<1x768xf32> to vector<8x768xf32>
      %217 = arith.mulf %214, %216 : vector<8x768xf32>
      %218 = arith.addf %213, %217 : vector<8x768xf32>
      %c8_131 = arith.constant 8 : index
      %c0_132 = arith.constant 0 : index
      %219 = vector.load %arg2[%c8_131, %c0_132] : memref<72x768xf32, #tpu.memory_space<vmem>>, vector<8x768xf32>
      %c37 = arith.constant 37 : index
      %c0_133 = arith.constant 0 : index
      %220 = vector.load %arg1[%c37, %c0_133] : memref<72x768xf32, #tpu.memory_space<vmem>>, vector<1x768xf32>
      %221 = vector.broadcast %220 : vector<1x768xf32> to vector<8x768xf32>
      %222 = arith.mulf %219, %221 : vector<8x768xf32>
      %223 = arith.addf %218, %222 : vector<8x768xf32>
      %c16_134 = arith.constant 16 : index
      %c0_135 = arith.constant 0 : index
      %224 = vector.load %arg2[%c16_134, %c0_135] : memref<72x768xf32, #tpu.memory_space<vmem>>, vector<8x768xf32>
      %c38 = arith.constant 38 : index
      %c0_136 = arith.constant 0 : index
      %225 = vector.load %arg1[%c38, %c0_136] : memref<72x768xf32, #tpu.memory_space<vmem>>, vector<1x768xf32>
      %226 = vector.broadcast %225 : vector<1x768xf32> to vector<8x768xf32>
      %227 = arith.mulf %224, %226 : vector<8x768xf32>
      %228 = arith.addf %223, %227 : vector<8x768xf32>
      %c24_137 = arith.constant 24 : index
      %c0_138 = arith.constant 0 : index
      %229 = vector.load %arg2[%c24_137, %c0_138] : memref<72x768xf32, #tpu.memory_space<vmem>>, vector<8x768xf32>
      %c39 = arith.constant 39 : index
      %c0_139 = arith.constant 0 : index
      %230 = vector.load %arg1[%c39, %c0_139] : memref<72x768xf32, #tpu.memory_space<vmem>>, vector<1x768xf32>
      %231 = vector.broadcast %230 : vector<1x768xf32> to vector<8x768xf32>
      %232 = arith.mulf %229, %231 : vector<8x768xf32>
      %233 = arith.addf %228, %232 : vector<8x768xf32>
      %c32_140 = arith.constant 32 : index
      %c0_141 = arith.constant 0 : index
      %234 = vector.load %arg2[%c32_140, %c0_141] : memref<72x768xf32, #tpu.memory_space<vmem>>, vector<8x768xf32>
      %c40_142 = arith.constant 40 : index
      %c0_143 = arith.constant 0 : index
      %235 = vector.load %arg1[%c40_142, %c0_143] : memref<72x768xf32, #tpu.memory_space<vmem>>, vector<1x768xf32>
      %236 = vector.broadcast %235 : vector<1x768xf32> to vector<8x768xf32>
      %237 = arith.mulf %234, %236 : vector<8x768xf32>
      %238 = arith.addf %233, %237 : vector<8x768xf32>
      %c40_144 = arith.constant 40 : index
      %c0_145 = arith.constant 0 : index
      %239 = vector.load %arg2[%c40_144, %c0_145] : memref<72x768xf32, #tpu.memory_space<vmem>>, vector<8x768xf32>
      %c41 = arith.constant 41 : index
      %c0_146 = arith.constant 0 : index
      %240 = vector.load %arg1[%c41, %c0_146] : memref<72x768xf32, #tpu.memory_space<vmem>>, vector<1x768xf32>
      %241 = vector.broadcast %240 : vector<1x768xf32> to vector<8x768xf32>
      %242 = arith.mulf %239, %241 : vector<8x768xf32>
      %243 = arith.addf %238, %242 : vector<8x768xf32>
      %c48_147 = arith.constant 48 : index
      %c0_148 = arith.constant 0 : index
      %244 = vector.load %arg2[%c48_147, %c0_148] : memref<72x768xf32, #tpu.memory_space<vmem>>, vector<8x768xf32>
      %c42 = arith.constant 42 : index
      %c0_149 = arith.constant 0 : index
      %245 = vector.load %arg1[%c42, %c0_149] : memref<72x768xf32, #tpu.memory_space<vmem>>, vector<1x768xf32>
      %246 = vector.broadcast %245 : vector<1x768xf32> to vector<8x768xf32>
      %247 = arith.mulf %244, %246 : vector<8x768xf32>
      %248 = arith.addf %243, %247 : vector<8x768xf32>
      %c56_150 = arith.constant 56 : index
      %c0_151 = arith.constant 0 : index
      %249 = vector.load %arg2[%c56_150, %c0_151] : memref<72x768xf32, #tpu.memory_space<vmem>>, vector<8x768xf32>
      %c43 = arith.constant 43 : index
      %c0_152 = arith.constant 0 : index
      %250 = vector.load %arg1[%c43, %c0_152] : memref<72x768xf32, #tpu.memory_space<vmem>>, vector<1x768xf32>
      %251 = vector.broadcast %250 : vector<1x768xf32> to vector<8x768xf32>
      %252 = arith.mulf %249, %251 : vector<8x768xf32>
      %253 = arith.addf %248, %252 : vector<8x768xf32>
      %c64_153 = arith.constant 64 : index
      %c0_154 = arith.constant 0 : index
      %254 = vector.load %arg2[%c64_153, %c0_154] : memref<72x768xf32, #tpu.memory_space<vmem>>, vector<8x768xf32>
      %c44 = arith.constant 44 : index
      %c0_155 = arith.constant 0 : index
      %255 = vector.load %arg1[%c44, %c0_155] : memref<72x768xf32, #tpu.memory_space<vmem>>, vector<1x768xf32>
      %256 = vector.broadcast %255 : vector<1x768xf32> to vector<8x768xf32>
      %257 = arith.mulf %254, %256 : vector<8x768xf32>
      %258 = arith.addf %253, %257 : vector<8x768xf32>
      %cst_156 = arith.constant 0.000000e+00 : f32
      %259 = vector.broadcast %cst_156 : f32 to vector<8x768xf32>
      %c0_157 = arith.constant 0 : index
      %c0_158 = arith.constant 0 : index
      %260 = vector.load %arg2[%c0_157, %c0_158] : memref<72x768xf32, #tpu.memory_space<vmem>>, vector<8x768xf32>
      %c45 = arith.constant 45 : index
      %c0_159 = arith.constant 0 : index
      %261 = vector.load %arg1[%c45, %c0_159] : memref<72x768xf32, #tpu.memory_space<vmem>>, vector<1x768xf32>
      %262 = vector.broadcast %261 : vector<1x768xf32> to vector<8x768xf32>
      %263 = arith.mulf %260, %262 : vector<8x768xf32>
      %264 = arith.addf %259, %263 : vector<8x768xf32>
      %c8_160 = arith.constant 8 : index
      %c0_161 = arith.constant 0 : index
      %265 = vector.load %arg2[%c8_160, %c0_161] : memref<72x768xf32, #tpu.memory_space<vmem>>, vector<8x768xf32>
      %c46 = arith.constant 46 : index
      %c0_162 = arith.constant 0 : index
      %266 = vector.load %arg1[%c46, %c0_162] : memref<72x768xf32, #tpu.memory_space<vmem>>, vector<1x768xf32>
      %267 = vector.broadcast %266 : vector<1x768xf32> to vector<8x768xf32>
      %268 = arith.mulf %265, %267 : vector<8x768xf32>
      %269 = arith.addf %264, %268 : vector<8x768xf32>
      %c16_163 = arith.constant 16 : index
      %c0_164 = arith.constant 0 : index
      %270 = vector.load %arg2[%c16_163, %c0_164] : memref<72x768xf32, #tpu.memory_space<vmem>>, vector<8x768xf32>
      %c47 = arith.constant 47 : index
      %c0_165 = arith.constant 0 : index
      %271 = vector.load %arg1[%c47, %c0_165] : memref<72x768xf32, #tpu.memory_space<vmem>>, vector<1x768xf32>
      %272 = vector.broadcast %271 : vector<1x768xf32> to vector<8x768xf32>
      %273 = arith.mulf %270, %272 : vector<8x768xf32>
      %274 = arith.addf %269, %273 : vector<8x768xf32>
      %c24_166 = arith.constant 24 : index
      %c0_167 = arith.constant 0 : index
      %275 = vector.load %arg2[%c24_166, %c0_167] : memref<72x768xf32, #tpu.memory_space<vmem>>, vector<8x768xf32>
      %c48_168 = arith.constant 48 : index
      %c0_169 = arith.constant 0 : index
      %276 = vector.load %arg1[%c48_168, %c0_169] : memref<72x768xf32, #tpu.memory_space<vmem>>, vector<1x768xf32>
      %277 = vector.broadcast %276 : vector<1x768xf32> to vector<8x768xf32>
      %278 = arith.mulf %275, %277 : vector<8x768xf32>
      %279 = arith.addf %274, %278 : vector<8x768xf32>
      %c32_170 = arith.constant 32 : index
      %c0_171 = arith.constant 0 : index
      %280 = vector.load %arg2[%c32_170, %c0_171] : memref<72x768xf32, #tpu.memory_space<vmem>>, vector<8x768xf32>
      %c49 = arith.constant 49 : index
      %c0_172 = arith.constant 0 : index
      %281 = vector.load %arg1[%c49, %c0_172] : memref<72x768xf32, #tpu.memory_space<vmem>>, vector<1x768xf32>
      %282 = vector.broadcast %281 : vector<1x768xf32> to vector<8x768xf32>
      %283 = arith.mulf %280, %282 : vector<8x768xf32>
      %284 = arith.addf %279, %283 : vector<8x768xf32>
      %c40_173 = arith.constant 40 : index
      %c0_174 = arith.constant 0 : index
      %285 = vector.load %arg2[%c40_173, %c0_174] : memref<72x768xf32, #tpu.memory_space<vmem>>, vector<8x768xf32>
      %c50 = arith.constant 50 : index
      %c0_175 = arith.constant 0 : index
      %286 = vector.load %arg1[%c50, %c0_175] : memref<72x768xf32, #tpu.memory_space<vmem>>, vector<1x768xf32>
      %287 = vector.broadcast %286 : vector<1x768xf32> to vector<8x768xf32>
      %288 = arith.mulf %285, %287 : vector<8x768xf32>
      %289 = arith.addf %284, %288 : vector<8x768xf32>
      %c48_176 = arith.constant 48 : index
      %c0_177 = arith.constant 0 : index
      %290 = vector.load %arg2[%c48_176, %c0_177] : memref<72x768xf32, #tpu.memory_space<vmem>>, vector<8x768xf32>
      %c51 = arith.constant 51 : index
      %c0_178 = arith.constant 0 : index
      %291 = vector.load %arg1[%c51, %c0_178] : memref<72x768xf32, #tpu.memory_space<vmem>>, vector<1x768xf32>
      %292 = vector.broadcast %291 : vector<1x768xf32> to vector<8x768xf32>
      %293 = arith.mulf %290, %292 : vector<8x768xf32>
      %294 = arith.addf %289, %293 : vector<8x768xf32>
      %c56_179 = arith.constant 56 : index
      %c0_180 = arith.constant 0 : index
      %295 = vector.load %arg2[%c56_179, %c0_180] : memref<72x768xf32, #tpu.memory_space<vmem>>, vector<8x768xf32>
      %c52 = arith.constant 52 : index
      %c0_181 = arith.constant 0 : index
      %296 = vector.load %arg1[%c52, %c0_181] : memref<72x768xf32, #tpu.memory_space<vmem>>, vector<1x768xf32>
      %297 = vector.broadcast %296 : vector<1x768xf32> to vector<8x768xf32>
      %298 = arith.mulf %295, %297 : vector<8x768xf32>
      %299 = arith.addf %294, %298 : vector<8x768xf32>
      %c64_182 = arith.constant 64 : index
      %c0_183 = arith.constant 0 : index
      %300 = vector.load %arg2[%c64_182, %c0_183] : memref<72x768xf32, #tpu.memory_space<vmem>>, vector<8x768xf32>
      %c53 = arith.constant 53 : index
      %c0_184 = arith.constant 0 : index
      %301 = vector.load %arg1[%c53, %c0_184] : memref<72x768xf32, #tpu.memory_space<vmem>>, vector<1x768xf32>
      %302 = vector.broadcast %301 : vector<1x768xf32> to vector<8x768xf32>
      %303 = arith.mulf %300, %302 : vector<8x768xf32>
      %304 = arith.addf %299, %303 : vector<8x768xf32>
      %305 = arith.maximumf %258, %304 : vector<8x768xf32>
      %cst_185 = arith.constant 0.000000e+00 : f32
      %306 = vector.broadcast %cst_185 : f32 to vector<8x768xf32>
      %c0_186 = arith.constant 0 : index
      %c0_187 = arith.constant 0 : index
      %307 = vector.load %arg2[%c0_186, %c0_187] : memref<72x768xf32, #tpu.memory_space<vmem>>, vector<8x768xf32>
      %c54 = arith.constant 54 : index
      %c0_188 = arith.constant 0 : index
      %308 = vector.load %arg1[%c54, %c0_188] : memref<72x768xf32, #tpu.memory_space<vmem>>, vector<1x768xf32>
      %309 = vector.broadcast %308 : vector<1x768xf32> to vector<8x768xf32>
      %310 = arith.mulf %307, %309 : vector<8x768xf32>
      %311 = arith.addf %306, %310 : vector<8x768xf32>
      %c8_189 = arith.constant 8 : index
      %c0_190 = arith.constant 0 : index
      %312 = vector.load %arg2[%c8_189, %c0_190] : memref<72x768xf32, #tpu.memory_space<vmem>>, vector<8x768xf32>
      %c55 = arith.constant 55 : index
      %c0_191 = arith.constant 0 : index
      %313 = vector.load %arg1[%c55, %c0_191] : memref<72x768xf32, #tpu.memory_space<vmem>>, vector<1x768xf32>
      %314 = vector.broadcast %313 : vector<1x768xf32> to vector<8x768xf32>
      %315 = arith.mulf %312, %314 : vector<8x768xf32>
      %316 = arith.addf %311, %315 : vector<8x768xf32>
      %c16_192 = arith.constant 16 : index
      %c0_193 = arith.constant 0 : index
      %317 = vector.load %arg2[%c16_192, %c0_193] : memref<72x768xf32, #tpu.memory_space<vmem>>, vector<8x768xf32>
      %c56_194 = arith.constant 56 : index
      %c0_195 = arith.constant 0 : index
      %318 = vector.load %arg1[%c56_194, %c0_195] : memref<72x768xf32, #tpu.memory_space<vmem>>, vector<1x768xf32>
      %319 = vector.broadcast %318 : vector<1x768xf32> to vector<8x768xf32>
      %320 = arith.mulf %317, %319 : vector<8x768xf32>
      %321 = arith.addf %316, %320 : vector<8x768xf32>
      %c24_196 = arith.constant 24 : index
      %c0_197 = arith.constant 0 : index
      %322 = vector.load %arg2[%c24_196, %c0_197] : memref<72x768xf32, #tpu.memory_space<vmem>>, vector<8x768xf32>
      %c57 = arith.constant 57 : index
      %c0_198 = arith.constant 0 : index
      %323 = vector.load %arg1[%c57, %c0_198] : memref<72x768xf32, #tpu.memory_space<vmem>>, vector<1x768xf32>
      %324 = vector.broadcast %323 : vector<1x768xf32> to vector<8x768xf32>
      %325 = arith.mulf %322, %324 : vector<8x768xf32>
      %326 = arith.addf %321, %325 : vector<8x768xf32>
      %c32_199 = arith.constant 32 : index
      %c0_200 = arith.constant 0 : index
      %327 = vector.load %arg2[%c32_199, %c0_200] : memref<72x768xf32, #tpu.memory_space<vmem>>, vector<8x768xf32>
      %c58 = arith.constant 58 : index
      %c0_201 = arith.constant 0 : index
      %328 = vector.load %arg1[%c58, %c0_201] : memref<72x768xf32, #tpu.memory_space<vmem>>, vector<1x768xf32>
      %329 = vector.broadcast %328 : vector<1x768xf32> to vector<8x768xf32>
      %330 = arith.mulf %327, %329 : vector<8x768xf32>
      %331 = arith.addf %326, %330 : vector<8x768xf32>
      %c40_202 = arith.constant 40 : index
      %c0_203 = arith.constant 0 : index
      %332 = vector.load %arg2[%c40_202, %c0_203] : memref<72x768xf32, #tpu.memory_space<vmem>>, vector<8x768xf32>
      %c59 = arith.constant 59 : index
      %c0_204 = arith.constant 0 : index
      %333 = vector.load %arg1[%c59, %c0_204] : memref<72x768xf32, #tpu.memory_space<vmem>>, vector<1x768xf32>
      %334 = vector.broadcast %333 : vector<1x768xf32> to vector<8x768xf32>
      %335 = arith.mulf %332, %334 : vector<8x768xf32>
      %336 = arith.addf %331, %335 : vector<8x768xf32>
      %c48_205 = arith.constant 48 : index
      %c0_206 = arith.constant 0 : index
      %337 = vector.load %arg2[%c48_205, %c0_206] : memref<72x768xf32, #tpu.memory_space<vmem>>, vector<8x768xf32>
      %c60 = arith.constant 60 : index
      %c0_207 = arith.constant 0 : index
      %338 = vector.load %arg1[%c60, %c0_207] : memref<72x768xf32, #tpu.memory_space<vmem>>, vector<1x768xf32>
      %339 = vector.broadcast %338 : vector<1x768xf32> to vector<8x768xf32>
      %340 = arith.mulf %337, %339 : vector<8x768xf32>
      %341 = arith.addf %336, %340 : vector<8x768xf32>
      %c56_208 = arith.constant 56 : index
      %c0_209 = arith.constant 0 : index
      %342 = vector.load %arg2[%c56_208, %c0_209] : memref<72x768xf32, #tpu.memory_space<vmem>>, vector<8x768xf32>
      %c61 = arith.constant 61 : index
      %c0_210 = arith.constant 0 : index
      %343 = vector.load %arg1[%c61, %c0_210] : memref<72x768xf32, #tpu.memory_space<vmem>>, vector<1x768xf32>
      %344 = vector.broadcast %343 : vector<1x768xf32> to vector<8x768xf32>
      %345 = arith.mulf %342, %344 : vector<8x768xf32>
      %346 = arith.addf %341, %345 : vector<8x768xf32>
      %c64_211 = arith.constant 64 : index
      %c0_212 = arith.constant 0 : index
      %347 = vector.load %arg2[%c64_211, %c0_212] : memref<72x768xf32, #tpu.memory_space<vmem>>, vector<8x768xf32>
      %c62 = arith.constant 62 : index
      %c0_213 = arith.constant 0 : index
      %348 = vector.load %arg1[%c62, %c0_213] : memref<72x768xf32, #tpu.memory_space<vmem>>, vector<1x768xf32>
      %349 = vector.broadcast %348 : vector<1x768xf32> to vector<8x768xf32>
      %350 = arith.mulf %347, %349 : vector<8x768xf32>
      %351 = arith.addf %346, %350 : vector<8x768xf32>
      %352 = arith.maximumf %305, %351 : vector<8x768xf32>
      %cst_214 = arith.constant 0.000000e+00 : f32
      %353 = vector.broadcast %cst_214 : f32 to vector<8x768xf32>
      %c0_215 = arith.constant 0 : index
      %c0_216 = arith.constant 0 : index
      %354 = vector.load %arg2[%c0_215, %c0_216] : memref<72x768xf32, #tpu.memory_space<vmem>>, vector<8x768xf32>
      %c63 = arith.constant 63 : index
      %c0_217 = arith.constant 0 : index
      %355 = vector.load %arg1[%c63, %c0_217] : memref<72x768xf32, #tpu.memory_space<vmem>>, vector<1x768xf32>
      %356 = vector.broadcast %355 : vector<1x768xf32> to vector<8x768xf32>
      %357 = arith.mulf %354, %356 : vector<8x768xf32>
      %358 = arith.addf %353, %357 : vector<8x768xf32>
      %c8_218 = arith.constant 8 : index
      %c0_219 = arith.constant 0 : index
      %359 = vector.load %arg2[%c8_218, %c0_219] : memref<72x768xf32, #tpu.memory_space<vmem>>, vector<8x768xf32>
      %c64_220 = arith.constant 64 : index
      %c0_221 = arith.constant 0 : index
      %360 = vector.load %arg1[%c64_220, %c0_221] : memref<72x768xf32, #tpu.memory_space<vmem>>, vector<1x768xf32>
      %361 = vector.broadcast %360 : vector<1x768xf32> to vector<8x768xf32>
      %362 = arith.mulf %359, %361 : vector<8x768xf32>
      %363 = arith.addf %358, %362 : vector<8x768xf32>
      %c16_222 = arith.constant 16 : index
      %c0_223 = arith.constant 0 : index
      %364 = vector.load %arg2[%c16_222, %c0_223] : memref<72x768xf32, #tpu.memory_space<vmem>>, vector<8x768xf32>
      %c65 = arith.constant 65 : index
      %c0_224 = arith.constant 0 : index
      %365 = vector.load %arg1[%c65, %c0_224] : memref<72x768xf32, #tpu.memory_space<vmem>>, vector<1x768xf32>
      %366 = vector.broadcast %365 : vector<1x768xf32> to vector<8x768xf32>
      %367 = arith.mulf %364, %366 : vector<8x768xf32>
      %368 = arith.addf %363, %367 : vector<8x768xf32>
      %c24_225 = arith.constant 24 : index
      %c0_226 = arith.constant 0 : index
      %369 = vector.load %arg2[%c24_225, %c0_226] : memref<72x768xf32, #tpu.memory_space<vmem>>, vector<8x768xf32>
      %c66 = arith.constant 66 : index
      %c0_227 = arith.constant 0 : index
      %370 = vector.load %arg1[%c66, %c0_227] : memref<72x768xf32, #tpu.memory_space<vmem>>, vector<1x768xf32>
      %371 = vector.broadcast %370 : vector<1x768xf32> to vector<8x768xf32>
      %372 = arith.mulf %369, %371 : vector<8x768xf32>
      %373 = arith.addf %368, %372 : vector<8x768xf32>
      %c32_228 = arith.constant 32 : index
      %c0_229 = arith.constant 0 : index
      %374 = vector.load %arg2[%c32_228, %c0_229] : memref<72x768xf32, #tpu.memory_space<vmem>>, vector<8x768xf32>
      %c67 = arith.constant 67 : index
      %c0_230 = arith.constant 0 : index
      %375 = vector.load %arg1[%c67, %c0_230] : memref<72x768xf32, #tpu.memory_space<vmem>>, vector<1x768xf32>
      %376 = vector.broadcast %375 : vector<1x768xf32> to vector<8x768xf32>
      %377 = arith.mulf %374, %376 : vector<8x768xf32>
      %378 = arith.addf %373, %377 : vector<8x768xf32>
      %c40_231 = arith.constant 40 : index
      %c0_232 = arith.constant 0 : index
      %379 = vector.load %arg2[%c40_231, %c0_232] : memref<72x768xf32, #tpu.memory_space<vmem>>, vector<8x768xf32>
      %c68 = arith.constant 68 : index
      %c0_233 = arith.constant 0 : index
      %380 = vector.load %arg1[%c68, %c0_233] : memref<72x768xf32, #tpu.memory_space<vmem>>, vector<1x768xf32>
      %381 = vector.broadcast %380 : vector<1x768xf32> to vector<8x768xf32>
      %382 = arith.mulf %379, %381 : vector<8x768xf32>
      %383 = arith.addf %378, %382 : vector<8x768xf32>
      %c48_234 = arith.constant 48 : index
      %c0_235 = arith.constant 0 : index
      %384 = vector.load %arg2[%c48_234, %c0_235] : memref<72x768xf32, #tpu.memory_space<vmem>>, vector<8x768xf32>
      %c69 = arith.constant 69 : index
      %c0_236 = arith.constant 0 : index
      %385 = vector.load %arg1[%c69, %c0_236] : memref<72x768xf32, #tpu.memory_space<vmem>>, vector<1x768xf32>
      %386 = vector.broadcast %385 : vector<1x768xf32> to vector<8x768xf32>
      %387 = arith.mulf %384, %386 : vector<8x768xf32>
      %388 = arith.addf %383, %387 : vector<8x768xf32>
      %c56_237 = arith.constant 56 : index
      %c0_238 = arith.constant 0 : index
      %389 = vector.load %arg2[%c56_237, %c0_238] : memref<72x768xf32, #tpu.memory_space<vmem>>, vector<8x768xf32>
      %c70 = arith.constant 70 : index
      %c0_239 = arith.constant 0 : index
      %390 = vector.load %arg1[%c70, %c0_239] : memref<72x768xf32, #tpu.memory_space<vmem>>, vector<1x768xf32>
      %391 = vector.broadcast %390 : vector<1x768xf32> to vector<8x768xf32>
      %392 = arith.mulf %389, %391 : vector<8x768xf32>
      %393 = arith.addf %388, %392 : vector<8x768xf32>
      %c64_240 = arith.constant 64 : index
      %c0_241 = arith.constant 0 : index
      %394 = vector.load %arg2[%c64_240, %c0_241] : memref<72x768xf32, #tpu.memory_space<vmem>>, vector<8x768xf32>
      %c71 = arith.constant 71 : index
      %c0_242 = arith.constant 0 : index
      %395 = vector.load %arg1[%c71, %c0_242] : memref<72x768xf32, #tpu.memory_space<vmem>>, vector<1x768xf32>
      %396 = vector.broadcast %395 : vector<1x768xf32> to vector<8x768xf32>
      %397 = arith.mulf %394, %396 : vector<8x768xf32>
      %398 = arith.addf %393, %397 : vector<8x768xf32>
      %399 = arith.maximumf %352, %398 : vector<8x768xf32>
      %400 = arith.addf %399, %21 : vector<8x768xf32>
      %cst_243 = arith.constant 0.000000e+00 : f32
      %401 = vector.broadcast %cst_243 : f32 to vector<8x768xf32>
      %402 = arith.maximumf %400, %401 : vector<8x768xf32>
      %c8_244 = arith.constant 8 : index
      %c0_245 = arith.constant 0 : index
      %403 = vector.load %arg9[%c8_244, %c0_245] : memref<16x768xf32, #tpu.memory_space<vmem>>, vector<8x768xf32>
      tpu.vector_store %arg9[%c8_244, %c0_245], %402 {strides = array<i32>} : memref<16x768xf32, #tpu.memory_space<vmem>>, vector<8x768xf32>,
    } else {
    }
    %c0_i32_1 = arith.constant 0 : i32
    %3 = arith.addi %c0_i32_1, %arg0 : i32
    %4 = arith.index_cast %3 : i32 to index
    %c0 = arith.constant 0 : index
    %5 = vector.load %arg9[%4, %c0] : memref<16x768xf32, #tpu.memory_space<vmem>>, vector<1x768xf32>
    %c8_i32 = arith.constant 8 : i32
    %6 = arith.addi %c8_i32, %arg0 : i32
    %7 = arith.index_cast %6 : i32 to index
    %c0_2 = arith.constant 0 : index
    %8 = vector.load %arg9[%7, %c0_2] : memref<16x768xf32, #tpu.memory_space<vmem>>, vector<1x768xf32>
    %9 = tpu.concatenate %5, %8 in 0 : vector<1x768xf32>, vector<1x768xf32> -> vector<2x768xf32>
    %c0_3 = arith.constant 0 : index
    %c0_4 = arith.constant 0 : index
    %10 = vector.load %arg10[%c0_3, %c0_4] : memref<2x128xf32, #tpu.memory_space<vmem>>, vector<2x128xf32>
    %11 = arith.truncf %9 : vector<2x768xf32> to vector<2x768xbf16>
    %c0_5 = arith.constant 0 : index
    %c0_6 = arith.constant 0 : index
    %12 = vector.load %arg4[%c0_5, %c0_6] : memref<768x128xbf16, #tpu.memory_space<vmem>>, vector<768x128xbf16>
    %cst = arith.constant dense<0.000000e+00> : vector<2x128xf32>
    %13 = tpu.matmul %11, %12, %cst {dimension_numbers = #tpu.dot_dimension_numbers<[1], [0], [0], [1], [0, 0, 1, 1], [], []>} : vector<2x768xbf16>, vector<768x128xbf16>, vector<2x128xf32> -> vector<2x128xf32>
    %14 = arith.addf %10, %13 : vector<2x128xf32>
    %c0_7 = arith.constant 0 : index
    %c0_8 = arith.constant 0 : index
    %15 = vector.load %arg10[%c0_7, %c0_8] : memref<2x128xf32, #tpu.memory_space<vmem>>, vector<2x128xf32>
    tpu.vector_store %arg10[%c0_7, %c0_8], %14 {strides = array<i32>} : memref<2x128xf32, #tpu.memory_space<vmem>>, vector<2x128xf32>,
    %c7_i32 = arith.constant 7 : i32
    %16 = arith.cmpi eq, %arg0, %c7_i32 : i32
    %17 = arith.extui %16 : i1 to i32
    %c0_i32_9 = arith.constant 0 : i32
    %18 = arith.cmpi ne, %17, %c0_i32_9 : i32
    scf.if %18 {
      %c0_10 = arith.constant 0 : index
      %c0_11 = arith.constant 0 : index
      %19 = vector.load %arg10[%c0_10, %c0_11] : memref<2x128xf32, #tpu.memory_space<vmem>>, vector<2x128xf32>
      %c0_12 = arith.constant 0 : index
      %c0_13 = arith.constant 0 : index
      %20 = vector.load %arg5[%c0_12, %c0_13] : memref<1x128xf32, #tpu.memory_space<vmem>>, vector<1x128xf32>
      %21 = vector.broadcast %20 : vector<1x128xf32> to vector<2x128xf32>
      %22 = arith.addf %19, %21 : vector<2x128xf32>
      %cst_14 = arith.constant 0.000000e+00 : f32
      %23 = vector.broadcast %cst_14 : f32 to vector<2x128xf32>
      %24 = arith.maximumf %22, %23 : vector<2x128xf32>
      %c0_15 = arith.constant 0 : index
      %c0_16 = arith.constant 0 : index
      %25 = vector.load %arg6[%c0_15, %c0_16] : memref<1x128xf32, #tpu.memory_space<vmem>>, vector<1x128xf32>
      %26 = vector.broadcast %25 : vector<1x128xf32> to vector<2x128xf32>
      %27 = arith.mulf %24, %26 : vector<2x128xf32>
      %cst_17 = arith.constant dense<0.000000e+00> : vector<2xf32>
      %28 = vector.multi_reduction <add>, %27, %cst_17 [1] : vector<2x128xf32> to vector<2xf32>
      %29 = vector.shape_cast %28 : vector<2xf32> to vector<2x1xf32>
      %c0_18 = arith.constant 0 : index
      %c0_19 = arith.constant 0 : index
      %30 = vector.load %arg7[%c0_18, %c0_19] : memref<1x1xf32, #tpu.memory_space<vmem>>, vector<1x1xf32>
      %31 = vector.broadcast %30 : vector<1x1xf32> to vector<2x1xf32>
      %32 = arith.addf %29, %31 : vector<2x1xf32>
      %c0_20 = arith.constant 0 : index
      %c0_21 = arith.constant 0 : index
      %33 = vector.load %arg8[%c0_20, %c0_21] : memref<2x1xf32, #tpu.memory_space<vmem>>, vector<2x1xf32>
      tpu.vector_store %arg8[%c0_20, %c0_21], %32 {strides = array<i32>} : memref<2x1xf32, #tpu.memory_space<vmem>>, vector<2x1xf32>,
    } else {
    }
    return
  }
  func.func @transform_0(%arg0: i32) -> (i32, i32) {
    %c0_i32 = arith.constant 0 : i32
    %c0_i32_0 = arith.constant 0 : i32
    %c0_i32_1 = arith.constant 0 : i32
    return %c0_i32, %c0_i32_0 : i32, i32
  }
  func.func @transform_1(%arg0: i32) -> (i32, i32) {
    %c0_i32 = arith.constant 0 : i32
    %c0_i32_0 = arith.constant 0 : i32
    %c0_i32_1 = arith.constant 0 : i32
    return %c0_i32, %c0_i32_0 : i32, i32
  }
  func.func @transform_2(%arg0: i32) -> (i32, i32) {
    %c0_i32 = arith.constant 0 : i32
    %c0_i32_0 = arith.constant 0 : i32
    %c0_i32_1 = arith.constant 0 : i32
    return %c0_i32, %c0_i32_0 : i32, i32
  }
  func.func @transform_3(%arg0: i32) -> (i32, i32) {
    %c0_i32 = arith.constant 0 : i32
    %c0_i32_0 = arith.constant 0 : i32
    return %arg0, %c0_i32 : i32, i32
  }
  func.func @transform_4(%arg0: i32) -> (i32, i32) {
    %c0_i32 = arith.constant 0 : i32
    %c0_i32_0 = arith.constant 0 : i32
    %c0_i32_1 = arith.constant 0 : i32
    return %c0_i32, %c0_i32_0 : i32, i32
  }
  func.func @transform_5(%arg0: i32) -> (i32, i32) {
    %c0_i32 = arith.constant 0 : i32
    %c0_i32_0 = arith.constant 0 : i32
    %c0_i32_1 = arith.constant 0 : i32
    return %c0_i32, %c0_i32_0 : i32, i32
  }
  func.func @transform_6(%arg0: i32) -> (i32, i32) {
    %c0_i32 = arith.constant 0 : i32
    %c0_i32_0 = arith.constant 0 : i32
    %c0_i32_1 = arith.constant 0 : i32
    return %c0_i32, %c0_i32_0 : i32, i32
  }
  func.func @transform_7(%arg0: i32) -> (i32, i32) {
    %c0_i32 = arith.constant 0 : i32
    %c0_i32_0 = arith.constant 0 : i32
    %c0_i32_1 = arith.constant 0 : i32
    return %c0_i32, %c0_i32_0 : i32, i32
  }
}

</mosaic_0001>

<bundles_post_ra>
// kernel: tile.9
= control target key start
LH: loop header
LB: loop body
LE: loop exit
PB: predicated region body
PF: predicated region fallthrough
CT: control target
= control target key end

     0   :  { %s1369_s7 = smov 3  ;;  %s1372_s8 = smov 12  ;;  %vm1374_vm0 = vcmask 1043458   ;;  %vm1379_vm1 = vcmask 1045508   ;;  %vm581_vm2 = vcmask 523264   ;;  %vm1384_vm3 = vcmask 1047558   ;;  %s4495_s0 = inlined_call_operand.vmem [shape: f32[2,1,36,4,192], index: 0, kind: input, shape index: {}]   ;;  %s4496_s1 = inlined_call_operand.vmem [shape: f32[72,768], index: 1, kind: output, shape index: {}]  }
   0x1   :  { %v2723_v0 = vld [vmem:[%s4495_s0 + $0x78] sm:$0xf]  ;;  %v2725_v1 = vld [vmem:[%s4495_s0 + $0x70] sm:$0xf]  ;;  %v2727_v2 = vld [vmem:[%s4495_s0 + $0x68] sm:$0xf] }
   0x2   :  { %459 = vst [vmem:[#allocation0 + $0xf0] sm:$0xf] %v2723_v0  ;;  %v2729_v3 = vld [vmem:[%s4495_s0 + $0x60] sm:$0xf]  ;;  %v2731_v4 = vld [vmem:[%s4495_s0 + $0x58] sm:$0xf] }
   0x3   :  { %467 = vst [vmem:[#allocation0 + $0xe0] sm:$0xf] %v2725_v1  ;;  %v2733_v5 = vld [vmem:[%s4495_s0 + $0x50] sm:$0xf]  ;;  %v2735_v6 = vld [vmem:[%s4495_s0 + $0x48] sm:$0xf] }
   0x4   :  { %475 = vst [vmem:[#allocation0 + $0xd0] sm:$0xf] %v2727_v2  ;;  %v2737_v7 = vld [vmem:[%s4495_s0 + $0x40] sm:$0xf]  ;;  %v2739_v8 = vld [vmem:[%s4495_s0 + $0x38] sm:$0xf] }
   0x5   :  { %483 = vst [vmem:[#allocation0 + $0xc0] sm:$0xf] %v2729_v3  ;;  %v2741_v9 = vld [vmem:[%s4495_s0 + $0x30] sm:$0xf]  ;;  %v2743_v10 = vld [vmem:[%s4495_s0 + $0x28] sm:$0xf] }
   0x6   :  { %491 = vst [vmem:[#allocation0 + $0xb0] sm:$0xf] %v2731_v4  ;;  %v2745_v11 = vld [vmem:[%s4495_s0 + $0x20] sm:$0xf]  ;;  %v2747_v12 = vld [vmem:[%s4495_s0 + $0x18] sm:$0xf] }
   0x7   :  { %499 = vst [vmem:[#allocation0 + $0xa0] sm:$0xf] %v2733_v5  ;;  %v2749_v13 = vld [vmem:[%s4495_s0 + $0x10] sm:$0xf]  ;;  %v2751_v14 = vld [vmem:[%s4495_s0 + $0x8] sm:$0xf] }
   0x8   :  { %507 = vst [vmem:[#allocation0 + $0x90] sm:$0xf] %v2735_v6  ;;  %v576_v15 = vld [vmem:[%s4495_s0] sm:$0xf]  ;;  %s1377_s11 = smov 48  ;;  %s1382_s18 = smov 192 }
   0x9   :  { %515 = vst [vmem:[#allocation0 + $0x80] sm:$0xf] %v2737_v7  ;;  %v2659_v16 = vld [vmem:[%s4495_s0 + $0x178] sm:$0xf]  ;;  %v2661_v17 = vld [vmem:[%s4495_s0 + $0x170] sm:$0xf] }
   0xa   :  { %523 = vst [vmem:[#allocation0 + $0x70] sm:$0xf] %v2739_v8  ;;  %v2663_v20 = vld [vmem:[%s4495_s0 + $0x168] sm:$0xf]  ;;  %v2665_v21 = vld [vmem:[%s4495_s0 + $0x160] sm:$0xf] }
   0xb   :  { %531 = vst [vmem:[#allocation0 + $0x60] sm:$0xf] %v2741_v9  ;;  %v2667_v24 = vld [vmem:[%s4495_s0 + $0x158] sm:$0xf]  ;;  %s1387_s23 = smov 3  ;;  %s1390_s24 = smov 12 }
   0xc   :  { %539 = vst [vmem:[#allocation0 + $0x50] sm:$0xf] %v2743_v10  ;;  %v2669_v25 = vld [vmem:[%s4495_s0 + $0x150] sm:$0xf]  ;;  %s1395_s27 = smov 48  ;;  %s1400_s28 = smov 192 }
   0xd   :  { %547 = vst [vmem:[#allocation0 + $0x40] sm:$0xf] %v2745_v11  ;;  %v2671_v28 = vld [vmem:[%s4495_s0 + $0x148] sm:$0xf]  ;;  %v2673_v29 = vld [vmem:[%s4495_s0 + $0x140] sm:$0xf] }
   0xe   :  { %555 = vst [vmem:[#allocation0 + $0x30] sm:$0xf] %v2747_v12  ;;  %v2707_v30 = vld [vmem:[%s4495_s0 + $0xb8] sm:$0xf]  ;;  %v2709_v37 = vld [vmem:[%s4495_s0 + $0xb0] sm:$0xf] }
   0xf   :  { %563 = vst [vmem:[#allocation0 + $0x20] sm:$0xf] %v2749_v13  ;;  %v2711_v39 = vld [vmem:[%s4495_s0 + $0xa8] sm:$0xf]  ;;  %v2713_v41 = vld [vmem:[%s4495_s0 + $0xa0] sm:$0xf] }
  0x10   :  { %571 = vst [vmem:[#allocation0 + $0x10] sm:$0xf] %v2751_v14  ;;  %v1370_v18 = vld [vmem:[#allocation0 + $0x81] ss:$16 sm:%s1369_s7]   ;;  %v2715_v43 = vld [vmem:[%s4495_s0 + $0x98] sm:$0xf] }
  0x11   :  { %v1373_v19 = vld [vmem:[#allocation0 + $0x81] ss:$16 sm:%s1372_s8]   ;;  %577 = vst [vmem:[#allocation0] sm:$0xf] %v576_v15  ;;  %s2951_s14 = smov 64   ;;  %s1461_s19 = smov 3 }
  0x12   :  { %203 = vst [vmem:[#allocation0 + $0x2f0] sm:$0xf] %v2659_v16  ;;  %v1375_v22 = vsel %vm1374_vm0, %v1373_v19, %v1370_v18  ;;  %v1378_v23 = vld [vmem:[#allocation0 + $0x81] ss:$16 sm:%s1377_s11]   ;;  %v2719_v45 = vld [vmem:[%s4495_s0 + $0x88] sm:$0xf] }
  0x13   :  { %211 = vst [vmem:[#allocation0 + $0x2e0] sm:$0xf] %v2661_v17  ;;  %v1380_v26 = vsel %vm1379_vm1, %v1378_v23, %v1375_v22  ;;  %v1383_v27 = vld [vmem:[#allocation0 + $0x81] ss:$16 sm:%s1382_s18]   ;;  %s1464_s20 = smov 12  ;;  %s1469_s25 = smov 48 }
  0x14   :  { %219 = vst [vmem:[#allocation0 + $0x2d0] sm:$0xf] %v2663_v20  ;;  %v1385_v34 = vsel %vm1384_vm3, %v1383_v27, %v1380_v26  ;;  %v2717_v44 = vld [vmem:[%s4495_s0 + $0x90] sm:$0xf]  ;;  %v2721_v46 = vld [vmem:[%s4495_s0 + $0x80] sm:$0xf] }
  0x15   :  { %227 = vst [vmem:[#allocation0 + $0x2c0] sm:$0xf] %v2665_v21  ;;  %v2691_v47 = vld [vmem:[%s4495_s0 + $0xf8] sm:$0xf]  ;;  %v2693_v48 = vld [vmem:[%s4495_s0 + $0xf0] sm:$0xf] }
  0x16   :  { %235 = vst [vmem:[#allocation0 + $0x2b0] sm:$0xf] %v2667_v24  ;;  %v2695_v51 = vld [vmem:[%s4495_s0 + $0xe8] sm:$0xf]  ;;  %s1474_s30 = smov 192  ;;  %s1479_s6 = smov 3 }
  0x17   :  { %243 = vst [vmem:[#allocation0 + $0x2a0] sm:$0xf] %v2669_v25  ;;  %v2697_v52 = vld [vmem:[%s4495_s0 + $0xe0] sm:$0xf]  ;;  %v2699_v55 = vld [vmem:[%s4495_s0 + $0xd8] sm:$0xf] }
  0x18   :  { %v1388_v31 = vld [vmem:[#allocation0 + $0x3] ss:$16 sm:%s1387_s23]   ;;  %251 = vst [vmem:[#allocation0 + $0x290] sm:$0xf] %v2671_v28  ;;  %s1482_s7 = smov 12  ;;  %s1487_s10 = smov 48 }
  0x19   :  { %v1391_v32 = vld [vmem:[#allocation0 + $0x3] ss:$16 sm:%s1390_s24]   ;;  %259 = vst [vmem:[#allocation0 + $0x280] sm:$0xf] %v2673_v29  ;;  %s1492_s11 = smov 192  ;;  %s1415_s2 = smov 3 }
  0x1a   :  { %v1396_v33 = vld [vmem:[#allocation0 + $0x3] ss:$16 sm:%s1395_s27]   ;;  %v1393_v35 = vsel %vm1374_vm0, %v1391_v32, %v1388_v31  ;;  %395 = vst [vmem:[#allocation0 + $0x170] sm:$0xf] %v2707_v30  ;;  %v2703_v59 = vld [vmem:[%s4495_s0 + $0xc8] sm:$0xf] }
  0x1b   :  { %v1401_v36 = vld [vmem:[#allocation0 + $0x3] ss:$16 sm:%s1400_s28]   ;;  %v1398_v38 = vsel %vm1379_vm1, %v1396_v33, %v1393_v35  ;;  %403 = vst [vmem:[#allocation0 + $0x160] sm:$0xf] %v2709_v37  ;;  %v2722_v61 = vld [vmem:[%s4495_s0 + $0x7c] sm:$0xf] }
  0x1c   :  { %v1403_v40 = vsel %vm1384_vm3, %v1401_v36, %v1398_v38  ;;  %411 = vst [vmem:[#allocation0 + $0x150] sm:$0xf] %v2711_v39  ;;  %v2701_v56 = vld [vmem:[%s4495_s0 + $0xd0] sm:$0xf]  ;;  %v2705_v60 = vld [vmem:[%s4495_s0 + $0xc0] sm:$0xf] }
  0x1d   :  { %v1405_v42 = vsel %vm581_vm2, %v1403_v40, %v1385_v34  ;;  %419 = vst [vmem:[#allocation0 + $0x140] sm:$0xf] %v2713_v41  ;;  %v2724_v4 = vld [vmem:[%s4495_s0 + $0x74] sm:$0xf]  ;;  %v2726_v6 = vld [vmem:[%s4495_s0 + $0x6c] sm:$0xf] }
  0x1e   :  { %1406 = vrot.lane.b32.xlu0 %v1405_v42, %s2951_s14  ;;  %427 = vst [vmem:[#allocation0 + $0x130] sm:$0xf] %v2715_v43  ;;  %v2728_v8 = vld [vmem:[%s4495_s0 + $0x64] sm:$0xf]  ;;  %v2730_v10 = vld [vmem:[%s4495_s0 + $0x5c] sm:$0xf] }
  0x1f   :  { %435 = vst [vmem:[#allocation0 + $0x120] sm:$0xf] %v2717_v44  ;;  %v2732_v11 = vld [vmem:[%s4495_s0 + $0x54] sm:$0xf]  ;;  %v2734_v12 = vld [vmem:[%s4495_s0 + $0x4c] sm:$0xf] }
  0x20   :  { %443 = vst [vmem:[#allocation0 + $0x110] sm:$0xf] %v2719_v45  ;;  %v1462_v49 = vld [vmem:[#allocation0 + $0x281] ss:$16 sm:%s1461_s19]   ;;  %s1418_s3 = smov 12  ;;  %s1428_s13 = smov 192 }
  0x21   :  { %v1465_v50 = vld [vmem:[#allocation0 + $0x281] ss:$16 sm:%s1464_s20]   ;;  %451 = vst [vmem:[#allocation0 + $0x100] sm:$0xf] %v2721_v46  ;;  %v2736_v13 = vld [vmem:[%s4495_s0 + $0x44] sm:$0xf] }
  0x22   :  { %331 = vst [vmem:[#allocation0 + $0x1f0] sm:$0xf] %v2691_v47  ;;  %v1467_v53 = vsel %vm1374_vm0, %v1465_v50, %v1462_v49  ;;  %v1470_v54 = vld [vmem:[#allocation0 + $0x281] ss:$16 sm:%s1469_s25]   ;;  %v2627_v14 = vld [vmem:[%s4495_s0 + $0x1f8] sm:$0xf] }
  0x23   :  { %339 = vst [vmem:[#allocation0 + $0x1e0] sm:$0xf] %v2693_v48  ;;  %v1472_v57 = vsel %vm1379_vm1, %v1470_v54, %v1467_v53  ;;  %v1475_v58 = vld [vmem:[#allocation0 + $0x281] ss:$16 sm:%s1474_s30]   ;;  %v2631_v18 = vld [vmem:[%s4495_s0 + $0x1e8] sm:$0xf] }
  0x24   :  { %347 = vst [vmem:[#allocation0 + $0x1d0] sm:$0xf] %v2695_v51  ;;  %v1477_v1 = vsel %vm1384_vm3, %v1475_v58, %v1472_v57  ;;  %v2629_v15 = vld [vmem:[%s4495_s0 + $0x1f0] sm:$0xf]  ;;  %v2633_v19 = vld [vmem:[%s4495_s0 + $0x1e0] sm:$0xf] }
  0x25   :  { %355 = vst [vmem:[#allocation0 + $0x1c0] sm:$0xf] %v2697_v52  ;;  %v2635_v22 = vld [vmem:[%s4495_s0 + $0x1d8] sm:$0xf]  ;;  %s1433_s19 = smov 3  ;;  %s1436_s20 = smov 12 }
  0x26   :  { %363 = vst [vmem:[#allocation0 + $0x1b0] sm:$0xf] %v2699_v55  ;;  %v2637_v23 = vld [vmem:[%s4495_s0 + $0x1d0] sm:$0xf]  ;;  %s1441_s23 = smov 48  ;;  %s1446_s24 = smov 192 }
  0x27   :  { %371 = vst [vmem:[#allocation0 + $0x1a0] sm:$0xf] %v2701_v56  ;;  %v2639_v26 = vld [vmem:[%s4495_s0 + $0x1c8] sm:$0xf]  ;;  %v2641_v27 = vld [vmem:[%s4495_s0 + $0x1c0] sm:$0xf] }
  0x28   :  { %v1480_v62 = vld [vmem:[#allocation0 + $0x103] ss:$16 sm:%s1479_s6]   ;;  %379 = vst [vmem:[#allocation0 + $0x190] sm:$0xf] %v2703_v59  ;;  %s1423_s6 = smov 48  ;;  %s1507_s15 = smov 3 }
  0x29   :  { %v1483_v63 = vld [vmem:[#allocation0 + $0x103] ss:$16 sm:%s1482_s7]   ;;  %387 = vst [vmem:[#allocation0 + $0x180] sm:$0xf] %v2705_v60  ;;  %v2690_v28 = vld [vmem:[%s4495_s0 + $0xfc] sm:$0xf] }
  0x2a   :  { %v1488_v0 = vld [vmem:[#allocation0 + $0x103] ss:$16 sm:%s1487_s10]   ;;  %v1485_v2 = vsel %vm1374_vm0, %v1483_v63, %v1480_v62  ;;  %455 = vst [vmem:[#allocation0 + $0xf8] sm:$0xf] %v2722_v61  ;;  %v2692_v35 = vld [vmem:[%s4495_s0 + $0xf4] sm:$0xf] }
  0x2b   :  { %v1493_v3 = vld [vmem:[#allocation0 + $0x103] ss:$16 sm:%s1492_s11]   ;;  %v1490_v5 = vsel %vm1379_vm1, %v1488_v0, %v1485_v2  ;;  %463 = vst [vmem:[#allocation0 + $0xe8] sm:$0xf] %v2724_v4  ;;  %v2694_v37 = vld [vmem:[%s4495_s0 + $0xec] sm:$0xf] }
  0x2c   :  { %v1495_v7 = vsel %vm1384_vm3, %v1493_v3, %v1490_v5  ;;  %471 = vst [vmem:[#allocation0 + $0xd8] sm:$0xf] %v2726_v6  ;;  %v2696_v39 = vld [vmem:[%s4495_s0 + $0xe4] sm:$0xf]  ;;  %v2698_v41 = vld [vmem:[%s4495_s0 + $0xdc] sm:$0xf] }
  0x2d   :  { %v1497_v9 = vsel %vm581_vm2, %v1495_v7, %v1477_v1  ;;  %479 = vst [vmem:[#allocation0 + $0xc8] sm:$0xf] %v2728_v8  ;;  %v2700_v42 = vld [vmem:[%s4495_s0 + $0xd4] sm:$0xf]  ;;  %v2702_v43 = vld [vmem:[%s4495_s0 + $0xcc] sm:$0xf] }
  0x2e   :  { %1498 = vrot.lane.b32.xlu1 %v1497_v9, %s2951_s14  ;;  %487 = vst [vmem:[#allocation0 + $0xb8] sm:$0xf] %v2730_v10  ;;  %s1510_s16 = smov 12  ;;  %v2704_v44 = vld [vmem:[%s4495_s0 + $0xc4] sm:$0xf]  ;;  %s1515_s21 = smov 48 }
  0x2f   :  { %495 = vst [vmem:[#allocation0 + $0xa8] sm:$0xf] %v2732_v11  ;;  %v2643_v45 = vld [vmem:[%s4495_s0 + $0x1b8] sm:$0xf]  ;;  %v2645_v46 = vld [vmem:[%s4495_s0 + $0x1b0] sm:$0xf] }
  0x30   :  { %503 = vst [vmem:[#allocation0 + $0x98] sm:$0xf] %v2734_v12  ;;  %v1416_v16 = vld [vmem:[#allocation0 + $0x181] ss:$16 sm:%s1415_s2]   ;;  %v2647_v49 = vld [vmem:[%s4495_s0 + $0x1a8] sm:$0xf] }
  0x31   :  { %v1419_v17 = vld [vmem:[#allocation0 + $0x181] ss:$16 sm:%s1418_s3]   ;;  %511 = vst [vmem:[#allocation0 + $0x88] sm:$0xf] %v2736_v13  ;;  %s1525_s27 = smov 3  ;;  %s1528_s28 = smov 12 }
  0x32   :  { %75 = vst [vmem:[#allocation0 + $0x3f0] sm:$0xf] %v2627_v14  ;;  %v1421_v20 = vsel %vm1374_vm0, %v1419_v17, %v1416_v16  ;;  %v1424_v21 = vld [vmem:[#allocation0 + $0x181] ss:$16 sm:%s1423_s6]   ;;  %v2651_v53 = vld [vmem:[%s4495_s0 + $0x198] sm:$0xf] }
  0x33   :  { %83 = vst [vmem:[#allocation0 + $0x3e0] sm:$0xf] %v2629_v15  ;;  %v1426_v24 = vsel %vm1379_vm1, %v1424_v21, %v1421_v20  ;;  %v1429_v25 = vld [vmem:[#allocation0 + $0x181] ss:$16 sm:%s1428_s13]   ;;  %s1533_s4 = smov 48  ;;  %s1538_s5 = smov 192 }
  0x34   :  { %91 = vst [vmem:[#allocation0 + $0x3d0] sm:$0xf] %v2631_v18  ;;  %v1431_v32 = vsel %vm1384_vm3, %v1429_v25, %v1426_v24  ;;  %v2649_v50 = vld [vmem:[%s4495_s0 + $0x1a0] sm:$0xf]  ;;  %v2653_v54 = vld [vmem:[%s4495_s0 + $0x190] sm:$0xf] }
  0x35   :  { %99 = vst [vmem:[#allocation0 + $0x3c0] sm:$0xf] %v2633_v19  ;;  %v2655_v55 = vld [vmem:[%s4495_s0 + $0x188] sm:$0xf]  ;;  %v2657_v56 = vld [vmem:[%s4495_s0 + $0x180] sm:$0xf] }
  0x36   :  { %107 = vst [vmem:[#allocation0 + $0x3b0] sm:$0xf] %v2635_v22  ;;  %v2675_v59 = vld [vmem:[%s4495_s0 + $0x138] sm:$0xf]  ;;  %v2677_v60 = vld [vmem:[%s4495_s0 + $0x130] sm:$0xf] }
  0x37   :  { %115 = vst [vmem:[#allocation0 + $0x3a0] sm:$0xf] %v2637_v23  ;;  %v2679_v0 = vld [vmem:[%s4495_s0 + $0x128] sm:$0xf]  ;;  %v2681_v4 = vld [vmem:[%s4495_s0 + $0x120] sm:$0xf] }
  0x38   :  { %v1434_v29 = vld [vmem:[#allocation0 + $0x89] ss:$16 sm:%s1433_s19]   ;;  %123 = vst [vmem:[#allocation0 + $0x390] sm:$0xf] %v2639_v26  ;;  %s3214_s19 = smov 48  ;;  %s3226_s25 = smov 3 }
  0x39   :  { %v1437_v30 = vld [vmem:[#allocation0 + $0x89] ss:$16 sm:%s1436_s20]   ;;  %131 = vst [vmem:[#allocation0 + $0x380] sm:$0xf] %v2641_v27  ;;  %s3216_s20 = smov 192  ;;  %s3228_s26 = smov 12 }
  0x3a   :  { %v1442_v31 = vld [vmem:[#allocation0 + $0x89] ss:$16 sm:%s1441_s23]   ;;  %v1439_v33 = vsel %vm1374_vm0, %v1437_v30, %v1434_v29  ;;  %327 = vst [vmem:[#allocation0 + $0x1f8] sm:$0xf] %v2690_v28  ;;  %s3234_s29 = smov 48  ;;  %s3236_s30 = smov 192 }
  0x3b   :  { %v1447_v34 = vld [vmem:[#allocation0 + $0x89] ss:$16 sm:%s1446_s24]   ;;  %v1444_v36 = vsel %vm1379_vm1, %v1442_v31, %v1439_v33  ;;  %335 = vst [vmem:[#allocation0 + $0x1e8] sm:$0xf] %v2692_v35  ;;  %s1520_s24 = smov 192  ;;  %s3250_s8 = smov 48 }
  0x3c   :  { %v1449_v38 = vsel %vm1384_vm3, %v1447_v34, %v1444_v36  ;;  %343 = vst [vmem:[#allocation0 + $0x1d8] sm:$0xf] %v2694_v37  ;;  %v2683_v6 = vld [vmem:[%s4495_s0 + $0x118] sm:$0xf]  ;;  %v2685_v8 = vld [vmem:[%s4495_s0 + $0x110] sm:$0xf] }
  0x3d   :  { %v1451_v40 = vsel %vm581_vm2, %v1449_v38, %v1431_v32  ;;  %351 = vst [vmem:[#allocation0 + $0x1c8] sm:$0xf] %v2696_v39  ;;  %v2687_v10 = vld [vmem:[%s4495_s0 + $0x108] sm:$0xf]  ;;  %s3252_s9 = smov 192  ;;  %s3258_s12 = smov 3 }
  0x3e   :  { %1452 = vrot.lane.b32.xlu0 %v1451_v40, %s2951_s14  ;;  %359 = vst [vmem:[#allocation0 + $0x1b8] sm:$0xf] %v2698_v41  ;;  %v2689_v11 = vld [vmem:[%s4495_s0 + $0x100] sm:$0xf]  ;;  %s3260_s13 = smov 12  ;;  %s1556_s22 = smov 12 }
  0x3f   :  { %367 = vst [vmem:[#allocation0 + $0x1a8] sm:$0xf] %v2700_v42  ;;  %v2626_v12 = vld [vmem:[%s4495_s0 + $0x1fc] sm:$0xf]  ;;  %v2628_v13 = vld [vmem:[%s4495_s0 + $0x1f4] sm:$0xf] }
  0x40   :  { %375 = vst [vmem:[#allocation0 + $0x198] sm:$0xf] %v2702_v43  ;;  %v1508_v47 = vld [vmem:[#allocation0 + $0x381] ss:$16 sm:%s1507_s15]   ;;  %s3207_s15 = smov 3  ;;  %s3273_s6 = smov 3 }
  0x41   :  { %v1511_v48 = vld [vmem:[#allocation0 + $0x381] ss:$16 sm:%s1510_s16]   ;;  %383 = vst [vmem:[#allocation0 + $0x188] sm:$0xf] %v2704_v44  ;;  %s3209_s16 = smov 12  ;;  %s3275_s7 = smov 12 }
  0x42   :  { %139 = vst [vmem:[#allocation0 + $0x370] sm:$0xf] %v2643_v45  ;;  %v1513_v51 = vsel %vm1374_vm0, %v1511_v48, %v1508_v47  ;;  %v1516_v52 = vld [vmem:[#allocation0 + $0x381] ss:$16 sm:%s1515_s21]   ;;  %s1553_s21 = smov 3  ;;  %s1783_s17 = smov 3 }
  0x43   :  { %147 = vst [vmem:[#allocation0 + $0x360] sm:$0xf] %v2645_v46  ;;  %v1518_v57 = vsel %vm1379_vm1, %v1516_v52, %v1513_v51  ;;  %v1521_v58 = vld [vmem:[#allocation0 + $0x381] ss:$16 sm:%s1520_s24]   ;;  %v2630_v14 = vld [vmem:[%s4495_s0 + $0x1ec] sm:$0xf] }
  0x44   :  { %155 = vst [vmem:[#allocation0 + $0x350] sm:$0xf] %v2647_v49  ;;  %v1523_v1 = vsel %vm1384_vm3, %v1521_v58, %v1518_v57  ;;  %v2632_v17 = vld [vmem:[%s4495_s0 + $0x1e4] sm:$0xf]  ;;  %v2634_v18 = vld [vmem:[%s4495_s0 + $0x1dc] sm:$0xf] }
  0x45   :  { %163 = vst [vmem:[#allocation0 + $0x340] sm:$0xf] %v2649_v50  ;;  %v1554_v19 = vld [vmem:[#allocation0 + $0x3] ss:$16 sm:%s1553_s21]   ;;  %s1786_s18 = smov 12  ;;  %s1791_s24 = smov 48 }
  0x46   :  { %171 = vst [vmem:[#allocation0 + $0x330] sm:$0xf] %v2651_v53  ;;  %v2636_v20 = vld [vmem:[%s4495_s0 + $0x1d4] sm:$0xf]  ;;  %v1557_v21 = vld [vmem:[#allocation0 + $0x3] ss:$16 sm:%s1556_s22]  }
  0x47   :  { %179 = vst [vmem:[#allocation0 + $0x320] sm:$0xf] %v2653_v54  ;;  %s3288_s22 = smov 48  ;;  %v2638_v25 = vld [vmem:[%s4495_s0 + $0x1cc] sm:$0xf]  ;;  %v1559_v30 = vsel %vm1374_vm0, %v1557_v21, %v1554_v19  ;;  %s1809_s10 = smov 48 }
  0x48   :  { %v1526_v61 = vld [vmem:[#allocation0 + $0x189] ss:$16 sm:%s1525_s27]   ;;  %187 = vst [vmem:[#allocation0 + $0x310] sm:$0xf] %v2655_v55  ;;  %s1561_s27 = smov 48  ;;  %s1832_s3 = smov 12 }
  0x49   :  { %v1529_v62 = vld [vmem:[#allocation0 + $0x189] ss:$16 sm:%s1528_s28]   ;;  %195 = vst [vmem:[#allocation0 + $0x300] sm:$0xf] %v2657_v56  ;;  %s3268_s28 = smov 192  ;;  %s1860_s21 = smov 192 }
  0x4a   :  { %v1534_v63 = vld [vmem:[#allocation0 + $0x189] ss:$16 sm:%s1533_s4]   ;;  %v1531_v2 = vsel %vm1374_vm0, %v1529_v62, %v1526_v61  ;;  %267 = vst [vmem:[#allocation0 + $0x270] sm:$0xf] %v2675_v59  ;;  %s3242_s4 = smov 3  ;;  %s1620_s11 = smov 12 }
  0x4b   :  { %v1539_v3 = vld [vmem:[#allocation0 + $0x189] ss:$16 sm:%s1538_s5]   ;;  %v1536_v5 = vsel %vm1379_vm1, %v1534_v63, %v1531_v2  ;;  %s3244_s5 = smov 12  ;;  %275 = vst [vmem:[#allocation0 + $0x260] sm:$0xf] %v2677_v60  ;;  %s1929_s23 = smov 48 }
  0x4c   :  { %v1541_v7 = vsel %vm1384_vm3, %v1539_v3, %v1536_v5  ;;  %283 = vst [vmem:[#allocation0 + $0x250] sm:$0xf] %v2679_v0  ;;  %v1562_v24 = vld [vmem:[#allocation0 + $0x3] ss:$16 sm:%s1561_s27]   ;;  %s1804_s27 = smov 12  ;;  %s2062_s2 = smov 12 }
  0x4d   :  { %v1543_v9 = vsel %vm581_vm2, %v1541_v7, %v1523_v1  ;;  %291 = vst [vmem:[#allocation0 + $0x240] sm:$0xf] %v2681_v4  ;;  %v1784_v26 = vld [vmem:[#allocation0 + $0x1] ss:$16 sm:%s1783_s17]   ;;  %v2640_v29 = vld [vmem:[%s4495_s0 + $0x1c4] sm:$0xf]  ;;  %v1564_v44 = vsel %vm1379_vm1, %v1562_v24, %v1559_v30 }
  0x4e   :  { %1544 = vrot.lane.b32.xlu1 %v1543_v9, %s2951_s14  ;;  %299 = vst [vmem:[#allocation0 + $0x230] sm:$0xf] %v2683_v6  ;;  %v1787_v27 = vld [vmem:[#allocation0 + $0x1] ss:$16 sm:%s1786_s18]   ;;  %v1567_v32 = vld [vmem:[#allocation0 + $0x3] ss:$16 sm:%s3268_s28]  }
  0x4f   :  { %307 = vst [vmem:[#allocation0 + $0x220] sm:$0xf] %v2685_v8  ;;  %v1792_v33 = vld [vmem:[#allocation0 + $0x1] ss:$16 sm:%s1791_s24]   ;;  %v2738_v36 = vld [vmem:[%s4495_s0 + $0x3c] sm:$0xf]  ;;  %v1789_v45 = vsel %vm1374_vm0, %v1787_v27, %v1784_v26  ;;  %v1569_v58 = vsel %vm1384_vm3, %v1567_v32, %v1564_v44 }
  0x50   :  { %315 = vst [vmem:[#allocation0 + $0x210] sm:$0xf] %v2687_v10  ;;  %v1664_v15 = vld [vmem:[#allocation0 + $0x303] ss:$16 sm:%s3226_s25]   ;;  %v1805_v35 = vld [vmem:[#allocation0 + $0x1] ss:$16 sm:%s1804_s27]   ;;  %v1794_v61 = vsel %vm1379_vm1, %v1792_v33, %v1789_v45 }
  0x51   :  { %v1667_v16 = vld [vmem:[#allocation0 + $0x303] ss:$16 sm:%s3228_s26]   ;;  %323 = vst [vmem:[#allocation0 + $0x200] sm:$0xf] %v2689_v11  ;;  %s3300_s26 = smov 192  ;;  %s1847_s17 = smov 3 }
  0x52   :  { %71 = vst [vmem:[#allocation0 + $0x3f8] sm:$0xf] %v2626_v12  ;;  %v1669_v22 = vsel %vm1374_vm0, %v1667_v16, %v1664_v15  ;;  %v1672_v23 = vld [vmem:[#allocation0 + $0x303] ss:$16 sm:%s3234_s29]   ;;  %s1801_s29 = smov 3  ;;  %s1850_s18 = smov 12 }
  0x53   :  { %79 = vst [vmem:[#allocation0 + $0x3e8] sm:$0xf] %v2628_v13  ;;  %v1677_v28 = vld [vmem:[#allocation0 + $0x303] ss:$16 sm:%s3236_s30]   ;;  %v1674_v31 = vsel %vm1379_vm1, %v1672_v23, %v1669_v22  ;;  %v1802_v34 = vld [vmem:[#allocation0 + $0x1] ss:$16 sm:%s1801_s29]  }
  0x54   :  { %87 = vst [vmem:[#allocation0 + $0x3d8] sm:$0xf] %v2630_v14  ;;  %v1692_v37 = vld [vmem:[#allocation0 + $0x303] ss:$16 sm:%s3242_s4]   ;;  %s1796_s4 = smov 192  ;;  %v1679_v49 = vsel %vm1384_vm3, %v1677_v28, %v1674_v31  ;;  %v1807_v51 = vsel %vm1374_vm0, %v1805_v35, %v1802_v34  ;;  %s1612_s25 = smov 192 }
  0x55   :  { %95 = vst [vmem:[#allocation0 + $0x3c8] sm:$0xf] %v2632_v17  ;;  %v1695_v38 = vld [vmem:[#allocation0 + $0x303] ss:$16 sm:%s3244_s5]   ;;  %v1810_v39 = vld [vmem:[#allocation0 + $0x1] ss:$16 sm:%s1809_s10]  }
  0x56   :  { %103 = vst [vmem:[#allocation0 + $0x3b8] sm:$0xf] %v2634_v18  ;;  %s3309_s5 = smov 192  ;;  %v2740_v40 = vld [vmem:[%s4495_s0 + $0x34] sm:$0xf]  ;;  %v1697_v0 = vsel %vm1374_vm0, %v1695_v38, %v1692_v37  ;;  %v1812_v3 = vsel %vm1379_vm1, %v1810_v39, %v1807_v51  ;;  %s3451_s10 = smov 192 }
  0x57   :  { %111 = vst [vmem:[#allocation0 + $0x3a8] sm:$0xf] %v2636_v20  ;;  %v2742_v46 = vld [vmem:[%s4495_s0 + $0x2c] sm:$0xf]  ;;  %v2744_v52 = vld [vmem:[%s4495_s0 + $0x24] sm:$0xf] }
  0x58   :  { %v1646_v41 = vld [vmem:[#allocation0 + $0x203] ss:$16 sm:%s3207_s15]   ;;  %119 = vst [vmem:[#allocation0 + $0x398] sm:$0xf] %v2638_v25  ;;  %v2746_v56 = vld [vmem:[%s4495_s0 + $0x1c] sm:$0xf] }
  0x59   :  { %v1649_v42 = vld [vmem:[#allocation0 + $0x203] ss:$16 sm:%s3209_s16]   ;;  %127 = vst [vmem:[#allocation0 + $0x388] sm:$0xf] %v2640_v29  ;;  %v1797_v62 = vld [vmem:[#allocation0 + $0x1] ss:$16 sm:%s1796_s4]  }
  0x5a   :  { %v1654_v43 = vld [vmem:[#allocation0 + $0x203] ss:$16 sm:%s3214_s19]   ;;  %v1651_v47 = vsel %vm1374_vm0, %v1649_v42, %v1646_v41  ;;  %519 = vst [vmem:[#allocation0 + $0x78] sm:$0xf] %v2738_v36  ;;  %v1815_v4 = vld [vmem:[#allocation0 + $0x1] ss:$16 sm:%s3309_s5]   ;;  %v1799_v12 = vsel %vm1384_vm3, %v1797_v62, %v1794_v61 }
  0x5b   :  { %v1659_v48 = vld [vmem:[#allocation0 + $0x203] ss:$16 sm:%s3216_s20]   ;;  %v1656_v53 = vsel %vm1379_vm1, %v1654_v43, %v1651_v47  ;;  %527 = vst [vmem:[#allocation0 + $0x68] sm:$0xf] %v2740_v40  ;;  %v2748_v6 = vld [vmem:[%s4495_s0 + $0x14] sm:$0xf]  ;;  %v1817_v13 = vsel %vm1384_vm3, %v1815_v4, %v1812_v3 }
  0x5c   :  { %v1572_v50 = vld [vmem:[#allocation0 + $0x203] ss:$16 sm:%s3273_s6]   ;;  %v1661_v57 = vsel %vm1384_vm3, %v1659_v48, %v1656_v53  ;;  %535 = vst [vmem:[#allocation0 + $0x58] sm:$0xf] %v2742_v46  ;;  %v2750_v8 = vld [vmem:[%s4495_s0 + $0xc] sm:$0xf]  ;;  %v1819_v23 = vsel %vm581_vm2, %v1817_v13, %v1799_v12 }
  0x5d   :  { %v1575_v54 = vld [vmem:[#allocation0 + $0x203] ss:$16 sm:%s3275_s7]   ;;  %v1681_v63 = vsel %vm581_vm2, %v1679_v49, %v1661_v57  ;;  %543 = vst [vmem:[#allocation0 + $0x48] sm:$0xf] %v2744_v52  ;;  %v2752_v9 = vld [vmem:[%s4495_s0 + $0x4] sm:$0xf] }
  0x5e   :  { %v1580_v55 = vld [vmem:[#allocation0 + $0x203] ss:$16 sm:%s3288_s22]   ;;  %v1577_v59 = vsel %vm1374_vm0, %v1575_v54, %v1572_v50  ;;  %1682 = vrot.lane.b32.xlu0 %v1681_v63, %s2951_s14  ;;  %s1829_s22 = smov 3  ;;  %551 = vst [vmem:[#allocation0 + $0x38] sm:$0xf] %v2746_v56  ;;  %s1599_s6 = smov 3 }
  0x5f   :  { %v1585_v60 = vld [vmem:[#allocation0 + $0x203] ss:$16 sm:%s3300_s26]   ;;  %v1582_v2 = vsel %vm1379_vm1, %v1580_v55, %v1577_v59  ;;  %v2658_v14 = vld [vmem:[%s4495_s0 + $0x17c] sm:$0xf]  ;;  %559 = vst [vmem:[#allocation0 + $0x28] sm:$0xf] %v2748_v6 }
  0x60   :  { %v1700_v1 = vld [vmem:[#allocation0 + $0x303] ss:$16 sm:%s3250_s8]   ;;  %s1717_s8 = smov 48  ;;  %v1587_v5 = vsel %vm1384_vm3, %v1585_v60, %v1582_v2  ;;  %v1830_v15 = vld [vmem:[#allocation0 + $0x101] ss:$16 sm:%s1829_s22]   ;;  %s1837_s26 = smov 48 }
  0x61   :  { %v1589_v7 = vsel %vm581_vm2, %v1587_v5, %v1569_v58  ;;  %v1702_v10 = vsel %vm1379_vm1, %v1700_v1, %v1697_v0  ;;  %v1705_v11 = vld [vmem:[#allocation0 + $0x303] ss:$16 sm:%s3252_s9]   ;;  %s1722_s9 = smov 192  ;;  %v2660_v16 = vld [vmem:[%s4495_s0 + $0x174] sm:$0xf]  ;;  %s1602_s7 = smov 12 }
  0x62   :  { %1590 = vrot.lane.b32.xlu2 %v1589_v7, %s2951_s14  ;;  %v1710_v17 = vld [vmem:[#allocation0 + $0x389] ss:$16 sm:%s3258_s12]   ;;  %v1707_v20 = vsel %vm1384_vm3, %v1705_v11, %v1702_v10  ;;  %567 = vst [vmem:[#allocation0 + $0x18] sm:$0xf] %v2750_v8  ;;  %v1833_v24 = vld [vmem:[#allocation0 + $0x101] ss:$16 sm:%s1832_s3]  }
  0x63   :  { %v1713_v18 = vld [vmem:[#allocation0 + $0x389] ss:$16 sm:%s3260_s13]   ;;  %575 = vst [vmem:[#allocation0 + $0x8] sm:$0xf] %v2752_v9  ;;  %s1842_s12 = smov 192  ;;  %v1835_v31 = vsel %vm1374_vm0, %v1833_v24, %v1830_v15  ;;  %s1617_s13 = smov 3 }
  0x64   :  { %v1718_v19 = vld [vmem:[#allocation0 + $0x389] ss:$16 sm:%s1717_s8]   ;;  %v1715_v21 = vsel %vm1374_vm0, %v1713_v18, %v1710_v17  ;;  %v2662_v26 = vld [vmem:[%s4495_s0 + $0x16c] sm:$0xf]  ;;  %v1838_v28 = vld [vmem:[#allocation0 + $0x101] ss:$16 sm:%s1837_s26]  }
  0x65   :  { %v1723_v22 = vld [vmem:[#allocation0 + $0x389] ss:$16 sm:%s1722_s9]   ;;  %v1720_v25 = vsel %vm1379_vm1, %v1718_v19, %v1715_v21  ;;  %199 = vst [vmem:[#allocation0 + $0x2f8] sm:$0xf] %v2658_v14  ;;  %v2664_v29 = vld [vmem:[%s4495_s0 + $0x164] sm:$0xf]  ;;  %v1840_v36 = vsel %vm1379_vm1, %v1838_v28, %v1835_v31 }
  0x66   :  { %v1725_v27 = vsel %vm1384_vm3, %v1723_v22, %v1720_v25  ;;  %1820 = vrot.lane.b32.xlu0 %v1819_v23, %s2951_s14  ;;  %207 = vst [vmem:[#allocation0 + $0x2e8] sm:$0xf] %v2660_v16  ;;  %v2666_v32 = vld [vmem:[%s4495_s0 + $0x15c] sm:$0xf]  ;;  %v1843_v33 = vld [vmem:[#allocation0 + $0x101] ss:$16 sm:%s1842_s12]  }
  0x67   :  { %v1727_v30 = vsel %vm581_vm2, %v1725_v27, %v1707_v20  ;;  %215 = vst [vmem:[#allocation0 + $0x2d8] sm:$0xf] %v2662_v26  ;;  %v2668_v34 = vld [vmem:[%s4495_s0 + $0x154] sm:$0xf]  ;;  %s1855_s8 = smov 48  ;;  %s1607_s9 = smov 48  ;;  %v1845_v44 = vsel %vm1384_vm3, %v1843_v33, %v1840_v36 }
  0x68   :  { %1728 = vrot.lane.b32.xlu1 %v1727_v30, %s2951_s14  ;;  %223 = vst [vmem:[#allocation0 + $0x2c8] sm:$0xf] %v2664_v29  ;;  %v2670_v35 = vld [vmem:[%s4495_s0 + $0x14c] sm:$0xf]  ;;  %v2672_v37 = vld [vmem:[%s4495_s0 + $0x144] sm:$0xf] }
  0x69   :  { %231 = vst [vmem:[#allocation0 + $0x2b8] sm:$0xf] %v2666_v32  ;;  %v2706_v38 = vld [vmem:[%s4495_s0 + $0xbc] sm:$0xf]  ;;  %v1600_v39 = vld [vmem:[#allocation0 + $0x103] ss:$16 sm:%s1599_s6]  }
  0x6a   :  { %239 = vst [vmem:[#allocation0 + $0x2a8] sm:$0xf] %v2668_v34  ;;  %v1603_v40 = vld [vmem:[#allocation0 + $0x103] ss:$16 sm:%s1602_s7]   ;;  %v1848_v41 = vld [vmem:[#allocation0 + $0xb] ss:$16 sm:%s1847_s17]  }
  0x6b   :  { %v1851_v42 = vld [vmem:[#allocation0 + $0xb] ss:$16 sm:%s1850_s18]   ;;  %247 = vst [vmem:[#allocation0 + $0x298] sm:$0xf] %v2670_v35  ;;  %v2708_v47 = vld [vmem:[%s4495_s0 + $0xb4] sm:$0xf]  ;;  %v1605_v54 = vsel %vm1374_vm0, %v1603_v40, %v1600_v39 }
  0x6c   :  { %v1856_v43 = vld [vmem:[#allocation0 + $0xb] ss:$16 sm:%s1855_s8]   ;;  %v1853_v45 = vsel %vm1374_vm0, %v1851_v42, %v1848_v41  ;;  %255 = vst [vmem:[#allocation0 + $0x288] sm:$0xf] %v2672_v37  ;;  %v2710_v49 = vld [vmem:[%s4495_s0 + $0xac] sm:$0xf] }
  0x6d   :  { %v1861_v46 = vld [vmem:[#allocation0 + $0xb] ss:$16 sm:%s1860_s21]   ;;  %v1858_v48 = vsel %vm1379_vm1, %v1856_v43, %v1853_v45  ;;  %v1608_v51 = vld [vmem:[#allocation0 + $0x103] ss:$16 sm:%s1607_s9]   ;;  %391 = vst [vmem:[#allocation0 + $0x178] sm:$0xf] %v2706_v38 }
  0x6e   :  { %v1863_v50 = vsel %vm1384_vm3, %v1861_v46, %v1858_v48  ;;  %v2712_v52 = vld [vmem:[%s4495_s0 + $0xa4] sm:$0xf]  ;;  %399 = vst [vmem:[#allocation0 + $0x168] sm:$0xf] %v2708_v47  ;;  %v2714_v55 = vld [vmem:[%s4495_s0 + $0x9c] sm:$0xf]  ;;  %v1610_v58 = vsel %vm1379_vm1, %v1608_v51, %v1605_v54 }
  0x6f   :  { %v1865_v53 = vsel %vm581_vm2, %v1863_v50, %v1845_v44  ;;  %407 = vst [vmem:[#allocation0 + $0x158] sm:$0xf] %v2710_v49  ;;  %v2716_v56 = vld [vmem:[%s4495_s0 + $0x94] sm:$0xf]  ;;  %s1921_s15 = smov 3  ;;  %s1924_s16 = smov 12 }
  0x70   :  { %1866 = vrot.lane.b32.xlu1 %v1865_v53, %s2951_s14  ;;  %v1613_v57 = vld [vmem:[#allocation0 + $0x103] ss:$16 sm:%s1612_s25]   ;;  %s1625_s19 = smov 48  ;;  %s1630_s20 = smov 192  ;;  %415 = vst [vmem:[#allocation0 + $0x148] sm:$0xf] %v2712_v52 }
  0x71   :  { %423 = vst [vmem:[#allocation0 + $0x138] sm:$0xf] %v2714_v55  ;;  %v2718_v59 = vld [vmem:[%s4495_s0 + $0x8c] sm:$0xf]  ;;  %v2720_v60 = vld [vmem:[%s4495_s0 + $0x84] sm:$0xf]  ;;  %v1615_v3 = vsel %vm1384_vm3, %v1613_v57, %v1610_v58 }
  0x72   :  { %431 = vst [vmem:[#allocation0 + $0x128] sm:$0xf] %v2716_v56  ;;  %v1922_v61 = vld [vmem:[#allocation0 + $0x301] ss:$16 sm:%s1921_s15]   ;;  %s1934_s22 = smov 192  ;;  %s3441_s9 = smov 3 }
  0x73   :  { %v1925_v62 = vld [vmem:[#allocation0 + $0x301] ss:$16 sm:%s1924_s16]   ;;  %v2611_v63 = vld [vmem:[%s4495_s0 + $0x238] sm:$0xf]  ;;  %439 = vst [vmem:[#allocation0 + $0x118] sm:$0xf] %v2718_v59 }
  0x74   :  { %v1618_v0 = vld [vmem:[#allocation0 + $0x289] ss:$16 sm:%s1617_s13]   ;;  %v2613_v6 = vld [vmem:[%s4495_s0 + $0x230] sm:$0xf]  ;;  %447 = vst [vmem:[#allocation0 + $0x108] sm:$0xf] %v2720_v60  ;;  %v1927_v13 = vsel %vm1374_vm0, %v1925_v62, %v1922_v61 }
  0x75   :  { %v1621_v1 = vld [vmem:[#allocation0 + $0x289] ss:$16 sm:%s1620_s11]   ;;  %v1930_v8 = vld [vmem:[#allocation0 + $0x301] ss:$16 sm:%s1929_s23]   ;;  %s3443_s3 = smov 12  ;;  %s3449_s26 = smov 48 }
  0x76   :  { %v1626_v2 = vld [vmem:[#allocation0 + $0x289] ss:$16 sm:%s1625_s19]   ;;  %v1623_v4 = vsel %vm1374_vm0, %v1621_v1, %v1618_v0  ;;  %11 = vst [vmem:[#allocation0 + $0x470] sm:$0xf] %v2611_v63  ;;  %v2617_v11 = vld [vmem:[%s4495_s0 + $0x220] sm:$0xf]  ;;  %v1932_v19 = vsel %vm1379_vm1, %v1930_v8, %v1927_v13 }
  0x77   :  { %v1631_v5 = vld [vmem:[#allocation0 + $0x289] ss:$16 sm:%s1630_s20]   ;;  %v1628_v7 = vsel %vm1379_vm1, %v1626_v2, %v1623_v4  ;;  %19 = vst [vmem:[#allocation0 + $0x460] sm:$0xf] %v2613_v6  ;;  %v2621_v15 = vld [vmem:[%s4495_s0 + $0x210] sm:$0xf] }
  0x78   :  { %v2615_v9 = vld [vmem:[%s4495_s0 + $0x228] sm:$0xf]  ;;  %v1633_v10 = vsel %vm1384_vm3, %v1631_v5, %v1628_v7  ;;  %v2619_v14 = vld [vmem:[%s4495_s0 + $0x218] sm:$0xf]  ;;  %v1935_v16 = vld [vmem:[#allocation0 + $0x301] ss:$16 sm:%s1934_s22]  }
  0x79   :  { %v1635_v12 = vsel %vm581_vm2, %v1633_v10, %v1615_v3  ;;  %27 = vst [vmem:[#allocation0 + $0x450] sm:$0xf] %v2615_v9  ;;  %v2623_v17 = vld [vmem:[%s4495_s0 + $0x208] sm:$0xf]  ;;  %s1985_s15 = smov 3  ;;  %s1988_s16 = smov 12  ;;  %v1937_v26 = vsel %vm1384_vm3, %v1935_v16, %v1932_v19 }
  0x7a   :  { %1636 = vrot.lane.b32.xlu2 %v1635_v12, %s2951_s14  ;;  %35 = vst [vmem:[#allocation0 + $0x440] sm:$0xf] %v2617_v11  ;;  %v2625_v18 = vld [vmem:[%s4495_s0 + $0x200] sm:$0xf]  ;;  %s3471_s6 = smov 3  ;;  %s3473_s7 = smov 12 }
  0x7b   :  { %43 = vst [vmem:[#allocation0 + $0x430] sm:$0xf] %v2619_v14  ;;  %s3476_s8 = smov 48  ;;  %s3478_s21 = smov 192  ;;  %v2642_v20 = vld [vmem:[%s4495_s0 + $0x1bc] sm:$0xf] }
  0x7c   :  { %51 = vst [vmem:[#allocation0 + $0x420] sm:$0xf] %v2621_v15  ;;  %v1986_v21 = vld [vmem:[#allocation0 + $0x201] ss:$16 sm:%s1985_s15]   ;;  %s1993_s24 = smov 48  ;;  %s3483_s29 = smov 192 }
  0x7d   :  { %v1989_v22 = vld [vmem:[#allocation0 + $0x201] ss:$16 sm:%s1988_s16]   ;;  %v1940_v23 = vld [vmem:[#allocation0 + $0x10b] ss:$16 sm:%s3441_s9]   ;;  %59 = vst [vmem:[#allocation0 + $0x410] sm:$0xf] %v2623_v17 }
  0x7e   :  { %v1943_v24 = vld [vmem:[#allocation0 + $0x10b] ss:$16 sm:%s3443_s3]   ;;  %s2059_s27 = smov 3  ;;  %v2644_v29 = vld [vmem:[%s4495_s0 + $0x1b4] sm:$0xf]  ;;  %v1991_v39 = vsel %vm1374_vm0, %v1989_v22, %v1986_v21  ;;  %s2077_s13 = smov 3 }
  0x7f   :  { %v1948_v25 = vld [vmem:[#allocation0 + $0x10b] ss:$16 sm:%s3449_s26]   ;;  %v1945_v27 = vsel %vm1374_vm0, %v1943_v24, %v1940_v23  ;;  %67 = vst [vmem:[#allocation0 + $0x400] sm:$0xf] %v2625_v18  ;;  %v2060_v31 = vld [vmem:[#allocation0 + $0x183] ss:$16 sm:%s2059_s27]  }
  0x80   :  { %v1953_v28 = vld [vmem:[#allocation0 + $0x10b] ss:$16 sm:%s3451_s10]   ;;  %v1950_v30 = vsel %vm1379_vm1, %v1948_v25, %v1945_v27  ;;  %v2063_v32 = vld [vmem:[#allocation0 + $0x183] ss:$16 sm:%s2062_s2]   ;;  %v2646_v33 = vld [vmem:[%s4495_s0 + $0x1ac] sm:$0xf] }
  0x81   :  { %v1955_v34 = vsel %vm1384_vm3, %v1953_v28, %v1950_v30  ;;  %v1994_v35 = vld [vmem:[#allocation0 + $0x201] ss:$16 sm:%s1993_s24]   ;;  %v2065_v36 = vsel %vm1374_vm0, %v2063_v32, %v2060_v31  ;;  %s2067_s26 = smov 48  ;;  %s2072_s10 = smov 192  ;;  %135 = vst [vmem:[#allocation0 + $0x378] sm:$0xf] %v2642_v20 }
  0x82   :  { %v2648_v37 = vld [vmem:[%s4495_s0 + $0x1a4] sm:$0xf]  ;;  %v1957_v38 = vsel %vm581_vm2, %v1955_v34, %v1937_v26  ;;  %v2068_v40 = vld [vmem:[#allocation0 + $0x183] ss:$16 sm:%s2067_s26]   ;;  %s2080_s11 = smov 12  ;;  %s2085_s4 = smov 48  ;;  %v1996_v49 = vsel %vm1379_vm1, %v1994_v35, %v1991_v39 }
  0x83   :  { %v2073_v41 = vld [vmem:[#allocation0 + $0x183] ss:$16 sm:%s2072_s10]   ;;  %1958 = vrot.lane.b32.xlu0 %v1957_v38, %s2951_s14  ;;  %v1999_v42 = vld [vmem:[#allocation0 + $0x201] ss:$16 sm:%s3483_s29]   ;;  %v2070_v43 = vsel %vm1379_vm1, %v2068_v40, %v2065_v36  ;;  %s2090_s5 = smov 192  ;;  %s2105_s23 = smov 3 }
  0x84   :  { %v2078_v44 = vld [vmem:[#allocation0 + $0x301] ss:$16 sm:%s2077_s13]   ;;  %143 = vst [vmem:[#allocation0 + $0x368] sm:$0xf] %v2644_v29  ;;  %v2075_v50 = vsel %vm1384_vm3, %v2073_v41, %v2070_v43  ;;  %v2650_v52 = vld [vmem:[%s4495_s0 + $0x19c] sm:$0xf]  ;;  %v2001_v61 = vsel %vm1384_vm3, %v1999_v42, %v1996_v49 }
  0x85   :  { %v2081_v45 = vld [vmem:[#allocation0 + $0x301] ss:$16 sm:%s2080_s11]   ;;  %151 = vst [vmem:[#allocation0 + $0x358] sm:$0xf] %v2646_v33  ;;  %v2652_v53 = vld [vmem:[%s4495_s0 + $0x194] sm:$0xf] }
  0x86   :  { %v2083_v46 = vsel %vm1374_vm0, %v2081_v45, %v2078_v44  ;;  %v2086_v47 = vld [vmem:[#allocation0 + $0x301] ss:$16 sm:%s2085_s4]   ;;  %159 = vst [vmem:[#allocation0 + $0x348] sm:$0xf] %v2648_v37  ;;  %v2654_v55 = vld [vmem:[%s4495_s0 + $0x18c] sm:$0xf] }
  0x87   :  { %v2091_v48 = vld [vmem:[#allocation0 + $0x301] ss:$16 sm:%s2090_s5]   ;;  %v2088_v51 = vsel %vm1379_vm1, %v2086_v47, %v2083_v46  ;;  %s2108_s22 = smov 12  ;;  %167 = vst [vmem:[#allocation0 + $0x338] sm:$0xf] %v2650_v52  ;;  %s3536_s24 = smov 3 }
  0x88   :  { %v2093_v54 = vsel %vm1384_vm3, %v2091_v48, %v2088_v51  ;;  %v1968_v56 = vld [vmem:[#allocation0 + $0x401] ss:$16 sm:%s3471_s6]   ;;  %v2656_v63 = vld [vmem:[%s4495_s0 + $0x184] sm:$0xf]  ;;  %175 = vst [vmem:[#allocation0 + $0x328] sm:$0xf] %v2652_v53 }
  0x89   :  { %v1971_v57 = vld [vmem:[#allocation0 + $0x401] ss:$16 sm:%s3473_s7]   ;;  %v2095_v62 = vsel %vm581_vm2, %v2093_v54, %v2075_v50  ;;  %v2106_v1 = vld [vmem:[#allocation0 + $0x283] ss:$16 sm:%s2105_s23]   ;;  %183 = vst [vmem:[#allocation0 + $0x318] sm:$0xf] %v2654_v55 }
  0x8a   :  { %v1976_v58 = vld [vmem:[#allocation0 + $0x401] ss:$16 sm:%s3476_s8]   ;;  %v1973_v59 = vsel %vm1374_vm0, %v1971_v57, %v1968_v56  ;;  %v2109_v3 = vld [vmem:[#allocation0 + $0x283] ss:$16 sm:%s2108_s22]   ;;  %s2113_s8 = smov 48  ;;  %s3538_s29 = smov 12 }
  0x8b   :  { %v1981_v60 = vld [vmem:[#allocation0 + $0x401] ss:$16 sm:%s3478_s21]   ;;  %v1978_v0 = vsel %vm1379_vm1, %v1976_v58, %v1973_v59  ;;  %s2118_s21 = smov 192  ;;  %2096 = vrot.lane.b32.xlu0 %v2095_v62, %s2951_s14  ;;  %191 = vst [vmem:[#allocation0 + $0x308] sm:$0xf] %v2656_v63  ;;  %s3544_s9 = smov 48  ;;  %v2111_v7 = vsel %vm1374_vm0, %v2109_v3, %v2106_v1 }
  0x8c   :  { %v1983_v2 = vsel %vm1384_vm3, %v1981_v60, %v1978_v0  ;;  %v2610_v5 = vld [vmem:[%s4495_s0 + $0x23c] sm:$0xf]  ;;  %s3546_s3 = smov 192  ;;  %v2612_v6 = vld [vmem:[%s4495_s0 + $0x234] sm:$0xf]  ;;  %s1737_s26 = smov 3 }
  0x8d   :  { %v2003_v4 = vsel %vm581_vm2, %v2001_v61, %v1983_v2  ;;  %7 = vst [vmem:[#allocation0 + $0x478] sm:$0xf] %v2610_v5  ;;  %v2114_v8 = vld [vmem:[#allocation0 + $0x283] ss:$16 sm:%s2113_s8]   ;;  %s1740_s10 = smov 12  ;;  %s1745_s28 = smov 48 }
  0x8e   :  { %2004 = vrot.lane.b32.xlu1 %v2003_v4, %s2951_s14  ;;  %15 = vst [vmem:[#allocation0 + $0x468] sm:$0xf] %v2612_v6  ;;  %v2119_v9 = vld [vmem:[#allocation0 + $0x283] ss:$16 sm:%s2118_s21]   ;;  %s1750_s12 = smov 192  ;;  %s1755_s13 = smov 3  ;;  %v2116_v16 = vsel %vm1379_vm1, %v2114_v8, %v2111_v7 }
  0x8f   :  { %v1738_v10 = vld [vmem:[#allocation0 + $0x403] ss:$16 sm:%s1737_s26]   ;;  %s1758_s11 = smov 12  ;;  %v2614_v15 = vld [vmem:[%s4495_s0 + $0x22c] sm:$0xf]  ;;  %s1763_s17 = smov 48  ;;  %v2121_v28 = vsel %vm1384_vm3, %v2119_v9, %v2116_v16 }
  0x90   :  { %v1741_v11 = vld [vmem:[#allocation0 + $0x403] ss:$16 sm:%s1740_s10]   ;;  %s1768_s18 = smov 192  ;;  %s2220_s15 = smov 3  ;;  %23 = vst [vmem:[#allocation0 + $0x458] sm:$0xf] %v2614_v15 }
  0x91   :  { %v1743_v12 = vsel %vm1374_vm0, %v1741_v11, %v1738_v10  ;;  %v1746_v13 = vld [vmem:[#allocation0 + $0x403] ss:$16 sm:%s1745_s28]   ;;  %s2223_s16 = smov 12  ;;  %v2221_v32 = vld [vmem:[#allocation0 + $0x9] ss:$16 sm:%s2220_s15]   ;;  %s2228_s19 = smov 48 }
  0x92   :  { %v1751_v14 = vld [vmem:[#allocation0 + $0x403] ss:$16 sm:%s1750_s12]   ;;  %v1748_v17 = vsel %vm1379_vm1, %v1746_v13, %v1743_v12  ;;  %v2124_v24 = vld [vmem:[#allocation0 + $0x30b] ss:$16 sm:%s3536_s24]   ;;  %v2224_v33 = vld [vmem:[#allocation0 + $0x9] ss:$16 sm:%s2223_s16]  }
  0x93   :  { %v1756_v18 = vld [vmem:[#allocation0 + $0x403] ss:$16 sm:%s1755_s13]   ;;  %v1753_v20 = vsel %vm1384_vm3, %v1751_v14, %v1748_v17  ;;  %v2127_v25 = vld [vmem:[#allocation0 + $0x30b] ss:$16 sm:%s3538_s29]   ;;  %s2233_s20 = smov 192  ;;  %s1875_s23 = smov 3  ;;  %v2226_v40 = vsel %vm1374_vm0, %v2224_v33, %v2221_v32 }
  0x94   :  { %v1759_v19 = vld [vmem:[#allocation0 + $0x403] ss:$16 sm:%s1758_s11]   ;;  %v2132_v26 = vld [vmem:[#allocation0 + $0x30b] ss:$16 sm:%s3544_s9]   ;;  %v2129_v29 = vsel %vm1374_vm0, %v2127_v25, %v2124_v24  ;;  %v2229_v37 = vld [vmem:[#allocation0 + $0x9] ss:$16 sm:%s2228_s19]  }
  0x95   :  { %v1761_v21 = vsel %vm1374_vm0, %v1759_v19, %v1756_v18  ;;  %v1764_v22 = vld [vmem:[#allocation0 + $0x403] ss:$16 sm:%s1763_s17]   ;;  %v2137_v30 = vld [vmem:[#allocation0 + $0x30b] ss:$16 sm:%s3546_s3]   ;;  %v2134_v34 = vsel %vm1379_vm1, %v2132_v26, %v2129_v29  ;;  %s1878_s22 = smov 12  ;;  %s1883_s8 = smov 48  ;;  %v2231_v50 = vsel %vm1379_vm1, %v2229_v37, %v2226_v40 }
  0x96   :  { %v1769_v23 = vld [vmem:[#allocation0 + $0x403] ss:$16 sm:%s1768_s18]   ;;  %v1766_v27 = vsel %vm1379_vm1, %v1764_v22, %v1761_v21  ;;  %v2139_v36 = vsel %vm1384_vm3, %v2137_v30, %v2134_v34  ;;  %v2616_v38 = vld [vmem:[%s4495_s0 + $0x224] sm:$0xf]  ;;  %v1876_v41 = vld [vmem:[#allocation0 + $0x201] ss:$16 sm:%s1875_s23]  }
  0x97   :  { %v1771_v31 = vsel %vm1384_vm3, %v1769_v23, %v1766_v27  ;;  %v2141_v39 = vsel %vm581_vm2, %v2139_v36, %v2121_v28  ;;  %v1879_v42 = vld [vmem:[#allocation0 + $0x201] ss:$16 sm:%s1878_s22]   ;;  %s1888_s21 = smov 192  ;;  %v2234_v43 = vld [vmem:[#allocation0 + $0x9] ss:$16 sm:%s2233_s20]   ;;  %s1893_s24 = smov 3 }
  0x98   :  { %v1773_v35 = vsel %vm581_vm2, %v1771_v31, %v1753_v20  ;;  %2142 = vrot.lane.b32.xlu1 %v2141_v39, %s2951_s14  ;;  %v1881_v44 = vsel %vm1374_vm0, %v1879_v42, %v1876_v41  ;;  %v1884_v45 = vld [vmem:[#allocation0 + $0x201] ss:$16 sm:%s1883_s8]   ;;  %s1896_s29 = smov 12  ;;  %s1901_s27 = smov 48  ;;  %31 = vst [vmem:[#allocation0 + $0x448] sm:$0xf] %v2616_v38  ;;  %v2236_v61 = vsel %vm1384_vm3, %v2234_v43, %v2231_v50 }
  0x99   :  { %1774 = vrot.lane.b32.xlu2 %v1773_v35, %s2951_s14  ;;  %v1889_v46 = vld [vmem:[#allocation0 + $0x201] ss:$16 sm:%s1888_s21]   ;;  %v1886_v47 = vsel %vm1379_vm1, %v1884_v45, %v1881_v44  ;;  %s1906_s2 = smov 192  ;;  %v2618_v56 = vld [vmem:[%s4495_s0 + $0x21c] sm:$0xf]  ;;  %s3597_s13 = smov 3 }
  0x9a   :  { %v1894_v48 = vld [vmem:[#allocation0 + $0x101] ss:$16 sm:%s1893_s24]   ;;  %v1891_v51 = vsel %vm1384_vm3, %v1889_v46, %v1886_v47  ;;  %v2620_v57 = vld [vmem:[%s4495_s0 + $0x214] sm:$0xf]  ;;  %v2622_v58 = vld [vmem:[%s4495_s0 + $0x20c] sm:$0xf] }
  0x9b   :  { %v1897_v49 = vld [vmem:[#allocation0 + $0x101] ss:$16 sm:%s1896_s29]   ;;  %39 = vst [vmem:[#allocation0 + $0x438] sm:$0xf] %v2618_v56  ;;  %v2624_v60 = vld [vmem:[%s4495_s0 + $0x204] sm:$0xf] }
  0x9c   :  { %v1899_v52 = vsel %vm1374_vm0, %v1897_v49, %v1894_v48  ;;  %v1902_v53 = vld [vmem:[#allocation0 + $0x101] ss:$16 sm:%s1901_s27]   ;;  %s3599_s11 = smov 12  ;;  %47 = vst [vmem:[#allocation0 + $0x428] sm:$0xf] %v2620_v57  ;;  %s3603_s4 = smov 48 }
  0x9d   :  { %v1907_v54 = vld [vmem:[#allocation0 + $0x101] ss:$16 sm:%s1906_s2]   ;;  %v1904_v55 = vsel %vm1379_vm1, %v1902_v53, %v1899_v52  ;;  %s3605_s5 = smov 192  ;;  %v2674_v63 = vld [vmem:[%s4495_s0 + $0x13c] sm:$0xf]  ;;  %s2289_s15 = smov 3 }
  0x9e   :  { %v1909_v59 = vsel %vm1384_vm3, %v1907_v54, %v1904_v55  ;;  %55 = vst [vmem:[#allocation0 + $0x418] sm:$0xf] %v2622_v58  ;;  %s2292_s16 = smov 12  ;;  %v2676_v0 = vld [vmem:[%s4495_s0 + $0x134] sm:$0xf]  ;;  %s2297_s23 = smov 48 }
  0x9f   :  { %v1911_v62 = vsel %vm581_vm2, %v1909_v59, %v1891_v51  ;;  %63 = vst [vmem:[#allocation0 + $0x408] sm:$0xf] %v2624_v60  ;;  %v2290_v1 = vld [vmem:[#allocation0 + $0x183] ss:$16 sm:%s2289_s15]   ;;  %s2302_s22 = smov 192  ;;  %s2016_s26 = smov 12 }
  0xa0   :  { %v2293_v2 = vld [vmem:[#allocation0 + $0x183] ss:$16 sm:%s2292_s16]   ;;  %2237 = vrot.lane.b32.xlu1 %v2236_v61, %s2951_s14  ;;  %263 = vst [vmem:[#allocation0 + $0x278] sm:$0xf] %v2674_v63  ;;  %v2678_v4 = vld [vmem:[%s4495_s0 + $0x12c] sm:$0xf] }
  0xa1   :  { %1912 = vrot.lane.b32.xlu2 %v1911_v62, %s2951_s14  ;;  %v2295_v3 = vsel %vm1374_vm0, %v2293_v2, %v2290_v1  ;;  %v2298_v5 = vld [vmem:[#allocation0 + $0x183] ss:$16 sm:%s2297_s23]   ;;  %271 = vst [vmem:[#allocation0 + $0x268] sm:$0xf] %v2676_v0  ;;  %v2680_v8 = vld [vmem:[%s4495_s0 + $0x124] sm:$0xf] }
  0xa2   :  { %v2303_v6 = vld [vmem:[#allocation0 + $0x183] ss:$16 sm:%s2302_s22]   ;;  %v2300_v7 = vsel %vm1379_vm1, %v2298_v5, %v2295_v3  ;;  %279 = vst [vmem:[#allocation0 + $0x258] sm:$0xf] %v2678_v4  ;;  %v2682_v9 = vld [vmem:[%s4495_s0 + $0x11c] sm:$0xf] }
  0xa3   :  { %287 = vst [vmem:[#allocation0 + $0x248] sm:$0xf] %v2680_v8  ;;  %v2684_v10 = vld [vmem:[%s4495_s0 + $0x114] sm:$0xf]  ;;  %v2686_v11 = vld [vmem:[%s4495_s0 + $0x10c] sm:$0xf]  ;;  %v2305_v13 = vsel %vm1384_vm3, %v2303_v6, %v2300_v7 }
  0xa4   :  { %295 = vst [vmem:[#allocation0 + $0x238] sm:$0xf] %v2682_v9  ;;  %v2688_v12 = vld [vmem:[%s4495_s0 + $0x104] sm:$0xf]  ;;  %s2013_s0 = smov 3  ;;  %s2021_s10 = smov 48 }
  0xa5   :  { %303 = vst [vmem:[#allocation0 + $0x228] sm:$0xf] %v2684_v10  ;;  %v2014_v14 = vld [vmem:[#allocation0 + $0x83] ss:$16 sm:%s2013_s0]   ;;  %s2026_s28 = smov 192  ;;  %s2031_s12 = smov 3 }
  0xa6   :  { %v2017_v15 = vld [vmem:[#allocation0 + $0x83] ss:$16 sm:%s2016_s26]   ;;  %v2198_v16 = vld [vmem:[#allocation0 + $0x40b] ss:$16 sm:%s3597_s13]   ;;  %311 = vst [vmem:[#allocation0 + $0x218] sm:$0xf] %v2686_v11 }
  0xa7   :  { %v2201_v17 = vld [vmem:[#allocation0 + $0x40b] ss:$16 sm:%s3599_s11]   ;;  %319 = vst [vmem:[#allocation0 + $0x208] sm:$0xf] %v2688_v12  ;;  %s2034_s13 = smov 12  ;;  %v2019_v23 = vsel %vm1374_vm0, %v2017_v15, %v2014_v14  ;;  %s2039_s11 = smov 48 }
  0xa8   :  { %v2206_v18 = vld [vmem:[#allocation0 + $0x40b] ss:$16 sm:%s3603_s4]   ;;  %v2203_v19 = vsel %vm1374_vm0, %v2201_v17, %v2198_v16  ;;  %2306 = vrot.lane.b32.xlu1 %v2305_v13, %s2951_s14  ;;  %v2022_v24 = vld [vmem:[#allocation0 + $0x83] ss:$16 sm:%s2021_s10]   ;;  %s2044_s4 = smov 192  ;;  %s2269_s17 = smov 12 }
  0xa9   :  { %v2211_v20 = vld [vmem:[#allocation0 + $0x40b] ss:$16 sm:%s3605_s5]   ;;  %v2208_v21 = vsel %vm1379_vm1, %v2206_v18, %v2203_v19  ;;  %v2027_v25 = vld [vmem:[#allocation0 + $0x83] ss:$16 sm:%s2026_s28]   ;;  %s2266_s5 = smov 3  ;;  %s2274_s18 = smov 48  ;;  %v2024_v28 = vsel %vm1379_vm1, %v2022_v24, %v2019_v23 }
  0xaa   :  { %v2213_v22 = vsel %vm1384_vm3, %v2211_v20, %v2208_v21  ;;  %v2267_v26 = vld [vmem:[#allocation0 + $0x109] ss:$16 sm:%s2266_s5]   ;;  %s2279_s15 = smov 192  ;;  %s2358_s16 = smov 3  ;;  %v2029_v40 = vsel %vm1384_vm3, %v2027_v25, %v2024_v28  ;;  %vm1411_vm4 = vcmask 1048064  }
  0xab   :  { %2214 = vrot.lane.b32.xlu0 %v2213_v22, %s2951_s14  ;;  %v2270_v27 = vld [vmem:[#allocation0 + $0x109] ss:$16 sm:%s2269_s17]   ;;  %s2361_s19 = smov 12  ;;  %s2366_s20 = smov 48 }
  0xac   :  { %v2272_v29 = vsel %vm1374_vm0, %v2270_v27, %v2267_v26  ;;  %v2275_v30 = vld [vmem:[#allocation0 + $0x109] ss:$16 sm:%s2274_s18]   ;;  %s2371_s23 = smov 192  ;;  %s2151_s22 = smov 3 }
  0xad   :  { %v2280_v31 = vld [vmem:[#allocation0 + $0x109] ss:$16 sm:%s2279_s15]   ;;  %v2277_v32 = vsel %vm1379_vm1, %v2275_v30, %v2272_v29  ;;  %s2154_s6 = smov 12  ;;  %v2152_v49 = vld [vmem:[#allocation0 + $0x383] ss:$16 sm:%s2151_s22]   ;;  %s2159_s7 = smov 48 }
  0xae   :  { %v2359_v33 = vld [vmem:[#allocation0 + $0x309] ss:$16 sm:%s2358_s16]   ;;  %v2032_v35 = vld [vmem:[#allocation0 + $0x20b] ss:$16 sm:%s2031_s12]   ;;  %v2282_v38 = vsel %vm1384_vm3, %v2280_v31, %v2277_v32  ;;  %v2155_v50 = vld [vmem:[#allocation0 + $0x383] ss:$16 sm:%s2154_s6]  }
  0xaf   :  { %v2362_v34 = vld [vmem:[#allocation0 + $0x309] ss:$16 sm:%s2361_s19]   ;;  %v2035_v36 = vld [vmem:[#allocation0 + $0x20b] ss:$16 sm:%s2034_s13]   ;;  %s2164_s8 = smov 192  ;;  %v2157_v52 = vsel %vm1374_vm0, %v2155_v50, %v2152_v49  ;;  %s2169_s21 = smov 3 }
  0xb0   :  { %v2040_v37 = vld [vmem:[#allocation0 + $0x20b] ss:$16 sm:%s2039_s11]   ;;  %v2364_v39 = vsel %vm1374_vm0, %v2362_v34, %v2359_v33  ;;  %v2037_v41 = vsel %vm1374_vm0, %v2035_v36, %v2032_v35  ;;  %v2367_v43 = vld [vmem:[#allocation0 + $0x309] ss:$16 sm:%s2366_s20]   ;;  %v2160_v53 = vld [vmem:[#allocation0 + $0x383] ss:$16 sm:%s2159_s7]  }
  0xb1   :  { %v2045_v42 = vld [vmem:[#allocation0 + $0x20b] ss:$16 sm:%s2044_s4]   ;;  %v2372_v44 = vld [vmem:[#allocation0 + $0x309] ss:$16 sm:%s2371_s23]   ;;  %v2042_v45 = vsel %vm1379_vm1, %v2040_v37, %v2037_v41  ;;  %v2369_v46 = vsel %vm1379_vm1, %v2367_v43, %v2364_v39  ;;  %v2165_v54 = vld [vmem:[#allocation0 + $0x383] ss:$16 sm:%s2164_s8]   ;;  %v2162_v55 = vsel %vm1379_vm1, %v2160_v53, %v2157_v52 }
  0xb2   :  { %v2047_v47 = vsel %vm1384_vm3, %v2045_v42, %v2042_v45  ;;  %v2374_v48 = vsel %vm1384_vm3, %v2372_v44, %v2369_v46  ;;  %s2172_s24 = smov 12  ;;  %v2170_v56 = vld [vmem:[#allocation0 + $0x401] ss:$16 sm:%s2169_s21]   ;;  %s2177_s29 = smov 48  ;;  %v2167_v61 = vsel %vm1384_vm3, %v2165_v54, %v2162_v55 }
  0xb3   :  { %2283 = vrot.lane.b32.xlu0 %v2282_v38, %s2951_s14  ;;  %v2049_v51 = vsel %vm581_vm2, %v2047_v47, %v2029_v40  ;;  %2375 = vrot.lane.b32.xlu1 %v2374_v48, %s2951_s14  ;;  %v2173_v57 = vld [vmem:[#allocation0 + $0x401] ss:$16 sm:%s2172_s24]   ;;  %s2182_s27 = smov 192  ;;  %s2335_s2 = smov 3 }
  0xb4   :  { %2050 = vrot.lane.b32.xlu2 %v2049_v51, %s2951_s14  ;;  %v2175_v58 = vsel %vm1374_vm0, %v2173_v57, %v2170_v56  ;;  %v2178_v59 = vld [vmem:[#allocation0 + $0x401] ss:$16 sm:%s2177_s29]   ;;  %s2338_s9 = smov 12  ;;  %v2336_v63 = vld [vmem:[#allocation0 + $0x283] ss:$16 sm:%s2335_s2]   ;;  %s2343_s3 = smov 48 }
  0xb5   :  { %v2183_v60 = vld [vmem:[#allocation0 + $0x401] ss:$16 sm:%s2182_s27]   ;;  %v2180_v62 = vsel %vm1379_vm1, %v2178_v59, %v2175_v58  ;;  %v2339_v0 = vld [vmem:[#allocation0 + $0x283] ss:$16 sm:%s2338_s9]   ;;  %s2348_s30 = smov 192  ;;  %s2427_s25 = smov 3 }
  0xb6   :  { %v2185_v1 = vsel %vm1384_vm3, %v2183_v60, %v2180_v62  ;;  %v2341_v2 = vsel %vm1374_vm0, %v2339_v0, %v2336_v63  ;;  %v2344_v3 = vld [vmem:[#allocation0 + $0x283] ss:$16 sm:%s2343_s3]   ;;  %s2430_s0 = smov 12  ;;  %v2428_v6 = vld [vmem:[#allocation0 + $0x81] ss:$16 sm:%s2427_s25]   ;;  %s2435_s26 = smov 48 }
  0xb7   :  { %v2349_v4 = vld [vmem:[#allocation0 + $0x283] ss:$16 sm:%s2348_s30]   ;;  %v2346_v5 = vsel %vm1379_vm1, %v2344_v3, %v2341_v2  ;;  %v2431_v7 = vld [vmem:[#allocation0 + $0x81] ss:$16 sm:%s2430_s0]   ;;  %s2440_s10 = smov 192  ;;  %v2187_v8 = vsel %vm581_vm2, %v2185_v1, %v2167_v61  ;;  %s2243_s28 = smov 3  ;;  %v1407_v3 = vpop.permute.xlu0 %1406  }
  0xb8   :  { %v2351_v9 = vsel %vm1384_vm3, %v2349_v4, %v2346_v5  ;;  %v2433_v10 = vsel %vm1374_vm0, %v2431_v7, %v2428_v6  ;;  %v2436_v11 = vld [vmem:[#allocation0 + $0x81] ss:$16 sm:%s2435_s26]   ;;  %s2246_s12 = smov 12  ;;  %v2244_v14 = vld [vmem:[#allocation0 + $0x83] ss:$16 sm:%s2243_s28]   ;;  %s2251_s13 = smov 48  ;;  %v3710_v5 = vpop.permute.xlu1 %1498  }
  0xb9   :  { %v2441_v12 = vld [vmem:[#allocation0 + $0x81] ss:$16 sm:%s2440_s10]   ;;  %v2438_v13 = vsel %vm1379_vm1, %v2436_v11, %v2433_v10  ;;  %v2247_v15 = vld [vmem:[#allocation0 + $0x83] ss:$16 sm:%s2246_s12]   ;;  %s2256_s11 = smov 192  ;;  %s2404_s4 = smov 3 }
  0xba   :  { %v2443_v16 = vsel %vm1384_vm3, %v2441_v12, %v2438_v13  ;;  %v2249_v17 = vsel %vm1374_vm0, %v2247_v15, %v2244_v14  ;;  %v2252_v18 = vld [vmem:[#allocation0 + $0x83] ss:$16 sm:%s2251_s13]   ;;  %s2407_s5 = smov 12  ;;  %v2405_v20 = vld [vmem:[#allocation0 + $0x409] ss:$16 sm:%s2404_s4]   ;;  %s2412_s17 = smov 48 }
  0xbb   :  { %2352 = vrot.lane.b32.xlu0 %v2351_v9, %s2951_s14  ;;  %2444 = vrot.lane.b32.xlu1 %v2443_v16, %s2951_s14  ;;  %v2257_v19 = vld [vmem:[#allocation0 + $0x83] ss:$16 sm:%s2256_s11]   ;;  %v2408_v21 = vld [vmem:[#allocation0 + $0x409] ss:$16 sm:%s2407_s5]   ;;  %s2417_s18 = smov 192  ;;  %s2496_s15 = smov 3  ;;  %v2254_v25 = vsel %vm1379_vm1, %v2252_v18, %v2249_v17 }
  0xbc   :  { %2188 = vrot.lane.b32.xlu2 %v2187_v8, %s2951_s14  ;;  %v2410_v22 = vsel %vm1374_vm0, %v2408_v21, %v2405_v20  ;;  %v2413_v23 = vld [vmem:[#allocation0 + $0x409] ss:$16 sm:%s2412_s17]   ;;  %s2499_s16 = smov 12  ;;  %v2497_v27 = vld [vmem:[#allocation0 + $0x18b] ss:$16 sm:%s2496_s15]   ;;  %s2504_s19 = smov 48  ;;  %v2259_v36 = vsel %vm1384_vm3, %v2257_v19, %v2254_v25  ;;  %v3704_v4 = vpop.permute.xlu2 %1590  }
  0xbd   :  { %v2418_v24 = vld [vmem:[#allocation0 + $0x409] ss:$16 sm:%s2417_s18]   ;;  %v2415_v26 = vsel %vm1379_vm1, %v2413_v23, %v2410_v22  ;;  %v2500_v28 = vld [vmem:[#allocation0 + $0x18b] ss:$16 sm:%s2499_s16]   ;;  %s2509_s20 = smov 192  ;;  %s2312_s23 = smov 3 }
  0xbe   :  { %v2420_v29 = vsel %vm1384_vm3, %v2418_v24, %v2415_v26  ;;  %v2502_v30 = vsel %vm1374_vm0, %v2500_v28, %v2497_v27  ;;  %v2505_v31 = vld [vmem:[#allocation0 + $0x18b] ss:$16 sm:%s2504_s19]   ;;  %s2315_s22 = smov 12  ;;  %v2313_v34 = vld [vmem:[#allocation0 + $0x209] ss:$16 sm:%s2312_s23]   ;;  %s2320_s6 = smov 48 }
  0xbf   :  { %v2510_v32 = vld [vmem:[#allocation0 + $0x18b] ss:$16 sm:%s2509_s20]   ;;  %v2507_v33 = vsel %vm1379_vm1, %v2505_v31, %v2502_v30  ;;  %v2316_v35 = vld [vmem:[#allocation0 + $0x209] ss:$16 sm:%s2315_s22]   ;;  %s2325_s7 = smov 192  ;;  %s2473_s8 = smov 3  ;;  %v3739_v21 = vpop.permute.xlu0 %1452  }
  0xc0   :  { %v2512_v37 = vsel %vm1384_vm3, %v2510_v32, %v2507_v33  ;;  %v2321_v38 = vld [vmem:[#allocation0 + $0x209] ss:$16 sm:%s2320_s6]   ;;  %s2476_s21 = smov 12  ;;  %v2474_v39 = vld [vmem:[#allocation0 + $0x181] ss:$16 sm:%s2473_s8]   ;;  %s2481_s24 = smov 48  ;;  %v2318_v41 = vsel %vm1374_vm0, %v2316_v35, %v2313_v34  ;;  %v3749_v24 = vpop.permute.xlu1 %1544  }
  0xc1   :  { %v2477_v40 = vld [vmem:[#allocation0 + $0x181] ss:$16 sm:%s2476_s21]   ;;  %s2486_s29 = smov 192  ;;  %s2565_s27 = smov 3  ;;  %v2323_v50 = vsel %vm1379_vm1, %v2321_v38, %v2318_v41  ;;  %v2326_v51 = vld [vmem:[#allocation0 + $0x209] ss:$16 sm:%s2325_s7]  }
  0xc2   :  { %v2479_v42 = vsel %vm1374_vm0, %v2477_v40, %v2474_v39  ;;  %v2482_v43 = vld [vmem:[#allocation0 + $0x181] ss:$16 sm:%s2481_s24]   ;;  %s2568_s2 = smov 12  ;;  %s2573_s9 = smov 48  ;;  %v2328_v59 = vsel %vm1384_vm3, %v2326_v51, %v2323_v50  ;;  %2896 = vst.msk [vmem:[%s4496_s1 + $0x40] sm:$0xff] %vm581_vm2, %v1407_v3  }
  0xc3   :  { %2421 = vrot.lane.b32.xlu0 %v2420_v29, %s2951_s14  ;;  %v2487_v44 = vld [vmem:[#allocation0 + $0x181] ss:$16 sm:%s2486_s29]   ;;  %2513 = vrot.lane.b32.xlu1 %v2512_v37, %s2951_s14  ;;  %v2484_v45 = vsel %vm1379_vm1, %v2482_v43, %v2479_v42  ;;  %s2578_s3 = smov 192  ;;  %s2381_s30 = smov 3  ;;  %2904 = vst.msk [vmem:[%s4496_s1 + $0x28] sm:$0xff] %vm581_vm2, %v3704_v4  }
  0xc4   :  { %2260 = vrot.lane.b32.xlu2 %v2259_v36, %s2951_s14  ;;  %v2566_v46 = vld [vmem:[#allocation0 + $0x381] ss:$16 sm:%s2565_s27]   ;;  %s2384_s25 = smov 12  ;;  %v2489_v54 = vsel %vm1384_vm3, %v2487_v44, %v2484_v45  ;;  %v2382_v55 = vld [vmem:[#allocation0 + $0x383] ss:$16 sm:%s2381_s30]   ;;  %s2542_s0 = smov 3 }
  0xc5   :  { %v2569_v47 = vld [vmem:[#allocation0 + $0x381] ss:$16 sm:%s2568_s2]   ;;  %v2385_v56 = vld [vmem:[#allocation0 + $0x383] ss:$16 sm:%s2384_s25]   ;;  %s2545_s26 = smov 12  ;;  %s2389_s10 = smov 48 }
  0xc6   :  { %v2571_v48 = vsel %vm1374_vm0, %v2569_v47, %v2566_v46  ;;  %v2574_v49 = vld [vmem:[#allocation0 + $0x381] ss:$16 sm:%s2573_s9]   ;;  %v2543_v57 = vld [vmem:[#allocation0 + $0x28b] ss:$16 sm:%s2542_s0]   ;;  %s2550_s28 = smov 48  ;;  %s2555_s12 = smov 192  ;;  %v2387_v63 = vsel %vm1374_vm0, %v2385_v56, %v2382_v55 }
  0xc7   :  { %v2576_v52 = vsel %vm1379_vm1, %v2574_v49, %v2571_v48  ;;  %v2579_v53 = vld [vmem:[#allocation0 + $0x381] ss:$16 sm:%s2578_s3]   ;;  %v2546_v58 = vld [vmem:[#allocation0 + $0x28b] ss:$16 sm:%s2545_s26]   ;;  %v2390_v0 = vld [vmem:[#allocation0 + $0x383] ss:$16 sm:%s2389_s10]  }
  0xc8   :  { %v2581_v60 = vsel %vm1384_vm3, %v2579_v53, %v2576_v52  ;;  %v2548_v61 = vsel %vm1374_vm0, %v2546_v58, %v2543_v57  ;;  %v2551_v62 = vld [vmem:[#allocation0 + $0x28b] ss:$16 sm:%s2550_s28]   ;;  %s2394_s13 = smov 192  ;;  %s2450_s11 = smov 3  ;;  %v2392_v6 = vsel %vm1379_vm1, %v2390_v0, %v2387_v63  ;;  %2900 = vst.msk [vmem:[%s4496_s1 + $0x100] sm:$0xff] %vm581_vm2, %v3710_v5  }
  0xc9   :  { %v2553_v1 = vsel %vm1379_vm1, %v2551_v62, %v2548_v61  ;;  %v2556_v2 = vld [vmem:[#allocation0 + $0x28b] ss:$16 sm:%s2555_s12]   ;;  %s2453_s4 = smov 12  ;;  %s2458_s5 = smov 48  ;;  %v2395_v7 = vld [vmem:[#allocation0 + $0x383] ss:$16 sm:%s2394_s13]  }
  0xca   :  { %s3706_s17 = smov 192  ;;  %s3708_s18 = smov 3  ;;  %v2558_v8 = vsel %vm1384_vm3, %v2556_v2, %v2553_v1  ;;  %v2451_v9 = vld [vmem:[#allocation0 + $0x8b] ss:$16 sm:%s2450_s11]   ;;  %v2397_v13 = vsel %vm1384_vm3, %v2395_v7, %v2392_v6  ;;  %2898 = vst.msk [vmem:[%s4496_s1 + $0xa0] sm:$0xff] %vm581_vm2, %v3739_v21  }
  0xcb   :  { %2490 = vrot.lane.b32.xlu0 %v2489_v54, %s2951_s14  ;;  %2582 = vrot.lane.b32.xlu1 %v2581_v60, %s2951_s14  ;;  %s3713_s15 = smov 12  ;;  %s3715_s16 = smov 48  ;;  %v2454_v10 = vld [vmem:[#allocation0 + $0x8b] ss:$16 sm:%s2453_s4]   ;;  %v2520_v26 = vld [vmem:[#allocation0 + $0x281] ss:$16 sm:%s3708_s18]  }
  0xcc   :  { %2329 = vrot.lane.b32.xlu2 %v2328_v59, %s2951_s14  ;;  %s579_s19 = smov 3  ;;  %s585_s20 = smov 3  ;;  %v2459_v14 = vld [vmem:[#allocation0 + $0x8b] ss:$16 sm:%s2458_s5]   ;;  %v2456_v17 = vsel %vm1374_vm0, %v2454_v10, %v2451_v9  ;;  %v2523_v27 = vld [vmem:[#allocation0 + $0x281] ss:$16 sm:%s3713_s15]  }
  0xcd   :  { %v580_v11 = vld [vmem:[#allocation0 + $0x8] ss:$2 sm:%s579_s19]   ;;  %v586_v12 = vld [vmem:[#allocation0 + $0x18] ss:$2 sm:%s585_s20]   ;;  %s591_s23 = smov 3  ;;  %s597_s22 = smov 3  ;;  %v2461_v25 = vsel %vm1379_vm1, %v2459_v14, %v2456_v17  ;;  %v2525_v34 = vsel %vm1374_vm0, %v2523_v27, %v2520_v26 }
  0xce   :  { %2753 = vst.msk [vmem:[%s4496_s1 + $0x8] ss:$24 sm:$0x3] %vm581_vm2, %v580_v11   ;;  %v592_v15 = vld [vmem:[#allocation0 + $0x28] ss:$2 sm:%s591_s23]   ;;  %s603_s8 = smov 3 }
  0xcf   :  { %2754 = vst.msk [vmem:[%s4496_s1 + $0x9] ss:$24 sm:$0x3] %vm581_vm2, %v586_v12   ;;  %v598_v16 = vld [vmem:[#allocation0 + $0x38] ss:$2 sm:%s597_s22]   ;;  %s609_s29 = smov 3 }
  0xd0   :  { %2755 = vst.msk [vmem:[%s4496_s1 + $0xa] ss:$24 sm:$0x3] %vm581_vm2, %v592_v15   ;;  %v604_v18 = vld [vmem:[#allocation0 + $0x48] ss:$2 sm:%s603_s8]   ;;  %s615_s9 = smov 3  ;;  %v3787_v38 = vpop.permute.xlu0 %1682  }
  0xd1   :  { %v2464_v19 = vld [vmem:[#allocation0 + $0x8b] ss:$16 sm:%s3706_s17]   ;;  %2756 = vst.msk [vmem:[%s4496_s1 + $0xb] ss:$24 sm:$0x3] %vm581_vm2, %v598_v16   ;;  %s621_s25 = smov 3 }
  0xd2   :  { %v610_v20 = vld [vmem:[#allocation0 + $0x58] ss:$2 sm:%s609_s29]   ;;  %s3741_s0 = smov 192  ;;  %2757 = vst.msk [vmem:[%s4496_s1 + $0xc] ss:$24 sm:$0x3] %vm581_vm2, %v604_v18   ;;  %v2466_v30 = vsel %vm1384_vm3, %v2464_v19, %v2461_v25 }
  0xd3   :  { %2559 = vrot.lane.b32.xlu0 %v2558_v8, %s2951_s14  ;;  %v616_v22 = vld [vmem:[#allocation0 + $0x68] ss:$2 sm:%s615_s9]   ;;  %2758 = vst.msk [vmem:[%s4496_s1 + $0xd] ss:$24 sm:$0x3] %vm581_vm2, %v610_v20   ;;  %s771_s13 = smov 3 }
  0xd4   :  { %2398 = vrot.lane.b32.xlu2 %v2397_v13, %s2951_s14  ;;  %v3747_v23 = vpop.permute.xlu2 %1636   ;;  %v622_v28 = vld [vmem:[#allocation0 + $0x78] ss:$2 sm:%s621_s25]   ;;  %s2588_s11 = smov 3  ;;  %2759 = vst.msk [vmem:[%s4496_s1 + $0xe] ss:$24 sm:$0x3] %vm581_vm2, %v616_v22  }
  0xd5   :  { %s777_s17 = smov 3  ;;  %2760 = vst.msk [vmem:[%s4496_s1 + $0xf] ss:$24 sm:$0x3] %vm581_vm2, %v622_v28   ;;  %v772_v29 = vld [vmem:[#allocation0 + $0x208] ss:$2 sm:%s771_s13]  }
  0xd6   :  { %s783_s19 = smov 3  ;;  %v2528_v31 = vld [vmem:[#allocation0 + $0x281] ss:$16 sm:%s3715_s16]   ;;  %v778_v32 = vld [vmem:[#allocation0 + $0x218] ss:$2 sm:%s777_s17]   ;;  %s789_s23 = smov 3 }
  0xd7   :  { %s795_s22 = smov 3  ;;  %s2591_s6 = smov 12  ;;  %2897 = vst.msk [vmem:[%s4496_s1 + $0x20] sm:$0xff] %vm1411_vm4, %v1407_v3   ;;  %v784_v33 = vld [vmem:[#allocation0 + $0x228] ss:$2 sm:%s783_s19]   ;;  %v2530_v40 = vsel %vm1379_vm1, %v2528_v31, %v2525_v34 }
  0xd8   :  { %s801_s21 = smov 3  ;;  %2785 = vst.msk [vmem:[%s4496_s1 + $0xc8] ss:$24 sm:$0x3] %vm581_vm2, %v772_v29   ;;  %v790_v35 = vld [vmem:[#allocation0 + $0x238] ss:$2 sm:%s789_s23]   ;;  %v3855_v60 = vpop.permute.xlu0 %1820  }
  0xd9   :  { %s807_s27 = smov 3  ;;  %v2533_v36 = vld [vmem:[#allocation0 + $0x281] ss:$16 sm:%s3741_s0]   ;;  %2786 = vst.msk [vmem:[%s4496_s1 + $0xc9] ss:$24 sm:$0x3] %vm581_vm2, %v778_v32  }
  0xda   :  { %v796_v37 = vld [vmem:[#allocation0 + $0x248] ss:$2 sm:%s795_s22]   ;;  %s813_s3 = smov 3  ;;  %2787 = vst.msk [vmem:[%s4496_s1 + $0xca] ss:$24 sm:$0x3] %vm581_vm2, %v784_v33   ;;  %v3798_v44 = vpop.permute.xlu1 %1728   ;;  %v2535_v46 = vsel %vm1384_vm3, %v2533_v36, %v2530_v40 }
  0xdb   :  { %v802_v39 = vld [vmem:[#allocation0 + $0x258] ss:$2 sm:%s801_s21]   ;;  %v2589_v41 = vld [vmem:[#allocation0 + $0x38b] ss:$16 sm:%s2588_s11]   ;;  %v808_v43 = vld [vmem:[#allocation0 + $0x268] ss:$2 sm:%s807_s27]  }
  0xdc   :  { %2467 = vrot.lane.b32.xlu2 %v2466_v30, %s2951_s14  ;;  %v2592_v42 = vld [vmem:[#allocation0 + $0x38b] ss:$16 sm:%s2591_s6]   ;;  %2788 = vst.msk [vmem:[%s4496_s1 + $0xcb] ss:$24 sm:$0x3] %vm581_vm2, %v790_v35   ;;  %s675_s12 = smov 3 }
  0xdd   :  { %2789 = vst.msk [vmem:[%s4496_s1 + $0xcc] ss:$24 sm:$0x3] %vm581_vm2, %v796_v37   ;;  %v814_v45 = vld [vmem:[#allocation0 + $0x278] ss:$2 sm:%s813_s3]   ;;  %s2596_s13 = smov 48  ;;  %v2594_v48 = vsel %vm1374_vm0, %v2592_v42, %v2589_v41 }
  0xde   :  { %2790 = vst.msk [vmem:[%s4496_s1 + $0xcd] ss:$24 sm:$0x3] %vm581_vm2, %v802_v39   ;;  %s681_s5 = smov 3  ;;  %s2601_s17 = smov 192 }
  0xdf   :  { %2791 = vst.msk [vmem:[%s4496_s1 + $0xce] ss:$24 sm:$0x3] %vm581_vm2, %v808_v43   ;;  %s687_s19 = smov 3  ;;  %v676_v47 = vld [vmem:[#allocation0 + $0x108] ss:$2 sm:%s675_s12]  }
  0xe0   :  { %2792 = vst.msk [vmem:[%s4496_s1 + $0xcf] ss:$24 sm:$0x3] %vm581_vm2, %v814_v45   ;;  %s693_s23 = smov 3  ;;  %v2597_v49 = vld [vmem:[#allocation0 + $0x38b] ss:$16 sm:%s2596_s13]  }
  0xe1   :  { %v682_v50 = vld [vmem:[#allocation0 + $0x118] ss:$2 sm:%s681_s5]   ;;  %s699_s7 = smov 3  ;;  %v2602_v51 = vld [vmem:[#allocation0 + $0x38b] ss:$16 sm:%s2601_s17]   ;;  %2905 = vst.msk [vmem:[%s4496_s1 + $0xe0] sm:$0xff] %vm1411_vm4, %v3704_v4   ;;  %v2599_v54 = vsel %vm1379_vm1, %v2597_v49, %v2594_v48 }
  0xe2   :  { %v688_v52 = vld [vmem:[#allocation0 + $0x128] ss:$2 sm:%s687_s19]   ;;  %s705_s24 = smov 3  ;;  %2769 = vst.msk [vmem:[%s4496_s1 + $0x68] ss:$24 sm:$0x3] %vm581_vm2, %v676_v47   ;;  %v2604_v58 = vsel %vm1384_vm3, %v2602_v51, %v2599_v54  ;;  %v3866_v61 = vpop.permute.xlu1 %1866  }
  0xe3   :  { %v694_v53 = vld [vmem:[#allocation0 + $0x138] ss:$2 sm:%s693_s23]   ;;  %s711_s2 = smov 3  ;;  %2770 = vst.msk [vmem:[%s4496_s1 + $0x69] ss:$24 sm:$0x3] %vm581_vm2, %v682_v50  }
  0xe4   :  { %2536 = vrot.lane.b32.xlu2 %v2535_v46, %s2951_s14  ;;  %v700_v55 = vld [vmem:[#allocation0 + $0x148] ss:$2 sm:%s699_s7]   ;;  %s717_s30 = smov 3  ;;  %2771 = vst.msk [vmem:[%s4496_s1 + $0x6a] ss:$24 sm:$0x3] %vm581_vm2, %v688_v52  }
  0xe5   :  { %v706_v56 = vld [vmem:[#allocation0 + $0x158] ss:$2 sm:%s705_s24]   ;;  %2772 = vst.msk [vmem:[%s4496_s1 + $0x6b] ss:$24 sm:$0x3] %vm581_vm2, %v694_v53   ;;  %s867_s22 = smov 3 }
  0xe6   :  { %v712_v57 = vld [vmem:[#allocation0 + $0x168] ss:$2 sm:%s711_s2]   ;;  %2773 = vst.msk [vmem:[%s4496_s1 + $0x6c] ss:$24 sm:$0x3] %vm581_vm2, %v700_v55   ;;  %s873_s8 = smov 3 }
  0xe7   :  { %v718_v59 = vld [vmem:[#allocation0 + $0x178] ss:$2 sm:%s717_s30]   ;;  %2774 = vst.msk [vmem:[%s4496_s1 + $0x6d] ss:$24 sm:$0x3] %vm581_vm2, %v706_v56   ;;  %s879_s29 = smov 3 }
  0xe8   :  { %2775 = vst.msk [vmem:[%s4496_s1 + $0x6e] ss:$24 sm:$0x3] %vm581_vm2, %v712_v57   ;;  %v868_v63 = vld [vmem:[#allocation0 + $0x308] ss:$2 sm:%s867_s22]   ;;  %s885_s9 = smov 3 }
  0xe9   :  { %2776 = vst.msk [vmem:[%s4496_s1 + $0x6f] ss:$24 sm:$0x3] %vm581_vm2, %v718_v59   ;;  %v874_v0 = vld [vmem:[#allocation0 + $0x318] ss:$2 sm:%s873_s8]   ;;  %s891_s25 = smov 3 }
  0xea   :  { %2901 = vst.msk [vmem:[%s4496_s1 + $0x80] sm:$0xff] %vm1411_vm4, %v3710_v5   ;;  %v880_v1 = vld [vmem:[#allocation0 + $0x328] ss:$2 sm:%s879_s29]   ;;  %s897_s10 = smov 3  ;;  %v886_v2 = vld [vmem:[#allocation0 + $0x338] ss:$2 sm:%s885_s9]  }
  0xeb   :  { %2899 = vst.msk [vmem:[%s4496_s1 + $0x40] sm:$0xff] %vm1411_vm4, %v3739_v21   ;;  %s903_s13 = smov 3  ;;  %v892_v3 = vld [vmem:[#allocation0 + $0x348] ss:$2 sm:%s891_s25]   ;;  %s909_s5 = smov 3 }
  0xec   :  { %2605 = vrot.lane.b32.xlu2 %v2604_v58, %s2951_s14  ;;  %2906 = vst.msk [vmem:[%s4496_s1 + $0x88] sm:$0xff] %vm581_vm2, %v3747_v23   ;;  %v898_v5 = vld [vmem:[#allocation0 + $0x358] ss:$2 sm:%s897_s10]   ;;  %v904_v6 = vld [vmem:[#allocation0 + $0x368] ss:$2 sm:%s903_s13]   ;;  %s963_s7 = smov 3 }
  0xed   :  { %2907 = vst.msk [vmem:[%s4496_s1 + $0x100] sm:$0xff] %vm1411_vm4, %v3747_v23   ;;  %v910_v8 = vld [vmem:[#allocation0 + $0x378] ss:$2 sm:%s909_s5]   ;;  %s969_s24 = smov 3  ;;  %s975_s2 = smov 3 }
  0xee   :  { %2902 = vst.msk [vmem:[%s4496_s1 + $0x160] sm:$0xff] %vm581_vm2, %v3749_v24   ;;  %v964_v9 = vld [vmem:[#allocation0 + $0x408] ss:$2 sm:%s963_s7]   ;;  %s981_s30 = smov 3  ;;  %v970_v11 = vld [vmem:[#allocation0 + $0x418] ss:$2 sm:%s969_s24]  }
  0xef   :  { %2903 = vst.msk [vmem:[%s4496_s1 + $0xa0] sm:$0xff] %vm1411_vm4, %v3749_v24   ;;  %s987_s26 = smov 3  ;;  %v976_v13 = vld [vmem:[#allocation0 + $0x428] ss:$2 sm:%s975_s2]   ;;  %s993_s12 = smov 3 }
  0xf0   :  { %2801 = vst.msk [vmem:[%s4496_s1 + $0x128] ss:$24 sm:$0x3] %vm581_vm2, %v868_v63   ;;  %v982_v14 = vld [vmem:[#allocation0 + $0x438] ss:$2 sm:%s981_s30]   ;;  %s999_s4 = smov 3 }
  0xf1   :  { %2802 = vst.msk [vmem:[%s4496_s1 + $0x129] ss:$24 sm:$0x3] %vm581_vm2, %v874_v0   ;;  %v988_v15 = vld [vmem:[#allocation0 + $0x448] ss:$2 sm:%s987_s26]   ;;  %s1005_s17 = smov 3 }
  0xf2   :  { %2803 = vst.msk [vmem:[%s4496_s1 + $0x12a] ss:$24 sm:$0x3] %vm581_vm2, %v880_v1   ;;  %v994_v16 = vld [vmem:[#allocation0 + $0x458] ss:$2 sm:%s993_s12]   ;;  %s627_s2 = smov 3 }
  0xf3   :  { %v1775_v62 = vpop.permute.xlu2 %1774   ;;  %2804 = vst.msk [vmem:[%s4496_s1 + $0x12b] ss:$24 sm:$0x3] %vm581_vm2, %v886_v2   ;;  %v1000_v17 = vld [vmem:[#allocation0 + $0x468] ss:$2 sm:%s999_s4]   ;;  %s633_s30 = smov 3 }
  0xf4   :  { %2805 = vst.msk [vmem:[%s4496_s1 + $0x12c] ss:$24 sm:$0x3] %vm581_vm2, %v892_v3   ;;  %v1006_v18 = vld [vmem:[#allocation0 + $0x478] ss:$2 sm:%s1005_s17]   ;;  %s639_s26 = smov 3 }
  0xf5   :  { %v1959_v4 = vpop.permute.xlu0 %1958   ;;  %2806 = vst.msk [vmem:[%s4496_s1 + $0x12d] ss:$24 sm:$0x3] %vm581_vm2, %v898_v5   ;;  %v628_v24 = vld [vmem:[#allocation0 + $0x88] ss:$2 sm:%s627_s2]   ;;  %s645_s12 = smov 3 }
  0xf6   :  { %2807 = vst.msk [vmem:[%s4496_s1 + $0x12e] ss:$24 sm:$0x3] %vm581_vm2, %v904_v6   ;;  %v634_v25 = vld [vmem:[#allocation0 + $0x98] ss:$2 sm:%s633_s30]   ;;  %s651_s4 = smov 3 }
  0xf7   :  { %2808 = vst.msk [vmem:[%s4496_s1 + $0x12f] ss:$24 sm:$0x3] %vm581_vm2, %v910_v8   ;;  %v640_v27 = vld [vmem:[#allocation0 + $0xa8] ss:$2 sm:%s639_s26]   ;;  %s657_s17 = smov 3 }
  0xf8   :  { %2908 = vst.msk [vmem:[%s4496_s1 + $0xe8] sm:$0xff] %vm581_vm2, %v3787_v38   ;;  %v646_v28 = vld [vmem:[#allocation0 + $0xb8] ss:$2 sm:%s645_s12]   ;;  %s663_s19 = smov 3  ;;  %v652_v30 = vld [vmem:[#allocation0 + $0xc8] ss:$2 sm:%s651_s4]  }
  0xf9   :  { %2909 = vst.msk [vmem:[%s4496_s1 + $0x140] sm:$0xff] %vm1411_vm4, %v3787_v38   ;;  %s669_s23 = smov 3  ;;  %v658_v31 = vld [vmem:[#allocation0 + $0xd8] ss:$2 sm:%s657_s17]   ;;  %v664_v32 = vld [vmem:[#allocation0 + $0xe8] ss:$2 sm:%s663_s19]  }
  0xfa   :  { %2910 = vst.msk [vmem:[%s4496_s1 + $0x148] sm:$0xff] %vm581_vm2, %v3798_v44   ;;  %v670_v33 = vld [vmem:[#allocation0 + $0xf8] ss:$2 sm:%s669_s23]   ;;  %s723_s29 = smov 3  ;;  %s729_s9 = smov 3 }
  0xfb   :  { %v1913_v7 = vpop.permute.xlu2 %1912   ;;  %2911 = vst.msk [vmem:[%s4496_s1 + $0x160] sm:$0xff] %vm1411_vm4, %v3798_v44   ;;  %s735_s25 = smov 3  ;;  %v724_v35 = vld [vmem:[#allocation0 + $0x188] ss:$2 sm:%s723_s29]   ;;  %s741_s10 = smov 3 }
  0xfc   :  { %2817 = vst.msk [vmem:[%s4496_s1 + $0x188] ss:$24 sm:$0x3] %vm581_vm2, %v964_v9   ;;  %v730_v37 = vld [vmem:[#allocation0 + $0x198] ss:$2 sm:%s729_s9]   ;;  %s747_s13 = smov 3 }
  0xfd   :  { %v2097_v10 = vpop.permute.xlu0 %2096   ;;  %2818 = vst.msk [vmem:[%s4496_s1 + $0x189] ss:$24 sm:$0x3] %vm581_vm2, %v970_v11   ;;  %v736_v39 = vld [vmem:[#allocation0 + $0x1a8] ss:$2 sm:%s735_s25]   ;;  %s753_s5 = smov 3 }
  0xfe   :  { %2819 = vst.msk [vmem:[%s4496_s1 + $0x18a] ss:$24 sm:$0x3] %vm581_vm2, %v976_v13   ;;  %v742_v40 = vld [vmem:[#allocation0 + $0x1b8] ss:$2 sm:%s741_s10]   ;;  %s759_s18 = smov 3 }
  0xff   :  { %2820 = vst.msk [vmem:[%s4496_s1 + $0x18b] ss:$24 sm:$0x3] %vm581_vm2, %v982_v14   ;;  %v748_v41 = vld [vmem:[#allocation0 + $0x1c8] ss:$2 sm:%s747_s13]   ;;  %s765_s16 = smov 3 }
 0x100   :  { %v2005_v12 = vpop.permute.xlu1 %2004   ;;  %2821 = vst.msk [vmem:[%s4496_s1 + $0x18c] ss:$24 sm:$0x3] %vm581_vm2, %v988_v15   ;;  %v754_v42 = vld [vmem:[#allocation0 + $0x1d8] ss:$2 sm:%s753_s5]   ;;  %s915_s2 = smov 3 }
 0x101   :  { %2822 = vst.msk [vmem:[%s4496_s1 + $0x18d] ss:$24 sm:$0x3] %vm581_vm2, %v994_v16   ;;  %v760_v43 = vld [vmem:[#allocation0 + $0x1e8] ss:$2 sm:%s759_s18]   ;;  %s921_s30 = smov 3 }
 0x102   :  { %2823 = vst.msk [vmem:[%s4496_s1 + $0x18e] ss:$24 sm:$0x3] %vm581_vm2, %v1000_v17   ;;  %v766_v44 = vld [vmem:[#allocation0 + $0x1f8] ss:$2 sm:%s765_s16]   ;;  %s927_s26 = smov 3 }
 0x103   :  { %2824 = vst.msk [vmem:[%s4496_s1 + $0x18f] ss:$24 sm:$0x3] %vm581_vm2, %v1006_v18   ;;  %v916_v48 = vld [vmem:[#allocation0 + $0x388] ss:$2 sm:%s915_s2]   ;;  %s933_s12 = smov 3 }
 0x104   :  { %2912 = vst.msk [vmem:[%s4496_s1 + $0x1a8] sm:$0xff] %vm581_vm2, %v1775_v62   ;;  %v922_v49 = vld [vmem:[#allocation0 + $0x398] ss:$2 sm:%s921_s30]   ;;  %s939_s4 = smov 3  ;;  %v928_v50 = vld [vmem:[#allocation0 + $0x3a8] ss:$2 sm:%s927_s26]  }
 0x105   :  { %2913 = vst.msk [vmem:[%s4496_s1 + $0x1a0] sm:$0xff] %vm1411_vm4, %v1775_v62   ;;  %s945_s17 = smov 3  ;;  %v934_v51 = vld [vmem:[#allocation0 + $0x3b8] ss:$2 sm:%s933_s12]   ;;  %s951_s19 = smov 3 }
 0x106   :  { %2914 = vst.msk [vmem:[%s4496_s1 + $0x10] sm:$0xff] %vm581_vm2, %v3855_v60   ;;  %v940_v53 = vld [vmem:[#allocation0 + $0x3c8] ss:$2 sm:%s939_s4]   ;;  %s957_s23 = smov 3  ;;  %v946_v54 = vld [vmem:[#allocation0 + $0x3d8] ss:$2 sm:%s945_s17]  }
 0x107   :  { %2915 = vst.msk [vmem:[%s4496_s1 + $0x8] sm:$0xff] %vm1411_vm4, %v3855_v60   ;;  %v952_v57 = vld [vmem:[#allocation0 + $0x3e8] ss:$2 sm:%s951_s19]   ;;  %s819_s21 = smov 3  ;;  %v958_v58 = vld [vmem:[#allocation0 + $0x3f8] ss:$2 sm:%s957_s23]  }
 0x108   :  { %2916 = vst.msk [vmem:[%s4496_s1 + $0x70] sm:$0xff] %vm581_vm2, %v3866_v61   ;;  %s825_s27 = smov 3  ;;  %s831_s3 = smov 3  ;;  %v820_v59 = vld [vmem:[#allocation0 + $0x288] ss:$2 sm:%s819_s21]  }
 0x109   :  { %2917 = vst.msk [vmem:[%s4496_s1 + $0x28] sm:$0xff] %vm1411_vm4, %v3866_v61   ;;  %s837_s0 = smov 3  ;;  %v826_v60 = vld [vmem:[#allocation0 + $0x298] ss:$2 sm:%s825_s27]   ;;  %s843_s28 = smov 3 }
 0x10a   :  { %v2143_v19 = vpop.permute.xlu1 %2142   ;;  %2918 = vst.msk [vmem:[%s4496_s1 + $0xd0] sm:$0xff] %vm581_vm2, %v1913_v7   ;;  %v832_v61 = vld [vmem:[#allocation0 + $0x2a8] ss:$2 sm:%s831_s3]   ;;  %s849_s11 = smov 3  ;;  %v838_v63 = vld [vmem:[#allocation0 + $0x2b8] ss:$2 sm:%s837_s0]  }
 0x10b   :  { %2919 = vst.msk [vmem:[%s4496_s1 + $0x68] sm:$0xff] %vm1411_vm4, %v1913_v7   ;;  %s855_s14 = smov 3  ;;  %v844_v0 = vld [vmem:[#allocation0 + $0x2c8] ss:$2 sm:%s843_s28]   ;;  %s861_s15 = smov 3 }
 0x10c   :  { %2920 = vst.msk [vmem:[%s4496_s1 + $0x130] sm:$0xff] %vm581_vm2, %v1959_v4   ;;  %v850_v3 = vld [vmem:[#allocation0 + $0x2d8] ss:$2 sm:%s849_s11]   ;;  %s1010_s13 = smov 3  ;;  %s1014_s5 = smov 3 }
 0x10d   :  { %2921 = vst.msk [vmem:[%s4496_s1 + $0x88] sm:$0xff] %vm1411_vm4, %v1959_v4   ;;  %v856_v4 = vld [vmem:[#allocation0 + $0x2e8] ss:$2 sm:%s855_s14]   ;;  %v862_v5 = vld [vmem:[#allocation0 + $0x2f8] ss:$2 sm:%s861_s15]   ;;  %s1019_s18 = smov 3 }
 0x10e   :  { %v2051_v20 = vpop.permute.xlu2 %2050   ;;  %2922 = vst.msk [vmem:[%s4496_s1 + $0x190] sm:$0xff] %vm581_vm2, %v2005_v12   ;;  %v1011_v8 = vld [vmem:[#allocation0] ss:$2 sm:%s1010_s13]   ;;  %s1024_s16 = smov 3  ;;  %v1015_v9 = vld [vmem:[#allocation0 + $0x10] ss:$2 sm:%s1014_s5]  }
 0x10f   :  { %2923 = vst.msk [vmem:[%s4496_s1 + $0xc8] sm:$0xff] %vm1411_vm4, %v2005_v12   ;;  %s1029_s22 = smov 3  ;;  %s1034_s8 = smov 3  ;;  %v1025_v11 = vld [vmem:[#allocation0 + $0x30] ss:$2 sm:%s1024_s16]  }
 0x110   :  { %2924 = vst.msk [vmem:[%s4496_s1 + $0x58] sm:$0xff] %vm581_vm2, %v2051_v20   ;;  %s1039_s29 = smov 3  ;;  %v1030_v12 = vld [vmem:[#allocation0 + $0x40] ss:$2 sm:%s1029_s22]   ;;  %s1044_s9 = smov 3 }
 0x111   :  { %2925 = vst.msk [vmem:[%s4496_s1 + $0xe8] sm:$0xff] %vm1411_vm4, %v2051_v20   ;;  %v1035_v13 = vld [vmem:[#allocation0 + $0x50] ss:$2 sm:%s1034_s8]   ;;  %s1049_s25 = smov 3  ;;  %v1040_v14 = vld [vmem:[#allocation0 + $0x60] ss:$2 sm:%s1039_s29]  }
 0x112   :  { %v2238_v21 = vpop.permute.xlu1 %2237   ;;  %2926 = vst.msk [vmem:[%s4496_s1 + $0xb8] sm:$0xff] %vm581_vm2, %v2097_v10   ;;  %s1054_s10 = smov 3  ;;  %v1045_v15 = vld [vmem:[#allocation0 + $0x70] ss:$2 sm:%s1044_s9]   ;;  %s1059_s13 = smov 3 }
 0x113   :  { %2927 = vst.msk [vmem:[%s4496_s1 + $0x128] sm:$0xff] %vm1411_vm4, %v2097_v10   ;;  %v1020_v10 = vld [vmem:[#allocation0 + $0x20] ss:$2 sm:%s1019_s18]   ;;  %s1064_s5 = smov 3  ;;  %v1055_v17 = vld [vmem:[#allocation0 + $0x90] ss:$2 sm:%s1054_s10]  }
 0x114   :  { %2928 = vst.msk [vmem:[%s4496_s1 + $0x118] sm:$0xff] %vm581_vm2, %v2143_v19   ;;  %v1050_v16 = vld [vmem:[#allocation0 + $0x80] ss:$2 sm:%s1049_s25]   ;;  %s1069_s18 = smov 3  ;;  %s1074_s16 = smov 3 }
 0x115   :  { %2929 = vst.msk [vmem:[%s4496_s1 + $0x148] sm:$0xff] %vm1411_vm4, %v2143_v19   ;;  %v1060_v18 = vld [vmem:[#allocation0 + $0xa0] ss:$2 sm:%s1059_s13]   ;;  %v1065_v19 = vld [vmem:[#allocation0 + $0xb0] ss:$2 sm:%s1064_s5]   ;;  %s1079_s22 = smov 3 }
 0x116   :  { %v2189_v22 = vpop.permute.xlu2 %2188   ;;  %2933 = vst.msk [vmem:[%s4496_s1 + $0x10] sm:$0xff] %vm1411_vm4, %v2238_v21   ;;  %v1070_v20 = vld [vmem:[#allocation0 + $0xc0] ss:$2 sm:%s1069_s18]   ;;  %s1084_s8 = smov 3  ;;  %v1075_v21 = vld [vmem:[#allocation0 + $0xd0] ss:$2 sm:%s1074_s16]  }
 0x117   :  { %2930 = vst.msk [vmem:[%s4496_s1 + $0x178] sm:$0xff] %vm581_vm2, %v2189_v22   ;;  %s1089_s29 = smov 3  ;;  %s1094_s9 = smov 3 }
 0x118   :  { %2931 = vst.msk [vmem:[%s4496_s1 + $0x188] sm:$0xff] %vm1411_vm4, %v2189_v22   ;;  %v1080_v22 = vld [vmem:[#allocation0 + $0xe0] ss:$2 sm:%s1079_s22]   ;;  %s1099_s25 = smov 3  ;;  %s1104_s10 = smov 3 }
 0x119   :  { %2761 = vst.msk [vmem:[%s4496_s1 + $0x38] ss:$24 sm:$0x3] %vm581_vm2, %v628_v24   ;;  %v1090_v24 = vld [vmem:[#allocation0 + $0x100] ss:$2 sm:%s1089_s29]   ;;  %s1109_s13 = smov 3 }
 0x11a   :  { %v2307_v23 = vpop.permute.xlu1 %2306   ;;  %2762 = vst.msk [vmem:[%s4496_s1 + $0x39] ss:$24 sm:$0x3] %vm581_vm2, %v634_v25   ;;  %v1095_v25 = vld [vmem:[#allocation0 + $0x110] ss:$2 sm:%s1094_s9]   ;;  %s1114_s5 = smov 3 }
 0x11b   :  { %2763 = vst.msk [vmem:[%s4496_s1 + $0x3a] ss:$24 sm:$0x3] %vm581_vm2, %v640_v27   ;;  %v1105_v27 = vld [vmem:[#allocation0 + $0x130] ss:$2 sm:%s1104_s10]   ;;  %s1119_s18 = smov 3 }
 0x11c   :  { %2764 = vst.msk [vmem:[%s4496_s1 + $0x3b] ss:$24 sm:$0x3] %vm581_vm2, %v646_v28   ;;  %v1110_v28 = vld [vmem:[#allocation0 + $0x140] ss:$2 sm:%s1109_s13]   ;;  %s1124_s16 = smov 3 }
 0x11d   :  { %v2215_v26 = vpop.permute.xlu0 %2214   ;;  %2765 = vst.msk [vmem:[%s4496_s1 + $0x3c] ss:$24 sm:$0x3] %vm581_vm2, %v652_v30   ;;  %s1129_s22 = smov 3  ;;  %v1120_v30 = vld [vmem:[#allocation0 + $0x160] ss:$2 sm:%s1119_s18]  }
 0x11e   :  { %v2261_v29 = vpop.permute.xlu2 %2260   ;;  %2766 = vst.msk [vmem:[%s4496_s1 + $0x3d] ss:$24 sm:$0x3] %vm581_vm2, %v658_v31   ;;  %v1125_v31 = vld [vmem:[#allocation0 + $0x170] ss:$2 sm:%s1124_s16]   ;;  %s1139_s29 = smov 3 }
 0x11f   :  { %2767 = vst.msk [vmem:[%s4496_s1 + $0x3e] ss:$24 sm:$0x3] %vm581_vm2, %v664_v32   ;;  %v1130_v32 = vld [vmem:[#allocation0 + $0x180] ss:$2 sm:%s1129_s22]   ;;  %s1144_s9 = smov 3 }
 0x120   :  { %2768 = vst.msk [vmem:[%s4496_s1 + $0x3f] ss:$24 sm:$0x3] %vm581_vm2, %v670_v33   ;;  %s1154_s10 = smov 3  ;;  %s1159_s13 = smov 3 }
 0x121   :  { %2934 = vst.msk [vmem:[%s4496_s1 + $0x50] sm:$0xff] %vm1411_vm4, %v2261_v29   ;;  %v1115_v29 = vld [vmem:[#allocation0 + $0x150] ss:$2 sm:%s1114_s5]   ;;  %s1164_s5 = smov 3  ;;  %s1169_s18 = smov 3 }
 0x122   :  { %2932 = vst.msk [vmem:[%s4496_s1 + $0x1a8] sm:$0xff] %vm1411_vm4, %v2215_v26   ;;  %v1100_v26 = vld [vmem:[#allocation0 + $0x120] ss:$2 sm:%s1099_s25]   ;;  %s1149_s25 = smov 3  ;;  %s1174_s16 = smov 3 }
 0x123   :  { %2777 = vst.msk [vmem:[%s4496_s1 + $0x98] ss:$24 sm:$0x3] %vm581_vm2, %v724_v35   ;;  %v1145_v35 = vld [vmem:[#allocation0 + $0x1b0] ss:$2 sm:%s1144_s9]   ;;  %s1179_s22 = smov 3 }
 0x124   :  { %2778 = vst.msk [vmem:[%s4496_s1 + $0x99] ss:$24 sm:$0x3] %vm581_vm2, %v730_v37   ;;  %v1155_v37 = vld [vmem:[#allocation0 + $0x1d0] ss:$2 sm:%s1154_s10]   ;;  %s1194_s9 = smov 3 }
 0x125   :  { %v2284_v34 = vpop.permute.xlu0 %2283   ;;  %v2376_v36 = vpop.permute.xlu1 %2375   ;;  %2779 = vst.msk [vmem:[%s4496_s1 + $0x9a] ss:$24 sm:$0x3] %vm581_vm2, %v736_v39   ;;  %v1165_v39 = vld [vmem:[#allocation0 + $0x1f0] ss:$2 sm:%s1164_s5]   ;;  %s1204_s10 = smov 3 }
 0x126   :  { %v2330_v38 = vpop.permute.xlu2 %2329   ;;  %2780 = vst.msk [vmem:[%s4496_s1 + $0x9b] ss:$24 sm:$0x3] %vm581_vm2, %v742_v40   ;;  %v1170_v40 = vld [vmem:[#allocation0 + $0x200] ss:$2 sm:%s1169_s18]   ;;  %s1214_s5 = smov 3 }
 0x127   :  { %2781 = vst.msk [vmem:[%s4496_s1 + $0x9c] ss:$24 sm:$0x3] %vm581_vm2, %v748_v41   ;;  %v1175_v41 = vld [vmem:[#allocation0 + $0x210] ss:$2 sm:%s1174_s16]   ;;  %s1219_s18 = smov 3 }
 0x128   :  { %2782 = vst.msk [vmem:[%s4496_s1 + $0x9d] ss:$24 sm:$0x3] %vm581_vm2, %v754_v42   ;;  %v1180_v42 = vld [vmem:[#allocation0 + $0x220] ss:$2 sm:%s1179_s22]   ;;  %s1224_s16 = smov 3 }
 0x129   :  { %2783 = vst.msk [vmem:[%s4496_s1 + $0x9e] ss:$24 sm:$0x3] %vm581_vm2, %v760_v43   ;;  %s1229_s22 = smov 3 }
 0x12a   :  { %2784 = vst.msk [vmem:[%s4496_s1 + $0x9f] ss:$24 sm:$0x3] %vm581_vm2, %v766_v44  }
 0x12b   :  { %2936 = vst.msk [vmem:[%s4496_s1 + $0xb0] sm:$0xff] %vm1411_vm4, %v2307_v23   ;;  %v1085_v23 = vld [vmem:[#allocation0 + $0xf0] ss:$2 sm:%s1084_s8]   ;;  %s1134_s8 = smov 3 }
 0x12c   :  { %2937 = vst.msk [vmem:[%s4496_s1 + $0xd0] sm:$0xff] %vm1411_vm4, %v2330_v38   ;;  %v1135_v33 = vld [vmem:[#allocation0 + $0x190] ss:$2 sm:%s1134_s8]   ;;  %v1160_v38 = vld [vmem:[#allocation0 + $0x1e0] ss:$2 sm:%s1159_s13]   ;;  %s1184_s8 = smov 3 }
 0x12d   :  { %v4140_v45 = vpop.permute.xlu0 %2352   ;;  %v2445_v47 = vpop.permute.xlu1 %2444   ;;  %2935 = vst.msk [vmem:[%s4496_s1 + $0x70] sm:$0xff] %vm1411_vm4, %v2284_v34   ;;  %v1140_v34 = vld [vmem:[#allocation0 + $0x1a0] ss:$2 sm:%s1139_s29]   ;;  %s1189_s29 = smov 3  ;;  %v1185_v43 = vld [vmem:[#allocation0 + $0x230] ss:$2 sm:%s1184_s8]  }
 0x12e   :  { %v2399_v46 = vpop.permute.xlu2 %2398   ;;  %2939 = vst.msk [vmem:[%s4496_s1 + $0x130] sm:$0xff] %vm1411_vm4, %v2376_v36   ;;  %v1150_v36 = vld [vmem:[#allocation0 + $0x1c0] ss:$2 sm:%s1149_s25]   ;;  %s1199_s25 = smov 3  ;;  %s1209_s13 = smov 3 }
 0x12f   :  { %2809 = vst.msk [vmem:[%s4496_s1 + $0x158] ss:$24 sm:$0x3] %vm581_vm2, %v916_v48   ;;  %v1190_v44 = vld [vmem:[#allocation0 + $0x240] ss:$2 sm:%s1189_s29]   ;;  %s1234_s8 = smov 3 }
 0x130   :  { %2810 = vst.msk [vmem:[%s4496_s1 + $0x159] ss:$24 sm:$0x3] %vm581_vm2, %v922_v49   ;;  %v1210_v48 = vld [vmem:[#allocation0 + $0x280] ss:$2 sm:%s1209_s13]   ;;  %s1239_s29 = smov 3 }
 0x131   :  { %2811 = vst.msk [vmem:[%s4496_s1 + $0x15a] ss:$24 sm:$0x3] %vm581_vm2, %v928_v50   ;;  %v1215_v49 = vld [vmem:[#allocation0 + $0x290] ss:$2 sm:%s1214_s5]   ;;  %s1259_s13 = smov 3 }
 0x132   :  { %2812 = vst.msk [vmem:[%s4496_s1 + $0x15b] ss:$24 sm:$0x3] %vm581_vm2, %v934_v51   ;;  %v1220_v50 = vld [vmem:[#allocation0 + $0x2a0] ss:$2 sm:%s1219_s18]   ;;  %s1264_s5 = smov 3 }
 0x133   :  { %2813 = vst.msk [vmem:[%s4496_s1 + $0x15c] ss:$24 sm:$0x3] %vm581_vm2, %v940_v53   ;;  %v1225_v51 = vld [vmem:[#allocation0 + $0x2b0] ss:$2 sm:%s1224_s16]   ;;  %s1269_s18 = smov 3 }
 0x134   :  { %2814 = vst.msk [vmem:[%s4496_s1 + $0x15d] ss:$24 sm:$0x3] %vm581_vm2, %v946_v54   ;;  %v1235_v53 = vld [vmem:[#allocation0 + $0x2d0] ss:$2 sm:%s1234_s8]   ;;  %s1274_s16 = smov 3 }
 0x135   :  { %v2422_v52 = vpop.permute.xlu0 %2421   ;;  %v2514_v56 = vpop.permute.xlu1 %2513   ;;  %2815 = vst.msk [vmem:[%s4496_s1 + $0x15e] ss:$24 sm:$0x3] %vm581_vm2, %v952_v57   ;;  %v1240_v54 = vld [vmem:[#allocation0 + $0x2e0] ss:$2 sm:%s1239_s29]   ;;  %s1284_s8 = smov 3 }
 0x136   :  { %v2468_v55 = vpop.permute.xlu2 %2467   ;;  %2816 = vst.msk [vmem:[%s4496_s1 + $0x15f] ss:$24 sm:$0x3] %vm581_vm2, %v958_v58   ;;  %v1260_v58 = vld [vmem:[#allocation0 + $0x320] ss:$2 sm:%s1259_s13]   ;;  %s1289_s29 = smov 3 }
 0x137   :  { %2940 = vst.msk [vmem:[%s4496_s1 + $0x170] sm:$0xff] %vm1411_vm4, %v2399_v46   ;;  %v1200_v46 = vld [vmem:[#allocation0 + $0x260] ss:$2 sm:%s1199_s25]   ;;  %s1249_s25 = smov 3  ;;  %s1309_s13 = smov 3 }
 0x138   :  { %2793 = vst.msk [vmem:[%s4496_s1 + $0xf8] ss:$24 sm:$0x3] %vm581_vm2, %v820_v59   ;;  %v1265_v59 = vld [vmem:[#allocation0 + $0x330] ss:$2 sm:%s1264_s5]   ;;  %s1314_s5 = smov 3 }
 0x139   :  { %2794 = vst.msk [vmem:[%s4496_s1 + $0xf9] ss:$24 sm:$0x3] %vm581_vm2, %v826_v60   ;;  %v1270_v60 = vld [vmem:[#allocation0 + $0x340] ss:$2 sm:%s1269_s18]   ;;  %s1319_s18 = smov 3 }
 0x13a   :  { %2795 = vst.msk [vmem:[%s4496_s1 + $0xfa] ss:$24 sm:$0x3] %vm581_vm2, %v832_v61   ;;  %v1275_v61 = vld [vmem:[#allocation0 + $0x350] ss:$2 sm:%s1274_s16]   ;;  %s1324_s16 = smov 3 }
 0x13b   :  { %2796 = vst.msk [vmem:[%s4496_s1 + $0xfb] ss:$24 sm:$0x3] %vm581_vm2, %v838_v63   ;;  %v1285_v63 = vld [vmem:[#allocation0 + $0x370] ss:$2 sm:%s1284_s8]   ;;  %s1334_s8 = smov 3 }
 0x13c   :  { %2797 = vst.msk [vmem:[%s4496_s1 + $0xfc] ss:$24 sm:$0x3] %vm581_vm2, %v844_v0   ;;  %v1290_v0 = vld [vmem:[#allocation0 + $0x380] ss:$2 sm:%s1289_s29]   ;;  %s1339_s29 = smov 3 }
 0x13d   :  { %v2491_v62 = vpop.permute.xlu0 %2490   ;;  %v2583_v2 = vpop.permute.xlu1 %2582   ;;  %2798 = vst.msk [vmem:[%s4496_s1 + $0xfd] ss:$24 sm:$0x3] %vm581_vm2, %v850_v3  }
 0x13e   :  { %v2537_v1 = vpop.permute.xlu2 %2536   ;;  %2799 = vst.msk [vmem:[%s4496_s1 + $0xfe] ss:$24 sm:$0x3] %vm581_vm2, %v856_v4   ;;  %v1310_v4 = vld [vmem:[#allocation0 + $0x3c0] ss:$2 sm:%s1309_s13]   ;;  %s1359_s13 = smov 3 }
 0x13f   :  { %2800 = vst.msk [vmem:[%s4496_s1 + $0xff] ss:$24 sm:$0x3] %vm581_vm2, %v862_v5   ;;  %v1315_v5 = vld [vmem:[#allocation0 + $0x3d0] ss:$2 sm:%s1314_s5]   ;;  %s1364_s5 = smov 3 }
 0x140   :  { %2938 = vst.msk [vmem:[%s4496_s1 + $0x110] sm:$0xff] %vm1411_vm4, %v4140_v45   ;;  %v1195_v45 = vld [vmem:[#allocation0 + $0x250] ss:$2 sm:%s1194_s9]   ;;  %s1244_s9 = smov 3 }
 0x141   :  { %2942 = vst.msk [vmem:[%s4496_s1 + $0x38] sm:$0xff] %vm1411_vm4, %v2445_v47   ;;  %v1205_v47 = vld [vmem:[#allocation0 + $0x270] ss:$2 sm:%s1204_s10]   ;;  %s1254_s10 = smov 3 }
 0x142   :  { %2943 = vst.msk [vmem:[%s4496_s1 + $0x58] sm:$0xff] %vm1411_vm4, %v2468_v55   ;;  %v1245_v55 = vld [vmem:[#allocation0 + $0x2f0] ss:$2 sm:%s1244_s9]   ;;  %s1294_s9 = smov 3 }
 0x143   :  { %2941 = vst.msk [vmem:[%s4496_s1 + $0x190] sm:$0xff] %vm1411_vm4, %v2422_v52   ;;  %v1230_v52 = vld [vmem:[#allocation0 + $0x2c0] ss:$2 sm:%s1229_s22]   ;;  %v1255_v57 = vld [vmem:[#allocation0 + $0x310] ss:$2 sm:%s1254_s10]   ;;  %s1279_s22 = smov 3 }
 0x144   :  { %2945 = vst.msk [vmem:[%s4496_s1 + $0xb8] sm:$0xff] %vm1411_vm4, %v2514_v56   ;;  %v1250_v56 = vld [vmem:[#allocation0 + $0x300] ss:$2 sm:%s1249_s25]   ;;  %s1299_s25 = smov 3  ;;  %s1304_s10 = smov 3 }
 0x145   :  { %v2560_v6 = vpop.permute.xlu0 %2559   ;;  %2946 = vst.msk [vmem:[%s4496_s1 + $0xf8] sm:$0xff] %vm1411_vm4, %v2537_v1   ;;  %v1295_v1 = vld [vmem:[#allocation0 + $0x390] ss:$2 sm:%s1294_s9]   ;;  %s1344_s9 = smov 3 }
 0x146   :  { %v2606_v7 = vpop.permute.xlu2 %2605   ;;  %2944 = vst.msk [vmem:[%s4496_s1 + $0x98] sm:$0xff] %vm1411_vm4, %v2491_v62   ;;  %v1280_v62 = vld [vmem:[#allocation0 + $0x360] ss:$2 sm:%s1279_s22]   ;;  %v1305_v3 = vld [vmem:[#allocation0 + $0x3b0] ss:$2 sm:%s1304_s10]   ;;  %s1329_s22 = smov 3 }
 0x147   :  { %2948 = vst.msk [vmem:[%s4496_s1 + $0x158] sm:$0xff] %vm1411_vm4, %v2583_v2   ;;  %v1300_v2 = vld [vmem:[#allocation0 + $0x3a0] ss:$2 sm:%s1299_s25]   ;;  %s1349_s25 = smov 3  ;;  %s1354_s10 = smov 3 }
 0x148   :  { %2949 = vst.msk [vmem:[%s4496_s1 + $0x178] sm:$0xff] %vm1411_vm4, %v2606_v7   ;;  %v1325_v7 = vld [vmem:[#allocation0 + $0x3f0] ss:$2 sm:%s1324_s16]  }
 0x149   :  { %2947 = vst.msk [vmem:[%s4496_s1 + $0x118] sm:$0xff] %vm1411_vm4, %v2560_v6   ;;  %v1320_v6 = vld [vmem:[#allocation0 + $0x3e0] ss:$2 sm:%s1319_s18]  }
 0x14a   :  { %1012 = vst [vmem:[%s4496_s1] ss:$24 sm:$0x3] %v1011_v8   ;;  %v1330_v8 = vld [vmem:[#allocation0 + $0x400] ss:$2 sm:%s1329_s22]  }
 0x14b   :  { %2825 = vst [vmem:[%s4496_s1 + $0x1] ss:$24 sm:$0x3] %v1015_v9   ;;  %v1335_v9 = vld [vmem:[#allocation0 + $0x410] ss:$2 sm:%s1334_s8]  }
 0x14c   :  { %2826 = vst [vmem:[%s4496_s1 + $0x2] ss:$24 sm:$0x3] %v1020_v10   ;;  %v1340_v10 = vld [vmem:[#allocation0 + $0x420] ss:$2 sm:%s1339_s29]  }
 0x14d   :  { %2827 = vst [vmem:[%s4496_s1 + $0x3] ss:$24 sm:$0x3] %v1025_v11   ;;  %v1345_v11 = vld [vmem:[#allocation0 + $0x430] ss:$2 sm:%s1344_s9]  }
 0x14e   :  { %2828 = vst [vmem:[%s4496_s1 + $0x4] ss:$24 sm:$0x3] %v1030_v12   ;;  %v1350_v12 = vld [vmem:[#allocation0 + $0x440] ss:$2 sm:%s1349_s25]  }
 0x14f   :  { %2829 = vst [vmem:[%s4496_s1 + $0x5] ss:$24 sm:$0x3] %v1035_v13   ;;  %v1355_v13 = vld [vmem:[#allocation0 + $0x450] ss:$2 sm:%s1354_s10]  }
 0x150   :  { %2830 = vst [vmem:[%s4496_s1 + $0x6] ss:$24 sm:$0x3] %v1040_v14   ;;  %v1360_v14 = vld [vmem:[#allocation0 + $0x460] ss:$2 sm:%s1359_s13]  }
 0x151   :  { %2831 = vst [vmem:[%s4496_s1 + $0x7] ss:$24 sm:$0x3] %v1045_v15   ;;  %v1365_v15 = vld [vmem:[#allocation0 + $0x470] ss:$2 sm:%s1364_s5]  }
 0x152   :  { %2832 = vst [vmem:[%s4496_s1 + $0x30] ss:$24 sm:$0x3] %v1050_v16  }
 0x153   :  { %2833 = vst [vmem:[%s4496_s1 + $0x31] ss:$24 sm:$0x3] %v1055_v17  }
 0x154   :  { %2834 = vst [vmem:[%s4496_s1 + $0x32] ss:$24 sm:$0x3] %v1060_v18  }
 0x155   :  { %2835 = vst [vmem:[%s4496_s1 + $0x33] ss:$24 sm:$0x3] %v1065_v19  }
 0x156   :  { %2836 = vst [vmem:[%s4496_s1 + $0x34] ss:$24 sm:$0x3] %v1070_v20  }
 0x157   :  { %2837 = vst [vmem:[%s4496_s1 + $0x35] ss:$24 sm:$0x3] %v1075_v21  }
 0x158   :  { %2838 = vst [vmem:[%s4496_s1 + $0x36] ss:$24 sm:$0x3] %v1080_v22  }
 0x159   :  { %2839 = vst [vmem:[%s4496_s1 + $0x37] ss:$24 sm:$0x3] %v1085_v23  }
 0x15a   :  { %2840 = vst [vmem:[%s4496_s1 + $0x60] ss:$24 sm:$0x3] %v1090_v24  }
 0x15b   :  { %2841 = vst [vmem:[%s4496_s1 + $0x61] ss:$24 sm:$0x3] %v1095_v25  }
 0x15c   :  { %2842 = vst [vmem:[%s4496_s1 + $0x62] ss:$24 sm:$0x3] %v1100_v26  }
 0x15d   :  { %2843 = vst [vmem:[%s4496_s1 + $0x63] ss:$24 sm:$0x3] %v1105_v27  }
 0x15e   :  { %2844 = vst [vmem:[%s4496_s1 + $0x64] ss:$24 sm:$0x3] %v1110_v28  }
 0x15f   :  { %2845 = vst [vmem:[%s4496_s1 + $0x65] ss:$24 sm:$0x3] %v1115_v29  }
 0x160   :  { %2846 = vst [vmem:[%s4496_s1 + $0x66] ss:$24 sm:$0x3] %v1120_v30  }
 0x161   :  { %2847 = vst [vmem:[%s4496_s1 + $0x67] ss:$24 sm:$0x3] %v1125_v31  }
 0x162   :  { %2848 = vst [vmem:[%s4496_s1 + $0x90] ss:$24 sm:$0x3] %v1130_v32  }
 0x163   :  { %2849 = vst [vmem:[%s4496_s1 + $0x91] ss:$24 sm:$0x3] %v1135_v33  }
 0x164   :  { %2850 = vst [vmem:[%s4496_s1 + $0x92] ss:$24 sm:$0x3] %v1140_v34  }
 0x165   :  { %2851 = vst [vmem:[%s4496_s1 + $0x93] ss:$24 sm:$0x3] %v1145_v35  }
 0x166   :  { %2852 = vst [vmem:[%s4496_s1 + $0x94] ss:$24 sm:$0x3] %v1150_v36  }
 0x167   :  { %2853 = vst [vmem:[%s4496_s1 + $0x95] ss:$24 sm:$0x3] %v1155_v37  }
 0x168   :  { %2854 = vst [vmem:[%s4496_s1 + $0x96] ss:$24 sm:$0x3] %v1160_v38  }
 0x169   :  { %2855 = vst [vmem:[%s4496_s1 + $0x97] ss:$24 sm:$0x3] %v1165_v39  }
 0x16a   :  { %2856 = vst [vmem:[%s4496_s1 + $0xc0] ss:$24 sm:$0x3] %v1170_v40  }
 0x16b   :  { %2857 = vst [vmem:[%s4496_s1 + $0xc1] ss:$24 sm:$0x3] %v1175_v41  }
 0x16c   :  { %2858 = vst [vmem:[%s4496_s1 + $0xc2] ss:$24 sm:$0x3] %v1180_v42  }
 0x16d   :  { %2859 = vst [vmem:[%s4496_s1 + $0xc3] ss:$24 sm:$0x3] %v1185_v43  }
 0x16e   :  { %2860 = vst [vmem:[%s4496_s1 + $0xc4] ss:$24 sm:$0x3] %v1190_v44  }
 0x16f   :  { %2861 = vst [vmem:[%s4496_s1 + $0xc5] ss:$24 sm:$0x3] %v1195_v45  }
 0x170   :  { %2862 = vst [vmem:[%s4496_s1 + $0xc6] ss:$24 sm:$0x3] %v1200_v46  }
 0x171   :  { %2863 = vst [vmem:[%s4496_s1 + $0xc7] ss:$24 sm:$0x3] %v1205_v47  }
 0x172   :  { %2864 = vst [vmem:[%s4496_s1 + $0xf0] ss:$24 sm:$0x3] %v1210_v48  }
 0x173   :  { %2865 = vst [vmem:[%s4496_s1 + $0xf1] ss:$24 sm:$0x3] %v1215_v49  }
 0x174   :  { %2866 = vst [vmem:[%s4496_s1 + $0xf2] ss:$24 sm:$0x3] %v1220_v50  }
 0x175   :  { %2867 = vst [vmem:[%s4496_s1 + $0xf3] ss:$24 sm:$0x3] %v1225_v51  }
 0x176   :  { %2868 = vst [vmem:[%s4496_s1 + $0xf4] ss:$24 sm:$0x3] %v1230_v52  }
 0x177   :  { %2869 = vst [vmem:[%s4496_s1 + $0xf5] ss:$24 sm:$0x3] %v1235_v53  }
 0x178   :  { %2870 = vst [vmem:[%s4496_s1 + $0xf6] ss:$24 sm:$0x3] %v1240_v54  }
 0x179   :  { %2871 = vst [vmem:[%s4496_s1 + $0xf7] ss:$24 sm:$0x3] %v1245_v55  }
 0x17a   :  { %2872 = vst [vmem:[%s4496_s1 + $0x120] ss:$24 sm:$0x3] %v1250_v56  }
 0x17b   :  { %2873 = vst [vmem:[%s4496_s1 + $0x121] ss:$24 sm:$0x3] %v1255_v57  }
 0x17c   :  { %2874 = vst [vmem:[%s4496_s1 + $0x122] ss:$24 sm:$0x3] %v1260_v58  }
 0x17d   :  { %2875 = vst [vmem:[%s4496_s1 + $0x123] ss:$24 sm:$0x3] %v1265_v59  }
 0x17e   :  { %2876 = vst [vmem:[%s4496_s1 + $0x124] ss:$24 sm:$0x3] %v1270_v60  }
 0x17f   :  { %2877 = vst [vmem:[%s4496_s1 + $0x125] ss:$24 sm:$0x3] %v1275_v61  }
 0x180   :  { %2878 = vst [vmem:[%s4496_s1 + $0x126] ss:$24 sm:$0x3] %v1280_v62  }
 0x181   :  { %2879 = vst [vmem:[%s4496_s1 + $0x127] ss:$24 sm:$0x3] %v1285_v63  }
 0x182   :  { %2880 = vst [vmem:[%s4496_s1 + $0x150] ss:$24 sm:$0x3] %v1290_v0  }
 0x183   :  { %2881 = vst [vmem:[%s4496_s1 + $0x151] ss:$24 sm:$0x3] %v1295_v1  }
 0x184   :  { %2882 = vst [vmem:[%s4496_s1 + $0x152] ss:$24 sm:$0x3] %v1300_v2  }
 0x185   :  { %2883 = vst [vmem:[%s4496_s1 + $0x153] ss:$24 sm:$0x3] %v1305_v3  }
 0x186   :  { %2884 = vst [vmem:[%s4496_s1 + $0x154] ss:$24 sm:$0x3] %v1310_v4  }
 0x187   :  { %2885 = vst [vmem:[%s4496_s1 + $0x155] ss:$24 sm:$0x3] %v1315_v5  }
 0x188   :  { %2886 = vst [vmem:[%s4496_s1 + $0x156] ss:$24 sm:$0x3] %v1320_v6  }
 0x189   :  { %2887 = vst [vmem:[%s4496_s1 + $0x157] ss:$24 sm:$0x3] %v1325_v7  }
 0x18a   :  { %2888 = vst [vmem:[%s4496_s1 + $0x180] ss:$24 sm:$0x3] %v1330_v8  }
 0x18b   :  { %2889 = vst [vmem:[%s4496_s1 + $0x181] ss:$24 sm:$0x3] %v1335_v9  }
 0x18c   :  { %2890 = vst [vmem:[%s4496_s1 + $0x182] ss:$24 sm:$0x3] %v1340_v10  }
 0x18d   :  { %2891 = vst [vmem:[%s4496_s1 + $0x183] ss:$24 sm:$0x3] %v1345_v11  }
 0x18e   :  { %2892 = vst [vmem:[%s4496_s1 + $0x184] ss:$24 sm:$0x3] %v1350_v12  }
 0x18f   :  { %2893 = vst [vmem:[%s4496_s1 + $0x185] ss:$24 sm:$0x3] %v1355_v13  }
 0x190   :  { %2894 = vst [vmem:[%s4496_s1 + $0x186] ss:$24 sm:$0x3] %v1360_v14  }
 0x191   :  { %2895 = vst [vmem:[%s4496_s1 + $0x187] ss:$24 sm:$0x3] %v1365_v15  }

// kernel: modified_nn_forward.1
= control target key start
LH: loop header
LB: loop body
LE: loop exit
PB: predicated region body
PF: predicated region fallthrough
CT: control target
= control target key end

     0   :  { %s3705_s26 = smov 0   ;;  %s5750_s0 = inlined_call_operand.vmem [shape: f32[72,768], index: 0, kind: input, shape index: {}]   ;;  %s5751_s1 = inlined_call_operand.vmem [shape: f32[72,768], index: 1, kind: input, shape index: {}]   ;;  %s5752_s2 = inlined_call_operand.vmem [shape: f32[8,768], index: 2, kind: input, shape index: {}]   ;;  %s5753_s3 = inlined_call_operand.vmem [shape: bf16[6144,128], index: 3, kind: input, shape index: {}]   ;;  %s5754_s4 = inlined_call_operand.vmem [shape: f32[1,128], index: 4, kind: input, shape index: {}]   ;;  %s5755_s5 = inlined_call_operand.vmem [shape: f32[1,128], index: 5, kind: input, shape index: {}]   ;;  %s5756_s6 = inlined_call_operand.<no memory space> [shape: f32[1,1], index: 6, kind: input, shape index: {}]   ;;  %s5757_s7 = inlined_call_operand.vmem [shape: f32[2,1], index: 7, kind: output, shape index: {}]  }
   0x1   :  { %v12_v0 = vstv %s5756_s6 }
   0x2   :  { %13 = vst [vmem:[#allocation4] sm:$0x1] %v12_v0 }
   0x3 LB: > { %s3711_s27 = sadd.s32 4294967295, %s3659_s26   ;;  %p3137_p0 = scmp.ge.s32.totalorder %s3659_s26, 1  ;;  %s3659_s26 = sphi %s3705_s26, %s19_s26  }
   0x4   : > { %p235_p1 = scmp.lt.s32.totalorder %s3659_s26, 9 }
   0x6   : > { %p236_p2 = pnand %p3137_p0, %p235_p1 }
   0x7   : > { %s262_s28 = smul.u32 (!%p236_p2), 96, %s3711_s27  ;;  %p3139_p4 = scmp.ne.s32.totalorder (!%p236_p2), %s3711_s27, 0 }
   0x8   : > { %239 = sbr.rel (%p236_p2) target bundleno = 711 (0x2c7), region = 48 }
   0x9   : > { %p263_p3 = scmp.lt.s32.totalorder (!%p236_p2), %s262_s28, 767 }
   0xd   : > { %s6113_s28 = smov (!%p263_p3, %s262_s28), 767  ;;  %271 = sbr.rel (%p3139_p4) target bundleno = 381 (0x17d), region = 52 }
   0xe   : > { %s3138_s6 = sshll.u32 %s6113_s28, 2 }
   0xf   : > { %s3719_s8 = scalar_lea.vmem %s5753_s3, %s3138_s6 }
  0x12   : > { %v3661_v1 = vmov 0.0   ;;  %v285_v2 = vld [vmem:[%s5750_s0] ss:$8 sm:$0xf] }
  0x13   : > { %272 = vst [vmem:[#allocation3] sm:$0x3] %v3661_v1  ;;  %v286_v3 = vld [vmem:[%s5750_s0] ss:$8 sm:$0x30]  ;;  %v3741_v10 = vld [vmem:[%s5751_s1 + $0x10] sm:$0xff] }
  0x14   : > { %v287_v4 = vor.u32 %v286_v3, %v285_v2  ;;  %v3731_v5 = vld [vmem:[%s5751_s1] sm:$0xff]  ;;  %v3736_v9 = vld [vmem:[%s5751_s1 + $0x8] sm:$0xff]  ;;  %5889 = vst [vmem:[#allocation7_spill] sm:$0xff] %v3741_v10  ;;  %v3749_v12 = vld [vmem:[%s5751_s1 + $0x18] sm:$0xff] }
  0x15   : > { %5887 = vst [vmem:[#allocation5_spill] sm:$0xff] %v3731_v5  ;;  %v3140_v11 = vld [vmem:[%s5750_s0 + $0x1] ss:$8 sm:$0xf] }
  0x16   : > { %v289_v6 = vperm.slane %v287_v4, 0  ;;  %v290_v7 = vperm.slane %v287_v4, 1  ;;  %v291_v8 = vperm.slane %v287_v4, 2  ;;  %5888 = vst [vmem:[#allocation6_spill] sm:$0xff] %v3736_v9  ;;  %v292_v13 = vperm.slane %v287_v4, 3  ;;  %v3757_v16 = vld [vmem:[%s5751_s1 + $0x30] sm:$0xff] }
  0x17   : > { %5890 = vst [vmem:[#allocation8_spill] sm:$0xff] %v3749_v12  ;;  %v3141_v14 = vld [vmem:[%s5750_s0 + $0x1] ss:$8 sm:$0x30]  ;;  %v293_v15 = vperm.slane %v287_v4, 4  ;;  %v3762_v17 = vld [vmem:[%s5751_s1 + $0x38] sm:$0xff] }
  0x18   : > { %5891 = vst [vmem:[#allocation9_spill] sm:$0xff] %v3757_v16  ;;  %v322_v18 = vor.u32 %v3141_v14, %v3140_v11  ;;  %v3142_v19 = vld [vmem:[%s5750_s0 + $0x2] ss:$8 sm:$0xf]  ;;  %v294_v20 = vperm.slane %v287_v4, 5  ;;  %v301_v21 = vmul.f32 %v289_v6, %v3731_v5  ;;  %v302_v22 = vmul.f32 %v290_v7, %v3736_v9 }
  0x19   : > { %v303_v23 = vmul.f32 %v291_v8, %v3741_v10  ;;  %v3773_v24 = vld [vmem:[%s5751_s1 + $0x40] sm:$0xff]  ;;  %v3778_v25 = vld [vmem:[%s5751_s1 + $0x48] sm:$0xff]  ;;  %v3791_v28 = vld [vmem:[%s5751_s1 + $0x50] sm:$0xff]  ;;  %v304_v34 = vmul.f32 %v292_v13, %v3749_v12 }
  0x1a   : > { %v3143_v26 = vld [vmem:[%s5750_s0 + $0x2] ss:$8 sm:$0x30]  ;;  %v324_v29 = vperm.slane %v322_v18, 0  ;;  %v325_v30 = vperm.slane %v322_v18, 1  ;;  %v326_v31 = vperm.slane %v322_v18, 2 }
  0x1b   : > { %v3786_v27 = vld [vmem:[%s5751_s1 + $0x20] sm:$0xff]  ;;  %v327_v32 = vperm.slane %v322_v18, 3  ;;  %v3796_v33 = vld [vmem:[%s5751_s1 + $0x28] sm:$0xff]  ;;  %v3802_v35 = vld [vmem:[%s5751_s1 + $0x58] sm:$0xff]  ;;  %v328_v36 = vperm.slane %v322_v18, 4  ;;  %v329_v37 = vperm.slane %v322_v18, 5  ;;  %v357_v39 = vor.u32 %v3143_v26, %v3142_v19 }
  0x1c   : > { %5892 = vst [vmem:[#allocation10_spill] sm:$0xff] %v3786_v27  ;;  %v3807_v38 = vld [vmem:[%s5751_s1 + $0x60] sm:$0xff]  ;;  %v336_v40 = vmul.f32 %v324_v29, %v3757_v16  ;;  %v337_v41 = vmul.f32 %v325_v30, %v3762_v17  ;;  %v338_v42 = vmul.f32 %v326_v31, %v3773_v24  ;;  %v3816_v44 = vld [vmem:[%s5751_s1 + $0x68] sm:$0xff]  ;;  %v3821_v45 = vld [vmem:[%s5751_s1 + $0x70] sm:$0xff]  ;;  %v305_v47 = vmul.f32 %v293_v15, %v3786_v27 }
  0x1d   : > { %5893 = vst [vmem:[#allocation11_spill] sm:$0xff] %v3796_v33  ;;  %v339_v43 = vmul.f32 %v327_v32, %v3778_v25  ;;  %v3826_v46 = vld [vmem:[%s5751_s1 + $0x78] sm:$0xff]  ;;  %v340_v48 = vmul.f32 %v328_v36, %v3791_v28  ;;  %v3833_v49 = vld [vmem:[%s5751_s1 + $0x80] sm:$0xff]  ;;  %v359_v50 = vperm.slane %v357_v39, 0  ;;  %v360_v51 = vperm.slane %v357_v39, 1  ;;  %v3849_v61 = vld [vmem:[%s5751_s1 + $0x88] sm:$0xff] }
  0x1e   : > { %v3144_v52 = vld [vmem:[%s5750_s0 + $0x3] ss:$8 sm:$0xf]  ;;  %v306_v53 = vmul.f32 %v294_v20, %v3796_v33  ;;  %v341_v54 = vmul.f32 %v329_v37, %v3802_v35  ;;  %v342_v55 = vadd.f32 %v336_v40, %v301_v21  ;;  %v343_v56 = vadd.f32 %v337_v41, %v302_v22  ;;  %v3146_v58 = vld [vmem:[%s5750_s0 + $0x4] ss:$8 sm:$0xf] }
  0x1f   : > { %v3145_v57 = vld [vmem:[%s5750_s0 + $0x3] ss:$8 sm:$0x30]  ;;  %v344_v59 = vadd.f32 %v338_v42, %v303_v23  ;;  %v345_v60 = vadd.f32 %v339_v43, %v304_v34  ;;  %5894 = vst [vmem:[#allocation12_spill] sm:$0xff] %v3849_v61  ;;  %v361_v62 = vperm.slane %v357_v39, 2  ;;  %v362_v63 = vperm.slane %v357_v39, 3 }
  0x20   : > { %v3147_v0 = vld [vmem:[%s5750_s0 + $0x4] ss:$8 sm:$0x30]  ;;  %v363_v1 = vperm.slane %v357_v39, 4  ;;  %v364_v2 = vperm.slane %v357_v39, 5  ;;  %v371_v3 = vmul.f32 %v359_v50, %v3807_v38  ;;  %v372_v4 = vmul.f32 %v360_v51, %v3816_v44  ;;  %v3863_v18 = vld [vmem:[%s5751_s1 + $0x90] sm:$0xff] }
  0x21   : > { %v346_v6 = vadd.f32 %v340_v48, %v305_v47  ;;  %v373_v7 = vmul.f32 %v361_v62, %v3821_v45  ;;  %v374_v8 = vmul.f32 %v362_v63, %v3826_v46  ;;  %v392_v11 = vor.u32 %v3145_v57, %v3144_v52  ;;  %v3868_v19 = vld [vmem:[%s5751_s1 + $0x98] sm:$0xff]  ;;  %v3873_v23 = vld [vmem:[%s5751_s1 + $0xa0] sm:$0xff]  ;;  %v3878_v26 = vld [vmem:[%s5751_s1 + $0xa8] sm:$0xff] }
  0x22   : > { %v347_v13 = vadd.f32 %v341_v54, %v306_v53  ;;  %v375_v14 = vmul.f32 %v363_v1, %v3833_v49  ;;  %v376_v15 = vmul.f32 %v364_v2, %v3849_v61  ;;  %v427_v20 = vor.u32 %v3147_v0, %v3146_v58  ;;  %v3883_v34 = vld [vmem:[%s5751_s1 + $0xb0] sm:$0xff]  ;;  %v3888_v36 = vld [vmem:[%s5751_s1 + $0xb8] sm:$0xff]  ;;  %v3895_v47 = vld [vmem:[%s5751_s1 + $0xc0] sm:$0xff] }
  0x23   : > { %v377_v21 = vadd.f32 %v371_v3, %v342_v55  ;;  %v378_v22 = vadd.f32 %v372_v4, %v343_v56  ;;  %v394_v29 = vperm.slane %v392_v11, 0  ;;  %v395_v30 = vperm.slane %v392_v11, 1  ;;  %5895 = vst [vmem:[#allocation13_spill] sm:$0xff] %v3888_v36  ;;  %v3900_v48 = vld [vmem:[%s5751_s1 + $0xc8] sm:$0xff]  ;;  %v3905_v50 = vld [vmem:[%s5751_s1 + $0xd0] sm:$0xff]  ;;  %v3912_v53 = vld [vmem:[%s5751_s1 + $0xd8] sm:$0xff] }
  0x24   : > { %v379_v31 = vadd.f32 %v373_v7, %v344_v59  ;;  %v380_v32 = vadd.f32 %v374_v8, %v345_v60  ;;  %v396_v37 = vperm.slane %v392_v11, 2  ;;  %v397_v39 = vperm.slane %v392_v11, 3  ;;  %5896 = vst [vmem:[#allocation14_spill] sm:$0xff] %v3895_v47  ;;  %v3148_v56 = vld [vmem:[%s5750_s0 + $0x5] ss:$8 sm:$0xf] }
  0x25   : > { %v398_v40 = vperm.slane %v392_v11, 4  ;;  %v399_v41 = vperm.slane %v392_v11, 5  ;;  %v406_v42 = vmul.f32 %v394_v29, %v3863_v18  ;;  %v407_v43 = vmul.f32 %v395_v30, %v3868_v19  ;;  %5897 = vst [vmem:[#allocation15_spill] sm:$0xff] %v3900_v48  ;;  %v3149_v62 = vld [vmem:[%s5750_s0 + $0x5] ss:$8 sm:$0x30] }
  0x26   : > { %5898 = vst [vmem:[#allocation16_spill] sm:$0xff] %v3905_v50  ;;  %v408_v51 = vmul.f32 %v396_v37, %v3873_v23  ;;  %v409_v52 = vmul.f32 %v397_v39, %v3878_v26  ;;  %v429_v54 = vperm.slane %v427_v20, 0  ;;  %v430_v55 = vperm.slane %v427_v20, 1  ;;  %v3150_v63 = vld [vmem:[%s5750_s0 + $0x6] ss:$8 sm:$0xf] }
  0x27   : > { %5899 = vst [vmem:[#allocation17_spill] sm:$0xff] %v3912_v53  ;;  %v381_v57 = vadd.f32 %v375_v14, %v346_v6  ;;  %v382_v58 = vadd.f32 %v376_v15, %v347_v13  ;;  %v410_v59 = vmul.f32 %v398_v40, %v3883_v34  ;;  %v411_v60 = vmul.f32 %v399_v41, %v3888_v36  ;;  %v3151_v4 = vld [vmem:[%s5750_s0 + $0x6] ss:$8 sm:$0x30] }
  0x28   : > { %v412_v0 = vadd.f32 %v406_v42, %v377_v21  ;;  %v413_v1 = vadd.f32 %v407_v43, %v378_v22  ;;  %v431_v2 = vperm.slane %v427_v20, 2  ;;  %v432_v3 = vperm.slane %v427_v20, 3  ;;  %v3931_v8 = vld [vmem:[%s5751_s1 + $0xe0] sm:$0xff]  ;;  %v3936_v11 = vld [vmem:[%s5751_s1 + $0xe8] sm:$0xff]  ;;  %v3952_v43 = vld [vmem:[%s5751_s1 + $0xf8] sm:$0xff] }
  0x29   : > { %v414_v6 = vadd.f32 %v408_v51, %v379_v31  ;;  %v415_v7 = vadd.f32 %v409_v52, %v380_v32  ;;  %5900 = vst [vmem:[#allocation18_spill] sm:$0xff] %v3931_v8  ;;  %v433_v13 = vperm.slane %v427_v20, 4  ;;  %v434_v14 = vperm.slane %v427_v20, 5  ;;  %v3947_v20 = vld [vmem:[%s5751_s1 + $0xf0] sm:$0xff] }
  0x2a   : > { %5901 = vst [vmem:[#allocation19_spill] sm:$0xff] %v3936_v11  ;;  %v441_v15 = vmul.f32 %v429_v54, %v3895_v47  ;;  %v442_v21 = vmul.f32 %v430_v55, %v3900_v48  ;;  %v443_v22 = vmul.f32 %v431_v2, %v3905_v50  ;;  %v444_v29 = vmul.f32 %v432_v3, %v3912_v53  ;;  %v3957_v54 = vld [vmem:[%s5751_s1 + $0x100] sm:$0xff]  ;;  %v3962_v55 = vld [vmem:[%s5751_s1 + $0x108] sm:$0xff] }
  0x2b   : > { %v416_v30 = vadd.f32 %v410_v59, %v381_v57  ;;  %v417_v31 = vadd.f32 %v411_v60, %v382_v58  ;;  %v462_v32 = vor.u32 %v3149_v62, %v3148_v56  ;;  %v497_v37 = vor.u32 %v3151_v4, %v3150_v63  ;;  %5902 = vst [vmem:[#allocation20_spill] sm:$0xff] %v3947_v20  ;;  %v3967_v56 = vld [vmem:[%s5751_s1 + $0x110] sm:$0xff]  ;;  %v3972_v59 = vld [vmem:[%s5751_s1 + $0x118] sm:$0xff]  ;;  %v3979_v3 = vld [vmem:[%s5751_s1 + $0x120] sm:$0xff] }
  0x2c   : > { %v445_v39 = vmul.f32 %v433_v13, %v3931_v8  ;;  %v446_v40 = vmul.f32 %v434_v14, %v3936_v11  ;;  %v447_v41 = vadd.f32 %v441_v15, %v412_v0  ;;  %v448_v42 = vadd.f32 %v442_v21, %v413_v1  ;;  %5903 = vst [vmem:[#allocation21_spill] sm:$0xff] %v3952_v43  ;;  %v3984_v4 = vld [vmem:[%s5751_s1 + $0x128] sm:$0xff] }
  0x2d   : > { %v449_v51 = vadd.f32 %v443_v22, %v414_v6  ;;  %v450_v52 = vadd.f32 %v444_v29, %v415_v7  ;;  %5904 = vst [vmem:[#allocation22_spill] sm:$0xff] %v3957_v54  ;;  %v464_v57 = vperm.slane %v462_v32, 0  ;;  %v465_v58 = vperm.slane %v462_v32, 1  ;;  %v3989_v6 = vld [vmem:[%s5751_s1 + $0x130] sm:$0xff]  ;;  %v3997_v29 = vld [vmem:[%s5751_s1 + $0x138] sm:$0xff] }
  0x2e   : > { %5905 = vst [vmem:[#allocation23_spill] sm:$0xff] %v3962_v55  ;;  %v466_v60 = vperm.slane %v462_v32, 2  ;;  %v467_v62 = vperm.slane %v462_v32, 3  ;;  %v468_v63 = vperm.slane %v462_v32, 4  ;;  %v469_v0 = vperm.slane %v462_v32, 5  ;;  %v4002_v32 = vld [vmem:[%s5751_s1 + $0x140] sm:$0xff] }
  0x2f   : > { %5906 = vst [vmem:[#allocation24_spill] sm:$0xff] %v3967_v56  ;;  %v476_v1 = vmul.f32 %v464_v57, %v3947_v20  ;;  %v477_v2 = vmul.f32 %v465_v58, %v3952_v43  ;;  %v499_v7 = vperm.slane %v497_v37, 0  ;;  %v500_v13 = vperm.slane %v497_v37, 1  ;;  %v4011_v58 = vld [vmem:[%s5751_s1 + $0x148] sm:$0xff] }
  0x30   : > { %5907 = vst [vmem:[#allocation25_spill] sm:$0xff] %v3972_v59  ;;  %v451_v14 = vadd.f32 %v445_v39, %v416_v30  ;;  %v478_v15 = vmul.f32 %v466_v60, %v3957_v54  ;;  %v479_v21 = vmul.f32 %v467_v62, %v3962_v55  ;;  %v480_v22 = vmul.f32 %v468_v63, %v3967_v56  ;;  %v3152_v30 = vld [vmem:[%s5750_s0 + $0x7] ss:$8 sm:$0xf] }
  0x31   : > { %5908 = vst [vmem:[#allocation26_spill] sm:$0xff] %v3979_v3  ;;  %v452_v39 = vadd.f32 %v446_v40, %v417_v31  ;;  %v481_v57 = vmul.f32 %v469_v0, %v3972_v59  ;;  %v501_v60 = vperm.slane %v497_v37, 2  ;;  %v502_v62 = vperm.slane %v497_v37, 3  ;;  %v3153_v63 = vld [vmem:[%s5750_s0 + $0x7] ss:$8 sm:$0x30] }
  0x32   : > { %5909 = vst [vmem:[#allocation27_spill] sm:$0xff] %v3984_v4  ;;  %v482_v56 = vadd.f32 %v476_v1, %v447_v41  ;;  %v483_v55 = vadd.f32 %v477_v2, %v448_v42  ;;  %v484_v54 = vadd.f32 %v478_v15, %v449_v51  ;;  %v485_v43 = vadd.f32 %v479_v21, %v450_v52  ;;  %v3154_v31 = vld [vmem:[%s5750_s0 + $0x30] ss:$8 sm:$0xf] }
  0x33   : > { %5910 = vst [vmem:[#allocation28_spill] sm:$0xff] %v3989_v6  ;;  %v3155_v40 = vld [vmem:[%s5750_s0 + $0x30] ss:$8 sm:$0x30]  ;;  %v503_v0 = vperm.slane %v497_v37, 4  ;;  %v504_v59 = vperm.slane %v497_v37, 5  ;;  %v511_v20 = vmul.f32 %v499_v7, %v3979_v3  ;;  %v512_v11 = vmul.f32 %v500_v13, %v3984_v4 }
  0x34   : > { %5911 = vst [vmem:[#allocation29_spill] sm:$0xff] %v3997_v29  ;;  %v486_v8 = vadd.f32 %v480_v22, %v451_v14  ;;  %v513_v41 = vmul.f32 %v501_v60, %v3989_v6  ;;  %v514_v42 = vmul.f32 %v502_v62, %v3997_v29  ;;  %v532_v51 = vor.u32 %v3153_v63, %v3152_v30  ;;  %v4031_v15 = vld [vmem:[%s5751_s1 + $0x150] sm:$0xff]  ;;  %v4036_v37 = vld [vmem:[%s5751_s1 + $0x158] sm:$0xff]  ;;  %v4041_v21 = vld [vmem:[%s5751_s1 + $0x160] sm:$0xff] }
  0x35   : > { %5912 = vst [vmem:[#allocation30_spill] sm:$0xff] %v4002_v32  ;;  %v487_v52 = vadd.f32 %v481_v57, %v452_v39  ;;  %v515_v1 = vmul.f32 %v503_v0, %v4002_v32  ;;  %v516_v2 = vmul.f32 %v504_v59, %v4011_v58  ;;  %v567_v7 = vor.u32 %v3155_v40, %v3154_v31  ;;  %v4046_v59 = vld [vmem:[%s5751_s1 + $0x168] sm:$0xff]  ;;  %v4051_v60 = vld [vmem:[%s5751_s1 + $0x170] sm:$0xff] }
  0x36   : > { %5913 = vst [vmem:[#allocation31_spill] sm:$0xff] %v4011_v58  ;;  %v517_v13 = vadd.f32 %v511_v20, %v482_v56  ;;  %v518_v14 = vadd.f32 %v512_v11, %v483_v55  ;;  %v534_v22 = vperm.slane %v532_v51, 0  ;;  %v535_v30 = vperm.slane %v532_v51, 1  ;;  %v4056_v11 = vld [vmem:[%s5751_s1 + $0x178] sm:$0xff]  ;;  %v4073_v40 = vld [vmem:[%s5751_s1 + $0x190] sm:$0xff] }
  0x37   : > { %5914 = vst [vmem:[#allocation32_spill] sm:$0xff] %v4031_v15  ;;  %v519_v39 = vadd.f32 %v513_v41, %v484_v54  ;;  %v520_v57 = vadd.f32 %v514_v42, %v485_v43  ;;  %v536_v20 = vperm.slane %v532_v51, 2  ;;  %v537_v55 = vperm.slane %v532_v51, 3  ;;  %v4063_v43 = vld [vmem:[%s5751_s1 + $0x180] sm:$0xff]  ;;  %v4068_v54 = vld [vmem:[%s5751_s1 + $0x188] sm:$0xff]  ;;  %v4080_v42 = vld [vmem:[%s5751_s1 + $0x198] sm:$0xff] }
  0x38   : > { %5915 = vst [vmem:[#allocation33_spill] sm:$0xff] %v4036_v37  ;;  %v538_v56 = vperm.slane %v532_v51, 4  ;;  %v539_v62 = vperm.slane %v532_v51, 5  ;;  %v546_v63 = vmul.f32 %v534_v22, %v4031_v15  ;;  %v547_v31 = vmul.f32 %v535_v30, %v4036_v37  ;;  %v3156_v30 = vld [vmem:[%s5750_s0 + $0x31] ss:$8 sm:$0xf] }
  0x39   : > { %5916 = vst [vmem:[#allocation34_spill] sm:$0xff] %v4041_v21  ;;  %v548_v0 = vmul.f32 %v536_v20, %v4041_v21  ;;  %v549_v41 = vmul.f32 %v537_v55, %v4046_v59  ;;  %v569_v51 = vperm.slane %v567_v7, 0  ;;  %v570_v22 = vperm.slane %v567_v7, 1  ;;  %v3157_v20 = vld [vmem:[%s5750_s0 + $0x31] ss:$8 sm:$0x30] }
  0x3a   : > { %5917 = vst [vmem:[#allocation35_spill] sm:$0xff] %v4046_v59  ;;  %v521_v37 = vadd.f32 %v515_v1, %v486_v8  ;;  %v522_v15 = vadd.f32 %v516_v2, %v487_v52  ;;  %v550_v58 = vmul.f32 %v538_v56, %v4051_v60  ;;  %v551_v32 = vmul.f32 %v539_v62, %v4056_v11  ;;  %v3158_v55 = vld [vmem:[%s5750_s0 + $0x32] ss:$8 sm:$0xf] }
  0x3b   : > { %5918 = vst [vmem:[#allocation36_spill] sm:$0xff] %v4051_v60  ;;  %v552_v59 = vadd.f32 %v546_v63, %v517_v13  ;;  %v553_v21 = vadd.f32 %v547_v31, %v518_v14  ;;  %v571_v29 = vperm.slane %v567_v7, 2  ;;  %v572_v6 = vperm.slane %v567_v7, 3  ;;  %v3159_v8 = vld [vmem:[%s5750_s0 + $0x32] ss:$8 sm:$0x30] }
  0x3c   : > { %5919 = vst [vmem:[#allocation37_spill] sm:$0xff] %v4056_v11  ;;  %v554_v52 = vadd.f32 %v548_v0, %v519_v39  ;;  %v555_v1 = vadd.f32 %v549_v41, %v520_v57  ;;  %v4099_v2 = vld [vmem:[%s5751_s1 + $0x1a0] sm:$0xff]  ;;  %v4104_v56 = vld [vmem:[%s5751_s1 + $0x1a8] sm:$0xff]  ;;  %v573_v13 = vperm.slane %v567_v7, 4  ;;  %v574_v14 = vperm.slane %v567_v7, 5 }
  0x3d   : > { %5920 = vst [vmem:[#allocation38_spill] sm:$0xff] %v4099_v2  ;;  %v581_v62 = vmul.f32 %v569_v51, %v4063_v43  ;;  %v582_v63 = vmul.f32 %v570_v22, %v4068_v54  ;;  %v583_v31 = vmul.f32 %v571_v29, %v4073_v40  ;;  %v584_v39 = vmul.f32 %v572_v6, %v4080_v42 }
  0x3e   : > { %5921 = vst [vmem:[#allocation39_spill] sm:$0xff] %v4104_v56  ;;  %v4110_v57 = vadd.f32 %v550_v58, %v521_v37  ;;  %v4112_v0 = vadd.f32 %v551_v32, %v522_v15  ;;  %v596_v41 = vor.u32 %v3157_v20, %v3156_v30  ;;  %v625_v11 = vor.u32 %v3159_v8, %v3158_v55  ;;  %v3160_v32 = vld [vmem:[%s5750_s0 + $0x33] ss:$8 sm:$0xf] }
  0x3f   : > { %v4115_v60 = vmul.f32 %v573_v13, %v4099_v2  ;;  %v4118_v4 = vmul.f32 %v574_v14, %v4104_v56  ;;  %v4120_v7 = vadd.f32 %v581_v62, %v552_v59  ;;  %v4122_v51 = vadd.f32 %v582_v63, %v553_v21  ;;  %v3161_v15 = vld [vmem:[%s5750_s0 + $0x33] ss:$8 sm:$0x30]  ;;  %v3162_v37 = vld [vmem:[%s5750_s0 + $0x34] ss:$8 sm:$0xf] }
  0x40   : > { %v4124_v22 = vadd.f32 %v583_v31, %v554_v52  ;;  %v4126_v29 = vadd.f32 %v584_v39, %v555_v1  ;;  %v598_v6 = vperm.slane %v596_v41, 0  ;;  %v599_v58 = vperm.slane %v596_v41, 1  ;;  %v3163_v13 = vld [vmem:[%s5750_s0 + $0x34] ss:$8 sm:$0x30] }
  0x41   : > { %5922 = vst [vmem:[#allocation40_spill] sm:$0xff] %v4120_v7  ;;  %v600_v21 = vperm.slane %v596_v41, 2  ;;  %v601_v59 = vperm.slane %v596_v41, 3  ;;  %v602_v30 = vperm.slane %v596_v41, 4  ;;  %v603_v20 = vperm.slane %v596_v41, 5 }
  0x42   : > { %5923 = vst [vmem:[#allocation41_spill] sm:$0xff] %v4122_v51  ;;  %v610_v55 = vmul.f32 %v598_v6, %v3731_v5  ;;  %v611_v8 = vmul.f32 %v599_v58, %v3736_v9  ;;  %v627_v52 = vperm.slane %v625_v11, 0  ;;  %v628_v1 = vperm.slane %v625_v11, 1 }
  0x43   : > { %5924 = vst [vmem:[#allocation42_spill] sm:$0xff] %v4124_v22  ;;  %v612_v14 = vmul.f32 %v600_v21, %v3741_v10  ;;  %v613_v62 = vmul.f32 %v601_v59, %v3749_v12  ;;  %v614_v63 = vmul.f32 %v602_v30, %v3786_v27  ;;  %v615_v31 = vmul.f32 %v603_v20, %v3796_v33 }
  0x44   : > { %5925 = vst [vmem:[#allocation43_spill] sm:$0xff] %v4126_v29  ;;  %v629_v39 = vperm.slane %v625_v11, 2  ;;  %v630_v41 = vperm.slane %v625_v11, 3  ;;  %v631_v29 = vperm.slane %v625_v11, 4  ;;  %v632_v6 = vperm.slane %v625_v11, 5 }
  0x45   : > { %v639_v58 = vmul.f32 %v627_v52, %v3757_v16  ;;  %v640_v9 = vmul.f32 %v628_v1, %v3762_v17  ;;  %v654_v5 = vor.u32 %v3161_v15, %v3160_v32  ;;  %v683_v22 = vor.u32 %v3163_v13, %v3162_v37 }
  0x46   : > { %v641_v51 = vmul.f32 %v629_v39, %v3773_v24  ;;  %v642_v21 = vmul.f32 %v630_v41, %v3778_v25  ;;  %v643_v59 = vmul.f32 %v631_v29, %v3791_v28  ;;  %v644_v30 = vmul.f32 %v632_v6, %v3802_v35 }
  0x47   : > { %v645_v27 = vadd.f32 %v639_v58, %v610_v55  ;;  %v646_v20 = vadd.f32 %v640_v9, %v611_v8  ;;  %v656_v33 = vperm.slane %v654_v5, 0  ;;  %v657_v12 = vperm.slane %v654_v5, 1  ;;  %v3164_v9 = vld [vmem:[%s5750_s0 + $0x35] ss:$8 sm:$0xf] }
  0x48   : > { %v647_v10 = vadd.f32 %v641_v51, %v612_v14  ;;  %v648_v11 = vadd.f32 %v642_v21, %v613_v62  ;;  %v649_v7 = vadd.f32 %v643_v59, %v614_v63  ;;  %v650_v52 = vadd.f32 %v644_v30, %v615_v31 }
  0x49   : > { %v658_v16 = vperm.slane %v654_v5, 2  ;;  %v659_v1 = vperm.slane %v654_v5, 3  ;;  %v660_v32 = vperm.slane %v654_v5, 4  ;;  %v661_v15 = vperm.slane %v654_v5, 5 }
  0x4a   : > { %v668_v37 = vmul.f32 %v656_v33, %v3807_v38  ;;  %v669_v13 = vmul.f32 %v657_v12, %v3816_v44  ;;  %v685_v39 = vperm.slane %v683_v22, 0  ;;  %v686_v29 = vperm.slane %v683_v22, 1  ;;  %v3165_v5 = vld [vmem:[%s5750_s0 + $0x35] ss:$8 sm:$0x30] }
  0x4b   : > { %v670_v55 = vmul.f32 %v658_v16, %v3821_v45  ;;  %v671_v51 = vmul.f32 %v659_v1, %v3826_v46  ;;  %v672_v8 = vmul.f32 %v660_v32, %v3833_v49  ;;  %v673_v14 = vmul.f32 %v661_v15, %v3849_v61  ;;  %v3166_v12 = vld [vmem:[%s5750_s0 + $0x36] ss:$8 sm:$0xf] }
  0x4c   : > { %v674_v33 = vadd.f32 %v668_v37, %v645_v27  ;;  %v675_v62 = vadd.f32 %v669_v13, %v646_v20  ;;  %v687_v63 = vperm.slane %v683_v22, 2  ;;  %v688_v31 = vperm.slane %v683_v22, 3  ;;  %v3167_v16 = vld [vmem:[%s5750_s0 + $0x36] ss:$8 sm:$0x30] }
  0x4d   : > { %v676_v41 = vadd.f32 %v670_v55, %v647_v10  ;;  %v677_v6 = vadd.f32 %v671_v51, %v648_v11  ;;  %v678_v58 = vadd.f32 %v672_v8, %v649_v7  ;;  %v679_v21 = vadd.f32 %v673_v14, %v650_v52 }
  0x4e   : > { %v689_v59 = vperm.slane %v683_v22, 4  ;;  %v690_v30 = vperm.slane %v683_v22, 5  ;;  %v697_v1 = vmul.f32 %v685_v39, %v3863_v18  ;;  %v698_v32 = vmul.f32 %v686_v29, %v3868_v19 }
  0x4f   : > { %v699_v15 = vmul.f32 %v687_v63, %v3873_v23  ;;  %v700_v27 = vmul.f32 %v688_v31, %v3878_v26  ;;  %v712_v20 = vor.u32 %v3165_v5, %v3164_v9  ;;  %v741_v37 = vor.u32 %v3167_v16, %v3166_v12  ;;  %v3168_v16 = vld [vmem:[%s5750_s0 + $0x37] ss:$8 sm:$0xf] }
  0x50   : > { %v701_v13 = vmul.f32 %v689_v59, %v3883_v34  ;;  %v702_v61 = vmul.f32 %v690_v30, %v3888_v36  ;;  %v703_v10 = vadd.f32 %v697_v1, %v674_v33  ;;  %v704_v11 = vadd.f32 %v698_v32, %v675_v62  ;;  %v3169_v30 = vld [vmem:[%s5750_s0 + $0x37] ss:$8 sm:$0x30]  ;;  %v3170_v1 = vld [vmem:[%s5750_s0 + $0x60] ss:$8 sm:$0xf] }
  0x51   : > { %v705_v7 = vadd.f32 %v699_v15, %v676_v41  ;;  %v706_v52 = vadd.f32 %v700_v27, %v677_v6  ;;  %v714_v55 = vperm.slane %v712_v20, 0  ;;  %v715_v22 = vperm.slane %v712_v20, 1  ;;  %v5926_v41 = vld [vmem:[#allocation18_spill] sm:$0xff]  ;;  %v5927_v6 = vld [vmem:[#allocation19_spill] sm:$0xff] }
  0x52   : > { %v707_v51 = vadd.f32 %v701_v13, %v678_v58  ;;  %v708_v39 = vadd.f32 %v702_v61, %v679_v21  ;;  %v716_v8 = vperm.slane %v712_v20, 2  ;;  %v717_v29 = vperm.slane %v712_v20, 3  ;;  %v3171_v13 = vld [vmem:[%s5750_s0 + $0x60] ss:$8 sm:$0x30] }
  0x53   : > { %v718_v14 = vperm.slane %v712_v20, 4  ;;  %v719_v63 = vperm.slane %v712_v20, 5  ;;  %v726_v31 = vmul.f32 %v714_v55, %v3895_v47  ;;  %v727_v9 = vmul.f32 %v715_v22, %v3900_v48 }
  0x54   : > { %v728_v5 = vmul.f32 %v716_v8, %v3905_v50  ;;  %v729_v12 = vmul.f32 %v717_v29, %v3912_v53  ;;  %v743_v33 = vperm.slane %v741_v37, 0  ;;  %v744_v62 = vperm.slane %v741_v37, 1  ;;  %v5928_v8 = vld [vmem:[#allocation20_spill] sm:$0xff] }
  0x55   : > { %v730_v61 = vmul.f32 %v718_v14, %v5926_v41  ;;  %v731_v58 = vmul.f32 %v719_v63, %v5927_v6  ;;  %v732_v21 = vadd.f32 %v726_v31, %v703_v10  ;;  %v733_v59 = vadd.f32 %v727_v9, %v704_v11  ;;  %v5929_v14 = vld [vmem:[#allocation21_spill] sm:$0xff]  ;;  %v5930_v31 = vld [vmem:[#allocation22_spill] sm:$0xff]  ;;  %v5931_v6 = vld [vmem:[#allocation23_spill] sm:$0xff] }
  0x56   : > { %v734_v32 = vadd.f32 %v728_v5, %v705_v7  ;;  %v735_v15 = vadd.f32 %v729_v12, %v706_v52  ;;  %v745_v27 = vperm.slane %v741_v37, 2  ;;  %v746_v20 = vperm.slane %v741_v37, 3  ;;  %v5932_v7 = vld [vmem:[#allocation24_spill] sm:$0xff]  ;;  %v5933_v5 = vld [vmem:[#allocation25_spill] sm:$0xff] }
  0x57   : > { %v736_v55 = vadd.f32 %v730_v61, %v707_v51  ;;  %v737_v22 = vadd.f32 %v731_v58, %v708_v39  ;;  %v747_v10 = vperm.slane %v741_v37, 4  ;;  %v748_v11 = vperm.slane %v741_v37, 5 }
  0x58   : > { %v755_v29 = vmul.f32 %v743_v33, %v5928_v8  ;;  %v756_v63 = vmul.f32 %v744_v62, %v5929_v14  ;;  %v757_v9 = vmul.f32 %v745_v27, %v5930_v31  ;;  %v758_v41 = vmul.f32 %v746_v20, %v5931_v6  ;;  %v5934_v6 = vld [vmem:[#allocation27_spill] sm:$0xff]  ;;  %v5944_v31 = vld [vmem:[#allocation37_spill] sm:$0xff] }
  0x59   : > { %v759_v52 = vmul.f32 %v747_v10, %v5932_v7  ;;  %v760_v12 = vmul.f32 %v748_v11, %v5933_v5  ;;  %v770_v53 = vor.u32 %v3169_v30, %v3168_v16  ;;  %v799_v50 = vor.u32 %v3171_v13, %v3170_v1  ;;  %v3174_v16 = vld [vmem:[%s5750_s0 + $0x62] ss:$8 sm:$0xf] }
  0x5a   : > { %v761_v48 = vadd.f32 %v755_v29, %v732_v21  ;;  %v762_v47 = vadd.f32 %v756_v63, %v733_v59  ;;  %v763_v51 = vadd.f32 %v757_v9, %v734_v32  ;;  %v764_v39 = vadd.f32 %v758_v41, %v735_v15  ;;  %v5935_v21 = vld [vmem:[#allocation28_spill] sm:$0xff]  ;;  %v5936_v59 = vld [vmem:[#allocation29_spill] sm:$0xff]  ;;  %v5937_v1 = vld [vmem:[#allocation30_spill] sm:$0xff] }
  0x5b   : > { %v765_v61 = vadd.f32 %v759_v52, %v736_v55  ;;  %v766_v37 = vadd.f32 %v760_v12, %v737_v22  ;;  %v772_v58 = vperm.slane %v770_v53, 0  ;;  %v773_v33 = vperm.slane %v770_v53, 1  ;;  %v5938_v15 = vld [vmem:[#allocation31_spill] sm:$0xff]  ;;  %v3175_v55 = vld [vmem:[%s5750_s0 + $0x62] ss:$8 sm:$0x30] }
  0x5c   : > { %v774_v8 = vperm.slane %v770_v53, 2  ;;  %v775_v62 = vperm.slane %v770_v53, 3  ;;  %v776_v14 = vperm.slane %v770_v53, 4  ;;  %v777_v27 = vperm.slane %v770_v53, 5 }
  0x5d   : > { %v784_v20 = vmul.f32 %v772_v58, %v3979_v3  ;;  %v785_v10 = vmul.f32 %v773_v33, %v5934_v6  ;;  %v801_v7 = vperm.slane %v799_v50, 0  ;;  %v802_v11 = vperm.slane %v799_v50, 1  ;;  %v3172_v53 = vld [vmem:[%s5750_s0 + $0x61] ss:$8 sm:$0xf] }
  0x5e   : > { %v786_v41 = vmul.f32 %v774_v8, %v5935_v21  ;;  %v787_v30 = vmul.f32 %v775_v62, %v5936_v59  ;;  %v788_v32 = vmul.f32 %v776_v14, %v5937_v1  ;;  %v789_v13 = vmul.f32 %v777_v27, %v5938_v15  ;;  %v3173_v8 = vld [vmem:[%s5750_s0 + $0x61] ss:$8 sm:$0x30]  ;;  %v5941_v21 = vld [vmem:[#allocation34_spill] sm:$0xff] }
  0x5f   : > { %v790_v22 = vadd.f32 %v784_v20, %v761_v48  ;;  %v791_v29 = vadd.f32 %v785_v10, %v762_v47  ;;  %v803_v63 = vperm.slane %v799_v50, 2  ;;  %v804_v9 = vperm.slane %v799_v50, 3  ;;  %v5939_v27 = vld [vmem:[#allocation32_spill] sm:$0xff]  ;;  %v5940_v1 = vld [vmem:[#allocation33_spill] sm:$0xff]  ;;  %v5942_v48 = vld [vmem:[#allocation35_spill] sm:$0xff] }
  0x60   : > { %v792_v52 = vadd.f32 %v786_v41, %v763_v51  ;;  %v793_v14 = vadd.f32 %v787_v30, %v764_v39  ;;  %v794_v12 = vadd.f32 %v788_v32, %v765_v61  ;;  %v795_v58 = vadd.f32 %v789_v13, %v766_v37  ;;  %v5943_v3 = vld [vmem:[#allocation36_spill] sm:$0xff] }
  0x61   : > { %v805_v33 = vperm.slane %v799_v50, 4  ;;  %v806_v62 = vperm.slane %v799_v50, 5  ;;  %v813_v15 = vmul.f32 %v801_v7, %v5939_v27  ;;  %v814_v59 = vmul.f32 %v802_v11, %v5940_v1 }
  0x62   : > { %v815_v6 = vmul.f32 %v803_v63, %v5941_v21  ;;  %v816_v47 = vmul.f32 %v804_v9, %v5942_v48  ;;  %v828_v20 = vor.u32 %v3173_v8, %v3172_v53  ;;  %v863_v10 = vor.u32 %v3175_v55, %v3174_v16 }
  0x63   : > { %v817_v5 = vmul.f32 %v805_v33, %v5943_v3  ;;  %v818_v36 = vmul.f32 %v806_v62, %v5944_v31  ;;  %v819_v51 = vadd.f32 %v813_v15, %v790_v22  ;;  %v820_v39 = vadd.f32 %v814_v59, %v791_v29  ;;  %v3178_v33 = vld [vmem:[%s5750_s0 + $0x64] ss:$8 sm:$0xf] }
  0x64   : > { %v821_v61 = vadd.f32 %v815_v6, %v792_v52  ;;  %v822_v37 = vadd.f32 %v816_v47, %v793_v14  ;;  %v830_v41 = vperm.slane %v828_v20, 0  ;;  %v831_v50 = vperm.slane %v828_v20, 1  ;;  %v3179_v62 = vld [vmem:[%s5750_s0 + $0x64] ss:$8 sm:$0x30] }
  0x65   : > { %v823_v30 = vadd.f32 %v817_v5, %v794_v12  ;;  %v824_v7 = vadd.f32 %v818_v36, %v795_v58  ;;  %v832_v32 = vperm.slane %v828_v20, 2  ;;  %v833_v11 = vperm.slane %v828_v20, 3  ;;  %v3176_v12 = vld [vmem:[%s5750_s0 + $0x63] ss:$8 sm:$0xf] }
  0x66   : > { %v834_v13 = vperm.slane %v828_v20, 4  ;;  %v835_v63 = vperm.slane %v828_v20, 5  ;;  %v842_v9 = vmul.f32 %v830_v41, %v4063_v43  ;;  %v843_v16 = vmul.f32 %v831_v50, %v4068_v54  ;;  %v3177_v58 = vld [vmem:[%s5750_s0 + $0x63] ss:$8 sm:$0x30] }
  0x67   : > { %v844_v53 = vmul.f32 %v832_v32, %v4073_v40  ;;  %v845_v55 = vmul.f32 %v833_v11, %v4080_v42  ;;  %v865_v15 = vperm.slane %v863_v10, 0  ;;  %v866_v59 = vperm.slane %v863_v10, 1  ;;  %v3180_v47 = vld [vmem:[%s5750_s0 + $0x65] ss:$8 sm:$0xf] }
  0x68   : > { %v846_v6 = vmul.f32 %v834_v13, %v4099_v2  ;;  %v847_v22 = vmul.f32 %v835_v63, %v4104_v56  ;;  %v4230_v5 = vadd.f32 %v842_v9, %v819_v51  ;;  %v4232_v36 = vadd.f32 %v843_v16, %v820_v39  ;;  %v3181_v20 = vld [vmem:[%s5750_s0 + $0x65] ss:$8 sm:$0x30]  ;;  %v3182_v51 = vld [vmem:[%s5750_s0 + $0x66] ss:$8 sm:$0xf] }
  0x69   : > { %v4234_v29 = vadd.f32 %v844_v53, %v821_v61  ;;  %v4236_v8 = vadd.f32 %v845_v55, %v822_v37  ;;  %v867_v52 = vperm.slane %v863_v10, 2  ;;  %v868_v14 = vperm.slane %v863_v10, 3  ;;  %v3183_v39 = vld [vmem:[%s5750_s0 + $0x66] ss:$8 sm:$0x30]  ;;  %v5961_v53 = vld [vmem:[#allocation11_spill] sm:$0xff] }
  0x6a   : > { %5945 = vst [vmem:[#allocation32_spill] sm:$0xff] %v4230_v5  ;;  %v4264_v61 = vadd.f32 %v4115_v60, %v4110_v57  ;;  %v4268_v37 = vadd.f32 %v4118_v4, %v4112_v0  ;;  %v4270_v41 = vadd.f32 %v846_v6, %v823_v30  ;;  %v4272_v50 = vadd.f32 %v847_v22, %v824_v7  ;;  %v3184_v32 = vld [vmem:[%s5750_s0 + $0x67] ss:$8 sm:$0xf] }
  0x6b   : > { %5946 = vst [vmem:[#allocation33_spill] sm:$0xff] %v4232_v36  ;;  %v3185_v11 = vld [vmem:[%s5750_s0 + $0x67] ss:$8 sm:$0x30]  ;;  %v869_v63 = vperm.slane %v863_v10, 4  ;;  %v870_v9 = vperm.slane %v863_v10, 5 }
  0x6c   : > { %5947 = vst [vmem:[#allocation34_spill] sm:$0xff] %v4234_v29  ;;  %v3186_v60 = vld [vmem:[%s5750_s0 + $0x90] ss:$8 sm:$0xf] }
  0x6d   : > { %5948 = vst [vmem:[#allocation35_spill] sm:$0xff] %v4236_v8  ;;  %v3187_v4 = vld [vmem:[%s5750_s0 + $0x90] ss:$8 sm:$0x30]  ;;  %v5959_v7 = vld [vmem:[#allocation8_spill] sm:$0xff]  ;;  %v882_v22 = vmul.f32 %v870_v9, %v5961_v53  ;;  %v892_v8 = vor.u32 %v3177_v58, %v3176_v12  ;;  %v5962_v58 = vld [vmem:[#allocation9_spill] sm:$0xff] }
  0x6e   : > { %5949 = vst [vmem:[#allocation36_spill] sm:$0xff] %v4264_v61  ;;  %v3188_v57 = vld [vmem:[%s5750_s0 + $0x91] ss:$8 sm:$0xf]  ;;  %v880_v5 = vmul.f32 %v868_v14, %v5959_v7  ;;  %v4316_v6 = vor.u32 %v3187_v4, %v3186_v60 }
  0x6f   : > { %5950 = vst [vmem:[#allocation37_spill] sm:$0xff] %v4268_v37  ;;  %v3189_v16 = vld [vmem:[%s5750_s0 + $0x91] ss:$8 sm:$0x30]  ;;  %v5956_v37 = vld [vmem:[#allocation5_spill] sm:$0xff]  ;;  %v896_v14 = vperm.slane %v892_v8, 2 }
  0x70   : > { %5951 = vst [vmem:[#allocation44_spill] sm:$0xff] %v4272_v50  ;;  %v877_v50 = vmul.f32 %v865_v15, %v5956_v37  ;;  %v5957_v56 = vld [vmem:[#allocation6_spill] sm:$0xff]  ;;  %v5958_v30 = vld [vmem:[#allocation7_spill] sm:$0xff]  ;;  %v921_v15 = vor.u32 %v3179_v62, %v3178_v33  ;;  %v950_v37 = vor.u32 %v3181_v20, %v3180_v47  ;;  %v4318_v0 = vor.u32 %v3189_v16, %v3188_v57 }
  0x71   : > { %v878_v2 = vmul.f32 %v866_v59, %v5957_v56  ;;  %v3190_v13 = vld [vmem:[%s5750_s0 + $0x92] ss:$8 sm:$0xf]  ;;  %v879_v36 = vmul.f32 %v867_v52, %v5958_v30  ;;  %v4312_v56 = vor.u32 %v3183_v39, %v3182_v51  ;;  %v4314_v59 = vor.u32 %v3185_v11, %v3184_v32 }
  0x72   : > { %v3191_v10 = vld [vmem:[%s5750_s0 + $0x92] ss:$8 sm:$0x30]  ;;  %v894_v52 = vperm.slane %v892_v8, 0  ;;  %v895_v30 = vperm.slane %v892_v8, 1  ;;  %v897_v7 = vperm.slane %v892_v8, 3  ;;  %v908_v47 = vmul.f32 %v896_v14, %v3773_v24 }
  0x73   : > { %v5960_v55 = vld [vmem:[#allocation10_spill] sm:$0xff]  ;;  %v4320_v61 = vor.u32 %v3191_v10, %v3190_v13  ;;  %v923_v9 = vperm.slane %v921_v15, 0  ;;  %v924_v12 = vperm.slane %v921_v15, 1  ;;  %v925_v32 = vperm.slane %v921_v15, 2 }
  0x74   : > { %v881_v29 = vmul.f32 %v869_v63, %v5960_v55  ;;  %v898_v63 = vperm.slane %v892_v8, 4  ;;  %v899_v55 = vperm.slane %v892_v8, 5  ;;  %v906_v33 = vmul.f32 %v894_v52, %v5962_v58  ;;  %v5963_v52 = vld [vmem:[#allocation12_spill] sm:$0xff] }
  0x75   : > { %v907_v62 = vmul.f32 %v895_v30, %v3762_v17  ;;  %v909_v20 = vmul.f32 %v897_v7, %v3778_v25  ;;  %v926_v11 = vperm.slane %v921_v15, 3  ;;  %v914_v57 = vadd.f32 %v908_v47, %v879_v36 }
  0x76   : > { %v910_v51 = vmul.f32 %v898_v63, %v3791_v28  ;;  %v911_v39 = vmul.f32 %v899_v55, %v3802_v35  ;;  %v912_v60 = vadd.f32 %v906_v33, %v877_v50  ;;  %v927_v53 = vperm.slane %v921_v15, 4  ;;  %v5964_v33 = vld [vmem:[#allocation13_spill] sm:$0xff] }
  0x77   : > { %v913_v4 = vadd.f32 %v907_v62, %v878_v2  ;;  %v915_v8 = vadd.f32 %v909_v20, %v880_v5  ;;  %v928_v10 = vperm.slane %v921_v15, 5  ;;  %v935_v17 = vmul.f32 %v923_v9, %v3807_v38 }
  0x78   : > { %v916_v13 = vadd.f32 %v910_v51, %v881_v29  ;;  %v917_v16 = vadd.f32 %v911_v39, %v882_v22  ;;  %v936_v24 = vmul.f32 %v924_v12, %v3816_v44  ;;  %v937_v25 = vmul.f32 %v925_v32, %v3821_v45 }
  0x79   : > { %v938_v28 = vmul.f32 %v926_v11, %v3826_v46  ;;  %v939_v35 = vmul.f32 %v927_v53, %v3833_v49  ;;  %v940_v30 = vmul.f32 %v928_v10, %v5963_v52  ;;  %v952_v50 = vperm.slane %v950_v37, 0  ;;  %v5965_v11 = vld [vmem:[#allocation14_spill] sm:$0xff] }
  0x7a   : > { %v953_v2 = vperm.slane %v950_v37, 1  ;;  %v941_v36 = vadd.f32 %v935_v17, %v912_v60  ;;  %v942_v5 = vadd.f32 %v936_v24, %v913_v4  ;;  %v943_v29 = vadd.f32 %v937_v25, %v914_v57  ;;  %v5966_v4 = vld [vmem:[#allocation15_spill] sm:$0xff]  ;;  %v5967_v57 = vld [vmem:[#allocation16_spill] sm:$0xff]  ;;  %v5969_v53 = vld [vmem:[#allocation18_spill] sm:$0xff] }
  0x7b   : > { %v944_v22 = vadd.f32 %v938_v28, %v915_v8  ;;  %v945_v14 = vadd.f32 %v939_v35, %v916_v13  ;;  %v946_v15 = vadd.f32 %v940_v30, %v917_v16  ;;  %v954_v7 = vperm.slane %v950_v37, 2  ;;  %v5968_v13 = vld [vmem:[#allocation17_spill] sm:$0xff]  ;;  %v5970_v17 = vld [vmem:[#allocation19_spill] sm:$0xff] }
  0x7c   : > { %v955_v38 = vperm.slane %v950_v37, 3  ;;  %v956_v63 = vperm.slane %v950_v37, 4  ;;  %v957_v44 = vperm.slane %v950_v37, 5  ;;  %v964_v45 = vmul.f32 %v952_v50, %v3863_v18 }
  0x7d   : > { %v965_v46 = vmul.f32 %v953_v2, %v3868_v19  ;;  %v966_v49 = vmul.f32 %v954_v7, %v3873_v23  ;;  %v981_v9 = vperm.slane %v4312_v56, 0  ;;  %v982_v12 = vperm.slane %v4312_v56, 1  ;;  %v5972_v7 = vld [vmem:[#allocation21_spill] sm:$0xff] }
  0x7e   : > { %v967_v55 = vmul.f32 %v955_v38, %v3878_v26  ;;  %v968_v58 = vmul.f32 %v956_v63, %v3883_v34  ;;  %v969_v62 = vmul.f32 %v957_v44, %v5964_v33  ;;  %v970_v47 = vadd.f32 %v964_v45, %v941_v36  ;;  %v5973_v63 = vld [vmem:[#allocation22_spill] sm:$0xff]  ;;  %v5974_v45 = vld [vmem:[#allocation23_spill] sm:$0xff] }
  0x7f   : > { %v971_v20 = vadd.f32 %v965_v46, %v942_v5  ;;  %v972_v51 = vadd.f32 %v966_v49, %v943_v29  ;;  %v983_v18 = vperm.slane %v4312_v56, 2  ;;  %v984_v19 = vperm.slane %v4312_v56, 3 }
  0x80   : > { %v973_v37 = vadd.f32 %v967_v55, %v944_v22  ;;  %v974_v39 = vadd.f32 %v968_v58, %v945_v14  ;;  %v975_v23 = vadd.f32 %v969_v62, %v946_v15  ;;  %v985_v26 = vperm.slane %v4312_v56, 4  ;;  %v5971_v14 = vld [vmem:[#allocation20_spill] sm:$0xff]  ;;  %v5976_v58 = vld [vmem:[#allocation25_spill] sm:$0xff] }
  0x81   : > { %v986_v32 = vperm.slane %v4312_v56, 5  ;;  %v993_v60 = vmul.f32 %v981_v9, %v5965_v11  ;;  %v994_v34 = vmul.f32 %v982_v12, %v5966_v4  ;;  %v995_v8 = vmul.f32 %v983_v18, %v5967_v57  ;;  %v5975_v9 = vld [vmem:[#allocation24_spill] sm:$0xff]  ;;  %v5978_v11 = vld [vmem:[#allocation27_spill] sm:$0xff]  ;;  %v5980_v57 = vld [vmem:[#allocation29_spill] sm:$0xff] }
  0x82   : > { %v996_v16 = vmul.f32 %v984_v19, %v5968_v13  ;;  %v997_v10 = vmul.f32 %v985_v26, %v5969_v53  ;;  %v1010_v25 = vperm.slane %v4314_v59, 0  ;;  %v1011_v28 = vperm.slane %v4314_v59, 1  ;;  %v5977_v26 = vld [vmem:[#allocation26_spill] sm:$0xff]  ;;  %v5979_v4 = vld [vmem:[#allocation28_spill] sm:$0xff]  ;;  %v5982_v53 = vld [vmem:[#allocation31_spill] sm:$0xff] }
  0x83   : > { %v998_v24 = vmul.f32 %v986_v32, %v5970_v17  ;;  %v999_v35 = vadd.f32 %v993_v60, %v970_v47  ;;  %v1000_v52 = vadd.f32 %v994_v34, %v971_v20  ;;  %v1001_v30 = vadd.f32 %v995_v8, %v972_v51  ;;  %v5981_v13 = vld [vmem:[#allocation30_spill] sm:$0xff] }
  0x84   : > { %v1002_v56 = vadd.f32 %v996_v16, %v973_v37  ;;  %v1003_v50 = vadd.f32 %v997_v10, %v974_v39  ;;  %v1012_v36 = vperm.slane %v4314_v59, 2  ;;  %v1013_v5 = vperm.slane %v4314_v59, 3 }
  0x85   : > { %v1004_v2 = vadd.f32 %v998_v24, %v975_v23  ;;  %v1014_v29 = vperm.slane %v4314_v59, 4  ;;  %v1015_v22 = vperm.slane %v4314_v59, 5  ;;  %v1022_v15 = vmul.f32 %v1010_v25, %v5971_v14 }
  0x86   : > { %v1023_v38 = vmul.f32 %v1011_v28, %v5972_v7  ;;  %v1024_v44 = vmul.f32 %v1012_v36, %v5973_v63  ;;  %v1025_v46 = vmul.f32 %v1013_v5, %v5974_v45  ;;  %v1039_v49 = vperm.slane %v4316_v6, 0 }
  0x87   : > { %v1040_v55 = vperm.slane %v4316_v6, 1  ;;  %v1026_v12 = vmul.f32 %v1014_v29, %v5975_v9  ;;  %v1027_v33 = vmul.f32 %v1015_v22, %v5976_v58  ;;  %v1028_v62 = vadd.f32 %v1022_v15, %v999_v35 }
  0x88   : > { %v1029_v47 = vadd.f32 %v1023_v38, %v1000_v52  ;;  %v1030_v20 = vadd.f32 %v1024_v44, %v1001_v30  ;;  %v1031_v59 = vadd.f32 %v1025_v46, %v1002_v56  ;;  %v1041_v51 = vperm.slane %v4316_v6, 2  ;;  %v3193_v46 = vld [vmem:[%s5750_s0 + $0x93] ss:$8 sm:$0x30] }
  0x89   : > { %v1042_v37 = vperm.slane %v4316_v6, 3  ;;  %v1032_v18 = vadd.f32 %v1026_v12, %v1003_v50  ;;  %v1033_v19 = vadd.f32 %v1027_v33, %v1004_v2  ;;  %v1043_v39 = vperm.slane %v4316_v6, 4 }
  0x8a   : > { %v1044_v23 = vperm.slane %v4316_v6, 5  ;;  %v1051_v32 = vmul.f32 %v1039_v49, %v5977_v26  ;;  %v1052_v60 = vmul.f32 %v1040_v55, %v5978_v11  ;;  %v1053_v34 = vmul.f32 %v1041_v51, %v5979_v4 }
  0x8b   : > { %v1054_v8 = vmul.f32 %v1042_v37, %v5980_v57  ;;  %v1055_v16 = vmul.f32 %v1043_v39, %v5981_v13  ;;  %v1068_v17 = vperm.slane %v4318_v0, 0  ;;  %v1069_v24 = vperm.slane %v4318_v0, 1  ;;  %v5986_v39 = vld [vmem:[#allocation44_spill] sm:$0xff] }
  0x8c   : > { %v1056_v10 = vmul.f32 %v1044_v23, %v5982_v53  ;;  %v1057_v25 = vadd.f32 %v1051_v32, %v1028_v62  ;;  %v1058_v28 = vadd.f32 %v1052_v60, %v1029_v47  ;;  %v1059_v35 = vadd.f32 %v1053_v34, %v1030_v20  ;;  %v3194_v62 = vld [vmem:[%s5750_s0 + $0x94] ss:$8 sm:$0xf] }
  0x8d   : > { %v1060_v6 = vadd.f32 %v1054_v8, %v1031_v59  ;;  %v1061_v52 = vadd.f32 %v1055_v16, %v1032_v18  ;;  %v1070_v56 = vperm.slane %v4318_v0, 2  ;;  %v1071_v50 = vperm.slane %v4318_v0, 3  ;;  %v3195_v47 = vld [vmem:[%s5750_s0 + $0x94] ss:$8 sm:$0x30]  ;;  %v5987_v23 = vld [vmem:[#allocation37_spill] sm:$0xff] }
  0x8e   : > { %v1062_v30 = vadd.f32 %v1056_v10, %v1033_v19  ;;  %v1072_v2 = vperm.slane %v4318_v0, 4  ;;  %v1073_v36 = vperm.slane %v4318_v0, 5  ;;  %v1080_v5 = vmul.f32 %v1068_v17, %v5939_v27  ;;  %v3192_v27 = vld [vmem:[%s5750_s0 + $0x93] ss:$8 sm:$0xf] }
  0x8f   : > { %v1081_v29 = vmul.f32 %v1069_v24, %v5940_v1  ;;  %v1082_v22 = vmul.f32 %v1070_v56, %v5941_v21  ;;  %v1083_v14 = vmul.f32 %v1071_v50, %v5942_v48  ;;  %v1097_v15 = vperm.slane %v4320_v61, 0  ;;  %v5983_v20 = vld [vmem:[#allocation36_spill] sm:$0xff]  ;;  %v5991_v53 = vld [vmem:[#allocation41_spill] sm:$0xff] }
  0x90   : > { %v1098_v7 = vperm.slane %v4320_v61, 1  ;;  %v1084_v38 = vmul.f32 %v1072_v2, %v5943_v3  ;;  %v1085_v63 = vmul.f32 %v1073_v36, %v5944_v31  ;;  %v1086_v44 = vadd.f32 %v1080_v5, %v1057_v25  ;;  %v5988_v57 = vld [vmem:[#allocation40_spill] sm:$0xff]  ;;  %v5992_v10 = vld [vmem:[#allocation33_spill] sm:$0xff]  ;;  %v5994_v25 = vld [vmem:[#allocation42_spill] sm:$0xff] }
  0x91   : > { %v1087_v45 = vadd.f32 %v1081_v29, %v1058_v28  ;;  %v1088_v0 = vadd.f32 %v1082_v22, %v1059_v35  ;;  %v1089_v1 = vadd.f32 %v1083_v14, %v1060_v6  ;;  %v1099_v21 = vperm.slane %v4320_v61, 2  ;;  %v5989_v8 = vld [vmem:[#allocation32_spill] sm:$0xff]  ;;  %v5995_v28 = vld [vmem:[#allocation34_spill] sm:$0xff] }
  0x92   : > { %v1100_v48 = vperm.slane %v4320_v61, 3  ;;  %v1090_v49 = vadd.f32 %v1084_v38, %v1061_v52  ;;  %v1091_v3 = vadd.f32 %v1085_v63, %v1062_v30  ;;  %v1101_v31 = vperm.slane %v4320_v61, 4  ;;  %v5997_v52 = vld [vmem:[#allocation43_spill] sm:$0xff]  ;;  %v3537_v38 = vld [vmem:[%s5751_s1 + $0x8] sm:$0xff] }
  0x93   : > { %v1102_v55 = vperm.slane %v4320_v61, 5  ;;  %v1109_v9 = vmul.f32 %v1097_v15, %v4063_v43  ;;  %v1110_v12 = vmul.f32 %v1098_v7, %v4068_v54  ;;  %v1111_v58 = vmul.f32 %v1099_v21, %v4073_v40  ;;  %v5984_v61 = vld [vmem:[#allocation38_spill] sm:$0xff]  ;;  %v5985_v43 = vld [vmem:[#allocation39_spill] sm:$0xff]  ;;  %v3536_v15 = vld [vmem:[%s5751_s1] sm:$0xff] }
  0x94   : > { %v1112_v33 = vmul.f32 %v1100_v48, %v4080_v42  ;;  %v858_v59 = vmax.f32 %v5983_v20, %v4270_v41  ;;  %v1113_v51 = vmul.f32 %v1101_v31, %v5984_v61  ;;  %v1130_v54 = vor.u32 %v3193_v46, %v3192_v27  ;;  %v5998_v30 = vld [vmem:[#allocation35_spill] sm:$0xff]  ;;  %v3541_v31 = vld [vmem:[%s5751_s1 + $0x28] sm:$0xff]  ;;  %v273_v41 = vld [vmem:[%s5752_s2] sm:$0xff] }
  0x95   : > { %v1114_v37 = vmul.f32 %v1102_v55, %v5985_v43  ;;  %v1115_v18 = vadd.f32 %v1109_v9, %v1086_v44  ;;  %v1116_v40 = vadd.f32 %v1110_v12, %v1087_v45  ;;  %v1117_v19 = vadd.f32 %v1111_v58, %v1088_v0  ;;  %v3196_v5 = vld [vmem:[%s5750_s0 + $0x95] ss:$8 sm:$0xf]  ;;  %v3198_v44 = vld [vmem:[%s5750_s0 + $0x96] ss:$8 sm:$0xf] }
  0x96   : > { %v1118_v42 = vadd.f32 %v1112_v33, %v1089_v1  ;;  %v859_v26 = vmax.f32 %v5987_v23, %v5986_v39  ;;  %v1132_v32 = vperm.slane %v1130_v54, 0  ;;  %v1133_v11 = vperm.slane %v1130_v54, 1  ;;  %v3197_v29 = vld [vmem:[%s5750_s0 + $0x95] ss:$8 sm:$0x30]  ;;  %v3544_v43 = vld [vmem:[%s5751_s1 + $0x40] sm:$0xff] }
  0x97   : > { %v1159_v60 = vor.u32 %v3195_v47, %v3194_v62  ;;  %v4416_v4 = vadd.f32 %v1113_v51, %v1090_v49  ;;  %v4418_v34 = vadd.f32 %v1114_v37, %v1091_v3  ;;  %v5990_v13 = vmax.f32 %v5988_v57, %v5989_v8  ;;  %v3538_v45 = vld [vmem:[%s5751_s1 + $0x10] sm:$0xff]  ;;  %v3539_v0 = vld [vmem:[%s5751_s1 + $0x18] sm:$0xff]  ;;  %v3540_v49 = vld [vmem:[%s5751_s1 + $0x20] sm:$0xff] }
  0x98   : > { %v5993_v17 = vmax.f32 %v5991_v53, %v5992_v10  ;;  %v5996_v35 = vmax.f32 %v5994_v25, %v5995_v28  ;;  %v5999_v56 = vmax.f32 %v5997_v52, %v5998_v30  ;;  %v1134_v2 = vperm.slane %v1130_v54, 2  ;;  %v3199_v46 = vld [vmem:[%s5750_s0 + $0x96] ss:$8 sm:$0x30] }
  0x99   : > { %v4423_v16 = vmax.f32 %v5990_v13, %v1115_v18  ;;  %v1135_v36 = vperm.slane %v1130_v54, 3  ;;  %v1136_v22 = vperm.slane %v1130_v54, 4  ;;  %v1137_v14 = vperm.slane %v1130_v54, 5  ;;  %v3542_v62 = vld [vmem:[%s5751_s1 + $0x30] sm:$0xff]  ;;  %v3543_v61 = vld [vmem:[%s5751_s1 + $0x38] sm:$0xff]  ;;  %v3545_v54 = vld [vmem:[%s5751_s1 + $0x48] sm:$0xff] }
  0x9a   : > { %v4428_v24 = vmax.f32 %v5993_v17, %v1116_v40  ;;  %v4433_v6 = vmax.f32 %v5996_v35, %v1117_v19  ;;  %v4438_v50 = vmax.f32 %v5999_v56, %v1118_v42  ;;  %v1144_v7 = vmul.f32 %v3536_v15, %v1132_v32  ;;  %v3546_v42 = vld [vmem:[%s5751_s1 + $0x50] sm:$0xff]  ;;  %v3551_v15 = vld [vmem:[%s5751_s1 + $0x78] sm:$0xff] }
  0x9b   : > { %v1145_v63 = vmul.f32 %v3537_v38, %v1133_v11  ;;  %v1146_v27 = vmul.f32 %v3538_v45, %v1134_v2  ;;  %v1147_v1 = vmul.f32 %v3539_v0, %v1135_v36  ;;  %v1161_v21 = vperm.slane %v1159_v60, 0  ;;  %v3547_v11 = vld [vmem:[%s5751_s1 + $0x58] sm:$0xff]  ;;  %v3548_v2 = vld [vmem:[%s5751_s1 + $0x60] sm:$0xff]  ;;  %v3553_v0 = vld [vmem:[%s5751_s1 + $0x88] sm:$0xff] }
  0x9c   : > { %v1162_v48 = vperm.slane %v1159_v60, 1  ;;  %v1148_v3 = vmul.f32 %v3540_v49, %v1136_v22  ;;  %v1149_v55 = vmul.f32 %v3541_v31, %v1137_v14  ;;  %v1163_v9 = vperm.slane %v1159_v60, 2  ;;  %v3550_v22 = vld [vmem:[%s5751_s1 + $0x70] sm:$0xff]  ;;  %v3552_v45 = vld [vmem:[%s5751_s1 + $0x80] sm:$0xff]  ;;  %v3587_v39 = vld [vmem:[%s5751_s1 + $0x198] sm:$0xff] }
  0x9d   : > { %v1164_v12 = vperm.slane %v1159_v60, 3  ;;  %v1165_v58 = vperm.slane %v1159_v60, 4  ;;  %v1166_v33 = vperm.slane %v1159_v60, 5  ;;  %v1173_v47 = vmul.f32 %v3542_v62, %v1161_v21  ;;  %v3202_v49 = vld [vmem:[%s5750_s0 + $0xc0] ss:$8 sm:$0xf] }
  0x9e   : > { %v1174_v51 = vmul.f32 %v3543_v61, %v1162_v48  ;;  %v1175_v37 = vmul.f32 %v3544_v43, %v1163_v9  ;;  %v1188_v40 = vor.u32 %v3197_v29, %v3196_v5  ;;  %v1217_v19 = vor.u32 %v3199_v46, %v3198_v44  ;;  %v3549_v5 = vld [vmem:[%s5751_s1 + $0x68] sm:$0xff]  ;;  %v3201_v46 = vld [vmem:[%s5750_s0 + $0x97] ss:$8 sm:$0x30] }
  0x9f   : > { %v1176_v18 = vmul.f32 %v3545_v54, %v1164_v12  ;;  %v1177_v32 = vmul.f32 %v3546_v42, %v1165_v58  ;;  %v1178_v60 = vmul.f32 %v3547_v11, %v1166_v33  ;;  %v1179_v57 = vadd.f32 %v1173_v47, %v1144_v7  ;;  %v3200_v44 = vld [vmem:[%s5750_s0 + $0x97] ss:$8 sm:$0xf]  ;;  %v3203_v12 = vld [vmem:[%s5750_s0 + $0xc0] ss:$8 sm:$0x30] }
  0xa0   : > { %v1180_v8 = vadd.f32 %v1174_v51, %v1145_v63  ;;  %v1181_v13 = vadd.f32 %v1175_v37, %v1146_v27  ;;  %v1190_v10 = vperm.slane %v1188_v40, 0  ;;  %v1191_v17 = vperm.slane %v1188_v40, 1  ;;  %v3554_v61 = vld [vmem:[%s5751_s1 + $0x90] sm:$0xff]  ;;  %v3555_v43 = vld [vmem:[%s5751_s1 + $0x98] sm:$0xff]  ;;  %v3556_v54 = vld [vmem:[%s5751_s1 + $0xa0] sm:$0xff] }
  0xa1   : > { %v1182_v53 = vadd.f32 %v1176_v18, %v1147_v1  ;;  %v1183_v25 = vadd.f32 %v1177_v32, %v1148_v3  ;;  %v1184_v28 = vadd.f32 %v1178_v60, %v1149_v55  ;;  %v1192_v35 = vperm.slane %v1188_v40, 2  ;;  %v3558_v42 = vld [vmem:[%s5751_s1 + $0xb0] sm:$0xff]  ;;  %v3559_v11 = vld [vmem:[%s5751_s1 + $0xb8] sm:$0xff] }
  0xa2   : > { %v1193_v52 = vperm.slane %v1188_v40, 3  ;;  %v1194_v30 = vperm.slane %v1188_v40, 4  ;;  %v1195_v56 = vperm.slane %v1188_v40, 5  ;;  %v1202_v36 = vmul.f32 %v3548_v2, %v1190_v10  ;;  %v3557_v40 = vld [vmem:[%s5751_s1 + $0xa8] sm:$0xff]  ;;  %v3586_v20 = vld [vmem:[%s5751_s1 + $0x190] sm:$0xff] }
  0xa3   : > { %v1203_v29 = vmul.f32 %v3549_v5, %v1191_v17  ;;  %v1204_v14 = vmul.f32 %v3550_v22, %v1192_v35  ;;  %v1219_v38 = vperm.slane %v1217_v19, 0  ;;  %v1220_v63 = vperm.slane %v1217_v19, 1  ;;  %v3560_v5 = vld [vmem:[%s5751_s1 + $0xc0] sm:$0xff]  ;;  %v3561_v22 = vld [vmem:[%s5751_s1 + $0xc8] sm:$0xff] }
  0xa4   : > { %v1205_v7 = vmul.f32 %v3551_v15, %v1193_v52  ;;  %v1206_v27 = vmul.f32 %v3552_v45, %v1194_v30  ;;  %v1207_v1 = vmul.f32 %v3553_v0, %v1195_v56  ;;  %v1208_v21 = vadd.f32 %v1202_v36, %v1179_v57  ;;  %v3563_v45 = vld [vmem:[%s5751_s1 + $0xd8] sm:$0xff]  ;;  %v3564_v0 = vld [vmem:[%s5751_s1 + $0xe0] sm:$0xff] }
  0xa5   : > { %v1209_v48 = vadd.f32 %v1203_v29, %v1180_v8  ;;  %v1210_v3 = vadd.f32 %v1204_v14, %v1181_v13  ;;  %v1221_v55 = vperm.slane %v1217_v19, 2  ;;  %v1222_v9 = vperm.slane %v1217_v19, 3 }
  0xa6   : > { %v1211_v31 = vadd.f32 %v1205_v7, %v1182_v53  ;;  %v1212_v58 = vadd.f32 %v1206_v27, %v1183_v25  ;;  %v1213_v33 = vadd.f32 %v1207_v1, %v1184_v28  ;;  %v1223_v62 = vperm.slane %v1217_v19, 4 }
  0xa7   : > { %v1224_v47 = vperm.slane %v1217_v19, 5  ;;  %v1231_v51 = vmul.f32 %v3554_v61, %v1219_v38  ;;  %v1232_v37 = vmul.f32 %v3555_v43, %v1220_v63  ;;  %v1233_v18 = vmul.f32 %v3556_v54, %v1221_v55  ;;  %v3204_v38 = vld [vmem:[%s5750_s0 + $0xc1] ss:$8 sm:$0xf] }
  0xa8   : > { %v1234_v19 = vmul.f32 %v3557_v40, %v1222_v9  ;;  %v1235_v32 = vmul.f32 %v3558_v42, %v1223_v62  ;;  %v1246_v57 = vor.u32 %v3201_v46, %v3200_v44  ;;  %v1275_v8 = vor.u32 %v3203_v12, %v3202_v49  ;;  %v3562_v63 = vld [vmem:[%s5751_s1 + $0xd0] sm:$0xff]  ;;  %v3205_v46 = vld [vmem:[%s5750_s0 + $0xc1] ss:$8 sm:$0x30]  ;;  %v3567_v54 = vld [vmem:[%s5751_s1 + $0xf8] sm:$0xff] }
  0xa9   : > { %v1236_v60 = vmul.f32 %v3559_v11, %v1224_v47  ;;  %v1237_v13 = vadd.f32 %v1231_v51, %v1208_v21  ;;  %v1238_v53 = vadd.f32 %v1232_v37, %v1209_v48  ;;  %v1239_v10 = vadd.f32 %v1233_v18, %v1210_v3  ;;  %v3565_v21 = vld [vmem:[%s5751_s1 + $0xe8] sm:$0xff]  ;;  %v3566_v43 = vld [vmem:[%s5751_s1 + $0xf0] sm:$0xff]  ;;  %v3568_v40 = vld [vmem:[%s5751_s1 + $0x100] sm:$0xff] }
  0xaa   : > { %v1240_v17 = vadd.f32 %v1234_v19, %v1211_v31  ;;  %v1241_v25 = vadd.f32 %v1235_v32, %v1212_v58  ;;  %v1248_v35 = vperm.slane %v1246_v57, 0  ;;  %v1249_v52 = vperm.slane %v1246_v57, 1  ;;  %v3206_v49 = vld [vmem:[%s5750_s0 + $0xc2] ss:$8 sm:$0xf] }
  0xab   : > { %v1242_v28 = vadd.f32 %v1236_v60, %v1213_v33  ;;  %v1250_v30 = vperm.slane %v1246_v57, 2  ;;  %v1251_v56 = vperm.slane %v1246_v57, 3  ;;  %v1252_v2 = vperm.slane %v1246_v57, 4  ;;  %v3207_v12 = vld [vmem:[%s5750_s0 + $0xc2] ss:$8 sm:$0x30] }
  0xac   : > { %v1253_v36 = vperm.slane %v1246_v57, 5  ;;  %v1260_v29 = vmul.f32 %v3560_v5, %v1248_v35  ;;  %v1261_v14 = vmul.f32 %v3561_v22, %v1249_v52  ;;  %v1277_v15 = vperm.slane %v1275_v8, 0  ;;  %v3569_v42 = vld [vmem:[%s5751_s1 + $0x108] sm:$0xff]  ;;  %v3570_v57 = vld [vmem:[%s5751_s1 + $0x110] sm:$0xff]  ;;  %v3572_v22 = vld [vmem:[%s5751_s1 + $0x120] sm:$0xff] }
  0xad   : > { %v1278_v7 = vperm.slane %v1275_v8, 1  ;;  %v1262_v44 = vmul.f32 %v3562_v63, %v1250_v30  ;;  %v1263_v27 = vmul.f32 %v3563_v45, %v1251_v56  ;;  %v1264_v1 = vmul.f32 %v3564_v0, %v1252_v2 }
  0xae   : > { %v1265_v48 = vmul.f32 %v3565_v21, %v1253_v36  ;;  %v1266_v3 = vadd.f32 %v1260_v29, %v1237_v13  ;;  %v1267_v31 = vadd.f32 %v1261_v14, %v1238_v53  ;;  %v1279_v55 = vperm.slane %v1275_v8, 2  ;;  %v3571_v13 = vld [vmem:[%s5751_s1 + $0x118] sm:$0xff]  ;;  %v3576_v21 = vld [vmem:[%s5751_s1 + $0x140] sm:$0xff] }
  0xaf   : > { %v1280_v9 = vperm.slane %v1275_v8, 3  ;;  %v1268_v58 = vadd.f32 %v1262_v44, %v1239_v10  ;;  %v1269_v33 = vadd.f32 %v1263_v27, %v1240_v17  ;;  %v1270_v62 = vadd.f32 %v1264_v1, %v1241_v25  ;;  %v3575_v44 = vld [vmem:[%s5751_s1 + $0x138] sm:$0xff] }
  0xb0   : > { %v1271_v47 = vadd.f32 %v1265_v48, %v1242_v28  ;;  %v1281_v61 = vperm.slane %v1275_v8, 4  ;;  %v1282_v51 = vperm.slane %v1275_v8, 5  ;;  %v1289_v37 = vmul.f32 %v3566_v43, %v1277_v15  ;;  %v3573_v15 = vld [vmem:[%s5751_s1 + $0x128] sm:$0xff] }
  0xb1   : > { %v1290_v18 = vmul.f32 %v3567_v54, %v1278_v7  ;;  %v1291_v19 = vmul.f32 %v3568_v40, %v1279_v55  ;;  %v1292_v32 = vmul.f32 %v3569_v42, %v1280_v9  ;;  %v1304_v11 = vor.u32 %v3205_v46, %v3204_v38  ;;  %v3574_v38 = vld [vmem:[%s5751_s1 + $0x130] sm:$0xff]  ;;  %v3577_v46 = vld [vmem:[%s5751_s1 + $0x148] sm:$0xff]  ;;  %v3579_v40 = vld [vmem:[%s5751_s1 + $0x158] sm:$0xff] }
  0xb2   : > { %v1333_v60 = vor.u32 %v3207_v12, %v3206_v49  ;;  %v1293_v8 = vmul.f32 %v3570_v57, %v1281_v61  ;;  %v1294_v53 = vmul.f32 %v3571_v13, %v1282_v51  ;;  %v1295_v10 = vadd.f32 %v1289_v37, %v1266_v3  ;;  %v3210_v1 = vld [vmem:[%s5750_s0 + $0xc4] ss:$8 sm:$0xf]  ;;  %v3208_v55 = vld [vmem:[%s5750_s0 + $0xc3] ss:$8 sm:$0xf] }
  0xb3   : > { %v1296_v17 = vadd.f32 %v1290_v18, %v1267_v31  ;;  %v1297_v25 = vadd.f32 %v1291_v19, %v1268_v58  ;;  %v1298_v28 = vadd.f32 %v1292_v32, %v1269_v33  ;;  %v1306_v35 = vperm.slane %v1304_v11, 0  ;;  %v3211_v9 = vld [vmem:[%s5750_s0 + $0xc4] ss:$8 sm:$0x30]  ;;  %v3578_v54 = vld [vmem:[%s5751_s1 + $0x150] sm:$0xff]  ;;  %v3583_v13 = vld [vmem:[%s5751_s1 + $0x178] sm:$0xff] }
  0xb4   : > { %v1307_v52 = vperm.slane %v1304_v11, 1  ;;  %v1299_v30 = vadd.f32 %v1293_v8, %v1270_v62  ;;  %v1300_v56 = vadd.f32 %v1294_v53, %v1271_v47  ;;  %v1308_v2 = vperm.slane %v1304_v11, 2  ;;  %v3209_v47 = vld [vmem:[%s5750_s0 + $0xc3] ss:$8 sm:$0x30]  ;;  %v3582_v57 = vld [vmem:[%s5751_s1 + $0x170] sm:$0xff] }
  0xb5   : > { %v1309_v36 = vperm.slane %v1304_v11, 3  ;;  %v1310_v5 = vperm.slane %v1304_v11, 4  ;;  %v1311_v29 = vperm.slane %v1304_v11, 5  ;;  %v1318_v14 = vmul.f32 %v3572_v22, %v1306_v35  ;;  %v3580_v42 = vld [vmem:[%s5751_s1 + $0x160] sm:$0xff]  ;;  %v3581_v11 = vld [vmem:[%s5751_s1 + $0x168] sm:$0xff] }
  0xb6   : > { %v1319_v7 = vmul.f32 %v3573_v15, %v1307_v52  ;;  %v1320_v63 = vmul.f32 %v3574_v38, %v1308_v2  ;;  %v1335_v27 = vperm.slane %v1333_v60, 0  ;;  %v1336_v0 = vperm.slane %v1333_v60, 1  ;;  %v3584_v38 = vld [vmem:[%s5751_s1 + $0x180] sm:$0xff] }
  0xb7   : > { %v1321_v45 = vmul.f32 %v3575_v44, %v1309_v36  ;;  %v1322_v48 = vmul.f32 %v3576_v21, %v1310_v5  ;;  %v1323_v49 = vmul.f32 %v3577_v46, %v1311_v29  ;;  %v1324_v3 = vadd.f32 %v1318_v14, %v1295_v10  ;;  %v3585_v44 = vld [vmem:[%s5751_s1 + $0x188] sm:$0xff]  ;;  %v276_v21 = vld [vmem:[%s5752_s2 + $0x18] sm:$0xff] }
  0xb8   : > { %v1325_v31 = vadd.f32 %v1319_v7, %v1296_v17  ;;  %v1326_v12 = vadd.f32 %v1320_v63, %v1297_v25  ;;  %v1337_v33 = vperm.slane %v1333_v60, 2  ;;  %v1338_v62 = vperm.slane %v1333_v60, 3 }
  0xb9   : > { %v1327_v58 = vadd.f32 %v1321_v45, %v1298_v28  ;;  %v1328_v61 = vadd.f32 %v1322_v48, %v1299_v30  ;;  %v1329_v51 = vadd.f32 %v1323_v49, %v1300_v56  ;;  %v1339_v43 = vperm.slane %v1333_v60, 4 }
  0xba   : > { %v1340_v37 = vperm.slane %v1333_v60, 5  ;;  %v1347_v18 = vmul.f32 %v3578_v54, %v1335_v27  ;;  %v1348_v19 = vmul.f32 %v3579_v40, %v1336_v0  ;;  %v1349_v32 = vmul.f32 %v3580_v42, %v1337_v33  ;;  %v274_v0 = vld [vmem:[%s5752_s2 + $0x8] sm:$0xff] }
  0xbb   : > { %v1350_v60 = vmul.f32 %v3581_v11, %v1338_v62  ;;  %v1351_v8 = vmul.f32 %v3582_v57, %v1339_v43  ;;  %v1362_v10 = vor.u32 %v3209_v47, %v3208_v55  ;;  %v4632_v17 = vor.u32 %v3211_v9, %v3210_v1  ;;  %v275_v1 = vld [vmem:[%s5752_s2 + $0x10] sm:$0xff]  ;;  %v278_v55 = vld [vmem:[%s5752_s2 + $0x28] sm:$0xff]  ;;  %v4683_v62 = vld [vmem:[%s5751_s1] sm:$0xff] }
  0xbc   : > { %v1352_v53 = vmul.f32 %v3583_v13, %v1340_v37  ;;  %v1353_v25 = vadd.f32 %v1347_v18, %v1324_v3  ;;  %v1354_v28 = vadd.f32 %v1348_v19, %v1325_v31  ;;  %v1355_v35 = vadd.f32 %v1349_v32, %v1326_v12  ;;  %v277_v31 = vld [vmem:[%s5752_s2 + $0x20] sm:$0xff]  ;;  %6000 = vst [vmem:[#allocation5_spill] sm:$0xff] %v4683_v62  ;;  %v4695_v43 = vld [vmem:[%s5751_s1 + $0x10] sm:$0xff]  ;;  %v4700_v37 = vld [vmem:[%s5751_s1 + $0x18] sm:$0xff] }
  0xbd   : > { %v1356_v52 = vadd.f32 %v1350_v60, %v1327_v58  ;;  %v1357_v30 = vadd.f32 %v1351_v8, %v1328_v61  ;;  %v1364_v2 = vperm.slane %v1362_v10, 0  ;;  %v1365_v36 = vperm.slane %v1362_v10, 1  ;;  %6002 = vst [vmem:[#allocation7_spill] sm:$0xff] %v4695_v43  ;;  %v3212_v42 = vld [vmem:[%s5750_s0 + $0xc5] ss:$8 sm:$0xf] }
  0xbe   : > { %v1358_v56 = vadd.f32 %v1352_v53, %v1329_v51  ;;  %v1366_v5 = vperm.slane %v1362_v10, 2  ;;  %v1367_v29 = vperm.slane %v1362_v10, 3  ;;  %v1368_v22 = vperm.slane %v1362_v10, 4  ;;  %v4690_v51 = vld [vmem:[%s5751_s1 + $0x8] sm:$0xff]  ;;  %6003 = vst [vmem:[#allocation8_spill] sm:$0xff] %v4700_v37  ;;  %v4721_v57 = vld [vmem:[%s5751_s1 + $0x20] sm:$0xff] }
  0xbf   : > { %v1369_v14 = vperm.slane %v1362_v10, 5  ;;  %v1125_v15 = vmax.f32 %v858_v59, %v4416_v4  ;;  %v1126_v7 = vmax.f32 %v859_v26, %v4418_v34  ;;  %v1376_v63 = vmul.f32 %v3584_v38, %v1364_v2  ;;  %v3588_v26 = vld [vmem:[%s5751_s1 + $0x1a0] sm:$0xff]  ;;  %v3589_v34 = vld [vmem:[%s5751_s1 + $0x1a8] sm:$0xff]  ;;  %6001 = vst [vmem:[#allocation6_spill] sm:$0xff] %v4690_v51 }
  0xc0   : > { %v1377_v45 = vmul.f32 %v3585_v44, %v1365_v36  ;;  %v1378_v59 = vmul.f32 %v3586_v20, %v1366_v5  ;;  %v1379_v23 = vmul.f32 %v3587_v39, %v1367_v29  ;;  %v1380_v4 = vmul.f32 %v3588_v26, %v1368_v22  ;;  %v3213_v32 = vld [vmem:[%s5750_s0 + $0xc5] ss:$8 sm:$0x30]  ;;  %v3214_v11 = vld [vmem:[%s5750_s0 + $0xc6] ss:$8 sm:$0xf] }
  0xc1   : > { %v1381_v27 = vmul.f32 %v3589_v34, %v1369_v14  ;;  %v1382_v48 = vadd.f32 %v1376_v63, %v1353_v25  ;;  %v1423_v49 = vperm.slane %v4632_v17, 0  ;;  %v1424_v3 = vperm.slane %v4632_v17, 1  ;;  %6004 = vst [vmem:[#allocation10_spill] sm:$0xff] %v4721_v57  ;;  %v3216_v53 = vld [vmem:[%s5750_s0 + $0xc7] ss:$8 sm:$0xf] }
  0xc2   : > { %v1383_v46 = vadd.f32 %v1377_v45, %v1354_v28  ;;  %v1384_v9 = vadd.f32 %v1378_v59, %v1355_v35  ;;  %v1385_v12 = vadd.f32 %v1379_v23, %v1356_v52  ;;  %v1386_v58 = vadd.f32 %v1380_v4, %v1357_v30  ;;  %v3217_v52 = vld [vmem:[%s5750_s0 + $0xc7] ss:$8 sm:$0x30]  ;;  %v3218_v30 = vld [vmem:[%s5750_s0 + $0xf0] ss:$8 sm:$0xf] }
  0xc3   : > { %v1387_v33 = vadd.f32 %v1381_v27, %v1358_v56  ;;  %v1388_v47 = vmax.f32 %v4423_v16, %v1382_v48  ;;  %v1425_v54 = vperm.slane %v4632_v17, 2  ;;  %v1426_v16 = vperm.slane %v4632_v17, 3  ;;  %v3219_v29 = vld [vmem:[%s5750_s0 + $0xf0] ss:$8 sm:$0x30]  ;;  %v4766_v26 = vld [vmem:[%s5751_s1 + $0x48] sm:$0xff] }
  0xc4   : > { %v1389_v61 = vmax.f32 %v4428_v24, %v1383_v46  ;;  %v1390_v24 = vmax.f32 %v4433_v6, %v1384_v9  ;;  %v1391_v18 = vmax.f32 %v4438_v50, %v1385_v12  ;;  %v1392_v40 = vmax.f32 %v1125_v15, %v1386_v58  ;;  %v3215_v6 = vld [vmem:[%s5750_s0 + $0xc6] ss:$8 sm:$0x30]  ;;  %v4749_v44 = vld [vmem:[%s5751_s1 + $0x30] sm:$0xff]  ;;  %v4754_v45 = vld [vmem:[%s5751_s1 + $0x38] sm:$0xff] }
  0xc5   : > { %v1393_v19 = vmax.f32 %v1126_v7, %v1387_v33  ;;  %v1394_v60 = vadd.f32 %v1388_v47, %v273_v41  ;;  %v1427_v8 = vperm.slane %v4632_v17, 4  ;;  %v1428_v13 = vperm.slane %v4632_v17, 5  ;;  %v4737_v17 = vld [vmem:[%s5751_s1 + $0x28] sm:$0xff]  ;;  %6006 = vst [vmem:[#allocation9_spill] sm:$0xff] %v4749_v44  ;;  %v4759_v41 = vld [vmem:[%s5751_s1 + $0x40] sm:$0xff]  ;;  %v4771_v4 = vld [vmem:[%s5751_s1 + $0x50] sm:$0xff] }
  0xc6   : > { %v1395_v50 = vadd.f32 %v1389_v61, %v274_v0  ;;  %v1396_v10 = vadd.f32 %v1390_v24, %v275_v1  ;;  %v1397_v25 = vadd.f32 %v1391_v18, %v276_v21  ;;  %v1398_v28 = vadd.f32 %v1392_v40, %v277_v31  ;;  %6005 = vst [vmem:[#allocation11_spill] sm:$0xff] %v4737_v17  ;;  %v3220_v0 = vld [vmem:[%s5750_s0 + $0xf1] ss:$8 sm:$0xf] }
  0xc7   : > { %v1399_v35 = vadd.f32 %v1393_v19, %v278_v55  ;;  %v1400_v56 = vmax.f32 %v1394_v60, 0.0  ;;  %v1435_v36 = vmul.f32 %v1423_v49, %v4683_v62  ;;  %v1436_v5 = vmul.f32 %v1424_v3, %v4690_v51  ;;  %6007 = vst [vmem:[#allocation12_spill] sm:$0xff] %v4754_v45  ;;  %v3221_v1 = vld [vmem:[%s5750_s0 + $0xf1] ss:$8 sm:$0x30]  ;;  %v4801_v24 = vld [vmem:[%s5751_s1 + $0x60] sm:$0xff] }
  0xc8   : > { %v1401_v2 = vmax.f32 %v1395_v50, 0.0  ;;  %v1402_v22 = vmax.f32 %v1396_v10, 0.0  ;;  %v1403_v14 = vmax.f32 %v1397_v25, 0.0  ;;  %v1437_v15 = vmul.f32 %v1425_v54, %v4695_v43  ;;  %v3222_v21 = vld [vmem:[%s5750_s0 + $0xf2] ss:$8 sm:$0xf] }
  0xc9   : > { %v1438_v7 = vmul.f32 %v1426_v16, %v4700_v37  ;;  %v1404_v38 = vmax.f32 %v1398_v28, 0.0  ;;  %v1405_v63 = vmax.f32 %v1399_v35, 0.0  ;;  %1406 = vst [vmem:[#allocation2] sm:$0xff] %v1400_v56  ;;  %v1456_v20 = vor.u32 %v3213_v32, %v3212_v42  ;;  %v3223_v48 = vld [vmem:[%s5750_s0 + $0xf2] ss:$8 sm:$0x30] }
  0xca   : > { %v1491_v59 = vor.u32 %v3215_v6, %v3214_v11  ;;  %1407 = vst [vmem:[#allocation2 + $0x8] sm:$0xff] %v1401_v2  ;;  %v1439_v39 = vmul.f32 %v1427_v8, %v4721_v57  ;;  %v1440_v23 = vmul.f32 %v1428_v13, %v4737_v17  ;;  %v4773_v34 = vor.u32 %v3217_v52, %v3216_v53  ;;  %v4792_v46 = vld [vmem:[%s5751_s1 + $0x58] sm:$0xff]  ;;  %v4808_v19 = vld [vmem:[%s5751_s1 + $0x68] sm:$0xff]  ;;  %v4813_v42 = vld [vmem:[%s5751_s1 + $0x70] sm:$0xff] }
  0xcb   : > { %v4775_v27 = vor.u32 %v3219_v29, %v3218_v30  ;;  %1408 = vst [vmem:[#allocation2 + $0x10] sm:$0xff] %v1402_v22  ;;  %v1458_v49 = vperm.slane %v1456_v20, 0  ;;  %v1459_v3 = vperm.slane %v1456_v20, 1  ;;  %v1460_v31 = vperm.slane %v1456_v20, 2  ;;  %v4818_v32 = vld [vmem:[%s5751_s1 + $0x78] sm:$0xff]  ;;  %v4827_v25 = vld [vmem:[%s5751_s1 + $0x80] sm:$0xff] }
  0xcc   : > { %v1461_v55 = vperm.slane %v1456_v20, 3  ;;  %1409 = vst [vmem:[#allocation2 + $0x18] sm:$0xff] %v1403_v14  ;;  %v1462_v9 = vperm.slane %v1456_v20, 4  ;;  %v1463_v12 = vperm.slane %v1456_v20, 5  ;;  %v1493_v58 = vperm.slane %v1491_v59, 0  ;;  %v4832_v28 = vld [vmem:[%s5751_s1 + $0x88] sm:$0xff] }
  0xcd   : > { %v1494_v33 = vperm.slane %v1491_v59, 1  ;;  %1410 = vst [vmem:[#allocation2 + $0x20] sm:$0xff] %v1404_v38  ;;  %v1470_v47 = vmul.f32 %v1458_v49, %v4749_v44  ;;  %v1471_v61 = vmul.f32 %v1459_v3, %v4754_v45  ;;  %v1472_v54 = vmul.f32 %v1460_v31, %v4759_v41  ;;  %v4841_v22 = vld [vmem:[%s5751_s1 + $0x90] sm:$0xff]  ;;  %v4846_v14 = vld [vmem:[%s5751_s1 + $0x98] sm:$0xff] }
  0xce   : > { %v1473_v16 = vmul.f32 %v1461_v55, %v4766_v26  ;;  %1411 = vst [vmem:[#allocation2 + $0x28] sm:$0xff] %v1405_v63  ;;  %v1474_v18 = vmul.f32 %v1462_v9, %v4771_v4  ;;  %v1475_v40 = vmul.f32 %v1463_v12, %v4792_v46  ;;  %v1495_v11 = vperm.slane %v1491_v59, 2 }
  0xcf   : > { %v1496_v6 = vperm.slane %v1491_v59, 3  ;;  %v1476_v60 = vadd.f32 %v1470_v47, %v1435_v36  ;;  %v1477_v50 = vadd.f32 %v1471_v61, %v1436_v5  ;;  %v4820_v8 = vor.u32 %v3221_v1, %v3220_v0  ;;  %v4883_v47 = vld [vmem:[%s5751_s1 + $0xc0] sm:$0xff] }
  0xd0   : > { %v4822_v13 = vor.u32 %v3223_v48, %v3222_v21  ;;  %v1478_v53 = vadd.f32 %v1472_v54, %v1437_v15  ;;  %v1479_v10 = vadd.f32 %v1473_v16, %v1438_v7  ;;  %v1497_v35 = vperm.slane %v1491_v59, 4  ;;  %v4865_v21 = vld [vmem:[%s5751_s1 + $0xb0] sm:$0xff]  ;;  %v4870_v48 = vld [vmem:[%s5751_s1 + $0xb8] sm:$0xff]  ;;  %6011 = vst [vmem:[#allocation16_spill] sm:$0xff] %v4883_v47 }
  0xd1   : > { %v1498_v52 = vperm.slane %v1491_v59, 5  ;;  %v1505_v30 = vmul.f32 %v1493_v58, %v4801_v24  ;;  %v1506_v56 = vmul.f32 %v1494_v33, %v4808_v19  ;;  %v1507_v2 = vmul.f32 %v1495_v11, %v4813_v42  ;;  %6009 = vst [vmem:[#allocation14_spill] sm:$0xff] %v4865_v21  ;;  %v4892_v11 = vld [vmem:[%s5751_s1 + $0xc8] sm:$0xff] }
  0xd2   : > { %v1508_v36 = vmul.f32 %v1496_v6, %v4818_v32  ;;  %v1480_v5 = vadd.f32 %v1474_v18, %v1439_v39  ;;  %v1481_v29 = vadd.f32 %v1475_v40, %v1440_v23  ;;  %v1528_v15 = vperm.slane %v4773_v34, 0  ;;  %v4855_v39 = vld [vmem:[%s5751_s1 + $0xa0] sm:$0xff]  ;;  %v4860_v23 = vld [vmem:[%s5751_s1 + $0xa8] sm:$0xff]  ;;  %6010 = vst [vmem:[#allocation15_spill] sm:$0xff] %v4870_v48  ;;  %v4897_v6 = vld [vmem:[%s5751_s1 + $0xd0] sm:$0xff] }
  0xd3   : > { %v1529_v7 = vperm.slane %v4773_v34, 1  ;;  %v1509_v38 = vmul.f32 %v1497_v35, %v4827_v25  ;;  %v1510_v63 = vmul.f32 %v1498_v52, %v4832_v28  ;;  %v1511_v20 = vadd.f32 %v1505_v30, %v1476_v60  ;;  %6008 = vst [vmem:[#allocation13_spill] sm:$0xff] %v4860_v23  ;;  %v4902_v60 = vld [vmem:[%s5751_s1 + $0xd8] sm:$0xff] }
  0xd4   : > { %v1512_v59 = vadd.f32 %v1506_v56, %v1477_v50  ;;  %v1513_v0 = vadd.f32 %v1507_v2, %v1478_v53  ;;  %v1514_v1 = vadd.f32 %v1508_v36, %v1479_v10  ;;  %v1530_v49 = vperm.slane %v4773_v34, 2  ;;  %6012 = vst [vmem:[#allocation17_spill] sm:$0xff] %v4892_v11  ;;  %v4909_v56 = vld [vmem:[%s5751_s1 + $0xe0] sm:$0xff]  ;;  %v4914_v2 = vld [vmem:[%s5751_s1 + $0xe8] sm:$0xff] }
  0xd5   : > { %v1531_v3 = vperm.slane %v4773_v34, 3  ;;  %v1532_v31 = vperm.slane %v4773_v34, 4  ;;  %v1533_v55 = vperm.slane %v4773_v34, 5  ;;  %v1540_v9 = vmul.f32 %v1528_v15, %v4841_v22  ;;  %6013 = vst [vmem:[#allocation18_spill] sm:$0xff] %v4897_v6 }
  0xd6   : > { %v1541_v12 = vmul.f32 %v1529_v7, %v4846_v14  ;;  %v1542_v58 = vmul.f32 %v1530_v49, %v4855_v39  ;;  %v1563_v61 = vperm.slane %v4775_v27, 0  ;;  %v1564_v54 = vperm.slane %v4775_v27, 1  ;;  %6014 = vst [vmem:[#allocation19_spill] sm:$0xff] %v4902_v60 }
  0xd7   : > { %v1543_v33 = vmul.f32 %v1531_v3, %v4860_v23  ;;  %v1515_v16 = vadd.f32 %v1509_v38, %v1480_v5  ;;  %v1516_v18 = vadd.f32 %v1510_v63, %v1481_v29  ;;  %v1544_v34 = vmul.f32 %v1532_v31, %v4865_v21  ;;  %6015 = vst [vmem:[#allocation20_spill] sm:$0xff] %v4909_v56 }
  0xd8   : > { %v1545_v40 = vmul.f32 %v1533_v55, %v4870_v48  ;;  %v1546_v50 = vadd.f32 %v1540_v9, %v1511_v20  ;;  %v1547_v53 = vadd.f32 %v1541_v12, %v1512_v59  ;;  %v1565_v10 = vperm.slane %v4775_v27, 2  ;;  %6016 = vst [vmem:[#allocation21_spill] sm:$0xff] %v4914_v2  ;;  %v4925_v59 = vld [vmem:[%s5751_s1 + $0xf0] sm:$0xff]  ;;  %v4939_v9 = vld [vmem:[%s5751_s1 + $0x100] sm:$0xff]  ;;  %v4944_v12 = vld [vmem:[%s5751_s1 + $0x108] sm:$0xff] }
  0xd9   : > { %v1566_v35 = vperm.slane %v4775_v27, 3  ;;  %v1548_v52 = vadd.f32 %v1542_v58, %v1513_v0  ;;  %v1549_v30 = vadd.f32 %v1543_v33, %v1514_v1  ;;  %v1567_v36 = vperm.slane %v4775_v27, 4  ;;  %6017 = vst [vmem:[#allocation22_spill] sm:$0xff] %v4925_v59  ;;  %v4930_v0 = vld [vmem:[%s5751_s1 + $0xf8] sm:$0xff] }
  0xda   : > { %v1568_v5 = vperm.slane %v4775_v27, 5  ;;  %v1575_v29 = vmul.f32 %v1563_v61, %v4883_v47  ;;  %v1576_v15 = vmul.f32 %v1564_v54, %v4892_v11  ;;  %v1577_v7 = vmul.f32 %v1565_v10, %v4897_v6  ;;  %6018 = vst [vmem:[#allocation23_spill] sm:$0xff] %v4930_v0  ;;  %v4949_v61 = vld [vmem:[%s5751_s1 + $0x110] sm:$0xff]  ;;  %v4954_v54 = vld [vmem:[%s5751_s1 + $0x118] sm:$0xff]  ;;  %v4965_v10 = vld [vmem:[%s5751_s1 + $0x120] sm:$0xff] }
  0xdb   : > { %v1578_v38 = vmul.f32 %v1566_v35, %v4902_v60  ;;  %v1550_v63 = vadd.f32 %v1544_v34, %v1515_v16  ;;  %v1551_v20 = vadd.f32 %v1545_v40, %v1516_v18  ;;  %v1598_v27 = vperm.slane %v4820_v8, 0  ;;  %6019 = vst [vmem:[#allocation24_spill] sm:$0xff] %v4939_v9  ;;  %v4970_v35 = vld [vmem:[%s5751_s1 + $0x128] sm:$0xff] }
  0xdc   : > { %v1599_v1 = vperm.slane %v4820_v8, 1  ;;  %v1579_v49 = vmul.f32 %v1567_v36, %v4909_v56  ;;  %v1580_v3 = vmul.f32 %v1568_v5, %v4914_v2  ;;  %v1581_v31 = vadd.f32 %v1575_v29, %v1546_v50  ;;  %6020 = vst [vmem:[#allocation25_spill] sm:$0xff] %v4944_v12  ;;  %v4982_v36 = vld [vmem:[%s5751_s1 + $0x138] sm:$0xff] }
  0xdd   : > { %v1582_v55 = vadd.f32 %v1576_v15, %v1547_v53  ;;  %v1583_v58 = vadd.f32 %v1577_v7, %v1548_v52  ;;  %v1584_v33 = vadd.f32 %v1578_v38, %v1549_v30  ;;  %6021 = vst [vmem:[#allocation26_spill] sm:$0xff] %v4949_v61  ;;  %v1600_v16 = vperm.slane %v4820_v8, 2  ;;  %v4975_v52 = vld [vmem:[%s5751_s1 + $0x130] sm:$0xff] }
  0xde   : > { %6022 = vst [vmem:[#allocation27_spill] sm:$0xff] %v4954_v54  ;;  %v1601_v18 = vperm.slane %v4820_v8, 3  ;;  %v1602_v34 = vperm.slane %v4820_v8, 4  ;;  %v1603_v40 = vperm.slane %v4820_v8, 5  ;;  %v1610_v50 = vmul.f32 %v1598_v27, %v4925_v59 }
  0xdf   : > { %v1611_v53 = vmul.f32 %v1599_v1, %v4930_v0  ;;  %6023 = vst [vmem:[#allocation28_spill] sm:$0xff] %v4965_v10  ;;  %v1612_v8 = vmul.f32 %v1600_v16, %v4939_v9  ;;  %v1633_v5 = vperm.slane %v4822_v13, 0  ;;  %v1634_v29 = vperm.slane %v4822_v13, 1  ;;  %v3224_v15 = vld [vmem:[%s5750_s0 + $0xf3] ss:$8 sm:$0xf] }
  0xe0   : > { %6024 = vst [vmem:[#allocation29_spill] sm:$0xff] %v4970_v35  ;;  %v1613_v30 = vmul.f32 %v1601_v18, %v4944_v12  ;;  %v1585_v7 = vadd.f32 %v1579_v49, %v1550_v63  ;;  %v1586_v38 = vadd.f32 %v1580_v3, %v1551_v20  ;;  %v1614_v27 = vmul.f32 %v1602_v34, %v4949_v61  ;;  %v3225_v16 = vld [vmem:[%s5750_s0 + $0xf3] ss:$8 sm:$0x30]  ;;  %v5005_v3 = vld [vmem:[%s5751_s1 + $0x140] sm:$0xff] }
  0xe1   : > { %6025 = vst [vmem:[#allocation30_spill] sm:$0xff] %v4975_v52  ;;  %v1615_v1 = vmul.f32 %v1603_v40, %v4954_v54  ;;  %v3226_v18 = vld [vmem:[%s5750_s0 + $0xf4] ss:$8 sm:$0xf]  ;;  %v1616_v12 = vadd.f32 %v1610_v50, %v1581_v31  ;;  %v1617_v9 = vadd.f32 %v1611_v53, %v1582_v55  ;;  %v1635_v0 = vperm.slane %v4822_v13, 2 }
  0xe2   : > { %6026 = vst [vmem:[#allocation31_spill] sm:$0xff] %v4982_v36  ;;  %v1636_v59 = vperm.slane %v4822_v13, 3  ;;  %v3227_v63 = vld [vmem:[%s5750_s0 + $0xf4] ss:$8 sm:$0x30]  ;;  %v1618_v20 = vadd.f32 %v1612_v8, %v1583_v58  ;;  %v1619_v49 = vadd.f32 %v1613_v30, %v1584_v33  ;;  %v5010_v31 = vld [vmem:[%s5751_s1 + $0x148] sm:$0xff]  ;;  %v1645_v40 = vmul.f32 %v1633_v5, %v4965_v10 }
  0xe3   : > { %6027 = vst [vmem:[#allocation36_spill] sm:$0xff] %v5005_v3  ;;  %v1637_v55 = vperm.slane %v4822_v13, 4  ;;  %v1638_v34 = vperm.slane %v4822_v13, 5  ;;  %v1646_v50 = vmul.f32 %v1634_v29, %v4970_v35  ;;  %v1647_v58 = vmul.f32 %v1635_v0, %v4975_v52  ;;  %v5023_v13 = vld [vmem:[%s5751_s1 + $0x150] sm:$0xff]  ;;  %v5028_v0 = vld [vmem:[%s5751_s1 + $0x158] sm:$0xff]  ;;  %v5033_v29 = vld [vmem:[%s5751_s1 + $0x160] sm:$0xff] }
  0xe4   : > { %6028 = vst [vmem:[#allocation38_spill] sm:$0xff] %v5010_v31  ;;  %v1648_v33 = vmul.f32 %v1636_v59, %v4982_v36  ;;  %v1620_v53 = vadd.f32 %v1614_v27, %v1585_v7  ;;  %v1621_v8 = vadd.f32 %v1615_v1, %v1586_v38  ;;  %v1666_v30 = vor.u32 %v3225_v16, %v3224_v15  ;;  %v5048_v38 = vld [vmem:[%s5751_s1 + $0x178] sm:$0xff] }
  0xe5   : > { %v1701_v54 = vor.u32 %v3227_v63, %v3226_v18  ;;  %v1649_v61 = vmul.f32 %v1637_v55, %v5005_v3  ;;  %v1650_v2 = vmul.f32 %v1638_v34, %v5010_v31  ;;  %v1651_v56 = vadd.f32 %v1645_v40, %v1616_v12  ;;  %6029 = vst [vmem:[#allocation39_spill] sm:$0xff] %v5023_v13  ;;  %v5043_v12 = vld [vmem:[%s5751_s1 + $0x170] sm:$0xff] }
  0xe6   : > { %v1652_v60 = vadd.f32 %v1646_v50, %v1617_v9  ;;  %6030 = vst [vmem:[#allocation44_spill] sm:$0xff] %v5028_v0  ;;  %v1653_v59 = vadd.f32 %v1647_v58, %v1618_v20  ;;  %v1654_v5 = vadd.f32 %v1648_v33, %v1619_v49  ;;  %v5038_v9 = vld [vmem:[%s5751_s1 + $0x168] sm:$0xff]  ;;  %v1668_v15 = vperm.slane %v1666_v30, 0 }
  0xe7   : > { %6031 = vst [vmem:[#allocation37_spill] sm:$0xff] %v5033_v29  ;;  %v1669_v7 = vperm.slane %v1666_v30, 1  ;;  %v1670_v27 = vperm.slane %v1666_v30, 2  ;;  %v1671_v1 = vperm.slane %v1666_v30, 3  ;;  %v1672_v16 = vperm.slane %v1666_v30, 4 }
  0xe8   : > { %6032 = vst [vmem:[#allocation40_spill] sm:$0xff] %v5038_v9  ;;  %v1673_v18 = vperm.slane %v1666_v30, 5  ;;  %v1680_v63 = vmul.f32 %v1668_v15, %v5023_v13  ;;  %v1703_v49 = vperm.slane %v1701_v54, 0  ;;  %v1704_v55 = vperm.slane %v1701_v54, 1  ;;  %v5061_v30 = vld [vmem:[%s5751_s1 + $0x180] sm:$0xff]  ;;  %v5066_v15 = vld [vmem:[%s5751_s1 + $0x188] sm:$0xff] }
  0xe9   : > { %6033 = vst [vmem:[#allocation32_spill] sm:$0xff] %v5043_v12  ;;  %v1681_v20 = vmul.f32 %v1669_v7, %v5028_v0  ;;  %v3228_v34 = vld [vmem:[%s5750_s0 + $0xf5] ss:$8 sm:$0xf]  ;;  %v1655_v40 = vadd.f32 %v1649_v61, %v1620_v53  ;;  %v1682_v50 = vmul.f32 %v1670_v27, %v5033_v29  ;;  %v1683_v58 = vmul.f32 %v1671_v1, %v5038_v9 }
  0xea   : > { %6034 = vst [vmem:[#allocation41_spill] sm:$0xff] %v5048_v38  ;;  %v1684_v33 = vmul.f32 %v1672_v16, %v5043_v12  ;;  %v3229_v61 = vld [vmem:[%s5750_s0 + $0xf5] ss:$8 sm:$0x30]  ;;  %v1656_v53 = vadd.f32 %v1650_v2, %v1621_v8  ;;  %v1685_v7 = vmul.f32 %v1673_v18, %v5048_v38  ;;  %v5085_v16 = vld [vmem:[%s5751_s1 + $0x1a0] sm:$0xff]  ;;  %v1705_v12 = vperm.slane %v1701_v54, 2 }
  0xeb   : > { %v5075_v27 = vld [vmem:[%s5751_s1 + $0x190] sm:$0xff]  ;;  %v5080_v1 = vld [vmem:[%s5751_s1 + $0x198] sm:$0xff]  ;;  %v1706_v9 = vperm.slane %v1701_v54, 3  ;;  %v1686_v2 = vadd.f32 %v1680_v63, %v1651_v56  ;;  %v1687_v8 = vadd.f32 %v1681_v20, %v1652_v60  ;;  %v1688_v18 = vadd.f32 %v1682_v50, %v1653_v59  ;;  %v5096_v0 = vld [vmem:[%s5751_s1 + $0x1a8] sm:$0xff] }
  0xec   : > { %v3230_v38 = vld [vmem:[%s5750_s0 + $0xf6] ss:$8 sm:$0xf]  ;;  %v1707_v13 = vperm.slane %v1701_v54, 4  ;;  %v1708_v31 = vperm.slane %v1701_v54, 5  ;;  %v1715_v3 = vmul.f32 %v1703_v49, %v5061_v30  ;;  %v1716_v60 = vmul.f32 %v1704_v55, %v5066_v15 }
  0xed   : > { %v3231_v29 = vld [vmem:[%s5750_s0 + $0xf6] ss:$8 sm:$0x30]  ;;  %v5100_v56 = vadd.f32 %v1683_v58, %v1654_v5  ;;  %v5102_v59 = vadd.f32 %v1684_v33, %v1655_v40  ;;  %v1717_v63 = vmul.f32 %v1705_v12, %v5075_v27  ;;  %v1730_v20 = vor.u32 %v3229_v61, %v3228_v34  ;;  %v3234_v61 = vld [vmem:[%s5750_s0 + $0x120] ss:$8 sm:$0xf] }
  0xee   : > { %v5105_v50 = vadd.f32 %v1685_v7, %v1656_v53  ;;  %v5108_v36 = vmul.f32 %v1706_v9, %v5080_v1  ;;  %v5111_v52 = vmul.f32 %v1707_v13, %v5085_v16  ;;  %v1759_v54 = vor.u32 %v3231_v29, %v3230_v38  ;;  %v3232_v9 = vld [vmem:[%s5750_s0 + $0xf7] ss:$8 sm:$0xf] }
  0xef   : > { %v5114_v49 = vmul.f32 %v1708_v31, %v5096_v0  ;;  %v5116_v55 = vadd.f32 %v1715_v3, %v1686_v2  ;;  %v1732_v5 = vperm.slane %v1730_v20, 0  ;;  %v1733_v40 = vperm.slane %v1730_v20, 1  ;;  %v3233_v13 = vld [vmem:[%s5750_s0 + $0xf7] ss:$8 sm:$0x30] }
  0xf0   : > { %6035 = vst [vmem:[#allocation33_spill] sm:$0xff] %v5105_v50  ;;  %v5118_v58 = vadd.f32 %v1716_v60, %v1687_v8  ;;  %v5120_v12 = vadd.f32 %v1717_v63, %v1688_v18  ;;  %v1734_v34 = vperm.slane %v1730_v20, 2  ;;  %v1735_v33 = vperm.slane %v1730_v20, 3  ;;  %v3235_v18 = vld [vmem:[%s5750_s0 + $0x120] ss:$8 sm:$0x30] }
  0xf1   : > { %6036 = vst [vmem:[#allocation42_spill] sm:$0xff] %v5114_v49  ;;  %v1736_v31 = vperm.slane %v1730_v20, 4  ;;  %v1737_v29 = vperm.slane %v1730_v20, 5  ;;  %v1744_v3 = vmul.f32 %v1732_v5, %v4683_v62  ;;  %v1745_v38 = vmul.f32 %v1733_v40, %v4690_v51 }
  0xf2   : > { %6037 = vst [vmem:[#allocation34_spill] sm:$0xff] %v5116_v55  ;;  %v1746_v53 = vmul.f32 %v1734_v34, %v4695_v43  ;;  %v1747_v7 = vmul.f32 %v1735_v33, %v4700_v37  ;;  %v1761_v2 = vperm.slane %v1759_v54, 0  ;;  %v1762_v8 = vperm.slane %v1759_v54, 1 }
  0xf3   : > { %6038 = vst [vmem:[#allocation43_spill] sm:$0xff] %v5118_v58  ;;  %v1748_v60 = vmul.f32 %v1736_v31, %v4721_v57  ;;  %v1749_v63 = vmul.f32 %v1737_v29, %v4737_v17  ;;  %v1763_v20 = vperm.slane %v1759_v54, 2  ;;  %v1764_v5 = vperm.slane %v1759_v54, 3 }
  0xf4   : > { %6039 = vst [vmem:[#allocation35_spill] sm:$0xff] %v5120_v12  ;;  %v1765_v40 = vperm.slane %v1759_v54, 4  ;;  %v1766_v51 = vperm.slane %v1759_v54, 5  ;;  %v1773_v62 = vmul.f32 %v1761_v2, %v4749_v44  ;;  %v1774_v34 = vmul.f32 %v1762_v8, %v4754_v45 }
  0xf5   : > { %v1775_v33 = vmul.f32 %v1763_v20, %v4759_v41  ;;  %v1776_v37 = vmul.f32 %v1764_v5, %v4766_v26  ;;  %v1788_v43 = vor.u32 %v3233_v13, %v3232_v9  ;;  %v1817_v12 = vor.u32 %v3235_v18, %v3234_v61 }
  0xf6   : > { %v1777_v58 = vmul.f32 %v1765_v40, %v4771_v4  ;;  %v1778_v31 = vmul.f32 %v1766_v51, %v4792_v46  ;;  %v1779_v57 = vadd.f32 %v1773_v62, %v1744_v3  ;;  %v1780_v29 = vadd.f32 %v1774_v34, %v1745_v38 }
  0xf7   : > { %v1781_v17 = vadd.f32 %v1775_v33, %v1746_v53  ;;  %v1782_v55 = vadd.f32 %v1776_v37, %v1747_v7  ;;  %v1790_v49 = vperm.slane %v1788_v43, 0  ;;  %v1791_v54 = vperm.slane %v1788_v43, 1  ;;  %v3236_v37 = vld [vmem:[%s5750_s0 + $0x121] ss:$8 sm:$0xf] }
  0xf8   : > { %v1783_v50 = vadd.f32 %v1777_v58, %v1748_v60  ;;  %v1784_v2 = vadd.f32 %v1778_v31, %v1749_v63  ;;  %v1792_v44 = vperm.slane %v1788_v43, 2  ;;  %v1793_v8 = vperm.slane %v1788_v43, 3 }
  0xf9   : > { %v1794_v45 = vperm.slane %v1788_v43, 4  ;;  %v1795_v20 = vperm.slane %v1788_v43, 5  ;;  %v1802_v5 = vmul.f32 %v1790_v49, %v4801_v24  ;;  %v1803_v9 = vmul.f32 %v1791_v54, %v4808_v19  ;;  %v3237_v49 = vld [vmem:[%s5750_s0 + $0x121] ss:$8 sm:$0x30] }
  0xfa   : > { %v1804_v13 = vmul.f32 %v1792_v44, %v4813_v42  ;;  %v1805_v51 = vmul.f32 %v1793_v8, %v4818_v32  ;;  %v1819_v62 = vperm.slane %v1817_v12, 0  ;;  %v1820_v3 = vperm.slane %v1817_v12, 1  ;;  %v3238_v44 = vld [vmem:[%s5750_s0 + $0x122] ss:$8 sm:$0xf] }
  0xfb   : > { %v1806_v58 = vmul.f32 %v1794_v45, %v4827_v25  ;;  %v1807_v38 = vmul.f32 %v1795_v20, %v4832_v28  ;;  %v1808_v61 = vadd.f32 %v1802_v5, %v1779_v57  ;;  %v1809_v43 = vadd.f32 %v1803_v9, %v1780_v29  ;;  %v3239_v45 = vld [vmem:[%s5750_s0 + $0x122] ss:$8 sm:$0x30] }
  0xfc   : > { %v1810_v53 = vadd.f32 %v1804_v13, %v1781_v17  ;;  %v1811_v7 = vadd.f32 %v1805_v51, %v1782_v55  ;;  %v1821_v18 = vperm.slane %v1817_v12, 2  ;;  %v1822_v60 = vperm.slane %v1817_v12, 3 }
  0xfd   : > { %v1812_v63 = vadd.f32 %v1806_v58, %v1783_v50  ;;  %v1813_v40 = vadd.f32 %v1807_v38, %v1784_v2  ;;  %v1823_v57 = vperm.slane %v1817_v12, 4  ;;  %v1824_v34 = vperm.slane %v1817_v12, 5 }
  0xfe   : > { %v1831_v33 = vmul.f32 %v1819_v62, %v4841_v22  ;;  %v1832_v31 = vmul.f32 %v1820_v3, %v4846_v14  ;;  %v1833_v29 = vmul.f32 %v1821_v18, %v4855_v39  ;;  %v1834_v54 = vmul.f32 %v1822_v60, %v4860_v23 }
  0xff   : > { %v1835_v17 = vmul.f32 %v1823_v57, %v4865_v21  ;;  %v1836_v55 = vmul.f32 %v1824_v34, %v4870_v48  ;;  %v1846_v8 = vor.u32 %v3237_v49, %v3236_v37  ;;  %v1875_v20 = vor.u32 %v3239_v45, %v3238_v44  ;;  %v3240_v37 = vld [vmem:[%s5750_s0 + $0x123] ss:$8 sm:$0xf] }
 0x100   : > { %v1837_v5 = vadd.f32 %v1831_v33, %v1808_v61  ;;  %v1838_v9 = vadd.f32 %v1832_v31, %v1809_v43  ;;  %v1839_v50 = vadd.f32 %v1833_v29, %v1810_v53  ;;  %v1840_v2 = vadd.f32 %v1834_v54, %v1811_v7  ;;  %v6040_v43 = vld [vmem:[#allocation19_spill] sm:$0xff]  ;;  %v6041_v44 = vld [vmem:[#allocation20_spill] sm:$0xff]  ;;  %v6042_v7 = vld [vmem:[#allocation21_spill] sm:$0xff] }
 0x101   : > { %v1841_v13 = vadd.f32 %v1835_v17, %v1812_v63  ;;  %v1842_v12 = vadd.f32 %v1836_v55, %v1813_v40  ;;  %v1848_v51 = vperm.slane %v1846_v8, 0  ;;  %v1849_v62 = vperm.slane %v1846_v8, 1  ;;  %v3241_v63 = vld [vmem:[%s5750_s0 + $0x123] ss:$8 sm:$0x30]  ;;  %v6048_v48 = vld [vmem:[#allocation27_spill] sm:$0xff] }
 0x102   : > { %v1850_v58 = vperm.slane %v1846_v8, 2  ;;  %v1851_v3 = vperm.slane %v1846_v8, 3  ;;  %v1852_v38 = vperm.slane %v1846_v8, 4  ;;  %v1853_v18 = vperm.slane %v1846_v8, 5 }
 0x103   : > { %v1860_v60 = vmul.f32 %v1848_v51, %v4883_v47  ;;  %v1861_v57 = vmul.f32 %v1849_v62, %v4892_v11  ;;  %v1877_v21 = vperm.slane %v1875_v20, 0  ;;  %v1878_v34 = vperm.slane %v1875_v20, 1  ;;  %v3242_v40 = vld [vmem:[%s5750_s0 + $0x124] ss:$8 sm:$0xf] }
 0x104   : > { %v1862_v61 = vmul.f32 %v1850_v58, %v4897_v6  ;;  %v1863_v49 = vmul.f32 %v1851_v3, %v6040_v43  ;;  %v1864_v53 = vmul.f32 %v1852_v38, %v6041_v44  ;;  %v1865_v45 = vmul.f32 %v1853_v18, %v6042_v7  ;;  %v3243_v17 = vld [vmem:[%s5750_s0 + $0x124] ss:$8 sm:$0x30]  ;;  %v6044_v7 = vld [vmem:[#allocation23_spill] sm:$0xff]  ;;  %v6045_v43 = vld [vmem:[#allocation24_spill] sm:$0xff] }
 0x105   : > { %v1866_v33 = vadd.f32 %v1860_v60, %v1837_v5  ;;  %v1867_v31 = vadd.f32 %v1861_v57, %v1838_v9  ;;  %v1879_v29 = vperm.slane %v1875_v20, 2  ;;  %v1880_v54 = vperm.slane %v1875_v20, 3  ;;  %v6043_v38 = vld [vmem:[#allocation22_spill] sm:$0xff]  ;;  %v6046_v5 = vld [vmem:[#allocation25_spill] sm:$0xff] }
 0x106   : > { %v1868_v55 = vadd.f32 %v1862_v61, %v1839_v50  ;;  %v1869_v8 = vadd.f32 %v1863_v49, %v1840_v2  ;;  %v1870_v51 = vadd.f32 %v1864_v53, %v1841_v13  ;;  %v1871_v62 = vadd.f32 %v1865_v45, %v1842_v12  ;;  %v6047_v11 = vld [vmem:[#allocation26_spill] sm:$0xff] }
 0x107   : > { %v1881_v58 = vperm.slane %v1875_v20, 4  ;;  %v1882_v3 = vperm.slane %v1875_v20, 5  ;;  %v1889_v18 = vmul.f32 %v1877_v21, %v6043_v38  ;;  %v1890_v44 = vmul.f32 %v1878_v34, %v6044_v7 }
 0x108   : > { %v1891_v6 = vmul.f32 %v1879_v29, %v6045_v43  ;;  %v1892_v9 = vmul.f32 %v1880_v54, %v6046_v5  ;;  %v1904_v60 = vor.u32 %v3241_v63, %v3240_v37  ;;  %v1933_v57 = vor.u32 %v3243_v17, %v3242_v40  ;;  %v6049_v63 = vld [vmem:[#allocation30_spill] sm:$0xff]  ;;  %v6050_v17 = vld [vmem:[#allocation31_spill] sm:$0xff] }
 0x109   : > { %v1893_v47 = vmul.f32 %v1881_v58, %v6047_v11  ;;  %v1894_v23 = vmul.f32 %v1882_v3, %v6048_v48  ;;  %v1895_v50 = vadd.f32 %v1889_v18, %v1866_v33  ;;  %v1896_v2 = vadd.f32 %v1890_v44, %v1867_v31  ;;  %v6052_v31 = vld [vmem:[#allocation38_spill] sm:$0xff] }
 0x10a   : > { %v1897_v13 = vadd.f32 %v1891_v6, %v1868_v55  ;;  %v1898_v12 = vadd.f32 %v1892_v9, %v1869_v8  ;;  %v1906_v61 = vperm.slane %v1904_v60, 0  ;;  %v1907_v20 = vperm.slane %v1904_v60, 1  ;;  %v3246_v6 = vld [vmem:[%s5750_s0 + $0x126] ss:$8 sm:$0xf] }
 0x10b   : > { %v1899_v49 = vadd.f32 %v1893_v47, %v1870_v51  ;;  %v1900_v21 = vadd.f32 %v1894_v23, %v1871_v62  ;;  %v1908_v53 = vperm.slane %v1904_v60, 2  ;;  %v1909_v34 = vperm.slane %v1904_v60, 3  ;;  %v6051_v47 = vld [vmem:[#allocation36_spill] sm:$0xff]  ;;  %v3247_v3 = vld [vmem:[%s5750_s0 + $0x126] ss:$8 sm:$0x30] }
 0x10c   : > { %v1910_v45 = vperm.slane %v1904_v60, 4  ;;  %v1911_v29 = vperm.slane %v1904_v60, 5  ;;  %v1918_v54 = vmul.f32 %v1906_v61, %v4965_v10  ;;  %v1919_v37 = vmul.f32 %v1907_v20, %v4970_v35  ;;  %v3244_v62 = vld [vmem:[%s5750_s0 + $0x125] ss:$8 sm:$0xf] }
 0x10d   : > { %v1920_v40 = vmul.f32 %v1908_v53, %v6049_v63  ;;  %v1921_v58 = vmul.f32 %v1909_v34, %v6050_v17  ;;  %v1935_v33 = vperm.slane %v1933_v57, 0  ;;  %v1936_v44 = vperm.slane %v1933_v57, 1  ;;  %v3245_v20 = vld [vmem:[%s5750_s0 + $0x125] ss:$8 sm:$0x30]  ;;  %v6056_v17 = vld [vmem:[#allocation40_spill] sm:$0xff] }
 0x10e   : > { %v1922_v23 = vmul.f32 %v1910_v45, %v6051_v47  ;;  %v1923_v55 = vmul.f32 %v1911_v29, %v6052_v31  ;;  %v1924_v8 = vadd.f32 %v1918_v54, %v1895_v50  ;;  %v1925_v51 = vadd.f32 %v1919_v37, %v1896_v2  ;;  %v6053_v45 = vld [vmem:[#allocation39_spill] sm:$0xff]  ;;  %v6054_v54 = vld [vmem:[#allocation44_spill] sm:$0xff]  ;;  %v6055_v31 = vld [vmem:[#allocation37_spill] sm:$0xff] }
 0x10f   : > { %v1926_v18 = vadd.f32 %v1920_v40, %v1897_v13  ;;  %v1927_v9 = vadd.f32 %v1921_v58, %v1898_v12  ;;  %v1937_v60 = vperm.slane %v1933_v57, 2  ;;  %v1938_v61 = vperm.slane %v1933_v57, 3  ;;  %v6057_v13 = vld [vmem:[#allocation32_spill] sm:$0xff]  ;;  %v6058_v40 = vld [vmem:[#allocation41_spill] sm:$0xff] }
 0x110   : > { %v1928_v53 = vadd.f32 %v1922_v23, %v1899_v49  ;;  %v1929_v34 = vadd.f32 %v1923_v55, %v1900_v21  ;;  %v1939_v50 = vperm.slane %v1933_v57, 4  ;;  %v1940_v2 = vperm.slane %v1933_v57, 5 }
 0x111   : > { %v1947_v29 = vmul.f32 %v1935_v33, %v6053_v45  ;;  %v1948_v37 = vmul.f32 %v1936_v44, %v6054_v54  ;;  %v1949_v47 = vmul.f32 %v1937_v60, %v6055_v31  ;;  %v1950_v63 = vmul.f32 %v1938_v61, %v6056_v17 }
 0x112   : > { %v1951_v12 = vmul.f32 %v1939_v50, %v6057_v13  ;;  %v1952_v58 = vmul.f32 %v1940_v2, %v6058_v40  ;;  %v1962_v35 = vor.u32 %v3245_v20, %v3244_v62  ;;  %v1997_v10 = vor.u32 %v3247_v3, %v3246_v6  ;;  %v3250_v20 = vld [vmem:[%s5750_s0 + $0x150] ss:$8 sm:$0xf] }
 0x113   : > { %v1953_v48 = vadd.f32 %v1947_v29, %v1924_v8  ;;  %v1954_v11 = vadd.f32 %v1948_v37, %v1925_v51  ;;  %v1955_v49 = vadd.f32 %v1949_v47, %v1926_v18  ;;  %v1956_v21 = vadd.f32 %v1950_v63, %v1927_v9  ;;  %v3248_v18 = vld [vmem:[%s5750_s0 + $0x127] ss:$8 sm:$0xf]  ;;  %v3252_v37 = vld [vmem:[%s5750_s0 + $0x151] ss:$8 sm:$0xf] }
 0x114   : > { %v1957_v23 = vadd.f32 %v1951_v12, %v1928_v53  ;;  %v1958_v57 = vadd.f32 %v1952_v58, %v1929_v34  ;;  %v1964_v55 = vperm.slane %v1962_v35, 0  ;;  %v1965_v33 = vperm.slane %v1962_v35, 1  ;;  %v3249_v9 = vld [vmem:[%s5750_s0 + $0x127] ss:$8 sm:$0x30] }
 0x115   : > { %v1966_v45 = vperm.slane %v1962_v35, 2  ;;  %v1967_v44 = vperm.slane %v1962_v35, 3  ;;  %v1968_v54 = vperm.slane %v1962_v35, 4  ;;  %v1969_v60 = vperm.slane %v1962_v35, 5  ;;  %v6062_v34 = vld [vmem:[#allocation33_spill] sm:$0xff] }
 0x116   : > { %v1976_v61 = vmul.f32 %v1964_v55, %v5061_v30  ;;  %v1977_v50 = vmul.f32 %v1965_v33, %v5066_v15  ;;  %v1999_v13 = vperm.slane %v1997_v10, 0  ;;  %v2000_v2 = vperm.slane %v1997_v10, 1  ;;  %v3253_v12 = vld [vmem:[%s5750_s0 + $0x151] ss:$8 sm:$0x30] }
 0x117   : > { %v1978_v6 = vmul.f32 %v1966_v45, %v5075_v27  ;;  %v1979_v8 = vmul.f32 %v1967_v44, %v5080_v1  ;;  %v1980_v63 = vmul.f32 %v1968_v54, %v5085_v16  ;;  %v1981_v47 = vmul.f32 %v1969_v60, %v5096_v0  ;;  %v6063_v45 = vld [vmem:[#allocation42_spill] sm:$0xff]  ;;  %v3257_v33 = vld [vmem:[%s5750_s0 + $0x153] ss:$8 sm:$0x30] }
 0x118   : > { %v5224_v51 = vadd.f32 %v1976_v61, %v1953_v48  ;;  %v5226_v62 = vadd.f32 %v1977_v50, %v1954_v11  ;;  %v2001_v3 = vperm.slane %v1997_v10, 2  ;;  %v2002_v35 = vperm.slane %v1997_v10, 3  ;;  %v3251_v48 = vld [vmem:[%s5750_s0 + $0x150] ss:$8 sm:$0x30] }
 0x119   : > { %v5242_v11 = vadd.f32 %v5108_v36, %v5100_v56  ;;  %v5246_v53 = vadd.f32 %v5111_v52, %v5102_v59  ;;  %v5250_v29 = vadd.f32 %v6063_v45, %v6062_v34  ;;  %v5252_v54 = vadd.f32 %v1978_v6, %v1955_v49  ;;  %v3254_v36 = vld [vmem:[%s5750_s0 + $0x152] ss:$8 sm:$0xf]  ;;  %v3256_v56 = vld [vmem:[%s5750_s0 + $0x153] ss:$8 sm:$0xf] }
 0x11a   : > { %6059 = vst [vmem:[#allocation22_spill] sm:$0xff] %v5224_v51  ;;  %v3255_v52 = vld [vmem:[%s5750_s0 + $0x152] ss:$8 sm:$0x30]  ;;  %v5269_v59 = vadd.f32 %v1979_v8, %v1956_v21  ;;  %v5271_v58 = vadd.f32 %v1980_v63, %v1957_v23  ;;  %v2003_v49 = vperm.slane %v1997_v10, 4  ;;  %v2004_v55 = vperm.slane %v1997_v10, 5 }
 0x11b   : > { %6060 = vst [vmem:[#allocation23_spill] sm:$0xff] %v5226_v62  ;;  %v5276_v44 = vadd.f32 %v1981_v47, %v1958_v57  ;;  %v3258_v23 = vld [vmem:[%s5750_s0 + $0x154] ss:$8 sm:$0xf]  ;;  %v2055_v34 = vor.u32 %v3251_v48, %v3250_v20 }
 0x11c   : > { %6061 = vst [vmem:[#allocation24_spill] sm:$0xff] %v5246_v53  ;;  %v3259_v10 = vld [vmem:[%s5750_s0 + $0x154] ss:$8 sm:$0x30]  ;;  %v6071_v8 = vld [vmem:[#allocation5_spill] sm:$0xff]  ;;  %v6072_v63 = vld [vmem:[#allocation6_spill] sm:$0xff]  ;;  %v5298_v53 = vor.u32 %v3257_v33, %v3256_v56 }
 0x11d   : > { %6064 = vst [vmem:[#allocation25_spill] sm:$0xff] %v5250_v29  ;;  %v2011_v57 = vmul.f32 %v1999_v13, %v6071_v8  ;;  %v2012_v47 = vmul.f32 %v2000_v2, %v6072_v63  ;;  %v6073_v45 = vld [vmem:[#allocation7_spill] sm:$0xff]  ;;  %v6074_v51 = vld [vmem:[#allocation8_spill] sm:$0xff]  ;;  %v6075_v6 = vld [vmem:[#allocation10_spill] sm:$0xff]  ;;  %v2084_v29 = vor.u32 %v3253_v12, %v3252_v37  ;;  %v2059_v12 = vperm.slane %v2055_v34, 2 }
 0x11e   : > { %6065 = vst [vmem:[#allocation37_spill] sm:$0xff] %v5252_v54  ;;  %v2013_v61 = vmul.f32 %v2001_v3, %v6073_v45  ;;  %v2014_v60 = vmul.f32 %v2002_v35, %v6074_v51  ;;  %v2015_v62 = vmul.f32 %v2003_v49, %v6075_v6  ;;  %v6076_v50 = vld [vmem:[#allocation11_spill] sm:$0xff]  ;;  %v2026_v54 = vor.u32 %v3249_v9, %v3248_v18  ;;  %v6077_v49 = vld [vmem:[#allocation9_spill] sm:$0xff] }
 0x11f   : > { %6066 = vst [vmem:[#allocation40_spill] sm:$0xff] %v5271_v58  ;;  %v2016_v21 = vmul.f32 %v2004_v55, %v6076_v50  ;;  %v5300_v58 = vor.u32 %v3259_v10, %v3258_v23  ;;  %v2057_v51 = vperm.slane %v2055_v34, 0  ;;  %v2058_v35 = vperm.slane %v2055_v34, 1  ;;  %v6078_v55 = vld [vmem:[#allocation12_spill] sm:$0xff] }
 0x120   : > { %6067 = vst [vmem:[#allocation41_spill] sm:$0xff] %v5276_v44  ;;  %v5296_v44 = vor.u32 %v3255_v52, %v3254_v36  ;;  %v2028_v13 = vperm.slane %v2026_v54, 0  ;;  %v2029_v8 = vperm.slane %v2026_v54, 1  ;;  %v2030_v2 = vperm.slane %v2026_v54, 2 }
 0x121   : > { %v2031_v63 = vperm.slane %v2026_v54, 3  ;;  %v2032_v3 = vperm.slane %v2026_v54, 4  ;;  %v2033_v45 = vperm.slane %v2026_v54, 5  ;;  %v2060_v36 = vperm.slane %v2055_v34, 3 }
 0x122   : > { %v2040_v6 = vmul.f32 %v2028_v13, %v6077_v49  ;;  %v2041_v18 = vmul.f32 %v2029_v8, %v6078_v55  ;;  %v2042_v9 = vmul.f32 %v2030_v2, %v4759_v41  ;;  %v2061_v10 = vperm.slane %v2055_v34, 4 }
 0x123   : > { %v2043_v20 = vmul.f32 %v2031_v63, %v4766_v26  ;;  %v2044_v48 = vmul.f32 %v2032_v3, %v4771_v4  ;;  %v2045_v37 = vmul.f32 %v2033_v45, %v4792_v46  ;;  %v2062_v13 = vperm.slane %v2055_v34, 5 }
 0x124   : > { %v2046_v52 = vadd.f32 %v2040_v6, %v2011_v57  ;;  %v2047_v56 = vadd.f32 %v2041_v18, %v2012_v47  ;;  %v2048_v33 = vadd.f32 %v2042_v9, %v2013_v61  ;;  %v2069_v8 = vmul.f32 %v2057_v51, %v4801_v24  ;;  %v6079_v51 = vld [vmem:[#allocation13_spill] sm:$0xff]  ;;  %v6080_v6 = vld [vmem:[#allocation14_spill] sm:$0xff]  ;;  %v6081_v18 = vld [vmem:[#allocation15_spill] sm:$0xff] }
 0x125   : > { %v2049_v54 = vadd.f32 %v2043_v20, %v2014_v60  ;;  %v2050_v50 = vadd.f32 %v2044_v48, %v2015_v62  ;;  %v2051_v23 = vadd.f32 %v2045_v37, %v2016_v21  ;;  %v2070_v41 = vmul.f32 %v2058_v35, %v4808_v19 }
 0x126   : > { %v2071_v26 = vmul.f32 %v2059_v12, %v4813_v42  ;;  %v2072_v4 = vmul.f32 %v2060_v36, %v4818_v32  ;;  %v2073_v46 = vmul.f32 %v2061_v10, %v4827_v25  ;;  %v2074_v2 = vmul.f32 %v2062_v13, %v4832_v28  ;;  %v6085_v13 = vld [vmem:[#allocation19_spill] sm:$0xff] }
 0x127   : > { %v2086_v57 = vperm.slane %v2084_v29, 0  ;;  %v2087_v47 = vperm.slane %v2084_v29, 1  ;;  %v2075_v61 = vadd.f32 %v2069_v8, %v2046_v52  ;;  %v2076_v60 = vadd.f32 %v2070_v41, %v2047_v56  ;;  %v6082_v56 = vld [vmem:[#allocation16_spill] sm:$0xff] }
 0x128   : > { %v2077_v62 = vadd.f32 %v2071_v26, %v2048_v33  ;;  %v2078_v21 = vadd.f32 %v2072_v4, %v2049_v54  ;;  %v2079_v63 = vadd.f32 %v2073_v46, %v2050_v50  ;;  %v2080_v34 = vadd.f32 %v2074_v2, %v2051_v23  ;;  %v6083_v54 = vld [vmem:[#allocation17_spill] sm:$0xff]  ;;  %v6084_v23 = vld [vmem:[#allocation18_spill] sm:$0xff]  ;;  %v6086_v41 = vld [vmem:[#allocation20_spill] sm:$0xff] }
 0x129   : > { %v2088_v3 = vperm.slane %v2084_v29, 2  ;;  %v2089_v24 = vperm.slane %v2084_v29, 3  ;;  %v2090_v45 = vperm.slane %v2084_v29, 4  ;;  %v2091_v19 = vperm.slane %v2084_v29, 5  ;;  %v6087_v4 = vld [vmem:[#allocation21_spill] sm:$0xff] }
 0x12a   : > { %v2098_v42 = vmul.f32 %v2086_v57, %v4841_v22  ;;  %v2099_v32 = vmul.f32 %v2087_v47, %v4846_v14  ;;  %v2115_v35 = vperm.slane %v5296_v44, 0  ;;  %v2116_v49 = vperm.slane %v5296_v44, 1 }
 0x12b   : > { %v2100_v25 = vmul.f32 %v2088_v3, %v4855_v39  ;;  %v2101_v28 = vmul.f32 %v2089_v24, %v6079_v51  ;;  %v2102_v55 = vmul.f32 %v2090_v45, %v6080_v6  ;;  %v2103_v9 = vmul.f32 %v2091_v19, %v6081_v18  ;;  %v6089_v6 = vld [vmem:[#allocation27_spill] sm:$0xff] }
 0x12c   : > { %v2104_v20 = vadd.f32 %v2098_v42, %v2075_v61  ;;  %v2105_v48 = vadd.f32 %v2099_v32, %v2076_v60  ;;  %v2117_v22 = vperm.slane %v5296_v44, 2  ;;  %v2118_v14 = vperm.slane %v5296_v44, 3 }
 0x12d   : > { %v2106_v37 = vadd.f32 %v2100_v25, %v2077_v62  ;;  %v2107_v29 = vadd.f32 %v2101_v28, %v2078_v21  ;;  %v2108_v12 = vadd.f32 %v2102_v55, %v2079_v63  ;;  %v2109_v39 = vadd.f32 %v2103_v9, %v2080_v34  ;;  %v3260_v28 = vld [vmem:[%s5750_s0 + $0x155] ss:$8 sm:$0xf] }
 0x12e   : > { %v2119_v36 = vperm.slane %v5296_v44, 4  ;;  %v2120_v52 = vperm.slane %v5296_v44, 5  ;;  %v2127_v33 = vmul.f32 %v2115_v35, %v6082_v56  ;;  %v2128_v50 = vmul.f32 %v2116_v49, %v6083_v54  ;;  %v6088_v35 = vld [vmem:[#allocation26_spill] sm:$0xff]  ;;  %v6093_v54 = vld [vmem:[#allocation31_spill] sm:$0xff] }
 0x12f   : > { %v2129_v10 = vmul.f32 %v2117_v22, %v6084_v23  ;;  %v2130_v8 = vmul.f32 %v2118_v14, %v6085_v13  ;;  %v2144_v2 = vperm.slane %v5298_v53, 0  ;;  %v2145_v57 = vperm.slane %v5298_v53, 1  ;;  %v6092_v56 = vld [vmem:[#allocation30_spill] sm:$0xff]  ;;  %v6094_v23 = vld [vmem:[#allocation36_spill] sm:$0xff] }
 0x130   : > { %v2131_v26 = vmul.f32 %v2119_v36, %v6086_v41  ;;  %v2132_v46 = vmul.f32 %v2120_v52, %v6087_v4  ;;  %v2133_v47 = vadd.f32 %v2127_v33, %v2104_v20  ;;  %v2134_v61 = vadd.f32 %v2128_v50, %v2105_v48  ;;  %v3263_v48 = vld [vmem:[%s5750_s0 + $0x156] ss:$8 sm:$0x30]  ;;  %v6091_v36 = vld [vmem:[#allocation29_spill] sm:$0xff]  ;;  %v6095_v13 = vld [vmem:[#allocation38_spill] sm:$0xff] }
 0x131   : > { %v2135_v60 = vadd.f32 %v2129_v10, %v2106_v37  ;;  %v2136_v44 = vadd.f32 %v2130_v8, %v2107_v29  ;;  %v2146_v63 = vperm.slane %v5298_v53, 2  ;;  %v2147_v34 = vperm.slane %v5298_v53, 3 }
 0x132   : > { %v2137_v62 = vadd.f32 %v2131_v26, %v2108_v12  ;;  %v2138_v21 = vadd.f32 %v2132_v46, %v2109_v39  ;;  %v2148_v3 = vperm.slane %v5298_v53, 4  ;;  %v2149_v24 = vperm.slane %v5298_v53, 5  ;;  %v6090_v12 = vld [vmem:[#allocation28_spill] sm:$0xff] }
 0x133   : > { %v2156_v45 = vmul.f32 %v2144_v2, %v6043_v38  ;;  %v2157_v19 = vmul.f32 %v2145_v57, %v6044_v7  ;;  %v2158_v42 = vmul.f32 %v2146_v63, %v6045_v43  ;;  %v2159_v32 = vmul.f32 %v2147_v34, %v6046_v5  ;;  %v3261_v43 = vld [vmem:[%s5750_s0 + $0x155] ss:$8 sm:$0x30]  ;;  %v3262_v7 = vld [vmem:[%s5750_s0 + $0x156] ss:$8 sm:$0xf] }
 0x134   : > { %v2173_v25 = vperm.slane %v5300_v58, 0  ;;  %v2174_v51 = vperm.slane %v5300_v58, 1  ;;  %v2160_v49 = vmul.f32 %v2148_v3, %v6088_v35  ;;  %v2161_v53 = vmul.f32 %v2149_v24, %v6089_v6  ;;  %v6096_v34 = vld [vmem:[#allocation39_spill] sm:$0xff]  ;;  %v6097_v24 = vld [vmem:[#allocation44_spill] sm:$0xff] }
 0x135   : > { %v2162_v55 = vadd.f32 %v2156_v45, %v2133_v47  ;;  %v2163_v38 = vadd.f32 %v2157_v19, %v2134_v61  ;;  %v2164_v5 = vadd.f32 %v2158_v42, %v2135_v60  ;;  %v2165_v18 = vadd.f32 %v2159_v32, %v2136_v44 }
 0x136   : > { %v2175_v9 = vperm.slane %v5300_v58, 2  ;;  %v2176_v20 = vperm.slane %v5300_v58, 3  ;;  %v2166_v37 = vadd.f32 %v2160_v49, %v2137_v62  ;;  %v2167_v29 = vadd.f32 %v2161_v53, %v2138_v21  ;;  %v3264_v49 = vld [vmem:[%s5750_s0 + $0x157] ss:$8 sm:$0xf] }
 0x137   : > { %v2177_v22 = vperm.slane %v5300_v58, 4  ;;  %v2178_v14 = vperm.slane %v5300_v58, 5  ;;  %v2185_v39 = vmul.f32 %v2173_v25, %v6090_v12  ;;  %v2186_v52 = vmul.f32 %v2174_v51, %v6091_v36  ;;  %v6098_v51 = vld [vmem:[#allocation32_spill] sm:$0xff] }
 0x138   : > { %v2187_v33 = vmul.f32 %v2175_v9, %v6092_v56  ;;  %v2188_v50 = vmul.f32 %v2176_v20, %v6093_v54  ;;  %v2200_v41 = vor.u32 %v3261_v43, %v3260_v28  ;;  %v2229_v26 = vor.u32 %v3263_v48, %v3262_v7  ;;  %v3265_v43 = vld [vmem:[%s5750_s0 + $0x157] ss:$8 sm:$0x30]  ;;  %v3267_v12 = vld [vmem:[%s5750_s0 + $0x180] ss:$8 sm:$0x30] }
 0x139   : > { %v2189_v10 = vmul.f32 %v2177_v22, %v6094_v23  ;;  %v2190_v8 = vmul.f32 %v2178_v14, %v6095_v13  ;;  %v2191_v4 = vadd.f32 %v2185_v39, %v2162_v55  ;;  %v2192_v46 = vadd.f32 %v2186_v52, %v2163_v38  ;;  %v3266_v14 = vld [vmem:[%s5750_s0 + $0x180] ss:$8 sm:$0xf] }
 0x13a   : > { %v2193_v2 = vadd.f32 %v2187_v33, %v2164_v5  ;;  %v2194_v57 = vadd.f32 %v2188_v50, %v2165_v18  ;;  %v2202_v61 = vperm.slane %v2200_v41, 0  ;;  %v2203_v60 = vperm.slane %v2200_v41, 1  ;;  %v6099_v52 = vld [vmem:[#allocation40_spill] sm:$0xff]  ;;  %v6101_v50 = vld [vmem:[#allocation41_spill] sm:$0xff] }
 0x13b   : > { %v2195_v47 = vadd.f32 %v2189_v10, %v2166_v37  ;;  %v2196_v58 = vadd.f32 %v2190_v8, %v2167_v29  ;;  %v2204_v44 = vperm.slane %v2200_v41, 2  ;;  %v2205_v62 = vperm.slane %v2200_v41, 3  ;;  %v6100_v56 = vld [vmem:[#allocation24_spill] sm:$0xff]  ;;  %v6102_v23 = vld [vmem:[#allocation25_spill] sm:$0xff] }
 0x13c   : > { %v2206_v21 = vperm.slane %v2200_v41, 4  ;;  %v2207_v63 = vperm.slane %v2200_v41, 5  ;;  %v2214_v3 = vmul.f32 %v2202_v61, %v6096_v34  ;;  %v2215_v45 = vmul.f32 %v2203_v60, %v6097_v24  ;;  %v6107_v61 = vld [vmem:[#allocation23_spill] sm:$0xff] }
 0x13d   : > { %v2231_v19 = vperm.slane %v2229_v26, 0  ;;  %v2232_v42 = vperm.slane %v2229_v26, 1  ;;  %v2216_v32 = vmul.f32 %v2204_v44, %v6055_v31  ;;  %v2217_v25 = vmul.f32 %v2205_v62, %v6056_v17  ;;  %v6109_v62 = vld [vmem:[#allocation35_spill] sm:$0xff] }
 0x13e   : > { %v2218_v28 = vmul.f32 %v2206_v21, %v6098_v51  ;;  %v2219_v35 = vmul.f32 %v2207_v63, %v6058_v40  ;;  %v2220_v6 = vadd.f32 %v2214_v3, %v2191_v4  ;;  %v2221_v53 = vadd.f32 %v2215_v45, %v2192_v46  ;;  %v6110_v21 = vld [vmem:[#allocation37_spill] sm:$0xff]  ;;  %v3592_v51 = vld [vmem:[%s5751_s1 + $0x10] sm:$0xff] }
 0x13f   : > { %v2233_v55 = vperm.slane %v2229_v26, 2  ;;  %v2234_v38 = vperm.slane %v2229_v26, 3  ;;  %v1991_v31 = vmax.f32 %v5242_v11, %v5269_v59  ;;  %v2222_v17 = vadd.f32 %v2216_v32, %v2193_v2  ;;  %v3269_v45 = vld [vmem:[%s5750_s0 + $0x181] ss:$8 sm:$0x30]  ;;  %v3637_v11 = vld [vmem:[%s5751_s1 + $0x178] sm:$0xff] }
 0x140   : > { %v2223_v7 = vadd.f32 %v2217_v25, %v2194_v57  ;;  %v2224_v5 = vadd.f32 %v2218_v28, %v2195_v47  ;;  %v2235_v18 = vperm.slane %v2229_v26, 4  ;;  %v2236_v40 = vperm.slane %v2229_v26, 5  ;;  %v3268_v47 = vld [vmem:[%s5750_s0 + $0x181] ss:$8 sm:$0xf] }
 0x141   : > { %v2243_v9 = vmul.f32 %v2231_v19, %v5061_v30  ;;  %v2244_v20 = vmul.f32 %v2232_v42, %v5066_v15  ;;  %v2225_v48 = vadd.f32 %v2219_v35, %v2196_v58  ;;  %v2245_v37 = vmul.f32 %v2233_v55, %v5075_v27  ;;  %v6106_v58 = vld [vmem:[#allocation43_spill] sm:$0xff]  ;;  %v3590_v19 = vld [vmem:[%s5751_s1] sm:$0xff]  ;;  %v3591_v32 = vld [vmem:[%s5751_s1 + $0x8] sm:$0xff] }
 0x142   : > { %v2246_v29 = vmul.f32 %v2234_v38, %v5080_v1  ;;  %v2264_v22 = vor.u32 %v3265_v43, %v3264_v49  ;;  %v2247_v39 = vmul.f32 %v2235_v18, %v5085_v16  ;;  %v2248_v30 = vmul.f32 %v2236_v40, %v5096_v0  ;;  %v6103_v16 = vld [vmem:[#allocation34_spill] sm:$0xff]  ;;  %v3593_v35 = vld [vmem:[%s5751_s1 + $0x18] sm:$0xff]  ;;  %v3594_v55 = vld [vmem:[%s5751_s1 + $0x20] sm:$0xff] }
 0x143   : > { %v2249_v36 = vadd.f32 %v2243_v9, %v2220_v6  ;;  %v2250_v15 = vadd.f32 %v2244_v20, %v2221_v53  ;;  %v1992_v27 = vmax.f32 %v6100_v56, %v6099_v52  ;;  %v2251_v33 = vadd.f32 %v2245_v37, %v2222_v17  ;;  %v6104_v0 = vld [vmem:[#allocation22_spill] sm:$0xff]  ;;  %v3271_v53 = vld [vmem:[%s5750_s0 + $0x182] ss:$8 sm:$0x30] }
 0x144   : > { %v2266_v1 = vperm.slane %v2264_v22, 0  ;;  %v2267_v54 = vperm.slane %v2264_v22, 1  ;;  %v1993_v10 = vmax.f32 %v6102_v23, %v6101_v50  ;;  %v5398_v13 = vadd.f32 %v2246_v29, %v2223_v7  ;;  %v3270_v6 = vld [vmem:[%s5750_s0 + $0x182] ss:$8 sm:$0xf] }
 0x145   : > { %v5400_v8 = vadd.f32 %v2247_v39, %v2224_v5  ;;  %v2293_v41 = vor.u32 %v3267_v12, %v3266_v14  ;;  %v5402_v26 = vadd.f32 %v2248_v30, %v2225_v48  ;;  %v6105_v4 = vmax.f32 %v6103_v16, %v6104_v0  ;;  %v3595_v43 = vld [vmem:[%s5751_s1 + $0x28] sm:$0xff]  ;;  %v3596_v48 = vld [vmem:[%s5751_s1 + $0x30] sm:$0xff]  ;;  %v3597_v29 = vld [vmem:[%s5751_s1 + $0x38] sm:$0xff] }
 0x146   : > { %v2268_v2 = vperm.slane %v2264_v22, 2  ;;  %v2269_v57 = vperm.slane %v2264_v22, 3  ;;  %v6108_v60 = vmax.f32 %v6106_v58, %v6107_v61  ;;  %v6111_v63 = vmax.f32 %v6109_v62, %v6110_v21  ;;  %v3598_v39 = vld [vmem:[%s5751_s1 + $0x40] sm:$0xff] }
 0x147   : > { %v5407_v46 = vmax.f32 %v6105_v4, %v2249_v36  ;;  %v2270_v3 = vperm.slane %v2264_v22, 4  ;;  %v2271_v24 = vperm.slane %v2264_v22, 5  ;;  %v2278_v42 = vmul.f32 %v3590_v19, %v2266_v1  ;;  %v3599_v36 = vld [vmem:[%s5751_s1 + $0x48] sm:$0xff]  ;;  %v3642_v52 = vld [vmem:[%s5751_s1 + $0x1a0] sm:$0xff] }
 0x148   : > { %v5415_v44 = vmax.f32 %v6108_v60, %v2250_v15  ;;  %v5420_v34 = vmax.f32 %v6111_v63, %v2251_v33  ;;  %v2279_v25 = vmul.f32 %v3591_v32, %v2267_v54  ;;  %v2280_v28 = vmul.f32 %v3592_v51, %v2268_v2  ;;  %v3600_v33 = vld [vmem:[%s5751_s1 + $0x50] sm:$0xff]  ;;  %v3601_v54 = vld [vmem:[%s5751_s1 + $0x58] sm:$0xff] }
 0x149   : > { %v2281_v49 = vmul.f32 %v3593_v35, %v2269_v57  ;;  %v2282_v38 = vmul.f32 %v3594_v55, %v2270_v3  ;;  %v2283_v17 = vmul.f32 %v3595_v43, %v2271_v24  ;;  %v2295_v7 = vperm.slane %v2293_v41, 0  ;;  %v3602_v3 = vld [vmem:[%s5751_s1 + $0x60] sm:$0xff]  ;;  %v3604_v51 = vld [vmem:[%s5751_s1 + $0x70] sm:$0xff]  ;;  %v3605_v35 = vld [vmem:[%s5751_s1 + $0x78] sm:$0xff] }
 0x14a   : > { %v2296_v5 = vperm.slane %v2293_v41, 1  ;;  %v2297_v18 = vperm.slane %v2293_v41, 2  ;;  %v2298_v40 = vperm.slane %v2293_v41, 3  ;;  %v2299_v9 = vperm.slane %v2293_v41, 4  ;;  %v3607_v55 = vld [vmem:[%s5751_s1 + $0x88] sm:$0xff] }
 0x14b   : > { %v2300_v20 = vperm.slane %v2293_v41, 5  ;;  %v2307_v37 = vmul.f32 %v3596_v48, %v2295_v7  ;;  %v2322_v14 = vor.u32 %v3269_v45, %v3268_v47  ;;  %v5455_v12 = vor.u32 %v3271_v53, %v3270_v6  ;;  %v3603_v45 = vld [vmem:[%s5751_s1 + $0x68] sm:$0xff]  ;;  %v3606_v6 = vld [vmem:[%s5751_s1 + $0x80] sm:$0xff] }
 0x14c   : > { %v2308_v22 = vmul.f32 %v3597_v29, %v2296_v5  ;;  %v2309_v30 = vmul.f32 %v3598_v39, %v2297_v18  ;;  %v2310_v15 = vmul.f32 %v3599_v36, %v2298_v40  ;;  %v2311_v1 = vmul.f32 %v3600_v33, %v2299_v9  ;;  %v3273_v43 = vld [vmem:[%s5750_s0 + $0x183] ss:$8 sm:$0x30]  ;;  %v3275_v9 = vld [vmem:[%s5750_s0 + $0x184] ss:$8 sm:$0x30] }
 0x14d   : > { %v2312_v41 = vmul.f32 %v3601_v54, %v2300_v20  ;;  %v2313_v16 = vadd.f32 %v2307_v37, %v2278_v42  ;;  %v2324_v4 = vperm.slane %v2322_v14, 0  ;;  %v2325_v2 = vperm.slane %v2322_v14, 1  ;;  %v3608_v39 = vld [vmem:[%s5751_s1 + $0x90] sm:$0xff]  ;;  %v3609_v36 = vld [vmem:[%s5751_s1 + $0x98] sm:$0xff]  ;;  %v3610_v33 = vld [vmem:[%s5751_s1 + $0xa0] sm:$0xff] }
 0x14e   : > { %v2314_v0 = vadd.f32 %v2308_v22, %v2279_v25  ;;  %v2315_v57 = vadd.f32 %v2309_v30, %v2280_v28  ;;  %v2316_v47 = vadd.f32 %v2310_v15, %v2281_v49  ;;  %v2317_v58 = vadd.f32 %v2311_v1, %v2282_v38  ;;  %v3272_v25 = vld [vmem:[%s5750_s0 + $0x183] ss:$8 sm:$0xf] }
 0x14f   : > { %v2318_v61 = vadd.f32 %v2312_v41, %v2283_v17  ;;  %v2326_v60 = vperm.slane %v2322_v14, 2  ;;  %v2327_v62 = vperm.slane %v2322_v14, 3  ;;  %v2328_v21 = vperm.slane %v2322_v14, 4  ;;  %v3274_v17 = vld [vmem:[%s5750_s0 + $0x184] ss:$8 sm:$0xf] }
 0x150   : > { %v2329_v63 = vperm.slane %v2322_v14, 5  ;;  %v2336_v24 = vmul.f32 %v3602_v3, %v2324_v4  ;;  %v2337_v19 = vmul.f32 %v3603_v45, %v2325_v2  ;;  %v2353_v42 = vperm.slane %v5455_v12, 0  ;;  %v3611_v54 = vld [vmem:[%s5751_s1 + $0xa8] sm:$0xff]  ;;  %v3613_v2 = vld [vmem:[%s5751_s1 + $0xb8] sm:$0xff] }
 0x151   : > { %v2354_v32 = vperm.slane %v5455_v12, 1  ;;  %v2338_v28 = vmul.f32 %v3604_v51, %v2326_v60  ;;  %v2339_v49 = vmul.f32 %v3605_v35, %v2327_v62  ;;  %v2340_v53 = vmul.f32 %v3606_v6, %v2328_v21  ;;  %v3615_v51 = vld [vmem:[%s5751_s1 + $0xc8] sm:$0xff]  ;;  %v3616_v35 = vld [vmem:[%s5751_s1 + $0xd0] sm:$0xff]  ;;  %v3617_v6 = vld [vmem:[%s5751_s1 + $0xd8] sm:$0xff] }
 0x152   : > { %v2341_v38 = vmul.f32 %v3607_v55, %v2329_v63  ;;  %v2342_v7 = vadd.f32 %v2336_v24, %v2313_v16  ;;  %v2343_v5 = vadd.f32 %v2337_v19, %v2314_v0  ;;  %v2355_v18 = vperm.slane %v5455_v12, 2  ;;  %v3612_v0 = vld [vmem:[%s5751_s1 + $0xb0] sm:$0xff] }
 0x153   : > { %v2356_v40 = vperm.slane %v5455_v12, 3  ;;  %v2344_v20 = vadd.f32 %v2338_v28, %v2315_v57  ;;  %v2345_v48 = vadd.f32 %v2339_v49, %v2316_v47  ;;  %v2346_v37 = vadd.f32 %v2340_v53, %v2317_v58 }
 0x154   : > { %v2347_v29 = vadd.f32 %v2341_v38, %v2318_v61  ;;  %v2357_v22 = vperm.slane %v5455_v12, 4  ;;  %v2358_v14 = vperm.slane %v5455_v12, 5  ;;  %v2365_v30 = vmul.f32 %v3608_v39, %v2353_v42  ;;  %v3279_v39 = vld [vmem:[%s5750_s0 + $0x186] ss:$8 sm:$0x30] }
 0x155   : > { %v2366_v15 = vmul.f32 %v3609_v36, %v2354_v32  ;;  %v2367_v1 = vmul.f32 %v3610_v33, %v2355_v18  ;;  %v2368_v12 = vmul.f32 %v3611_v54, %v2356_v40  ;;  %v2380_v41 = vor.u32 %v3273_v43, %v3272_v25  ;;  %v3614_v32 = vld [vmem:[%s5751_s1 + $0xc0] sm:$0xff] }
 0x156   : > { %v2409_v16 = vor.u32 %v3275_v9, %v3274_v17  ;;  %v2369_v4 = vmul.f32 %v3612_v0, %v2357_v22  ;;  %v2370_v57 = vmul.f32 %v3613_v2, %v2358_v14  ;;  %v2371_v47 = vadd.f32 %v2365_v30, %v2342_v7  ;;  %v3276_v43 = vld [vmem:[%s5750_s0 + $0x185] ss:$8 sm:$0xf] }
 0x157   : > { %v2372_v58 = vadd.f32 %v2366_v15, %v2343_v5  ;;  %v2373_v61 = vadd.f32 %v2367_v1, %v2344_v20  ;;  %v2374_v60 = vadd.f32 %v2368_v12, %v2345_v48  ;;  %v2382_v62 = vperm.slane %v2380_v41, 0  ;;  %v3618_v17 = vld [vmem:[%s5751_s1 + $0xe0] sm:$0xff]  ;;  %v3619_v5 = vld [vmem:[%s5751_s1 + $0xe8] sm:$0xff]  ;;  %v3620_v1 = vld [vmem:[%s5751_s1 + $0xf0] sm:$0xff] }
 0x158   : > { %v2383_v21 = vperm.slane %v2380_v41, 1  ;;  %v2375_v63 = vadd.f32 %v2369_v4, %v2346_v37  ;;  %v2376_v3 = vadd.f32 %v2370_v57, %v2347_v29  ;;  %v2384_v24 = vperm.slane %v2380_v41, 2  ;;  %v3277_v20 = vld [vmem:[%s5750_s0 + $0x185] ss:$8 sm:$0x30]  ;;  %v3621_v12 = vld [vmem:[%s5751_s1 + $0xf8] sm:$0xff] }
 0x159   : > { %v2385_v45 = vperm.slane %v2380_v41, 3  ;;  %v2386_v19 = vperm.slane %v2380_v41, 4  ;;  %v2387_v42 = vperm.slane %v2380_v41, 5  ;;  %v2394_v25 = vmul.f32 %v3614_v32, %v2382_v62  ;;  %v3278_v48 = vld [vmem:[%s5750_s0 + $0x186] ss:$8 sm:$0xf] }
 0x15a   : > { %v2395_v28 = vmul.f32 %v3615_v51, %v2383_v21  ;;  %v2396_v49 = vmul.f32 %v3616_v35, %v2384_v24  ;;  %v2411_v55 = vperm.slane %v2409_v16, 0  ;;  %v2412_v38 = vperm.slane %v2409_v16, 1  ;;  %v3622_v0 = vld [vmem:[%s5751_s1 + $0x100] sm:$0xff]  ;;  %v3623_v2 = vld [vmem:[%s5751_s1 + $0x108] sm:$0xff]  ;;  %v3624_v57 = vld [vmem:[%s5751_s1 + $0x110] sm:$0xff] }
 0x15b   : > { %v2397_v53 = vmul.f32 %v3617_v6, %v2385_v45  ;;  %v2398_v7 = vmul.f32 %v3618_v17, %v2386_v19  ;;  %v2399_v18 = vmul.f32 %v3619_v5, %v2387_v42  ;;  %v2400_v40 = vadd.f32 %v2394_v25, %v2371_v47  ;;  %v3628_v17 = vld [vmem:[%s5751_s1 + $0x130] sm:$0xff]  ;;  %v3629_v5 = vld [vmem:[%s5751_s1 + $0x138] sm:$0xff] }
 0x15c   : > { %v2401_v9 = vadd.f32 %v2395_v28, %v2372_v58  ;;  %v2402_v37 = vadd.f32 %v2396_v49, %v2373_v61  ;;  %v2413_v22 = vperm.slane %v2409_v16, 2  ;;  %v2414_v14 = vperm.slane %v2409_v16, 3  ;;  %v3625_v58 = vld [vmem:[%s5751_s1 + $0x118] sm:$0xff]  ;;  %v3626_v49 = vld [vmem:[%s5751_s1 + $0x120] sm:$0xff] }
 0x15d   : > { %v2403_v29 = vadd.f32 %v2397_v53, %v2374_v60  ;;  %v2404_v30 = vadd.f32 %v2398_v7, %v2375_v63  ;;  %v2405_v36 = vadd.f32 %v2399_v18, %v2376_v3  ;;  %v2415_v15 = vperm.slane %v2409_v16, 4  ;;  %v3627_v53 = vld [vmem:[%s5751_s1 + $0x128] sm:$0xff] }
 0x15e   : > { %v2416_v33 = vperm.slane %v2409_v16, 5  ;;  %v2423_v54 = vmul.f32 %v3620_v1, %v2411_v55  ;;  %v2424_v41 = vmul.f32 %v3621_v12, %v2412_v38  ;;  %v2425_v4 = vmul.f32 %v3622_v0, %v2413_v22 }
 0x15f   : > { %v2426_v16 = vmul.f32 %v3623_v2, %v2414_v14  ;;  %v2427_v47 = vmul.f32 %v3624_v57, %v2415_v15  ;;  %v2438_v60 = vor.u32 %v3277_v20, %v3276_v43  ;;  %v2467_v62 = vor.u32 %v3279_v39, %v3278_v48  ;;  %v3631_v20 = vld [vmem:[%s5751_s1 + $0x148] sm:$0xff]  ;;  %v3634_v57 = vld [vmem:[%s5751_s1 + $0x160] sm:$0xff] }
 0x160   : > { %v2428_v61 = vmul.f32 %v3625_v58, %v2416_v33  ;;  %v2429_v21 = vadd.f32 %v2423_v54, %v2400_v40  ;;  %v2430_v63 = vadd.f32 %v2424_v41, %v2401_v9  ;;  %v2431_v3 = vadd.f32 %v2425_v4, %v2402_v37  ;;  %v3630_v40 = vld [vmem:[%s5751_s1 + $0x140] sm:$0xff]  ;;  %v3632_v41 = vld [vmem:[%s5751_s1 + $0x150] sm:$0xff]  ;;  %v3633_v4 = vld [vmem:[%s5751_s1 + $0x158] sm:$0xff] }
 0x161   : > { %v2432_v24 = vadd.f32 %v2426_v16, %v2403_v29  ;;  %v2433_v45 = vadd.f32 %v2427_v47, %v2404_v30  ;;  %v2440_v42 = vperm.slane %v2438_v60, 0  ;;  %v2441_v32 = vperm.slane %v2438_v60, 1  ;;  %v3280_v37 = vld [vmem:[%s5750_s0 + $0x187] ss:$8 sm:$0xf] }
 0x162   : > { %v2434_v19 = vadd.f32 %v2428_v61, %v2405_v36  ;;  %v2442_v25 = vperm.slane %v2438_v60, 2  ;;  %v2443_v51 = vperm.slane %v2438_v60, 3  ;;  %v2444_v28 = vperm.slane %v2438_v60, 4  ;;  %v3281_v30 = vld [vmem:[%s5750_s0 + $0x187] ss:$8 sm:$0x30] }
 0x163   : > { %v2445_v35 = vperm.slane %v2438_v60, 5  ;;  %v2452_v6 = vmul.f32 %v3626_v49, %v2440_v42  ;;  %v2453_v55 = vmul.f32 %v3627_v53, %v2441_v32  ;;  %v2469_v38 = vperm.slane %v2467_v62, 0  ;;  %v3635_v58 = vld [vmem:[%s5751_s1 + $0x168] sm:$0xff] }
 0x164   : > { %v2470_v43 = vperm.slane %v2467_v62, 1  ;;  %v2454_v7 = vmul.f32 %v3628_v17, %v2442_v25  ;;  %v2455_v18 = vmul.f32 %v3629_v5, %v2443_v51  ;;  %v2456_v9 = vmul.f32 %v3630_v40, %v2444_v28 }
 0x165   : > { %v2457_v48 = vmul.f32 %v3631_v20, %v2445_v35  ;;  %v2458_v29 = vadd.f32 %v2452_v6, %v2429_v21  ;;  %v2459_v22 = vadd.f32 %v2453_v55, %v2430_v63  ;;  %v2471_v14 = vperm.slane %v2467_v62, 2  ;;  %v3638_v35 = vld [vmem:[%s5751_s1 + $0x180] sm:$0xff]  ;;  %v3639_v6 = vld [vmem:[%s5751_s1 + $0x188] sm:$0xff] }
 0x166   : > { %v2472_v39 = vperm.slane %v2467_v62, 3  ;;  %v2460_v36 = vadd.f32 %v2454_v7, %v2431_v3  ;;  %v2461_v15 = vadd.f32 %v2455_v18, %v2432_v24  ;;  %v2462_v33 = vadd.f32 %v2456_v9, %v2433_v45  ;;  %v3641_v7 = vld [vmem:[%s5751_s1 + $0x198] sm:$0xff] }
 0x167   : > { %v2463_v1 = vadd.f32 %v2457_v48, %v2434_v19  ;;  %v2473_v54 = vperm.slane %v2467_v62, 4  ;;  %v2474_v12 = vperm.slane %v2467_v62, 5  ;;  %v2481_v0 = vmul.f32 %v3632_v41, %v2469_v38  ;;  %v3636_v62 = vld [vmem:[%s5751_s1 + $0x170] sm:$0xff] }
 0x168   : > { %v2482_v2 = vmul.f32 %v3633_v4, %v2470_v43  ;;  %v2258_v16 = vmax.f32 %v1991_v31, %v5398_v13  ;;  %v2483_v47 = vmul.f32 %v3634_v57, %v2471_v14  ;;  %v2484_v61 = vmul.f32 %v3635_v58, %v2472_v39  ;;  %v3640_v43 = vld [vmem:[%s5751_s1 + $0x190] sm:$0xff]  ;;  %v3644_v14 = vld [vmem:[%s5752_s2] sm:$0xff] }
 0x169   : > { %v2496_v60 = vor.u32 %v3281_v30, %v3280_v37  ;;  %v2485_v21 = vmul.f32 %v3636_v62, %v2473_v54  ;;  %v2486_v59 = vmul.f32 %v3637_v11, %v2474_v12  ;;  %v2487_v31 = vadd.f32 %v2481_v0, %v2458_v29  ;;  %v3645_v30 = vld [vmem:[%s5752_s2 + $0x8] sm:$0xff] }
 0x16a   : > { %v2488_v13 = vadd.f32 %v2482_v2, %v2459_v22  ;;  %v2489_v63 = vadd.f32 %v2483_v47, %v2460_v36  ;;  %v2490_v3 = vadd.f32 %v2484_v61, %v2461_v15  ;;  %v2259_v55 = vmax.f32 %v1992_v27, %v5400_v8  ;;  %v3643_v27 = vld [vmem:[%s5751_s1 + $0x1a8] sm:$0xff] }
 0x16b   : > { %v2498_v24 = vperm.slane %v2496_v60, 0  ;;  %v2499_v45 = vperm.slane %v2496_v60, 1  ;;  %v2491_v19 = vadd.f32 %v2485_v21, %v2462_v33  ;;  %v2492_v42 = vadd.f32 %v2486_v59, %v2463_v1  ;;  %v3648_v33 = vld [vmem:[%s5752_s2 + $0x20] sm:$0xff]  ;;  %v3649_v54 = vld [vmem:[%s5752_s2 + $0x28] sm:$0xff] }
 0x16c   : > { %v2500_v32 = vperm.slane %v2496_v60, 2  ;;  %v2501_v25 = vperm.slane %v2496_v60, 3  ;;  %v2502_v51 = vperm.slane %v2496_v60, 4  ;;  %v2503_v28 = vperm.slane %v2496_v60, 5 }
 0x16d   : > { %v2510_v49 = vmul.f32 %v3638_v35, %v2498_v24  ;;  %v2511_v53 = vmul.f32 %v3639_v6, %v2499_v45  ;;  %v2260_v38 = vmax.f32 %v1993_v10, %v5402_v26 }
 0x16e   : > { %v2512_v17 = vmul.f32 %v3640_v43, %v2500_v32  ;;  %v2513_v5 = vmul.f32 %v3641_v7, %v2501_v25  ;;  %v2514_v56 = vmul.f32 %v3642_v52, %v2502_v51  ;;  %v2515_v50 = vmul.f32 %v3643_v27, %v2503_v28 }
 0x16f   : > { %v2516_v23 = vadd.f32 %v2510_v49, %v2487_v31  ;;  %v2517_v10 = vadd.f32 %v2511_v53, %v2488_v13 }
 0x170   : > { %v2518_v8 = vadd.f32 %v2512_v17, %v2489_v63  ;;  %v2519_v26 = vadd.f32 %v2513_v5, %v2490_v3  ;;  %v2520_v18 = vadd.f32 %v2514_v56, %v2491_v19  ;;  %v2521_v40 = vadd.f32 %v2515_v50, %v2492_v42 }
 0x171   : > { %v2522_v9 = vmax.f32 %v5407_v46, %v2516_v23  ;;  %v2523_v20 = vmax.f32 %v5415_v44, %v2517_v10  ;;  %v3646_v46 = vld [vmem:[%s5752_s2 + $0x10] sm:$0xff] }
 0x172   : > { %v2524_v48 = vmax.f32 %v5420_v34, %v2518_v8  ;;  %v2525_v37 = vmax.f32 %v2258_v16, %v2519_v26  ;;  %v2526_v29 = vmax.f32 %v2259_v55, %v2520_v18  ;;  %v2527_v22 = vmax.f32 %v2260_v38, %v2521_v40  ;;  %v3647_v34 = vld [vmem:[%s5752_s2 + $0x18] sm:$0xff] }
 0x173   : > { %v2528_v39 = vadd.f32 %v3644_v14, %v2522_v9  ;;  %v2529_v36 = vadd.f32 %v3645_v30, %v2523_v20 }
 0x174   : > { %v2530_v44 = vadd.f32 %v3646_v46, %v2524_v48  ;;  %v2531_v15 = vadd.f32 %v3647_v34, %v2525_v37  ;;  %v2532_v1 = vadd.f32 %v3648_v33, %v2526_v29  ;;  %v2533_v12 = vadd.f32 %v3649_v54, %v2527_v22 }
 0x175   : > { %v2534_v41 = vmax.f32 %v2528_v39, 0.0  ;;  %v2535_v0 = vmax.f32 %v2529_v36, 0.0 }
 0x176   : > { %v2536_v4 = vmax.f32 %v2530_v44, 0.0  ;;  %v2537_v2 = vmax.f32 %v2531_v15, 0.0  ;;  %v2538_v16 = vmax.f32 %v2532_v1, 0.0  ;;  %v2539_v57 = vmax.f32 %v2533_v12, 0.0 }
 0x177   : > { %2540 = vst [vmem:[#allocation2 + $0x30] sm:$0xff] %v2534_v41 }
 0x178   : > { %2541 = vst [vmem:[#allocation2 + $0x38] sm:$0xff] %v2535_v0 }
 0x179   : > { %2542 = vst [vmem:[#allocation2 + $0x40] sm:$0xff] %v2536_v4 }
 0x17a   : > { %2543 = vst [vmem:[#allocation2 + $0x48] sm:$0xff] %v2537_v2 }
 0x17b   : > { %2544 = vst [vmem:[#allocation2 + $0x50] sm:$0xff] %v2538_v16 }
 0x17c   : > { %2545 = vst [vmem:[#allocation2 + $0x58] sm:$0xff] %v2539_v57 }
 0x17d PF: > { %v3486_v47 = vld [vmem:[%s3719_s8 + $0x38] sm:$0xff]  ;;  %v3485_v61 = vld [vmem:[%s3719_s8 + $0x30] sm:$0xff]  ;;  %s2546_s18 = sshra.s32 %s3711_s27, 3  ;;  %s2557_s19 = sadd.s32 8, %s3711_s27  ;;  %v3484_v31 = vld [vmem:[%s3719_s8 + $0x28] sm:$0xff]  ;;  %vm2595_vm0 = vcmask 1040384  }
 0x17e   : > { %v3494_v58 = vld [vmem:[%s3719_s8 + $0x78] sm:$0xff]  ;;  %2993 = vmatpush.bf16.msra.mxu0 %v3486_v47  ;;  %v3493_v60 = vld [vmem:[%s3719_s8 + $0x70] sm:$0xff]  ;;  %s2558_s20 = sshra.s32 %s2557_s19, 3  ;;  %s3282_s21 = smul.u32 48, %s2546_s18  ;;  %v3492_v13 = vld [vmem:[%s3719_s8 + $0x68] sm:$0xff] }
 0x17f   : > { %3006 = vmatpush.bf16.msra.mxu1 %v3494_v58  ;;  %v3502_v62 = vld [vmem:[%s3719_s8 + $0xb8] sm:$0xff]  ;;  %v3501_v11 = vld [vmem:[%s3719_s8 + $0xb0] sm:$0xff]  ;;  %s2549_s22 = sand.u32 7, %s3711_s27  ;;  %s3283_s23 = smul.u32 48, %s2558_s20  ;;  %v3500_v63 = vld [vmem:[%s3719_s8 + $0xa8] sm:$0xff] }
 0x180   : > { %v3510_v21 = vld [vmem:[%s3719_s8 + $0xf8] sm:$0xff]  ;;  %3019 = vmatpush.bf16.msra.mxu2 %v3502_v62  ;;  %v3509_v59 = vld [vmem:[%s3719_s8 + $0xf0] sm:$0xff]  ;;  %s2561_s24 = sand.u32 7, %s2557_s19  ;;  %v3508_v3 = vld [vmem:[%s3719_s8 + $0xe8] sm:$0xff]  ;;  %s2552_s25 = sadd.s32 %s3282_s21, %s2549_s22 }
 0x181   : > { %3032 = vmatpush.bf16.msra.mxu3 %v3510_v21  ;;  %s2564_s28 = sadd.s32 %s3283_s23, %s2561_s24  ;;  %v3483_v24 = vld [vmem:[%s3719_s8 + $0x20] sm:$0xff]  ;;  %v3482_v32 = vld [vmem:[%s3719_s8 + $0x18] sm:$0xff]  ;;  %s2553_s6 = scalar_lea.vmem [#allocation2], %s2552_s25  ;;  %v3481_v55 = vld [vmem:[%s3719_s8 + $0x10] sm:$0xff] }
 0x182   : > { %2994 = vmatpush.bf16.msra.mxu0 %v3485_v61  ;;  %v3491_v45 = vld [vmem:[%s3719_s8 + $0x60] sm:$0xff]  ;;  %v3490_v25 = vld [vmem:[%s3719_s8 + $0x58] sm:$0xff]  ;;  %s2565_s29 = scalar_lea.vmem [#allocation2], %s2564_s28  ;;  %v3489_v38 = vld [vmem:[%s3719_s8 + $0x50] sm:$0xff]  ;;  %p3476_p5 = scmp.ne.s32.totalorder %s3711_s27, 7 }
 0x183   : > { %3007 = vmatpush.bf16.msra.mxu1 %v3493_v60  ;;  %v3499_v19 = vld [vmem:[%s3719_s8 + $0xa0] sm:$0xff]  ;;  %v3498_v6 = vld [vmem:[%s3719_s8 + $0x98] sm:$0xff]  ;;  %v3497_v7 = vld [vmem:[%s3719_s8 + $0x90] sm:$0xff] }
 0x184   : > { %3020 = vmatpush.bf16.msra.mxu2 %v3501_v11  ;;  %v3507_v42 = vld [vmem:[%s3719_s8 + $0xe0] sm:$0xff]  ;;  %v3506_v53 = vld [vmem:[%s3719_s8 + $0xd8] sm:$0xff]  ;;  %v3505_v5 = vld [vmem:[%s3719_s8 + $0xd0] sm:$0xff] }
 0x185   : > { %3033 = vmatpush.bf16.msra.mxu3 %v3509_v59  ;;  %v2554_v51 = vld [vmem:[%s2553_s6] ss:$8 sm:$0xf] }
 0x186   : > { %2995 = vmatpush.bf16.msra.mxu0 %v3484_v31  ;;  %v2555_v28 = vld [vmem:[%s2553_s6] ss:$8 sm:$0x30]  ;;  %v3518_v14 = vld [vmem:[%s3719_s8 + $0x138] sm:$0xff]  ;;  %v3517_v33 = vld [vmem:[%s3719_s8 + $0x130] sm:$0xff] }
 0x187   : > { %3008 = vmatpush.bf16.msra.mxu1 %v3492_v13  ;;  %v2566_v35 = vld [vmem:[%s2565_s29] ss:$8 sm:$0xf]  ;;  %v5689_v43 = vor.u32 %v2555_v28, %v2554_v51 }
 0x188   : > { %3021 = vmatpush.bf16.msra.mxu2 %v3500_v63  ;;  %v2567_v49 = vld [vmem:[%s2565_s29] ss:$8 sm:$0x30]  ;;  %v3526_v39 = vld [vmem:[%s3719_s8 + $0x178] sm:$0xff]  ;;  %v3525_v1 = vld [vmem:[%s3719_s8 + $0x170] sm:$0xff] }
 0x189   : > { %3034 = vmatpush.bf16.msra.mxu3 %v3508_v3  ;;  %v5691_v17 = vor.u32 %v2567_v49, %v2566_v35  ;;  %v3480_v52 = vld [vmem:[%s3719_s8 + $0x8] sm:$0xff]  ;;  %v2570_v27 = vperm.slane %v5689_v43, 0  ;;  %v2571_v23 = vperm.slane %v5689_v43, 1  ;;  %v2572_v18 = vperm.slane %v5689_v43, 2  ;;  %v3479_v48 = vld [vmem:[%s3719_s8] sm:$0xff]  ;;  %v3514_v16 = vld [vmem:[%s3719_s8 + $0x118] sm:$0xff] }
 0x18a   : > { %2996 = vmatpush.bf16.msra.mxu0 %v3483_v24  ;;  %v3488_v56 = vld [vmem:[%s3719_s8 + $0x48] sm:$0xff]  ;;  %v2573_v9 = vperm.slane %v5689_v43, 3  ;;  %v3487_v37 = vld [vmem:[%s3719_s8 + $0x40] sm:$0xff]  ;;  %v3522_v57 = vld [vmem:[%s3719_s8 + $0x158] sm:$0xff]  ;;  %v2574_v62 = vperm.slane %v5689_v43, 4  ;;  %v2575_v11 = vperm.slane %v5689_v43, 5 }
 0x18b   : > { %3009 = vmatpush.bf16.msra.mxu1 %v3491_v45  ;;  %v2583_v50 = vperm.slane %v5691_v17, 0  ;;  %v2584_v10 = vperm.slane %v5691_v17, 1  ;;  %v3496_v8 = vld [vmem:[%s3719_s8 + $0x88] sm:$0xff]  ;;  %v2585_v40 = vperm.slane %v5691_v17, 2  ;;  %v2586_v20 = vperm.slane %v5691_v17, 3  ;;  %v3495_v30 = vld [vmem:[%s3719_s8 + $0x80] sm:$0xff] }
 0x18c   : > { %3022 = vmatpush.bf16.msra.mxu2 %v3499_v19  ;;  %v3504_v26 = vld [vmem:[%s3719_s8 + $0xc8] sm:$0xff]  ;;  %v3503_v36 = vld [vmem:[%s3719_s8 + $0xc0] sm:$0xff]  ;;  %v3513_v47 = vld [vmem:[%s3719_s8 + $0x110] sm:$0xff]  ;;  %v2587_v21 = vperm.slane %v5691_v17, 4  ;;  %v2588_v59 = vperm.slane %v5691_v17, 5 }
 0x18d   : > { %3035 = vmatpush.bf16.msra.mxu3 %v3507_v42  ;;  %v2596_v29 = vsel %vm2595_vm0, %v2570_v27, %v2583_v50  ;;  %v2597_v22 = vsel %vm2595_vm0, %v2571_v23, %v2584_v10  ;;  %v2598_v34 = vsel %vm2595_vm0, %v2572_v18, %v2585_v40  ;;  %v2599_v15 = vsel %vm2595_vm0, %v2573_v9, %v2586_v20  ;;  %v3516_v41 = vld [vmem:[%s3719_s8 + $0x128] sm:$0xff]  ;;  %v3515_v4 = vld [vmem:[%s3719_s8 + $0x120] sm:$0xff]  ;;  %v3521_v58 = vld [vmem:[%s3719_s8 + $0x150] sm:$0xff] }
 0x18e   : > { %2997 = vmatpush.bf16.msra.mxu0 %v3482_v32  ;;  %v2603_v46 = vpack.c.bf16 %v2596_v29, %v2596_v29  ;;  %v2604_v44 = vpack.c.bf16 %v2597_v22, %v2597_v22  ;;  %v2605_v54 = vpack.c.bf16 %v2598_v34, %v2598_v34  ;;  %v2606_v12 = vpack.c.bf16 %v2599_v15, %v2599_v15  ;;  %v3524_v0 = vld [vmem:[%s3719_s8 + $0x168] sm:$0xff]  ;;  %v3523_v2 = vld [vmem:[%s3719_s8 + $0x160] sm:$0xff] }
 0x18f   : > { %3010 = vmatpush.bf16.msra.mxu1 %v3490_v25  ;;  %v3512_v61 = vld [vmem:[%s3719_s8 + $0x108] sm:$0xff]  ;;  %v3511_v31 = vld [vmem:[%s3719_s8 + $0x100] sm:$0xff]  ;;  %v2600_v63 = vsel %vm2595_vm0, %v2574_v62, %v2587_v21  ;;  %v2601_v3 = vsel %vm2595_vm0, %v2575_v11, %v2588_v59 }
 0x190   : > { %3023 = vmatpush.bf16.msra.mxu2 %v3498_v6  ;;  %v3520_v60 = vld [vmem:[%s3719_s8 + $0x148] sm:$0xff]  ;;  %v3519_v13 = vld [vmem:[%s3719_s8 + $0x140] sm:$0xff]  ;;  %v2607_v24 = vpack.c.bf16 %v2600_v63, %v2600_v63  ;;  %v2608_v45 = vpack.c.bf16 %v2601_v3, %v2601_v3 }
 0x191   : > { %3036 = vmatpush.bf16.msra.mxu3 %v3506_v53 }
 0x192   : > { %2998 = vmatpush.bf16.msra.mxu0 %v3481_v55 }
 0x193   : > { %3011 = vmatpush.bf16.msra.mxu1 %v3489_v38 }
 0x194   : > { %3024 = vmatpush.bf16.msra.mxu2 %v3497_v7  ;;  %v2602_v7 = vld [vmem:[#allocation3] sm:$0x3] }
 0x195   : > { %3037 = vmatpush.bf16.msra.mxu3 %v3505_v5 }
 0x196   : > { %2999 = vmatpush.bf16.msra.mxu0 %v3480_v52 }
 0x197   : > { %3012 = vmatpush.bf16.msra.mxu1 %v3488_v56 }
 0x198   : > { %3025 = vmatpush.bf16.msra.mxu2 %v3496_v8 }
 0x199   : > { %3038 = vmatpush.bf16.msra.mxu3 %v3504_v26 }
 0x19a   : > { %3000 = vmatpush.bf16.msra.mxu0 %v3479_v48 }
 0x19b   : > { %3013 = vmatpush.bf16.msra.mxu1 %v3487_v37 }
 0x19c   : > { %3026 = vmatpush.bf16.msra.mxu2 %v3495_v30 }
 0x19d   : > { %3039 = vmatpush.bf16.msra.mxu3 %v3503_v36  ;;  %3001 = vmatmul.bf16.vlgmr.msra.gmra.mxu0 %v2603_v46 }
 0x19e   : > { %3045 = vmatpush.bf16.msrb.mxu0 %v3518_v14  ;;  %3014 = vmatmul.bf16.vlgmr.msra.gmra.mxu1 %v2604_v44 }
 0x19f   : > { %3058 = vmatpush.bf16.msrb.mxu1 %v3526_v39  ;;  %3027 = vmatmul.bf16.vlgmr.msra.gmra.mxu2 %v2605_v54 }
 0x1a0   : > { %3040 = vmatmul.bf16.vlgmr.msra.gmra.mxu3 %v2606_v12 }
 0x1a2   : > { %3046 = vmatpush.bf16.msrb.mxu0 %v3517_v33 }
 0x1a3   : > { %3059 = vmatpush.bf16.msrb.mxu1 %v3525_v1 }
 0x1a6   : > { %3047 = vmatpush.bf16.msrb.mxu0 %v3516_v41 }
 0x1a7   : > { %3060 = vmatpush.bf16.msrb.mxu1 %v3524_v0 }
 0x1aa   : > { %3048 = vmatpush.bf16.msrb.mxu0 %v3515_v4 }
 0x1ab   : > { %3061 = vmatpush.bf16.msrb.mxu1 %v3523_v2 }
 0x1ae   : > { %3049 = vmatpush.bf16.msrb.mxu0 %v3514_v16 }
 0x1af   : > { %3062 = vmatpush.bf16.msrb.mxu1 %v3522_v57 }
 0x1b2   : > { %3050 = vmatpush.bf16.msrb.mxu0 %v3513_v47 }
 0x1b3   : > { %3063 = vmatpush.bf16.msrb.mxu1 %v3521_v58 }
 0x1b6   : > { %3051 = vmatpush.bf16.msrb.mxu0 %v3512_v61 }
 0x1b7   : > { %3064 = vmatpush.bf16.msrb.mxu1 %v3520_v60 }
 0x1ba   : > { %3052 = vmatpush.bf16.msrb.mxu0 %v3511_v31 }
 0x1bb   : > { %3065 = vmatpush.bf16.msrb.mxu1 %v3519_v13 }
 0x1bd   : > { %3053 = vmatmul.bf16.vlgmr.msrb.gmra.mxu0 %v2607_v24 }
 0x1be   : > { %3066 = vmatmul.bf16.vlgmr.msrb.gmra.mxu1 %v2608_v45 }
 0x21a   : > { %v3002_v19 = vpop.f32.mrf.mxu0 }
 0x21b   : > { %v3015_v42 = vpop.f32.mrf.mxu1 }
 0x21c   : > { %v3016_v6 = vadd.f32 %v3015_v42, %v3002_v19 }
 0x222   : > { %v3004_v32 = vpop.f32.mrf.mxu0  ;;  %v3028_v51 = vpop.f32.mrf.mxu2 }
 0x223   : > { %v3017_v25 = vpop.f32.mrf.mxu1  ;;  %v3041_v28 = vpop.f32.mrf.mxu3  ;;  %v3029_v53 = vadd.f32 %v3028_v51, %v3016_v6 }
 0x225   : > { %v3042_v55 = vadd.f32 %v3041_v28, %v3029_v53 }
 0x22a   : > { %v3030_v35 = vpop.f32.mrf.mxu2 }
 0x22b   : > { %v3043_v49 = vpop.f32.mrf.mxu3 }
 0x23a   : > { %v3054_v38 = vpop.f32.mrf.mxu0 }
 0x23b   : > { %v3067_v43 = vpop.f32.mrf.mxu1  ;;  %v3055_v17 = vadd.f32 %v3054_v38, %v3042_v55 }
 0x23d   : > { %v3068_v5 = vadd.f32 %v3067_v43, %v3055_v17 }
 0x23f   : > { %v3071_v52 = vadd.f32 %v3068_v5, %v2602_v7  ;;  %3076 = sbr.rel (%p3476_p5) target bundleno = 711 (0x2c7), region = 56 }
 0x241   : > { %3072 = vst [vmem:[#allocation3] sm:$0x3] %v3071_v52 }
 0x242   : > { %v3056_v56 = vpop.f32.mrf.mxu0 }
 0x243   : > { %v3069_v27 = vpop.f32.mrf.mxu1 }
 0x244   : > { %v3650_v23 = vld [vmem:[%s5754_s4] ss:$0 sm:$0xff]  ;;  %vm3089_vm1 = vcmask 1041408   ;;  %v3652_v9 = vld [vmem:[#allocation4] ss:$0 sm:$0xff]  ;;  %vm3098_vm2 = vcmask 1024  }
 0x245   : > { %v3651_v8 = vld [vmem:[%s5755_s5] ss:$0 sm:$0xff] }
 0x248   : > { %v3077_v50 = vld [vmem:[#allocation3] sm:$0x3] }
 0x249   : > { %v3082_v10 = vadd.f32 %v3650_v23, %v3077_v50 }
 0x24b   : > { %v3083_v26 = vmax.f32 %v3082_v10, 0.0 }
 0x24d   : > { %v3088_v18 = vmul.f32 %v3651_v8, %v3083_v26 }
 0x24f   : > { %v3090_v40 = vsel %vm3089_vm1, %v3088_v18, 0.0 }
 0x250   : > { %3091 = vadd.xlane.f32.xlu0 %v3090_v40 }
 0x2c3   : > { %v3092_v20 = vpop.xlane.xlu0 %3091 }
 0x2c4   : > { %v3097_v48 = vadd.f32 %v3652_v9, %v3092_v20 }
 0x2c6   : > { %3099 = vst.msk [vmem:[%s5757_s7] sm:$0x3] %vm3098_vm2, %v3097_v48 }
 0x2c7 PF: > { %s19_s26 = sadd.s32 1, %s3659_s26  }
 0x2c8   : > { %p16_p6 = scmp.ge.s32.totalorder %s19_s26, 10  }
 0x2ca   :  { %18 = sbr.rel (!%p16_p6) target bundleno = 3 (0x3), region = 155 }

</bundles_post_ra>
